<compile_context>
chip_gen: v7x
topology: tpu7x:2x2x1
jax: 0.10.0
libtpu: 0.0.40
codegen_flags: <defaults>
</compile_context>

<pallas_src>
import jax
import jax.numpy as jnp
from jax.experimental import pallas as pl
from jax.experimental.pallas import tpu as pltpu

IMG = 32                      # img_size (must be divisible by 2**4)
BATCH = 2
DS = IMG // 2 ** 4            # ds_size = 2
N_CLASSES = 10
CODE_DIM = 2
HEAD_DIM = 1 + N_CLASSES + CODE_DIM    # 13

# (Cin, Cout, Hin) per discriminator block; Hout = Hin // 2
_LAYERS = [(3, 16, 32), (16, 32, 16), (32, 64, 8), (64, 128, 4)]


# ----------------------------- Pallas kernel --------------------------------

def _conv_block(src_ref, wtmp_ref, w_ref, bst_ref, B, Ho, Wo, cin, cout):
    """3x3 stride-2 pad-1 conv + bias + LeakyReLU(0.2) + BN(eval) affine.

    src_ref : (B, 2*Ho+2, 2*Wo+2, cin) zero-padded NHWC activation (VMEM ref)
    wtmp_ref: (B, 2*Ho+2, Wo, cin) scratch used to de-interleave stride-2 cols
    w_ref   : (9, cin, cout) bf16 weights, tap-major ((kh*3+kw), cin, cout)
    bst_ref : (3, cout) f32 = [bias; bn_scale; bn_shift]
    returns : (B*Ho*Wo, cout) f32 activation, rows in (b, ho, wo) order.
    """
    M = B * Ho * Wo
    acc = None
    for kw in range(3):
        # de-interleave the stride-2 columns once per kw (sublane-strided read)
        wtmp_ref[...] = src_ref[:, :, pl.ds(kw, Wo, 2), :]
        for kh in range(3):
            # stride-2 rows (leading-dim strided read)
            tap = wtmp_ref[:, pl.ds(kh, Ho, 2), :, :]           # (B, Ho, Wo, cin)
            lhs = tap.reshape(M, cin).astype(jnp.bfloat16)      # MXU operand
            rhs = w_ref[kh * 3 + kw]                            # (cin, cout) bf16
            d = jnp.dot(lhs, rhs, preferred_element_type=jnp.float32)
            acc = d if acc is None else acc + d
    acc = acc + bst_ref[0:1, :]                                 # conv bias
    acc = jnp.where(acc >= 0, acc, 0.2 * acc)                   # LeakyReLU(0.2)
    # TODO(synk): Dropout2d(0.25) treated as identity (eval mode).
    acc = acc * bst_ref[1:2, :] + bst_ref[2:3, :]               # BN (eval) affine
    return acc


def _disc_kernel(x_ref, w0_ref, bst0_ref, w1_ref, bst1_ref, w2_ref, bst2_ref,
                 w3_ref, bst3_ref, wh_ref, bh_ref,
                 adv_ref, aux_ref, lat_ref,
                 xpad1, xpad2, xpad3, wt0, wt1, wt2, wt3):
    B = x_ref.shape[0]

    # ---- block 0: 3 -> 16, 32x32 -> 16x16 (no BN: scale=1, shift=0) ----
    y = _conv_block(x_ref, wt0, w0_ref, bst0_ref, B, 16, 16, 3, 16)
    xpad1[...] = jnp.zeros(xpad1.shape, jnp.float32)            # zero border
    xpad1[:, 1:17, 1:17, :] = y.reshape(B, 16, 16, 16)

    # ---- block 1: 16 -> 32, 16x16 -> 8x8 ----
    y = _conv_block(xpad1, wt1, w1_ref, bst1_ref, B, 8, 8, 16, 32)
    xpad2[...] = jnp.zeros(xpad2.shape, jnp.float32)
    xpad2[:, 1:9, 1:9, :] = y.reshape(B, 8, 8, 32)

    # ---- block 2: 32 -> 64, 8x8 -> 4x4 ----
    y = _conv_block(xpad2, wt2, w2_ref, bst2_ref, B, 4, 4, 32, 64)
    xpad3[...] = jnp.zeros(xpad3.shape, jnp.float32)
    xpad3[:, 1:5, 1:5, :] = y.reshape(B, 4, 4, 64)

    # ---- block 3: 64 -> 128, 4x4 -> 2x2 (features stay in VMEM) ----
    y = _conv_block(xpad3, wt3, w3_ref, bst3_ref, B, 2, 2, 64, 128)  # (B*4, 128)

    # ---- fused heads: single accumulated matmul over 4 spatial positions ----
    feat = y.reshape(B, DS * DS, 128)
    logits = None
    for s in range(DS * DS):
        lhs = feat[:, s, :].astype(jnp.bfloat16)                # (B, 128)
        d = jnp.dot(lhs, wh_ref[s], preferred_element_type=jnp.float32)
        logits = d if logits is None else logits + d
    logits = logits + bh_ref[...]                               # (B, 13)

    adv_ref[...] = logits[:, 0:1]                               # validity
    al = logits[:, 1:1 + N_CLASSES]                             # class logits
    m = jnp.max(al, axis=-1, keepdims=True)
    e = jnp.exp(al - m)                                         # f32 softmax
    aux_ref[...] = e / jnp.sum(e, axis=-1, keepdims=True)
    lat_ref[...] = logits[:, 1 + N_CLASSES:1 + N_CLASSES + CODE_DIM]


# ----------------------------- wrapper / glue --------------------------------

def _full_spec(shape):
    rank = len(shape)

    def idx_map(i):
        return (0,) * rank

    return pl.BlockSpec(shape, idx_map)


def discriminator_forward(img, kp):
    """img: (B, 3, 32, 32) NCHW float32; kp: kernel-ready params (prepare_params)."""
    B = img.shape[0]
    # one tiny boundary layout op: NCHW -> NHWC + zero-pad H/W by 1
    x = jnp.pad(jnp.transpose(img, (0, 2, 3, 1)),
                ((0, 0), (1, 1), (1, 1), (0, 0)))

    ins = (x, kp["w0"], kp["bst0"], kp["w1"], kp["bst1"], kp["w2"], kp["bst2"],
           kp["w3"], kp["bst3"], kp["wh"], kp["bh"])

    return pl.pallas_call(
        _disc_kernel,
        out_shape=(jax.ShapeDtypeStruct((B, 1), jnp.float32),
                   jax.ShapeDtypeStruct((B, N_CLASSES), jnp.float32),
                   jax.ShapeDtypeStruct((B, CODE_DIM), jnp.float32)),
        grid=(1,),
        in_specs=[_full_spec(a.shape) for a in ins],
        out_specs=(_full_spec((B, 1)),
                   _full_spec((B, N_CLASSES)),
                   _full_spec((B, CODE_DIM))),
        scratch_shapes=[
            pltpu.VMEM((B, 18, 18, 16), jnp.float32),   # padded act -> block 1
            pltpu.VMEM((B, 10, 10, 32), jnp.float32),   # padded act -> block 2
            pltpu.VMEM((B, 6, 6, 64), jnp.float32),     # padded act -> block 3
            pltpu.VMEM((B, 34, 16, 3), jnp.float32),    # column de-interleave
            pltpu.VMEM((B, 18, 8, 16), jnp.float32),
            pltpu.VMEM((B, 10, 4, 32), jnp.float32),
            pltpu.VMEM((B, 6, 2, 64), jnp.float32),
        ],
        compiler_params=pltpu.CompilerParams(dimension_semantics=("arbitrary",)),
    )(*ins)


def prepare_params(params):
    """One-time transform of torch-layout params into kernel-ready layouts."""
    kp = {}
    for idx in range(4):
        p = params[f"conv{idx}"]
        cout, cin = p["w"].shape[0], p["w"].shape[1]
        # (Cout, Cin, kh, kw) -> (kh, kw, Cin, Cout) -> (9, Cin, Cout), bf16 MXU operand
        kp[f"w{idx}"] = (jnp.transpose(p["w"], (2, 3, 1, 0))
                         .reshape(9, cin, cout).astype(jnp.bfloat16))
        kp[f"bst{idx}"] = jnp.stack([p["b"], p["scale"], p["shift"]]).astype(jnp.float32)

    # heads: concat adv|aux|lat along the output dim; permute rows from the
    # torch NCHW-flatten feature order (c*4 + h*2 + w) to the kernel's NHWC
    # flatten order ((h*2 + w)*128 + c), then split by spatial position.
    w_t = jnp.concatenate([params["adv"]["w"], params["aux"]["w"],
                           params["lat"]["w"]], axis=1)          # (512, 13)
    feat = w_t.shape[0]
    f = jnp.arange(feat)
    perm = (f % 128) * (DS * DS) + f // 128
    kp["wh"] = w_t[perm, :].reshape(DS * DS, 128, HEAD_DIM).astype(jnp.bfloat16)
    kp["bh"] = jnp.concatenate([params["adv"]["b"], params["aux"]["b"],
                                params["lat"]["b"]], axis=1).astype(jnp.float32)
    return kp


# ----------------------------- param init ------------------------------------

def init_params(key):
    params = {}
    blocks = [(3, 16, False), (16, 32, True), (32, 64, True), (64, 128, True)]
    eps = 0.8  # BatchNorm2d(out_filters, 0.8) -> second positional arg is eps
    for idx, (cin, cout, bn) in enumerate(blocks):
        key, k1, k2, k3, k4 = jax.random.split(key, 5)
        w = jax.random.normal(k1, (cout, cin, 3, 3), jnp.float32) * 0.05
        b = jax.random.normal(k2, (cout,), jnp.float32) * 0.05
        if bn:
            gamma = 1.0 + 0.1 * jax.random.normal(k3, (cout,), jnp.float32)
            beta = 0.1 * jax.random.normal(k4, (cout,), jnp.float32)
            running_mean = jnp.zeros((cout,), jnp.float32)
            running_var = jnp.ones((cout,), jnp.float32)
            scale = gamma / jnp.sqrt(running_var + eps)
            shift = beta - running_mean * scale
        else:
            scale = jnp.ones((cout,), jnp.float32)
            shift = jnp.zeros((cout,), jnp.float32)
        params[f"conv{idx}"] = dict(w=w, b=b, scale=scale, shift=shift)

    feat = 128 * DS * DS
    for name, out_dim in (("adv", 1), ("aux", N_CLASSES), ("lat", CODE_DIM)):
        key, k1, k2 = jax.random.split(key, 3)
        params[name] = dict(
            w=jax.random.normal(k1, (feat, out_dim), jnp.float32) * 0.05,
            b=jax.random.normal(k2, (1, out_dim), jnp.float32) * 0.05)
    return params


# ----------------------------- pure-JAX reference ----------------------------

def reference_forward(img, params):
    hi = jax.lax.Precision.HIGHEST
    x = img
    for idx in range(4):
        p = params[f"conv{idx}"]
        x = jax.lax.conv_general_dilated(
            x, p["w"], window_strides=(2, 2), padding=((1, 1), (1, 1)),
            dimension_numbers=("NCHW", "OIHW", "NCHW"), precision=hi)
        x = x + p["b"].reshape(1, -1, 1, 1)
        x = jnp.where(x >= 0, x, 0.2 * x)
        x = x * p["scale"].reshape(1, -1, 1, 1) + p["shift"].reshape(1, -1, 1, 1)
    feat = x.reshape(x.shape[0], -1)
    validity = jnp.dot(feat, params["adv"]["w"], precision=hi) + params["adv"]["b"]
    logits = jnp.dot(feat, params["aux"]["w"], precision=hi) + params["aux"]["b"]
    label = jax.nn.softmax(logits, axis=-1)
    latent = jnp.dot(feat, params["lat"]["w"], precision=hi) + params["lat"]["b"]
    return validity, label, latent


# --------------------------------- main ---------------------------------------

if __name__ == "__main__":
    key = jax.random.PRNGKey(0)
    pkey, xkey = jax.random.split(key)
    params = init_params(pkey)
    kparams = prepare_params(params)          # one-time weight layout transform
    img = jax.random.normal(xkey, (BATCH, 3, IMG, IMG), jnp.float32)

    fwd = jax.jit(discriminator_forward)
    validity, label, latent_code = fwd(img, kparams)
    jax.block_until_ready((validity, label, latent_code))

    assert validity.shape == (BATCH, 1)
    assert label.shape == (BATCH, N_CLASSES)
    assert latent_code.shape == (BATCH, CODE_DIM)
    assert bool(jnp.allclose(jnp.sum(label, axis=-1), 1.0, atol=1e-5))

    # numerical check against the f32 XLA reference (kernel matmuls run in
    # bf16 with f32 accumulation, hence the loose tolerance).
    v_ref, l_ref, c_ref = reference_forward(img, params)
    assert float(jnp.max(jnp.abs(validity - v_ref))) < 5e-3
    assert float(jnp.max(jnp.abs(label - l_ref))) < 5e-3
    assert float(jnp.max(jnp.abs(latent_code - c_ref))) < 5e-3

    print("KERNEL_OK")
</pallas_src>

<mosaic_0001>
module attributes {stable_mosaic.version = 11 : i64} {
  func.func @_disc_kernel(%arg0: i32, %arg1: memref<2x34x34x3xf32, #tpu.memory_space<vmem>>, %arg2: memref<9x3x16xbf16, #tpu.memory_space<vmem>>, %arg3: memref<3x16xf32, #tpu.memory_space<vmem>>, %arg4: memref<9x16x32xbf16, #tpu.memory_space<vmem>>, %arg5: memref<3x32xf32, #tpu.memory_space<vmem>>, %arg6: memref<9x32x64xbf16, #tpu.memory_space<vmem>>, %arg7: memref<3x64xf32, #tpu.memory_space<vmem>>, %arg8: memref<9x64x128xbf16, #tpu.memory_space<vmem>>, %arg9: memref<3x128xf32, #tpu.memory_space<vmem>>, %arg10: memref<4x128x13xbf16, #tpu.memory_space<vmem>>, %arg11: memref<1x13xf32, #tpu.memory_space<vmem>>, %arg12: memref<2x1xf32, #tpu.memory_space<vmem>>, %arg13: memref<2x10xf32, #tpu.memory_space<vmem>>, %arg14: memref<2x2xf32, #tpu.memory_space<vmem>>, %arg15: memref<2x18x18x16xf32, #tpu.memory_space<vmem>>, %arg16: memref<2x10x10x32xf32, #tpu.memory_space<vmem>>, %arg17: memref<2x6x6x64xf32, #tpu.memory_space<vmem>>, %arg18: memref<2x34x16x3xf32, #tpu.memory_space<vmem>>, %arg19: memref<2x18x8x16xf32, #tpu.memory_space<vmem>>, %arg20: memref<2x10x4x32xf32, #tpu.memory_space<vmem>>, %arg21: memref<2x6x2x64xf32, #tpu.memory_space<vmem>>) attributes {dimension_semantics = [#tpu.dimension_semantics<arbitrary>], iteration_bounds = array<i64: 1>, scalar_prefetch = 0 : i64, scratch_operands = 7 : i64, tpu.core_type = #tpu.core_type<tc>, window_params = [{pipeline_mode = #tpu.pipeline_mode<synchronous>, transform_indices = @transform_0, window_bounds = array<i64: 2, 34, 34, 3>}, {pipeline_mode = #tpu.pipeline_mode<synchronous>, transform_indices = @transform_1, window_bounds = array<i64: 9, 3, 16>}, {pipeline_mode = #tpu.pipeline_mode<synchronous>, transform_indices = @transform_2, window_bounds = array<i64: 3, 16>}, {pipeline_mode = #tpu.pipeline_mode<synchronous>, transform_indices = @transform_3, window_bounds = array<i64: 9, 16, 32>}, {pipeline_mode = #tpu.pipeline_mode<synchronous>, transform_indices = @transform_4, window_bounds = array<i64: 3, 32>}, {pipeline_mode = #tpu.pipeline_mode<synchronous>, transform_indices = @transform_5, window_bounds = array<i64: 9, 32, 64>}, {pipeline_mode = #tpu.pipeline_mode<synchronous>, transform_indices = @transform_6, window_bounds = array<i64: 3, 64>}, {pipeline_mode = #tpu.pipeline_mode<synchronous>, transform_indices = @transform_7, window_bounds = array<i64: 9, 64, 128>}, {pipeline_mode = #tpu.pipeline_mode<synchronous>, transform_indices = @transform_8, window_bounds = array<i64: 3, 128>}, {pipeline_mode = #tpu.pipeline_mode<synchronous>, transform_indices = @transform_9, window_bounds = array<i64: 4, 128, 13>}, {pipeline_mode = #tpu.pipeline_mode<synchronous>, transform_indices = @transform_10, window_bounds = array<i64: 1, 13>}, {pipeline_mode = #tpu.pipeline_mode<synchronous>, transform_indices = @transform_11, window_bounds = array<i64: 2, 1>}, {pipeline_mode = #tpu.pipeline_mode<synchronous>, transform_indices = @transform_12, window_bounds = array<i64: 2, 10>}, {pipeline_mode = #tpu.pipeline_mode<synchronous>, transform_indices = @transform_13, window_bounds = array<i64: 2, 2>}]} {
    %c0 = arith.constant 0 : index
    %c0_0 = arith.constant 0 : index
    %c0_1 = arith.constant 0 : index
    %c0_2 = arith.constant 0 : index
    %0 = tpu.strided_load %arg1[%c0, %c0_0, %c0_1, %c0_2] {strides = array<i32: 1, 1, 2, 1>} : memref<2x34x34x3xf32, #tpu.memory_space<vmem>>, vector<2x34x16x3xf32>
    %c0_3 = arith.constant 0 : index
    %c0_4 = arith.constant 0 : index
    %c0_5 = arith.constant 0 : index
    %c0_6 = arith.constant 0 : index
    %1 = vector.load %arg18[%c0_3, %c0_4, %c0_5, %c0_6] : memref<2x34x16x3xf32, #tpu.memory_space<vmem>>, vector<2x34x16x3xf32>
    tpu.vector_store %arg18[%c0_3, %c0_4, %c0_5, %c0_6], %0 {strides = array<i32>} : memref<2x34x16x3xf32, #tpu.memory_space<vmem>>, vector<2x34x16x3xf32>,
    %c0_7 = arith.constant 0 : index
    %c0_8 = arith.constant 0 : index
    %c0_9 = arith.constant 0 : index
    %c0_10 = arith.constant 0 : index
    %2 = tpu.strided_load %arg18[%c0_7, %c0_8, %c0_9, %c0_10] {strides = array<i32: 1, 2, 1, 1>} : memref<2x34x16x3xf32, #tpu.memory_space<vmem>>, vector<2x16x16x3xf32>
    %3 = vector.shape_cast %2 : vector<2x16x16x3xf32> to vector<512x3xf32>
    %4 = arith.truncf %3 : vector<512x3xf32> to vector<512x3xbf16>
    %c0_11 = arith.constant 0 : index
    %c0_12 = arith.constant 0 : index
    %c0_13 = arith.constant 0 : index
    %5 = vector.load %arg2[%c0_11, %c0_12, %c0_13] : memref<9x3x16xbf16, #tpu.memory_space<vmem>>, vector<1x3x16xbf16>
    %6 = vector.shape_cast %5 : vector<1x3x16xbf16> to vector<3x16xbf16>
    %cst = arith.constant dense<0.000000e+00> : vector<512x16xf32>
    %7 = tpu.matmul %4, %6, %cst {dimension_numbers = #tpu.dot_dimension_numbers<[1], [0], [0], [1], [0, 0, 1, 1], [], []>} : vector<512x3xbf16>, vector<3x16xbf16>, vector<512x16xf32> -> vector<512x16xf32>
    %c0_14 = arith.constant 0 : index
    %c1 = arith.constant 1 : index
    %c0_15 = arith.constant 0 : index
    %c0_16 = arith.constant 0 : index
    %8 = tpu.strided_load %arg18[%c0_14, %c1, %c0_15, %c0_16] {strides = array<i32: 1, 2, 1, 1>} : memref<2x34x16x3xf32, #tpu.memory_space<vmem>>, vector<2x16x16x3xf32>
    %9 = vector.shape_cast %8 : vector<2x16x16x3xf32> to vector<512x3xf32>
    %10 = arith.truncf %9 : vector<512x3xf32> to vector<512x3xbf16>
    %c3 = arith.constant 3 : index
    %c0_17 = arith.constant 0 : index
    %c0_18 = arith.constant 0 : index
    %11 = vector.load %arg2[%c3, %c0_17, %c0_18] : memref<9x3x16xbf16, #tpu.memory_space<vmem>>, vector<1x3x16xbf16>
    %12 = vector.shape_cast %11 : vector<1x3x16xbf16> to vector<3x16xbf16>
    %cst_19 = arith.constant dense<0.000000e+00> : vector<512x16xf32>
    %13 = tpu.matmul %10, %12, %cst_19 {dimension_numbers = #tpu.dot_dimension_numbers<[1], [0], [0], [1], [0, 0, 1, 1], [], []>} : vector<512x3xbf16>, vector<3x16xbf16>, vector<512x16xf32> -> vector<512x16xf32>
    %14 = arith.addf %7, %13 : vector<512x16xf32>
    %c0_20 = arith.constant 0 : index
    %c2 = arith.constant 2 : index
    %c0_21 = arith.constant 0 : index
    %c0_22 = arith.constant 0 : index
    %15 = tpu.strided_load %arg18[%c0_20, %c2, %c0_21, %c0_22] {strides = array<i32: 1, 2, 1, 1>} : memref<2x34x16x3xf32, #tpu.memory_space<vmem>>, vector<2x16x16x3xf32>
    %16 = vector.shape_cast %15 : vector<2x16x16x3xf32> to vector<512x3xf32>
    %17 = arith.truncf %16 : vector<512x3xf32> to vector<512x3xbf16>
    %c6 = arith.constant 6 : index
    %c0_23 = arith.constant 0 : index
    %c0_24 = arith.constant 0 : index
    %18 = vector.load %arg2[%c6, %c0_23, %c0_24] : memref<9x3x16xbf16, #tpu.memory_space<vmem>>, vector<1x3x16xbf16>
    %19 = vector.shape_cast %18 : vector<1x3x16xbf16> to vector<3x16xbf16>
    %cst_25 = arith.constant dense<0.000000e+00> : vector<512x16xf32>
    %20 = tpu.matmul %17, %19, %cst_25 {dimension_numbers = #tpu.dot_dimension_numbers<[1], [0], [0], [1], [0, 0, 1, 1], [], []>} : vector<512x3xbf16>, vector<3x16xbf16>, vector<512x16xf32> -> vector<512x16xf32>
    %21 = arith.addf %14, %20 : vector<512x16xf32>
    %c0_26 = arith.constant 0 : index
    %c0_27 = arith.constant 0 : index
    %c1_28 = arith.constant 1 : index
    %c0_29 = arith.constant 0 : index
    %22 = tpu.strided_load %arg1[%c0_26, %c0_27, %c1_28, %c0_29] {strides = array<i32: 1, 1, 2, 1>} : memref<2x34x34x3xf32, #tpu.memory_space<vmem>>, vector<2x34x16x3xf32>
    %c0_30 = arith.constant 0 : index
    %c0_31 = arith.constant 0 : index
    %c0_32 = arith.constant 0 : index
    %c0_33 = arith.constant 0 : index
    %23 = vector.load %arg18[%c0_30, %c0_31, %c0_32, %c0_33] : memref<2x34x16x3xf32, #tpu.memory_space<vmem>>, vector<2x34x16x3xf32>
    tpu.vector_store %arg18[%c0_30, %c0_31, %c0_32, %c0_33], %22 {strides = array<i32>} : memref<2x34x16x3xf32, #tpu.memory_space<vmem>>, vector<2x34x16x3xf32>,
    %c0_34 = arith.constant 0 : index
    %c0_35 = arith.constant 0 : index
    %c0_36 = arith.constant 0 : index
    %c0_37 = arith.constant 0 : index
    %24 = tpu.strided_load %arg18[%c0_34, %c0_35, %c0_36, %c0_37] {strides = array<i32: 1, 2, 1, 1>} : memref<2x34x16x3xf32, #tpu.memory_space<vmem>>, vector<2x16x16x3xf32>
    %25 = vector.shape_cast %24 : vector<2x16x16x3xf32> to vector<512x3xf32>
    %26 = arith.truncf %25 : vector<512x3xf32> to vector<512x3xbf16>
    %c1_38 = arith.constant 1 : index
    %c0_39 = arith.constant 0 : index
    %c0_40 = arith.constant 0 : index
    %27 = vector.load %arg2[%c1_38, %c0_39, %c0_40] : memref<9x3x16xbf16, #tpu.memory_space<vmem>>, vector<1x3x16xbf16>
    %28 = vector.shape_cast %27 : vector<1x3x16xbf16> to vector<3x16xbf16>
    %cst_41 = arith.constant dense<0.000000e+00> : vector<512x16xf32>
    %29 = tpu.matmul %26, %28, %cst_41 {dimension_numbers = #tpu.dot_dimension_numbers<[1], [0], [0], [1], [0, 0, 1, 1], [], []>} : vector<512x3xbf16>, vector<3x16xbf16>, vector<512x16xf32> -> vector<512x16xf32>
    %30 = arith.addf %21, %29 : vector<512x16xf32>
    %c0_42 = arith.constant 0 : index
    %c1_43 = arith.constant 1 : index
    %c0_44 = arith.constant 0 : index
    %c0_45 = arith.constant 0 : index
    %31 = tpu.strided_load %arg18[%c0_42, %c1_43, %c0_44, %c0_45] {strides = array<i32: 1, 2, 1, 1>} : memref<2x34x16x3xf32, #tpu.memory_space<vmem>>, vector<2x16x16x3xf32>
    %32 = vector.shape_cast %31 : vector<2x16x16x3xf32> to vector<512x3xf32>
    %33 = arith.truncf %32 : vector<512x3xf32> to vector<512x3xbf16>
    %c4 = arith.constant 4 : index
    %c0_46 = arith.constant 0 : index
    %c0_47 = arith.constant 0 : index
    %34 = vector.load %arg2[%c4, %c0_46, %c0_47] : memref<9x3x16xbf16, #tpu.memory_space<vmem>>, vector<1x3x16xbf16>
    %35 = vector.shape_cast %34 : vector<1x3x16xbf16> to vector<3x16xbf16>
    %cst_48 = arith.constant dense<0.000000e+00> : vector<512x16xf32>
    %36 = tpu.matmul %33, %35, %cst_48 {dimension_numbers = #tpu.dot_dimension_numbers<[1], [0], [0], [1], [0, 0, 1, 1], [], []>} : vector<512x3xbf16>, vector<3x16xbf16>, vector<512x16xf32> -> vector<512x16xf32>
    %37 = arith.addf %30, %36 : vector<512x16xf32>
    %c0_49 = arith.constant 0 : index
    %c2_50 = arith.constant 2 : index
    %c0_51 = arith.constant 0 : index
    %c0_52 = arith.constant 0 : index
    %38 = tpu.strided_load %arg18[%c0_49, %c2_50, %c0_51, %c0_52] {strides = array<i32: 1, 2, 1, 1>} : memref<2x34x16x3xf32, #tpu.memory_space<vmem>>, vector<2x16x16x3xf32>
    %39 = vector.shape_cast %38 : vector<2x16x16x3xf32> to vector<512x3xf32>
    %40 = arith.truncf %39 : vector<512x3xf32> to vector<512x3xbf16>
    %c7 = arith.constant 7 : index
    %c0_53 = arith.constant 0 : index
    %c0_54 = arith.constant 0 : index
    %41 = vector.load %arg2[%c7, %c0_53, %c0_54] : memref<9x3x16xbf16, #tpu.memory_space<vmem>>, vector<1x3x16xbf16>
    %42 = vector.shape_cast %41 : vector<1x3x16xbf16> to vector<3x16xbf16>
    %cst_55 = arith.constant dense<0.000000e+00> : vector<512x16xf32>
    %43 = tpu.matmul %40, %42, %cst_55 {dimension_numbers = #tpu.dot_dimension_numbers<[1], [0], [0], [1], [0, 0, 1, 1], [], []>} : vector<512x3xbf16>, vector<3x16xbf16>, vector<512x16xf32> -> vector<512x16xf32>
    %44 = arith.addf %37, %43 : vector<512x16xf32>
    %c0_56 = arith.constant 0 : index
    %c0_57 = arith.constant 0 : index
    %c2_58 = arith.constant 2 : index
    %c0_59 = arith.constant 0 : index
    %45 = tpu.strided_load %arg1[%c0_56, %c0_57, %c2_58, %c0_59] {strides = array<i32: 1, 1, 2, 1>} : memref<2x34x34x3xf32, #tpu.memory_space<vmem>>, vector<2x34x16x3xf32>
    %c0_60 = arith.constant 0 : index
    %c0_61 = arith.constant 0 : index
    %c0_62 = arith.constant 0 : index
    %c0_63 = arith.constant 0 : index
    %46 = vector.load %arg18[%c0_60, %c0_61, %c0_62, %c0_63] : memref<2x34x16x3xf32, #tpu.memory_space<vmem>>, vector<2x34x16x3xf32>
    tpu.vector_store %arg18[%c0_60, %c0_61, %c0_62, %c0_63], %45 {strides = array<i32>} : memref<2x34x16x3xf32, #tpu.memory_space<vmem>>, vector<2x34x16x3xf32>,
    %c0_64 = arith.constant 0 : index
    %c0_65 = arith.constant 0 : index
    %c0_66 = arith.constant 0 : index
    %c0_67 = arith.constant 0 : index
    %47 = tpu.strided_load %arg18[%c0_64, %c0_65, %c0_66, %c0_67] {strides = array<i32: 1, 2, 1, 1>} : memref<2x34x16x3xf32, #tpu.memory_space<vmem>>, vector<2x16x16x3xf32>
    %48 = vector.shape_cast %47 : vector<2x16x16x3xf32> to vector<512x3xf32>
    %49 = arith.truncf %48 : vector<512x3xf32> to vector<512x3xbf16>
    %c2_68 = arith.constant 2 : index
    %c0_69 = arith.constant 0 : index
    %c0_70 = arith.constant 0 : index
    %50 = vector.load %arg2[%c2_68, %c0_69, %c0_70] : memref<9x3x16xbf16, #tpu.memory_space<vmem>>, vector<1x3x16xbf16>
    %51 = vector.shape_cast %50 : vector<1x3x16xbf16> to vector<3x16xbf16>
    %cst_71 = arith.constant dense<0.000000e+00> : vector<512x16xf32>
    %52 = tpu.matmul %49, %51, %cst_71 {dimension_numbers = #tpu.dot_dimension_numbers<[1], [0], [0], [1], [0, 0, 1, 1], [], []>} : vector<512x3xbf16>, vector<3x16xbf16>, vector<512x16xf32> -> vector<512x16xf32>
    %53 = arith.addf %44, %52 : vector<512x16xf32>
    %c0_72 = arith.constant 0 : index
    %c1_73 = arith.constant 1 : index
    %c0_74 = arith.constant 0 : index
    %c0_75 = arith.constant 0 : index
    %54 = tpu.strided_load %arg18[%c0_72, %c1_73, %c0_74, %c0_75] {strides = array<i32: 1, 2, 1, 1>} : memref<2x34x16x3xf32, #tpu.memory_space<vmem>>, vector<2x16x16x3xf32>
    %55 = vector.shape_cast %54 : vector<2x16x16x3xf32> to vector<512x3xf32>
    %56 = arith.truncf %55 : vector<512x3xf32> to vector<512x3xbf16>
    %c5 = arith.constant 5 : index
    %c0_76 = arith.constant 0 : index
    %c0_77 = arith.constant 0 : index
    %57 = vector.load %arg2[%c5, %c0_76, %c0_77] : memref<9x3x16xbf16, #tpu.memory_space<vmem>>, vector<1x3x16xbf16>
    %58 = vector.shape_cast %57 : vector<1x3x16xbf16> to vector<3x16xbf16>
    %cst_78 = arith.constant dense<0.000000e+00> : vector<512x16xf32>
    %59 = tpu.matmul %56, %58, %cst_78 {dimension_numbers = #tpu.dot_dimension_numbers<[1], [0], [0], [1], [0, 0, 1, 1], [], []>} : vector<512x3xbf16>, vector<3x16xbf16>, vector<512x16xf32> -> vector<512x16xf32>
    %60 = arith.addf %53, %59 : vector<512x16xf32>
    %c0_79 = arith.constant 0 : index
    %c2_80 = arith.constant 2 : index
    %c0_81 = arith.constant 0 : index
    %c0_82 = arith.constant 0 : index
    %61 = tpu.strided_load %arg18[%c0_79, %c2_80, %c0_81, %c0_82] {strides = array<i32: 1, 2, 1, 1>} : memref<2x34x16x3xf32, #tpu.memory_space<vmem>>, vector<2x16x16x3xf32>
    %62 = vector.shape_cast %61 : vector<2x16x16x3xf32> to vector<512x3xf32>
    %63 = arith.truncf %62 : vector<512x3xf32> to vector<512x3xbf16>
    %c8 = arith.constant 8 : index
    %c0_83 = arith.constant 0 : index
    %c0_84 = arith.constant 0 : index
    %64 = vector.load %arg2[%c8, %c0_83, %c0_84] : memref<9x3x16xbf16, #tpu.memory_space<vmem>>, vector<1x3x16xbf16>
    %65 = vector.shape_cast %64 : vector<1x3x16xbf16> to vector<3x16xbf16>
    %cst_85 = arith.constant dense<0.000000e+00> : vector<512x16xf32>
    %66 = tpu.matmul %63, %65, %cst_85 {dimension_numbers = #tpu.dot_dimension_numbers<[1], [0], [0], [1], [0, 0, 1, 1], [], []>} : vector<512x3xbf16>, vector<3x16xbf16>, vector<512x16xf32> -> vector<512x16xf32>
    %67 = arith.addf %60, %66 : vector<512x16xf32>
    %c0_86 = arith.constant 0 : index
    %c0_87 = arith.constant 0 : index
    %68 = vector.load %arg3[%c0_86, %c0_87] : memref<3x16xf32, #tpu.memory_space<vmem>>, vector<1x16xf32>
    %69 = vector.broadcast %68 : vector<1x16xf32> to vector<512x16xf32>
    %70 = arith.addf %67, %69 : vector<512x16xf32>
    %cst_88 = arith.constant 0.000000e+00 : f32
    %71 = vector.broadcast %cst_88 : f32 to vector<512x16xf32>
    %72 = arith.cmpf oge, %70, %71 : vector<512x16xf32>
    %cst_89 = arith.constant 2.000000e-01 : f32
    %73 = vector.broadcast %cst_89 : f32 to vector<512x16xf32>
    %74 = arith.mulf %73, %70 : vector<512x16xf32>
    %75 = arith.select %72, %70, %74 : vector<512x16xi1>, vector<512x16xf32>
    %c1_90 = arith.constant 1 : index
    %c0_91 = arith.constant 0 : index
    %76 = vector.load %arg3[%c1_90, %c0_91] : memref<3x16xf32, #tpu.memory_space<vmem>>, vector<1x16xf32>
    %77 = vector.broadcast %76 : vector<1x16xf32> to vector<512x16xf32>
    %78 = arith.mulf %75, %77 : vector<512x16xf32>
    %c2_92 = arith.constant 2 : index
    %c0_93 = arith.constant 0 : index
    %79 = vector.load %arg3[%c2_92, %c0_93] : memref<3x16xf32, #tpu.memory_space<vmem>>, vector<1x16xf32>
    %80 = vector.broadcast %79 : vector<1x16xf32> to vector<512x16xf32>
    %81 = arith.addf %78, %80 : vector<512x16xf32>
    %cst_94 = arith.constant 0.000000e+00 : f32
    %82 = vector.broadcast %cst_94 : f32 to vector<2x18x18x16xf32>
    %c0_95 = arith.constant 0 : index
    %c0_96 = arith.constant 0 : index
    %c0_97 = arith.constant 0 : index
    %c0_98 = arith.constant 0 : index
    %83 = vector.load %arg15[%c0_95, %c0_96, %c0_97, %c0_98] : memref<2x18x18x16xf32, #tpu.memory_space<vmem>>, vector<2x18x18x16xf32>
    tpu.vector_store %arg15[%c0_95, %c0_96, %c0_97, %c0_98], %82 {strides = array<i32>} : memref<2x18x18x16xf32, #tpu.memory_space<vmem>>, vector<2x18x18x16xf32>,
    %84 = vector.shape_cast %81 : vector<512x16xf32> to vector<2x16x16x16xf32>
    %c0_99 = arith.constant 0 : index
    %c1_100 = arith.constant 1 : index
    %c1_101 = arith.constant 1 : index
    %c0_102 = arith.constant 0 : index
    %85 = vector.load %arg15[%c0_99, %c1_100, %c1_101, %c0_102] : memref<2x18x18x16xf32, #tpu.memory_space<vmem>>, vector<2x16x16x16xf32>
    tpu.vector_store %arg15[%c0_99, %c1_100, %c1_101, %c0_102], %84 {strides = array<i32>} : memref<2x18x18x16xf32, #tpu.memory_space<vmem>>, vector<2x16x16x16xf32>,
    %c0_103 = arith.constant 0 : index
    %c0_104 = arith.constant 0 : index
    %c0_105 = arith.constant 0 : index
    %c0_106 = arith.constant 0 : index
    %86 = tpu.strided_load %arg15[%c0_103, %c0_104, %c0_105, %c0_106] {strides = array<i32: 1, 1, 2, 1>} : memref<2x18x18x16xf32, #tpu.memory_space<vmem>>, vector<2x18x8x16xf32>
    %c0_107 = arith.constant 0 : index
    %c0_108 = arith.constant 0 : index
    %c0_109 = arith.constant 0 : index
    %c0_110 = arith.constant 0 : index
    %87 = vector.load %arg19[%c0_107, %c0_108, %c0_109, %c0_110] : memref<2x18x8x16xf32, #tpu.memory_space<vmem>>, vector<2x18x8x16xf32>
    tpu.vector_store %arg19[%c0_107, %c0_108, %c0_109, %c0_110], %86 {strides = array<i32>} : memref<2x18x8x16xf32, #tpu.memory_space<vmem>>, vector<2x18x8x16xf32>,
    %c0_111 = arith.constant 0 : index
    %c0_112 = arith.constant 0 : index
    %c0_113 = arith.constant 0 : index
    %c0_114 = arith.constant 0 : index
    %88 = tpu.strided_load %arg19[%c0_111, %c0_112, %c0_113, %c0_114] {strides = array<i32: 1, 2, 1, 1>} : memref<2x18x8x16xf32, #tpu.memory_space<vmem>>, vector<2x8x8x16xf32>
    %89 = vector.shape_cast %88 : vector<2x8x8x16xf32> to vector<128x16xf32>
    %90 = arith.truncf %89 : vector<128x16xf32> to vector<128x16xbf16>
    %c0_115 = arith.constant 0 : index
    %c0_116 = arith.constant 0 : index
    %c0_117 = arith.constant 0 : index
    %91 = vector.load %arg4[%c0_115, %c0_116, %c0_117] : memref<9x16x32xbf16, #tpu.memory_space<vmem>>, vector<1x16x32xbf16>
    %92 = vector.shape_cast %91 : vector<1x16x32xbf16> to vector<16x32xbf16>
    %cst_118 = arith.constant dense<0.000000e+00> : vector<128x32xf32>
    %93 = tpu.matmul %90, %92, %cst_118 {dimension_numbers = #tpu.dot_dimension_numbers<[1], [0], [0], [1], [0, 0, 1, 1], [], []>} : vector<128x16xbf16>, vector<16x32xbf16>, vector<128x32xf32> -> vector<128x32xf32>
    %c0_119 = arith.constant 0 : index
    %c1_120 = arith.constant 1 : index
    %c0_121 = arith.constant 0 : index
    %c0_122 = arith.constant 0 : index
    %94 = tpu.strided_load %arg19[%c0_119, %c1_120, %c0_121, %c0_122] {strides = array<i32: 1, 2, 1, 1>} : memref<2x18x8x16xf32, #tpu.memory_space<vmem>>, vector<2x8x8x16xf32>
    %95 = vector.shape_cast %94 : vector<2x8x8x16xf32> to vector<128x16xf32>
    %96 = arith.truncf %95 : vector<128x16xf32> to vector<128x16xbf16>
    %c3_123 = arith.constant 3 : index
    %c0_124 = arith.constant 0 : index
    %c0_125 = arith.constant 0 : index
    %97 = vector.load %arg4[%c3_123, %c0_124, %c0_125] : memref<9x16x32xbf16, #tpu.memory_space<vmem>>, vector<1x16x32xbf16>
    %98 = vector.shape_cast %97 : vector<1x16x32xbf16> to vector<16x32xbf16>
    %cst_126 = arith.constant dense<0.000000e+00> : vector<128x32xf32>
    %99 = tpu.matmul %96, %98, %cst_126 {dimension_numbers = #tpu.dot_dimension_numbers<[1], [0], [0], [1], [0, 0, 1, 1], [], []>} : vector<128x16xbf16>, vector<16x32xbf16>, vector<128x32xf32> -> vector<128x32xf32>
    %100 = arith.addf %93, %99 : vector<128x32xf32>
    %c0_127 = arith.constant 0 : index
    %c2_128 = arith.constant 2 : index
    %c0_129 = arith.constant 0 : index
    %c0_130 = arith.constant 0 : index
    %101 = tpu.strided_load %arg19[%c0_127, %c2_128, %c0_129, %c0_130] {strides = array<i32: 1, 2, 1, 1>} : memref<2x18x8x16xf32, #tpu.memory_space<vmem>>, vector<2x8x8x16xf32>
    %102 = vector.shape_cast %101 : vector<2x8x8x16xf32> to vector<128x16xf32>
    %103 = arith.truncf %102 : vector<128x16xf32> to vector<128x16xbf16>
    %c6_131 = arith.constant 6 : index
    %c0_132 = arith.constant 0 : index
    %c0_133 = arith.constant 0 : index
    %104 = vector.load %arg4[%c6_131, %c0_132, %c0_133] : memref<9x16x32xbf16, #tpu.memory_space<vmem>>, vector<1x16x32xbf16>
    %105 = vector.shape_cast %104 : vector<1x16x32xbf16> to vector<16x32xbf16>
    %cst_134 = arith.constant dense<0.000000e+00> : vector<128x32xf32>
    %106 = tpu.matmul %103, %105, %cst_134 {dimension_numbers = #tpu.dot_dimension_numbers<[1], [0], [0], [1], [0, 0, 1, 1], [], []>} : vector<128x16xbf16>, vector<16x32xbf16>, vector<128x32xf32> -> vector<128x32xf32>
    %107 = arith.addf %100, %106 : vector<128x32xf32>
    %c0_135 = arith.constant 0 : index
    %c0_136 = arith.constant 0 : index
    %c1_137 = arith.constant 1 : index
    %c0_138 = arith.constant 0 : index
    %108 = tpu.strided_load %arg15[%c0_135, %c0_136, %c1_137, %c0_138] {strides = array<i32: 1, 1, 2, 1>} : memref<2x18x18x16xf32, #tpu.memory_space<vmem>>, vector<2x18x8x16xf32>
    %c0_139 = arith.constant 0 : index
    %c0_140 = arith.constant 0 : index
    %c0_141 = arith.constant 0 : index
    %c0_142 = arith.constant 0 : index
    %109 = vector.load %arg19[%c0_139, %c0_140, %c0_141, %c0_142] : memref<2x18x8x16xf32, #tpu.memory_space<vmem>>, vector<2x18x8x16xf32>
    tpu.vector_store %arg19[%c0_139, %c0_140, %c0_141, %c0_142], %108 {strides = array<i32>} : memref<2x18x8x16xf32, #tpu.memory_space<vmem>>, vector<2x18x8x16xf32>,
    %c0_143 = arith.constant 0 : index
    %c0_144 = arith.constant 0 : index
    %c0_145 = arith.constant 0 : index
    %c0_146 = arith.constant 0 : index
    %110 = tpu.strided_load %arg19[%c0_143, %c0_144, %c0_145, %c0_146] {strides = array<i32: 1, 2, 1, 1>} : memref<2x18x8x16xf32, #tpu.memory_space<vmem>>, vector<2x8x8x16xf32>
    %111 = vector.shape_cast %110 : vector<2x8x8x16xf32> to vector<128x16xf32>
    %112 = arith.truncf %111 : vector<128x16xf32> to vector<128x16xbf16>
    %c1_147 = arith.constant 1 : index
    %c0_148 = arith.constant 0 : index
    %c0_149 = arith.constant 0 : index
    %113 = vector.load %arg4[%c1_147, %c0_148, %c0_149] : memref<9x16x32xbf16, #tpu.memory_space<vmem>>, vector<1x16x32xbf16>
    %114 = vector.shape_cast %113 : vector<1x16x32xbf16> to vector<16x32xbf16>
    %cst_150 = arith.constant dense<0.000000e+00> : vector<128x32xf32>
    %115 = tpu.matmul %112, %114, %cst_150 {dimension_numbers = #tpu.dot_dimension_numbers<[1], [0], [0], [1], [0, 0, 1, 1], [], []>} : vector<128x16xbf16>, vector<16x32xbf16>, vector<128x32xf32> -> vector<128x32xf32>
    %116 = arith.addf %107, %115 : vector<128x32xf32>
    %c0_151 = arith.constant 0 : index
    %c1_152 = arith.constant 1 : index
    %c0_153 = arith.constant 0 : index
    %c0_154 = arith.constant 0 : index
    %117 = tpu.strided_load %arg19[%c0_151, %c1_152, %c0_153, %c0_154] {strides = array<i32: 1, 2, 1, 1>} : memref<2x18x8x16xf32, #tpu.memory_space<vmem>>, vector<2x8x8x16xf32>
    %118 = vector.shape_cast %117 : vector<2x8x8x16xf32> to vector<128x16xf32>
    %119 = arith.truncf %118 : vector<128x16xf32> to vector<128x16xbf16>
    %c4_155 = arith.constant 4 : index
    %c0_156 = arith.constant 0 : index
    %c0_157 = arith.constant 0 : index
    %120 = vector.load %arg4[%c4_155, %c0_156, %c0_157] : memref<9x16x32xbf16, #tpu.memory_space<vmem>>, vector<1x16x32xbf16>
    %121 = vector.shape_cast %120 : vector<1x16x32xbf16> to vector<16x32xbf16>
    %cst_158 = arith.constant dense<0.000000e+00> : vector<128x32xf32>
    %122 = tpu.matmul %119, %121, %cst_158 {dimension_numbers = #tpu.dot_dimension_numbers<[1], [0], [0], [1], [0, 0, 1, 1], [], []>} : vector<128x16xbf16>, vector<16x32xbf16>, vector<128x32xf32> -> vector<128x32xf32>
    %123 = arith.addf %116, %122 : vector<128x32xf32>
    %c0_159 = arith.constant 0 : index
    %c2_160 = arith.constant 2 : index
    %c0_161 = arith.constant 0 : index
    %c0_162 = arith.constant 0 : index
    %124 = tpu.strided_load %arg19[%c0_159, %c2_160, %c0_161, %c0_162] {strides = array<i32: 1, 2, 1, 1>} : memref<2x18x8x16xf32, #tpu.memory_space<vmem>>, vector<2x8x8x16xf32>
    %125 = vector.shape_cast %124 : vector<2x8x8x16xf32> to vector<128x16xf32>
    %126 = arith.truncf %125 : vector<128x16xf32> to vector<128x16xbf16>
    %c7_163 = arith.constant 7 : index
    %c0_164 = arith.constant 0 : index
    %c0_165 = arith.constant 0 : index
    %127 = vector.load %arg4[%c7_163, %c0_164, %c0_165] : memref<9x16x32xbf16, #tpu.memory_space<vmem>>, vector<1x16x32xbf16>
    %128 = vector.shape_cast %127 : vector<1x16x32xbf16> to vector<16x32xbf16>
    %cst_166 = arith.constant dense<0.000000e+00> : vector<128x32xf32>
    %129 = tpu.matmul %126, %128, %cst_166 {dimension_numbers = #tpu.dot_dimension_numbers<[1], [0], [0], [1], [0, 0, 1, 1], [], []>} : vector<128x16xbf16>, vector<16x32xbf16>, vector<128x32xf32> -> vector<128x32xf32>
    %130 = arith.addf %123, %129 : vector<128x32xf32>
    %c0_167 = arith.constant 0 : index
    %c0_168 = arith.constant 0 : index
    %c2_169 = arith.constant 2 : index
    %c0_170 = arith.constant 0 : index
    %131 = tpu.strided_load %arg15[%c0_167, %c0_168, %c2_169, %c0_170] {strides = array<i32: 1, 1, 2, 1>} : memref<2x18x18x16xf32, #tpu.memory_space<vmem>>, vector<2x18x8x16xf32>
    %c0_171 = arith.constant 0 : index
    %c0_172 = arith.constant 0 : index
    %c0_173 = arith.constant 0 : index
    %c0_174 = arith.constant 0 : index
    %132 = vector.load %arg19[%c0_171, %c0_172, %c0_173, %c0_174] : memref<2x18x8x16xf32, #tpu.memory_space<vmem>>, vector<2x18x8x16xf32>
    tpu.vector_store %arg19[%c0_171, %c0_172, %c0_173, %c0_174], %131 {strides = array<i32>} : memref<2x18x8x16xf32, #tpu.memory_space<vmem>>, vector<2x18x8x16xf32>,
    %c0_175 = arith.constant 0 : index
    %c0_176 = arith.constant 0 : index
    %c0_177 = arith.constant 0 : index
    %c0_178 = arith.constant 0 : index
    %133 = tpu.strided_load %arg19[%c0_175, %c0_176, %c0_177, %c0_178] {strides = array<i32: 1, 2, 1, 1>} : memref<2x18x8x16xf32, #tpu.memory_space<vmem>>, vector<2x8x8x16xf32>
    %134 = vector.shape_cast %133 : vector<2x8x8x16xf32> to vector<128x16xf32>
    %135 = arith.truncf %134 : vector<128x16xf32> to vector<128x16xbf16>
    %c2_179 = arith.constant 2 : index
    %c0_180 = arith.constant 0 : index
    %c0_181 = arith.constant 0 : index
    %136 = vector.load %arg4[%c2_179, %c0_180, %c0_181] : memref<9x16x32xbf16, #tpu.memory_space<vmem>>, vector<1x16x32xbf16>
    %137 = vector.shape_cast %136 : vector<1x16x32xbf16> to vector<16x32xbf16>
    %cst_182 = arith.constant dense<0.000000e+00> : vector<128x32xf32>
    %138 = tpu.matmul %135, %137, %cst_182 {dimension_numbers = #tpu.dot_dimension_numbers<[1], [0], [0], [1], [0, 0, 1, 1], [], []>} : vector<128x16xbf16>, vector<16x32xbf16>, vector<128x32xf32> -> vector<128x32xf32>
    %139 = arith.addf %130, %138 : vector<128x32xf32>
    %c0_183 = arith.constant 0 : index
    %c1_184 = arith.constant 1 : index
    %c0_185 = arith.constant 0 : index
    %c0_186 = arith.constant 0 : index
    %140 = tpu.strided_load %arg19[%c0_183, %c1_184, %c0_185, %c0_186] {strides = array<i32: 1, 2, 1, 1>} : memref<2x18x8x16xf32, #tpu.memory_space<vmem>>, vector<2x8x8x16xf32>
    %141 = vector.shape_cast %140 : vector<2x8x8x16xf32> to vector<128x16xf32>
    %142 = arith.truncf %141 : vector<128x16xf32> to vector<128x16xbf16>
    %c5_187 = arith.constant 5 : index
    %c0_188 = arith.constant 0 : index
    %c0_189 = arith.constant 0 : index
    %143 = vector.load %arg4[%c5_187, %c0_188, %c0_189] : memref<9x16x32xbf16, #tpu.memory_space<vmem>>, vector<1x16x32xbf16>
    %144 = vector.shape_cast %143 : vector<1x16x32xbf16> to vector<16x32xbf16>
    %cst_190 = arith.constant dense<0.000000e+00> : vector<128x32xf32>
    %145 = tpu.matmul %142, %144, %cst_190 {dimension_numbers = #tpu.dot_dimension_numbers<[1], [0], [0], [1], [0, 0, 1, 1], [], []>} : vector<128x16xbf16>, vector<16x32xbf16>, vector<128x32xf32> -> vector<128x32xf32>
    %146 = arith.addf %139, %145 : vector<128x32xf32>
    %c0_191 = arith.constant 0 : index
    %c2_192 = arith.constant 2 : index
    %c0_193 = arith.constant 0 : index
    %c0_194 = arith.constant 0 : index
    %147 = tpu.strided_load %arg19[%c0_191, %c2_192, %c0_193, %c0_194] {strides = array<i32: 1, 2, 1, 1>} : memref<2x18x8x16xf32, #tpu.memory_space<vmem>>, vector<2x8x8x16xf32>
    %148 = vector.shape_cast %147 : vector<2x8x8x16xf32> to vector<128x16xf32>
    %149 = arith.truncf %148 : vector<128x16xf32> to vector<128x16xbf16>
    %c8_195 = arith.constant 8 : index
    %c0_196 = arith.constant 0 : index
    %c0_197 = arith.constant 0 : index
    %150 = vector.load %arg4[%c8_195, %c0_196, %c0_197] : memref<9x16x32xbf16, #tpu.memory_space<vmem>>, vector<1x16x32xbf16>
    %151 = vector.shape_cast %150 : vector<1x16x32xbf16> to vector<16x32xbf16>
    %cst_198 = arith.constant dense<0.000000e+00> : vector<128x32xf32>
    %152 = tpu.matmul %149, %151, %cst_198 {dimension_numbers = #tpu.dot_dimension_numbers<[1], [0], [0], [1], [0, 0, 1, 1], [], []>} : vector<128x16xbf16>, vector<16x32xbf16>, vector<128x32xf32> -> vector<128x32xf32>
    %153 = arith.addf %146, %152 : vector<128x32xf32>
    %c0_199 = arith.constant 0 : index
    %c0_200 = arith.constant 0 : index
    %154 = vector.load %arg5[%c0_199, %c0_200] : memref<3x32xf32, #tpu.memory_space<vmem>>, vector<1x32xf32>
    %155 = vector.broadcast %154 : vector<1x32xf32> to vector<128x32xf32>
    %156 = arith.addf %153, %155 : vector<128x32xf32>
    %cst_201 = arith.constant 0.000000e+00 : f32
    %157 = vector.broadcast %cst_201 : f32 to vector<128x32xf32>
    %158 = arith.cmpf oge, %156, %157 : vector<128x32xf32>
    %cst_202 = arith.constant 2.000000e-01 : f32
    %159 = vector.broadcast %cst_202 : f32 to vector<128x32xf32>
    %160 = arith.mulf %159, %156 : vector<128x32xf32>
    %161 = arith.select %158, %156, %160 : vector<128x32xi1>, vector<128x32xf32>
    %c1_203 = arith.constant 1 : index
    %c0_204 = arith.constant 0 : index
    %162 = vector.load %arg5[%c1_203, %c0_204] : memref<3x32xf32, #tpu.memory_space<vmem>>, vector<1x32xf32>
    %163 = vector.broadcast %162 : vector<1x32xf32> to vector<128x32xf32>
    %164 = arith.mulf %161, %163 : vector<128x32xf32>
    %c2_205 = arith.constant 2 : index
    %c0_206 = arith.constant 0 : index
    %165 = vector.load %arg5[%c2_205, %c0_206] : memref<3x32xf32, #tpu.memory_space<vmem>>, vector<1x32xf32>
    %166 = vector.broadcast %165 : vector<1x32xf32> to vector<128x32xf32>
    %167 = arith.addf %164, %166 : vector<128x32xf32>
    %cst_207 = arith.constant 0.000000e+00 : f32
    %168 = vector.broadcast %cst_207 : f32 to vector<2x10x10x32xf32>
    %c0_208 = arith.constant 0 : index
    %c0_209 = arith.constant 0 : index
    %c0_210 = arith.constant 0 : index
    %c0_211 = arith.constant 0 : index
    %169 = vector.load %arg16[%c0_208, %c0_209, %c0_210, %c0_211] : memref<2x10x10x32xf32, #tpu.memory_space<vmem>>, vector<2x10x10x32xf32>
    tpu.vector_store %arg16[%c0_208, %c0_209, %c0_210, %c0_211], %168 {strides = array<i32>} : memref<2x10x10x32xf32, #tpu.memory_space<vmem>>, vector<2x10x10x32xf32>,
    %170 = vector.shape_cast %167 : vector<128x32xf32> to vector<2x8x8x32xf32>
    %c0_212 = arith.constant 0 : index
    %c1_213 = arith.constant 1 : index
    %c1_214 = arith.constant 1 : index
    %c0_215 = arith.constant 0 : index
    %171 = vector.load %arg16[%c0_212, %c1_213, %c1_214, %c0_215] : memref<2x10x10x32xf32, #tpu.memory_space<vmem>>, vector<2x8x8x32xf32>
    tpu.vector_store %arg16[%c0_212, %c1_213, %c1_214, %c0_215], %170 {strides = array<i32>} : memref<2x10x10x32xf32, #tpu.memory_space<vmem>>, vector<2x8x8x32xf32>,
    %c0_216 = arith.constant 0 : index
    %c0_217 = arith.constant 0 : index
    %c0_218 = arith.constant 0 : index
    %c0_219 = arith.constant 0 : index
    %172 = tpu.strided_load %arg16[%c0_216, %c0_217, %c0_218, %c0_219] {strides = array<i32: 1, 1, 2, 1>} : memref<2x10x10x32xf32, #tpu.memory_space<vmem>>, vector<2x10x4x32xf32>
    %c0_220 = arith.constant 0 : index
    %c0_221 = arith.constant 0 : index
    %c0_222 = arith.constant 0 : index
    %c0_223 = arith.constant 0 : index
    %173 = vector.load %arg20[%c0_220, %c0_221, %c0_222, %c0_223] : memref<2x10x4x32xf32, #tpu.memory_space<vmem>>, vector<2x10x4x32xf32>
    tpu.vector_store %arg20[%c0_220, %c0_221, %c0_222, %c0_223], %172 {strides = array<i32>} : memref<2x10x4x32xf32, #tpu.memory_space<vmem>>, vector<2x10x4x32xf32>,
    %c0_224 = arith.constant 0 : index
    %c0_225 = arith.constant 0 : index
    %c0_226 = arith.constant 0 : index
    %c0_227 = arith.constant 0 : index
    %174 = tpu.strided_load %arg20[%c0_224, %c0_225, %c0_226, %c0_227] {strides = array<i32: 1, 2, 1, 1>} : memref<2x10x4x32xf32, #tpu.memory_space<vmem>>, vector<2x4x4x32xf32>
    %175 = vector.shape_cast %174 : vector<2x4x4x32xf32> to vector<32x32xf32>
    %176 = arith.truncf %175 : vector<32x32xf32> to vector<32x32xbf16>
    %c0_228 = arith.constant 0 : index
    %c0_229 = arith.constant 0 : index
    %c0_230 = arith.constant 0 : index
    %177 = vector.load %arg6[%c0_228, %c0_229, %c0_230] : memref<9x32x64xbf16, #tpu.memory_space<vmem>>, vector<1x32x64xbf16>
    %178 = vector.shape_cast %177 : vector<1x32x64xbf16> to vector<32x64xbf16>
    %cst_231 = arith.constant dense<0.000000e+00> : vector<32x64xf32>
    %179 = tpu.matmul %176, %178, %cst_231 {dimension_numbers = #tpu.dot_dimension_numbers<[1], [0], [0], [1], [0, 0, 1, 1], [], []>} : vector<32x32xbf16>, vector<32x64xbf16>, vector<32x64xf32> -> vector<32x64xf32>
    %c0_232 = arith.constant 0 : index
    %c1_233 = arith.constant 1 : index
    %c0_234 = arith.constant 0 : index
    %c0_235 = arith.constant 0 : index
    %180 = tpu.strided_load %arg20[%c0_232, %c1_233, %c0_234, %c0_235] {strides = array<i32: 1, 2, 1, 1>} : memref<2x10x4x32xf32, #tpu.memory_space<vmem>>, vector<2x4x4x32xf32>
    %181 = vector.shape_cast %180 : vector<2x4x4x32xf32> to vector<32x32xf32>
    %182 = arith.truncf %181 : vector<32x32xf32> to vector<32x32xbf16>
    %c3_236 = arith.constant 3 : index
    %c0_237 = arith.constant 0 : index
    %c0_238 = arith.constant 0 : index
    %183 = vector.load %arg6[%c3_236, %c0_237, %c0_238] : memref<9x32x64xbf16, #tpu.memory_space<vmem>>, vector<1x32x64xbf16>
    %184 = vector.shape_cast %183 : vector<1x32x64xbf16> to vector<32x64xbf16>
    %cst_239 = arith.constant dense<0.000000e+00> : vector<32x64xf32>
    %185 = tpu.matmul %182, %184, %cst_239 {dimension_numbers = #tpu.dot_dimension_numbers<[1], [0], [0], [1], [0, 0, 1, 1], [], []>} : vector<32x32xbf16>, vector<32x64xbf16>, vector<32x64xf32> -> vector<32x64xf32>
    %186 = arith.addf %179, %185 : vector<32x64xf32>
    %c0_240 = arith.constant 0 : index
    %c2_241 = arith.constant 2 : index
    %c0_242 = arith.constant 0 : index
    %c0_243 = arith.constant 0 : index
    %187 = tpu.strided_load %arg20[%c0_240, %c2_241, %c0_242, %c0_243] {strides = array<i32: 1, 2, 1, 1>} : memref<2x10x4x32xf32, #tpu.memory_space<vmem>>, vector<2x4x4x32xf32>
    %188 = vector.shape_cast %187 : vector<2x4x4x32xf32> to vector<32x32xf32>
    %189 = arith.truncf %188 : vector<32x32xf32> to vector<32x32xbf16>
    %c6_244 = arith.constant 6 : index
    %c0_245 = arith.constant 0 : index
    %c0_246 = arith.constant 0 : index
    %190 = vector.load %arg6[%c6_244, %c0_245, %c0_246] : memref<9x32x64xbf16, #tpu.memory_space<vmem>>, vector<1x32x64xbf16>
    %191 = vector.shape_cast %190 : vector<1x32x64xbf16> to vector<32x64xbf16>
    %cst_247 = arith.constant dense<0.000000e+00> : vector<32x64xf32>
    %192 = tpu.matmul %189, %191, %cst_247 {dimension_numbers = #tpu.dot_dimension_numbers<[1], [0], [0], [1], [0, 0, 1, 1], [], []>} : vector<32x32xbf16>, vector<32x64xbf16>, vector<32x64xf32> -> vector<32x64xf32>
    %193 = arith.addf %186, %192 : vector<32x64xf32>
    %c0_248 = arith.constant 0 : index
    %c0_249 = arith.constant 0 : index
    %c1_250 = arith.constant 1 : index
    %c0_251 = arith.constant 0 : index
    %194 = tpu.strided_load %arg16[%c0_248, %c0_249, %c1_250, %c0_251] {strides = array<i32: 1, 1, 2, 1>} : memref<2x10x10x32xf32, #tpu.memory_space<vmem>>, vector<2x10x4x32xf32>
    %c0_252 = arith.constant 0 : index
    %c0_253 = arith.constant 0 : index
    %c0_254 = arith.constant 0 : index
    %c0_255 = arith.constant 0 : index
    %195 = vector.load %arg20[%c0_252, %c0_253, %c0_254, %c0_255] : memref<2x10x4x32xf32, #tpu.memory_space<vmem>>, vector<2x10x4x32xf32>
    tpu.vector_store %arg20[%c0_252, %c0_253, %c0_254, %c0_255], %194 {strides = array<i32>} : memref<2x10x4x32xf32, #tpu.memory_space<vmem>>, vector<2x10x4x32xf32>,
    %c0_256 = arith.constant 0 : index
    %c0_257 = arith.constant 0 : index
    %c0_258 = arith.constant 0 : index
    %c0_259 = arith.constant 0 : index
    %196 = tpu.strided_load %arg20[%c0_256, %c0_257, %c0_258, %c0_259] {strides = array<i32: 1, 2, 1, 1>} : memref<2x10x4x32xf32, #tpu.memory_space<vmem>>, vector<2x4x4x32xf32>
    %197 = vector.shape_cast %196 : vector<2x4x4x32xf32> to vector<32x32xf32>
    %198 = arith.truncf %197 : vector<32x32xf32> to vector<32x32xbf16>
    %c1_260 = arith.constant 1 : index
    %c0_261 = arith.constant 0 : index
    %c0_262 = arith.constant 0 : index
    %199 = vector.load %arg6[%c1_260, %c0_261, %c0_262] : memref<9x32x64xbf16, #tpu.memory_space<vmem>>, vector<1x32x64xbf16>
    %200 = vector.shape_cast %199 : vector<1x32x64xbf16> to vector<32x64xbf16>
    %cst_263 = arith.constant dense<0.000000e+00> : vector<32x64xf32>
    %201 = tpu.matmul %198, %200, %cst_263 {dimension_numbers = #tpu.dot_dimension_numbers<[1], [0], [0], [1], [0, 0, 1, 1], [], []>} : vector<32x32xbf16>, vector<32x64xbf16>, vector<32x64xf32> -> vector<32x64xf32>
    %202 = arith.addf %193, %201 : vector<32x64xf32>
    %c0_264 = arith.constant 0 : index
    %c1_265 = arith.constant 1 : index
    %c0_266 = arith.constant 0 : index
    %c0_267 = arith.constant 0 : index
    %203 = tpu.strided_load %arg20[%c0_264, %c1_265, %c0_266, %c0_267] {strides = array<i32: 1, 2, 1, 1>} : memref<2x10x4x32xf32, #tpu.memory_space<vmem>>, vector<2x4x4x32xf32>
    %204 = vector.shape_cast %203 : vector<2x4x4x32xf32> to vector<32x32xf32>
    %205 = arith.truncf %204 : vector<32x32xf32> to vector<32x32xbf16>
    %c4_268 = arith.constant 4 : index
    %c0_269 = arith.constant 0 : index
    %c0_270 = arith.constant 0 : index
    %206 = vector.load %arg6[%c4_268, %c0_269, %c0_270] : memref<9x32x64xbf16, #tpu.memory_space<vmem>>, vector<1x32x64xbf16>
    %207 = vector.shape_cast %206 : vector<1x32x64xbf16> to vector<32x64xbf16>
    %cst_271 = arith.constant dense<0.000000e+00> : vector<32x64xf32>
    %208 = tpu.matmul %205, %207, %cst_271 {dimension_numbers = #tpu.dot_dimension_numbers<[1], [0], [0], [1], [0, 0, 1, 1], [], []>} : vector<32x32xbf16>, vector<32x64xbf16>, vector<32x64xf32> -> vector<32x64xf32>
    %209 = arith.addf %202, %208 : vector<32x64xf32>
    %c0_272 = arith.constant 0 : index
    %c2_273 = arith.constant 2 : index
    %c0_274 = arith.constant 0 : index
    %c0_275 = arith.constant 0 : index
    %210 = tpu.strided_load %arg20[%c0_272, %c2_273, %c0_274, %c0_275] {strides = array<i32: 1, 2, 1, 1>} : memref<2x10x4x32xf32, #tpu.memory_space<vmem>>, vector<2x4x4x32xf32>
    %211 = vector.shape_cast %210 : vector<2x4x4x32xf32> to vector<32x32xf32>
    %212 = arith.truncf %211 : vector<32x32xf32> to vector<32x32xbf16>
    %c7_276 = arith.constant 7 : index
    %c0_277 = arith.constant 0 : index
    %c0_278 = arith.constant 0 : index
    %213 = vector.load %arg6[%c7_276, %c0_277, %c0_278] : memref<9x32x64xbf16, #tpu.memory_space<vmem>>, vector<1x32x64xbf16>
    %214 = vector.shape_cast %213 : vector<1x32x64xbf16> to vector<32x64xbf16>
    %cst_279 = arith.constant dense<0.000000e+00> : vector<32x64xf32>
    %215 = tpu.matmul %212, %214, %cst_279 {dimension_numbers = #tpu.dot_dimension_numbers<[1], [0], [0], [1], [0, 0, 1, 1], [], []>} : vector<32x32xbf16>, vector<32x64xbf16>, vector<32x64xf32> -> vector<32x64xf32>
    %216 = arith.addf %209, %215 : vector<32x64xf32>
    %c0_280 = arith.constant 0 : index
    %c0_281 = arith.constant 0 : index
    %c2_282 = arith.constant 2 : index
    %c0_283 = arith.constant 0 : index
    %217 = tpu.strided_load %arg16[%c0_280, %c0_281, %c2_282, %c0_283] {strides = array<i32: 1, 1, 2, 1>} : memref<2x10x10x32xf32, #tpu.memory_space<vmem>>, vector<2x10x4x32xf32>
    %c0_284 = arith.constant 0 : index
    %c0_285 = arith.constant 0 : index
    %c0_286 = arith.constant 0 : index
    %c0_287 = arith.constant 0 : index
    %218 = vector.load %arg20[%c0_284, %c0_285, %c0_286, %c0_287] : memref<2x10x4x32xf32, #tpu.memory_space<vmem>>, vector<2x10x4x32xf32>
    tpu.vector_store %arg20[%c0_284, %c0_285, %c0_286, %c0_287], %217 {strides = array<i32>} : memref<2x10x4x32xf32, #tpu.memory_space<vmem>>, vector<2x10x4x32xf32>,
    %c0_288 = arith.constant 0 : index
    %c0_289 = arith.constant 0 : index
    %c0_290 = arith.constant 0 : index
    %c0_291 = arith.constant 0 : index
    %219 = tpu.strided_load %arg20[%c0_288, %c0_289, %c0_290, %c0_291] {strides = array<i32: 1, 2, 1, 1>} : memref<2x10x4x32xf32, #tpu.memory_space<vmem>>, vector<2x4x4x32xf32>
    %220 = vector.shape_cast %219 : vector<2x4x4x32xf32> to vector<32x32xf32>
    %221 = arith.truncf %220 : vector<32x32xf32> to vector<32x32xbf16>
    %c2_292 = arith.constant 2 : index
    %c0_293 = arith.constant 0 : index
    %c0_294 = arith.constant 0 : index
    %222 = vector.load %arg6[%c2_292, %c0_293, %c0_294] : memref<9x32x64xbf16, #tpu.memory_space<vmem>>, vector<1x32x64xbf16>
    %223 = vector.shape_cast %222 : vector<1x32x64xbf16> to vector<32x64xbf16>
    %cst_295 = arith.constant dense<0.000000e+00> : vector<32x64xf32>
    %224 = tpu.matmul %221, %223, %cst_295 {dimension_numbers = #tpu.dot_dimension_numbers<[1], [0], [0], [1], [0, 0, 1, 1], [], []>} : vector<32x32xbf16>, vector<32x64xbf16>, vector<32x64xf32> -> vector<32x64xf32>
    %225 = arith.addf %216, %224 : vector<32x64xf32>
    %c0_296 = arith.constant 0 : index
    %c1_297 = arith.constant 1 : index
    %c0_298 = arith.constant 0 : index
    %c0_299 = arith.constant 0 : index
    %226 = tpu.strided_load %arg20[%c0_296, %c1_297, %c0_298, %c0_299] {strides = array<i32: 1, 2, 1, 1>} : memref<2x10x4x32xf32, #tpu.memory_space<vmem>>, vector<2x4x4x32xf32>
    %227 = vector.shape_cast %226 : vector<2x4x4x32xf32> to vector<32x32xf32>
    %228 = arith.truncf %227 : vector<32x32xf32> to vector<32x32xbf16>
    %c5_300 = arith.constant 5 : index
    %c0_301 = arith.constant 0 : index
    %c0_302 = arith.constant 0 : index
    %229 = vector.load %arg6[%c5_300, %c0_301, %c0_302] : memref<9x32x64xbf16, #tpu.memory_space<vmem>>, vector<1x32x64xbf16>
    %230 = vector.shape_cast %229 : vector<1x32x64xbf16> to vector<32x64xbf16>
    %cst_303 = arith.constant dense<0.000000e+00> : vector<32x64xf32>
    %231 = tpu.matmul %228, %230, %cst_303 {dimension_numbers = #tpu.dot_dimension_numbers<[1], [0], [0], [1], [0, 0, 1, 1], [], []>} : vector<32x32xbf16>, vector<32x64xbf16>, vector<32x64xf32> -> vector<32x64xf32>
    %232 = arith.addf %225, %231 : vector<32x64xf32>
    %c0_304 = arith.constant 0 : index
    %c2_305 = arith.constant 2 : index
    %c0_306 = arith.constant 0 : index
    %c0_307 = arith.constant 0 : index
    %233 = tpu.strided_load %arg20[%c0_304, %c2_305, %c0_306, %c0_307] {strides = array<i32: 1, 2, 1, 1>} : memref<2x10x4x32xf32, #tpu.memory_space<vmem>>, vector<2x4x4x32xf32>
    %234 = vector.shape_cast %233 : vector<2x4x4x32xf32> to vector<32x32xf32>
    %235 = arith.truncf %234 : vector<32x32xf32> to vector<32x32xbf16>
    %c8_308 = arith.constant 8 : index
    %c0_309 = arith.constant 0 : index
    %c0_310 = arith.constant 0 : index
    %236 = vector.load %arg6[%c8_308, %c0_309, %c0_310] : memref<9x32x64xbf16, #tpu.memory_space<vmem>>, vector<1x32x64xbf16>
    %237 = vector.shape_cast %236 : vector<1x32x64xbf16> to vector<32x64xbf16>
    %cst_311 = arith.constant dense<0.000000e+00> : vector<32x64xf32>
    %238 = tpu.matmul %235, %237, %cst_311 {dimension_numbers = #tpu.dot_dimension_numbers<[1], [0], [0], [1], [0, 0, 1, 1], [], []>} : vector<32x32xbf16>, vector<32x64xbf16>, vector<32x64xf32> -> vector<32x64xf32>
    %239 = arith.addf %232, %238 : vector<32x64xf32>
    %c0_312 = arith.constant 0 : index
    %c0_313 = arith.constant 0 : index
    %240 = vector.load %arg7[%c0_312, %c0_313] : memref<3x64xf32, #tpu.memory_space<vmem>>, vector<1x64xf32>
    %241 = vector.broadcast %240 : vector<1x64xf32> to vector<32x64xf32>
    %242 = arith.addf %239, %241 : vector<32x64xf32>
    %cst_314 = arith.constant 0.000000e+00 : f32
    %243 = vector.broadcast %cst_314 : f32 to vector<32x64xf32>
    %244 = arith.cmpf oge, %242, %243 : vector<32x64xf32>
    %cst_315 = arith.constant 2.000000e-01 : f32
    %245 = vector.broadcast %cst_315 : f32 to vector<32x64xf32>
    %246 = arith.mulf %245, %242 : vector<32x64xf32>
    %247 = arith.select %244, %242, %246 : vector<32x64xi1>, vector<32x64xf32>
    %c1_316 = arith.constant 1 : index
    %c0_317 = arith.constant 0 : index
    %248 = vector.load %arg7[%c1_316, %c0_317] : memref<3x64xf32, #tpu.memory_space<vmem>>, vector<1x64xf32>
    %249 = vector.broadcast %248 : vector<1x64xf32> to vector<32x64xf32>
    %250 = arith.mulf %247, %249 : vector<32x64xf32>
    %c2_318 = arith.constant 2 : index
    %c0_319 = arith.constant 0 : index
    %251 = vector.load %arg7[%c2_318, %c0_319] : memref<3x64xf32, #tpu.memory_space<vmem>>, vector<1x64xf32>
    %252 = vector.broadcast %251 : vector<1x64xf32> to vector<32x64xf32>
    %253 = arith.addf %250, %252 : vector<32x64xf32>
    %cst_320 = arith.constant 0.000000e+00 : f32
    %254 = vector.broadcast %cst_320 : f32 to vector<2x6x6x64xf32>
    %c0_321 = arith.constant 0 : index
    %c0_322 = arith.constant 0 : index
    %c0_323 = arith.constant 0 : index
    %c0_324 = arith.constant 0 : index
    %255 = vector.load %arg17[%c0_321, %c0_322, %c0_323, %c0_324] : memref<2x6x6x64xf32, #tpu.memory_space<vmem>>, vector<2x6x6x64xf32>
    tpu.vector_store %arg17[%c0_321, %c0_322, %c0_323, %c0_324], %254 {strides = array<i32>} : memref<2x6x6x64xf32, #tpu.memory_space<vmem>>, vector<2x6x6x64xf32>,
    %256 = vector.shape_cast %253 : vector<32x64xf32> to vector<2x4x4x64xf32>
    %c0_325 = arith.constant 0 : index
    %c1_326 = arith.constant 1 : index
    %c1_327 = arith.constant 1 : index
    %c0_328 = arith.constant 0 : index
    %257 = vector.load %arg17[%c0_325, %c1_326, %c1_327, %c0_328] : memref<2x6x6x64xf32, #tpu.memory_space<vmem>>, vector<2x4x4x64xf32>
    tpu.vector_store %arg17[%c0_325, %c1_326, %c1_327, %c0_328], %256 {strides = array<i32>} : memref<2x6x6x64xf32, #tpu.memory_space<vmem>>, vector<2x4x4x64xf32>,
    %c0_329 = arith.constant 0 : index
    %c0_330 = arith.constant 0 : index
    %c0_331 = arith.constant 0 : index
    %c0_332 = arith.constant 0 : index
    %258 = tpu.strided_load %arg17[%c0_329, %c0_330, %c0_331, %c0_332] {strides = array<i32: 1, 1, 2, 1>} : memref<2x6x6x64xf32, #tpu.memory_space<vmem>>, vector<2x6x2x64xf32>
    %c0_333 = arith.constant 0 : index
    %c0_334 = arith.constant 0 : index
    %c0_335 = arith.constant 0 : index
    %c0_336 = arith.constant 0 : index
    %259 = vector.load %arg21[%c0_333, %c0_334, %c0_335, %c0_336] : memref<2x6x2x64xf32, #tpu.memory_space<vmem>>, vector<2x6x2x64xf32>
    tpu.vector_store %arg21[%c0_333, %c0_334, %c0_335, %c0_336], %258 {strides = array<i32>} : memref<2x6x2x64xf32, #tpu.memory_space<vmem>>, vector<2x6x2x64xf32>,
    %c0_337 = arith.constant 0 : index
    %c0_338 = arith.constant 0 : index
    %c0_339 = arith.constant 0 : index
    %c0_340 = arith.constant 0 : index
    %260 = tpu.strided_load %arg21[%c0_337, %c0_338, %c0_339, %c0_340] {strides = array<i32: 1, 2, 1, 1>} : memref<2x6x2x64xf32, #tpu.memory_space<vmem>>, vector<2x2x2x64xf32>
    %261 = vector.shape_cast %260 : vector<2x2x2x64xf32> to vector<8x64xf32>
    %262 = arith.truncf %261 : vector<8x64xf32> to vector<8x64xbf16>
    %c0_341 = arith.constant 0 : index
    %c0_342 = arith.constant 0 : index
    %c0_343 = arith.constant 0 : index
    %263 = vector.load %arg8[%c0_341, %c0_342, %c0_343] : memref<9x64x128xbf16, #tpu.memory_space<vmem>>, vector<1x64x128xbf16>
    %264 = vector.shape_cast %263 : vector<1x64x128xbf16> to vector<64x128xbf16>
    %cst_344 = arith.constant dense<0.000000e+00> : vector<8x128xf32>
    %265 = tpu.matmul %262, %264, %cst_344 {dimension_numbers = #tpu.dot_dimension_numbers<[1], [0], [0], [1], [0, 0, 1, 1], [], []>} : vector<8x64xbf16>, vector<64x128xbf16>, vector<8x128xf32> -> vector<8x128xf32>
    %c0_345 = arith.constant 0 : index
    %c1_346 = arith.constant 1 : index
    %c0_347 = arith.constant 0 : index
    %c0_348 = arith.constant 0 : index
    %266 = tpu.strided_load %arg21[%c0_345, %c1_346, %c0_347, %c0_348] {strides = array<i32: 1, 2, 1, 1>} : memref<2x6x2x64xf32, #tpu.memory_space<vmem>>, vector<2x2x2x64xf32>
    %267 = vector.shape_cast %266 : vector<2x2x2x64xf32> to vector<8x64xf32>
    %268 = arith.truncf %267 : vector<8x64xf32> to vector<8x64xbf16>
    %c3_349 = arith.constant 3 : index
    %c0_350 = arith.constant 0 : index
    %c0_351 = arith.constant 0 : index
    %269 = vector.load %arg8[%c3_349, %c0_350, %c0_351] : memref<9x64x128xbf16, #tpu.memory_space<vmem>>, vector<1x64x128xbf16>
    %270 = vector.shape_cast %269 : vector<1x64x128xbf16> to vector<64x128xbf16>
    %cst_352 = arith.constant dense<0.000000e+00> : vector<8x128xf32>
    %271 = tpu.matmul %268, %270, %cst_352 {dimension_numbers = #tpu.dot_dimension_numbers<[1], [0], [0], [1], [0, 0, 1, 1], [], []>} : vector<8x64xbf16>, vector<64x128xbf16>, vector<8x128xf32> -> vector<8x128xf32>
    %272 = arith.addf %265, %271 : vector<8x128xf32>
    %c0_353 = arith.constant 0 : index
    %c2_354 = arith.constant 2 : index
    %c0_355 = arith.constant 0 : index
    %c0_356 = arith.constant 0 : index
    %273 = tpu.strided_load %arg21[%c0_353, %c2_354, %c0_355, %c0_356] {strides = array<i32: 1, 2, 1, 1>} : memref<2x6x2x64xf32, #tpu.memory_space<vmem>>, vector<2x2x2x64xf32>
    %274 = vector.shape_cast %273 : vector<2x2x2x64xf32> to vector<8x64xf32>
    %275 = arith.truncf %274 : vector<8x64xf32> to vector<8x64xbf16>
    %c6_357 = arith.constant 6 : index
    %c0_358 = arith.constant 0 : index
    %c0_359 = arith.constant 0 : index
    %276 = vector.load %arg8[%c6_357, %c0_358, %c0_359] : memref<9x64x128xbf16, #tpu.memory_space<vmem>>, vector<1x64x128xbf16>
    %277 = vector.shape_cast %276 : vector<1x64x128xbf16> to vector<64x128xbf16>
    %cst_360 = arith.constant dense<0.000000e+00> : vector<8x128xf32>
    %278 = tpu.matmul %275, %277, %cst_360 {dimension_numbers = #tpu.dot_dimension_numbers<[1], [0], [0], [1], [0, 0, 1, 1], [], []>} : vector<8x64xbf16>, vector<64x128xbf16>, vector<8x128xf32> -> vector<8x128xf32>
    %279 = arith.addf %272, %278 : vector<8x128xf32>
    %c0_361 = arith.constant 0 : index
    %c0_362 = arith.constant 0 : index
    %c1_363 = arith.constant 1 : index
    %c0_364 = arith.constant 0 : index
    %280 = tpu.strided_load %arg17[%c0_361, %c0_362, %c1_363, %c0_364] {strides = array<i32: 1, 1, 2, 1>} : memref<2x6x6x64xf32, #tpu.memory_space<vmem>>, vector<2x6x2x64xf32>
    %c0_365 = arith.constant 0 : index
    %c0_366 = arith.constant 0 : index
    %c0_367 = arith.constant 0 : index
    %c0_368 = arith.constant 0 : index
    %281 = vector.load %arg21[%c0_365, %c0_366, %c0_367, %c0_368] : memref<2x6x2x64xf32, #tpu.memory_space<vmem>>, vector<2x6x2x64xf32>
    tpu.vector_store %arg21[%c0_365, %c0_366, %c0_367, %c0_368], %280 {strides = array<i32>} : memref<2x6x2x64xf32, #tpu.memory_space<vmem>>, vector<2x6x2x64xf32>,
    %c0_369 = arith.constant 0 : index
    %c0_370 = arith.constant 0 : index
    %c0_371 = arith.constant 0 : index
    %c0_372 = arith.constant 0 : index
    %282 = tpu.strided_load %arg21[%c0_369, %c0_370, %c0_371, %c0_372] {strides = array<i32: 1, 2, 1, 1>} : memref<2x6x2x64xf32, #tpu.memory_space<vmem>>, vector<2x2x2x64xf32>
    %283 = vector.shape_cast %282 : vector<2x2x2x64xf32> to vector<8x64xf32>
    %284 = arith.truncf %283 : vector<8x64xf32> to vector<8x64xbf16>
    %c1_373 = arith.constant 1 : index
    %c0_374 = arith.constant 0 : index
    %c0_375 = arith.constant 0 : index
    %285 = vector.load %arg8[%c1_373, %c0_374, %c0_375] : memref<9x64x128xbf16, #tpu.memory_space<vmem>>, vector<1x64x128xbf16>
    %286 = vector.shape_cast %285 : vector<1x64x128xbf16> to vector<64x128xbf16>
    %cst_376 = arith.constant dense<0.000000e+00> : vector<8x128xf32>
    %287 = tpu.matmul %284, %286, %cst_376 {dimension_numbers = #tpu.dot_dimension_numbers<[1], [0], [0], [1], [0, 0, 1, 1], [], []>} : vector<8x64xbf16>, vector<64x128xbf16>, vector<8x128xf32> -> vector<8x128xf32>
    %288 = arith.addf %279, %287 : vector<8x128xf32>
    %c0_377 = arith.constant 0 : index
    %c1_378 = arith.constant 1 : index
    %c0_379 = arith.constant 0 : index
    %c0_380 = arith.constant 0 : index
    %289 = tpu.strided_load %arg21[%c0_377, %c1_378, %c0_379, %c0_380] {strides = array<i32: 1, 2, 1, 1>} : memref<2x6x2x64xf32, #tpu.memory_space<vmem>>, vector<2x2x2x64xf32>
    %290 = vector.shape_cast %289 : vector<2x2x2x64xf32> to vector<8x64xf32>
    %291 = arith.truncf %290 : vector<8x64xf32> to vector<8x64xbf16>
    %c4_381 = arith.constant 4 : index
    %c0_382 = arith.constant 0 : index
    %c0_383 = arith.constant 0 : index
    %292 = vector.load %arg8[%c4_381, %c0_382, %c0_383] : memref<9x64x128xbf16, #tpu.memory_space<vmem>>, vector<1x64x128xbf16>
    %293 = vector.shape_cast %292 : vector<1x64x128xbf16> to vector<64x128xbf16>
    %cst_384 = arith.constant dense<0.000000e+00> : vector<8x128xf32>
    %294 = tpu.matmul %291, %293, %cst_384 {dimension_numbers = #tpu.dot_dimension_numbers<[1], [0], [0], [1], [0, 0, 1, 1], [], []>} : vector<8x64xbf16>, vector<64x128xbf16>, vector<8x128xf32> -> vector<8x128xf32>
    %295 = arith.addf %288, %294 : vector<8x128xf32>
    %c0_385 = arith.constant 0 : index
    %c2_386 = arith.constant 2 : index
    %c0_387 = arith.constant 0 : index
    %c0_388 = arith.constant 0 : index
    %296 = tpu.strided_load %arg21[%c0_385, %c2_386, %c0_387, %c0_388] {strides = array<i32: 1, 2, 1, 1>} : memref<2x6x2x64xf32, #tpu.memory_space<vmem>>, vector<2x2x2x64xf32>
    %297 = vector.shape_cast %296 : vector<2x2x2x64xf32> to vector<8x64xf32>
    %298 = arith.truncf %297 : vector<8x64xf32> to vector<8x64xbf16>
    %c7_389 = arith.constant 7 : index
    %c0_390 = arith.constant 0 : index
    %c0_391 = arith.constant 0 : index
    %299 = vector.load %arg8[%c7_389, %c0_390, %c0_391] : memref<9x64x128xbf16, #tpu.memory_space<vmem>>, vector<1x64x128xbf16>
    %300 = vector.shape_cast %299 : vector<1x64x128xbf16> to vector<64x128xbf16>
    %cst_392 = arith.constant dense<0.000000e+00> : vector<8x128xf32>
    %301 = tpu.matmul %298, %300, %cst_392 {dimension_numbers = #tpu.dot_dimension_numbers<[1], [0], [0], [1], [0, 0, 1, 1], [], []>} : vector<8x64xbf16>, vector<64x128xbf16>, vector<8x128xf32> -> vector<8x128xf32>
    %302 = arith.addf %295, %301 : vector<8x128xf32>
    %c0_393 = arith.constant 0 : index
    %c0_394 = arith.constant 0 : index
    %c2_395 = arith.constant 2 : index
    %c0_396 = arith.constant 0 : index
    %303 = tpu.strided_load %arg17[%c0_393, %c0_394, %c2_395, %c0_396] {strides = array<i32: 1, 1, 2, 1>} : memref<2x6x6x64xf32, #tpu.memory_space<vmem>>, vector<2x6x2x64xf32>
    %c0_397 = arith.constant 0 : index
    %c0_398 = arith.constant 0 : index
    %c0_399 = arith.constant 0 : index
    %c0_400 = arith.constant 0 : index
    %304 = vector.load %arg21[%c0_397, %c0_398, %c0_399, %c0_400] : memref<2x6x2x64xf32, #tpu.memory_space<vmem>>, vector<2x6x2x64xf32>
    tpu.vector_store %arg21[%c0_397, %c0_398, %c0_399, %c0_400], %303 {strides = array<i32>} : memref<2x6x2x64xf32, #tpu.memory_space<vmem>>, vector<2x6x2x64xf32>,
    %c0_401 = arith.constant 0 : index
    %c0_402 = arith.constant 0 : index
    %c0_403 = arith.constant 0 : index
    %c0_404 = arith.constant 0 : index
    %305 = tpu.strided_load %arg21[%c0_401, %c0_402, %c0_403, %c0_404] {strides = array<i32: 1, 2, 1, 1>} : memref<2x6x2x64xf32, #tpu.memory_space<vmem>>, vector<2x2x2x64xf32>
    %306 = vector.shape_cast %305 : vector<2x2x2x64xf32> to vector<8x64xf32>
    %307 = arith.truncf %306 : vector<8x64xf32> to vector<8x64xbf16>
    %c2_405 = arith.constant 2 : index
    %c0_406 = arith.constant 0 : index
    %c0_407 = arith.constant 0 : index
    %308 = vector.load %arg8[%c2_405, %c0_406, %c0_407] : memref<9x64x128xbf16, #tpu.memory_space<vmem>>, vector<1x64x128xbf16>
    %309 = vector.shape_cast %308 : vector<1x64x128xbf16> to vector<64x128xbf16>
    %cst_408 = arith.constant dense<0.000000e+00> : vector<8x128xf32>
    %310 = tpu.matmul %307, %309, %cst_408 {dimension_numbers = #tpu.dot_dimension_numbers<[1], [0], [0], [1], [0, 0, 1, 1], [], []>} : vector<8x64xbf16>, vector<64x128xbf16>, vector<8x128xf32> -> vector<8x128xf32>
    %311 = arith.addf %302, %310 : vector<8x128xf32>
    %c0_409 = arith.constant 0 : index
    %c1_410 = arith.constant 1 : index
    %c0_411 = arith.constant 0 : index
    %c0_412 = arith.constant 0 : index
    %312 = tpu.strided_load %arg21[%c0_409, %c1_410, %c0_411, %c0_412] {strides = array<i32: 1, 2, 1, 1>} : memref<2x6x2x64xf32, #tpu.memory_space<vmem>>, vector<2x2x2x64xf32>
    %313 = vector.shape_cast %312 : vector<2x2x2x64xf32> to vector<8x64xf32>
    %314 = arith.truncf %313 : vector<8x64xf32> to vector<8x64xbf16>
    %c5_413 = arith.constant 5 : index
    %c0_414 = arith.constant 0 : index
    %c0_415 = arith.constant 0 : index
    %315 = vector.load %arg8[%c5_413, %c0_414, %c0_415] : memref<9x64x128xbf16, #tpu.memory_space<vmem>>, vector<1x64x128xbf16>
    %316 = vector.shape_cast %315 : vector<1x64x128xbf16> to vector<64x128xbf16>
    %cst_416 = arith.constant dense<0.000000e+00> : vector<8x128xf32>
    %317 = tpu.matmul %314, %316, %cst_416 {dimension_numbers = #tpu.dot_dimension_numbers<[1], [0], [0], [1], [0, 0, 1, 1], [], []>} : vector<8x64xbf16>, vector<64x128xbf16>, vector<8x128xf32> -> vector<8x128xf32>
    %318 = arith.addf %311, %317 : vector<8x128xf32>
    %c0_417 = arith.constant 0 : index
    %c2_418 = arith.constant 2 : index
    %c0_419 = arith.constant 0 : index
    %c0_420 = arith.constant 0 : index
    %319 = tpu.strided_load %arg21[%c0_417, %c2_418, %c0_419, %c0_420] {strides = array<i32: 1, 2, 1, 1>} : memref<2x6x2x64xf32, #tpu.memory_space<vmem>>, vector<2x2x2x64xf32>
    %320 = vector.shape_cast %319 : vector<2x2x2x64xf32> to vector<8x64xf32>
    %321 = arith.truncf %320 : vector<8x64xf32> to vector<8x64xbf16>
    %c8_421 = arith.constant 8 : index
    %c0_422 = arith.constant 0 : index
    %c0_423 = arith.constant 0 : index
    %322 = vector.load %arg8[%c8_421, %c0_422, %c0_423] : memref<9x64x128xbf16, #tpu.memory_space<vmem>>, vector<1x64x128xbf16>
    %323 = vector.shape_cast %322 : vector<1x64x128xbf16> to vector<64x128xbf16>
    %cst_424 = arith.constant dense<0.000000e+00> : vector<8x128xf32>
    %324 = tpu.matmul %321, %323, %cst_424 {dimension_numbers = #tpu.dot_dimension_numbers<[1], [0], [0], [1], [0, 0, 1, 1], [], []>} : vector<8x64xbf16>, vector<64x128xbf16>, vector<8x128xf32> -> vector<8x128xf32>
    %325 = arith.addf %318, %324 : vector<8x128xf32>
    %c0_425 = arith.constant 0 : index
    %c0_426 = arith.constant 0 : index
    %326 = vector.load %arg9[%c0_425, %c0_426] : memref<3x128xf32, #tpu.memory_space<vmem>>, vector<1x128xf32>
    %327 = vector.broadcast %326 : vector<1x128xf32> to vector<8x128xf32>
    %328 = arith.addf %325, %327 : vector<8x128xf32>
    %cst_427 = arith.constant 0.000000e+00 : f32
    %329 = vector.broadcast %cst_427 : f32 to vector<8x128xf32>
    %330 = arith.cmpf oge, %328, %329 : vector<8x128xf32>
    %cst_428 = arith.constant 2.000000e-01 : f32
    %331 = vector.broadcast %cst_428 : f32 to vector<8x128xf32>
    %332 = arith.mulf %331, %328 : vector<8x128xf32>
    %333 = arith.select %330, %328, %332 : vector<8x128xi1>, vector<8x128xf32>
    %c1_429 = arith.constant 1 : index
    %c0_430 = arith.constant 0 : index
    %334 = vector.load %arg9[%c1_429, %c0_430] : memref<3x128xf32, #tpu.memory_space<vmem>>, vector<1x128xf32>
    %335 = vector.broadcast %334 : vector<1x128xf32> to vector<8x128xf32>
    %336 = arith.mulf %333, %335 : vector<8x128xf32>
    %c2_431 = arith.constant 2 : index
    %c0_432 = arith.constant 0 : index
    %337 = vector.load %arg9[%c2_431, %c0_432] : memref<3x128xf32, #tpu.memory_space<vmem>>, vector<1x128xf32>
    %338 = vector.broadcast %337 : vector<1x128xf32> to vector<8x128xf32>
    %339 = arith.addf %336, %338 : vector<8x128xf32>
    %340 = vector.shape_cast %339 : vector<8x128xf32> to vector<2x4x128xf32>
    %341 = vector.extract_strided_slice %340 {offsets = [0, 0, 0], sizes = [2, 1, 128], strides = [1, 1, 1]} : vector<2x4x128xf32> to vector<2x1x128xf32>
    %342 = vector.shape_cast %341 : vector<2x1x128xf32> to vector<2x128xf32>
    %343 = arith.truncf %342 : vector<2x128xf32> to vector<2x128xbf16>
    %c0_433 = arith.constant 0 : index
    %c0_434 = arith.constant 0 : index
    %c0_435 = arith.constant 0 : index
    %344 = vector.load %arg10[%c0_433, %c0_434, %c0_435] : memref<4x128x13xbf16, #tpu.memory_space<vmem>>, vector<1x128x13xbf16>
    %345 = vector.shape_cast %344 : vector<1x128x13xbf16> to vector<128x13xbf16>
    %cst_436 = arith.constant dense<0.000000e+00> : vector<2x13xf32>
    %346 = tpu.matmul %343, %345, %cst_436 {dimension_numbers = #tpu.dot_dimension_numbers<[1], [0], [0], [1], [0, 0, 1, 1], [], []>} : vector<2x128xbf16>, vector<128x13xbf16>, vector<2x13xf32> -> vector<2x13xf32>
    %347 = vector.extract_strided_slice %340 {offsets = [0, 1, 0], sizes = [2, 1, 128], strides = [1, 1, 1]} : vector<2x4x128xf32> to vector<2x1x128xf32>
    %348 = vector.shape_cast %347 : vector<2x1x128xf32> to vector<2x128xf32>
    %349 = arith.truncf %348 : vector<2x128xf32> to vector<2x128xbf16>
    %c1_437 = arith.constant 1 : index
    %c0_438 = arith.constant 0 : index
    %c0_439 = arith.constant 0 : index
    %350 = vector.load %arg10[%c1_437, %c0_438, %c0_439] : memref<4x128x13xbf16, #tpu.memory_space<vmem>>, vector<1x128x13xbf16>
    %351 = vector.shape_cast %350 : vector<1x128x13xbf16> to vector<128x13xbf16>
    %cst_440 = arith.constant dense<0.000000e+00> : vector<2x13xf32>
    %352 = tpu.matmul %349, %351, %cst_440 {dimension_numbers = #tpu.dot_dimension_numbers<[1], [0], [0], [1], [0, 0, 1, 1], [], []>} : vector<2x128xbf16>, vector<128x13xbf16>, vector<2x13xf32> -> vector<2x13xf32>
    %353 = arith.addf %346, %352 : vector<2x13xf32>
    %354 = vector.extract_strided_slice %340 {offsets = [0, 2, 0], sizes = [2, 1, 128], strides = [1, 1, 1]} : vector<2x4x128xf32> to vector<2x1x128xf32>
    %355 = vector.shape_cast %354 : vector<2x1x128xf32> to vector<2x128xf32>
    %356 = arith.truncf %355 : vector<2x128xf32> to vector<2x128xbf16>
    %c2_441 = arith.constant 2 : index
    %c0_442 = arith.constant 0 : index
    %c0_443 = arith.constant 0 : index
    %357 = vector.load %arg10[%c2_441, %c0_442, %c0_443] : memref<4x128x13xbf16, #tpu.memory_space<vmem>>, vector<1x128x13xbf16>
    %358 = vector.shape_cast %357 : vector<1x128x13xbf16> to vector<128x13xbf16>
    %cst_444 = arith.constant dense<0.000000e+00> : vector<2x13xf32>
    %359 = tpu.matmul %356, %358, %cst_444 {dimension_numbers = #tpu.dot_dimension_numbers<[1], [0], [0], [1], [0, 0, 1, 1], [], []>} : vector<2x128xbf16>, vector<128x13xbf16>, vector<2x13xf32> -> vector<2x13xf32>
    %360 = arith.addf %353, %359 : vector<2x13xf32>
    %361 = vector.extract_strided_slice %340 {offsets = [0, 3, 0], sizes = [2, 1, 128], strides = [1, 1, 1]} : vector<2x4x128xf32> to vector<2x1x128xf32>
    %362 = vector.shape_cast %361 : vector<2x1x128xf32> to vector<2x128xf32>
    %363 = arith.truncf %362 : vector<2x128xf32> to vector<2x128xbf16>
    %c3_445 = arith.constant 3 : index
    %c0_446 = arith.constant 0 : index
    %c0_447 = arith.constant 0 : index
    %364 = vector.load %arg10[%c3_445, %c0_446, %c0_447] : memref<4x128x13xbf16, #tpu.memory_space<vmem>>, vector<1x128x13xbf16>
    %365 = vector.shape_cast %364 : vector<1x128x13xbf16> to vector<128x13xbf16>
    %cst_448 = arith.constant dense<0.000000e+00> : vector<2x13xf32>
    %366 = tpu.matmul %363, %365, %cst_448 {dimension_numbers = #tpu.dot_dimension_numbers<[1], [0], [0], [1], [0, 0, 1, 1], [], []>} : vector<2x128xbf16>, vector<128x13xbf16>, vector<2x13xf32> -> vector<2x13xf32>
    %367 = arith.addf %360, %366 : vector<2x13xf32>
    %c0_449 = arith.constant 0 : index
    %c0_450 = arith.constant 0 : index
    %368 = vector.load %arg11[%c0_449, %c0_450] : memref<1x13xf32, #tpu.memory_space<vmem>>, vector<1x13xf32>
    %369 = vector.broadcast %368 : vector<1x13xf32> to vector<2x13xf32>
    %370 = arith.addf %367, %369 : vector<2x13xf32>
    %371 = vector.extract_strided_slice %370 {offsets = [0, 0], sizes = [2, 1], strides = [1, 1]} : vector<2x13xf32> to vector<2x1xf32>
    %c0_451 = arith.constant 0 : index
    %c0_452 = arith.constant 0 : index
    %372 = vector.load %arg12[%c0_451, %c0_452] : memref<2x1xf32, #tpu.memory_space<vmem>>, vector<2x1xf32>
    tpu.vector_store %arg12[%c0_451, %c0_452], %371 {strides = array<i32>} : memref<2x1xf32, #tpu.memory_space<vmem>>, vector<2x1xf32>,
    %373 = vector.extract_strided_slice %370 {offsets = [0, 1], sizes = [2, 10], strides = [1, 1]} : vector<2x13xf32> to vector<2x10xf32>
    %cst_453 = arith.constant dense<0xFF800000> : vector<2xf32>
    %374 = vector.multi_reduction <maximumf>, %373, %cst_453 [1] : vector<2x10xf32> to vector<2xf32>
    %375 = vector.shape_cast %374 : vector<2xf32> to vector<2x1xf32>
    %376 = vector.broadcast %375 : vector<2x1xf32> to vector<2x10xf32>
    %377 = arith.subf %373, %376 : vector<2x10xf32>
    %378 = math.exp %377 : vector<2x10xf32>
    %cst_454 = arith.constant dense<0.000000e+00> : vector<2xf32>
    %379 = vector.multi_reduction <add>, %378, %cst_454 [1] : vector<2x10xf32> to vector<2xf32>
    %380 = vector.shape_cast %379 : vector<2xf32> to vector<2x1xf32>
    %381 = vector.broadcast %380 : vector<2x1xf32> to vector<2x10xf32>
    %382 = arith.divf %378, %381 : vector<2x10xf32>
    %c0_455 = arith.constant 0 : index
    %c0_456 = arith.constant 0 : index
    %383 = vector.load %arg13[%c0_455, %c0_456] : memref<2x10xf32, #tpu.memory_space<vmem>>, vector<2x10xf32>
    tpu.vector_store %arg13[%c0_455, %c0_456], %382 {strides = array<i32>} : memref<2x10xf32, #tpu.memory_space<vmem>>, vector<2x10xf32>,
    %384 = vector.extract_strided_slice %370 {offsets = [0, 11], sizes = [2, 2], strides = [1, 1]} : vector<2x13xf32> to vector<2x2xf32>
    %c0_457 = arith.constant 0 : index
    %c0_458 = arith.constant 0 : index
    %385 = vector.load %arg14[%c0_457, %c0_458] : memref<2x2xf32, #tpu.memory_space<vmem>>, vector<2x2xf32>
    tpu.vector_store %arg14[%c0_457, %c0_458], %384 {strides = array<i32>} : memref<2x2xf32, #tpu.memory_space<vmem>>, vector<2x2xf32>,
    return
  }
  func.func @transform_0(%arg0: i32) -> (i32, i32, i32, i32) {
    %c0_i32 = arith.constant 0 : i32
    %c0_i32_0 = arith.constant 0 : i32
    %c0_i32_1 = arith.constant 0 : i32
    %c0_i32_2 = arith.constant 0 : i32
    %c0_i32_3 = arith.constant 0 : i32
    return %c0_i32, %c0_i32_0, %c0_i32_1, %c0_i32_2 : i32, i32, i32, i32
  }
  func.func @transform_1(%arg0: i32) -> (i32, i32, i32) {
    %c0_i32 = arith.constant 0 : i32
    %c0_i32_0 = arith.constant 0 : i32
    %c0_i32_1 = arith.constant 0 : i32
    %c0_i32_2 = arith.constant 0 : i32
    return %c0_i32, %c0_i32_0, %c0_i32_1 : i32, i32, i32
  }
  func.func @transform_2(%arg0: i32) -> (i32, i32) {
    %c0_i32 = arith.constant 0 : i32
    %c0_i32_0 = arith.constant 0 : i32
    %c0_i32_1 = arith.constant 0 : i32
    return %c0_i32, %c0_i32_0 : i32, i32
  }
  func.func @transform_3(%arg0: i32) -> (i32, i32, i32) {
    %c0_i32 = arith.constant 0 : i32
    %c0_i32_0 = arith.constant 0 : i32
    %c0_i32_1 = arith.constant 0 : i32
    %c0_i32_2 = arith.constant 0 : i32
    return %c0_i32, %c0_i32_0, %c0_i32_1 : i32, i32, i32
  }
  func.func @transform_4(%arg0: i32) -> (i32, i32) {
    %c0_i32 = arith.constant 0 : i32
    %c0_i32_0 = arith.constant 0 : i32
    %c0_i32_1 = arith.constant 0 : i32
    return %c0_i32, %c0_i32_0 : i32, i32
  }
  func.func @transform_5(%arg0: i32) -> (i32, i32, i32) {
    %c0_i32 = arith.constant 0 : i32
    %c0_i32_0 = arith.constant 0 : i32
    %c0_i32_1 = arith.constant 0 : i32
    %c0_i32_2 = arith.constant 0 : i32
    return %c0_i32, %c0_i32_0, %c0_i32_1 : i32, i32, i32
  }
  func.func @transform_6(%arg0: i32) -> (i32, i32) {
    %c0_i32 = arith.constant 0 : i32
    %c0_i32_0 = arith.constant 0 : i32
    %c0_i32_1 = arith.constant 0 : i32
    return %c0_i32, %c0_i32_0 : i32, i32
  }
  func.func @transform_7(%arg0: i32) -> (i32, i32, i32) {
    %c0_i32 = arith.constant 0 : i32
    %c0_i32_0 = arith.constant 0 : i32
    %c0_i32_1 = arith.constant 0 : i32
    %c0_i32_2 = arith.constant 0 : i32
    return %c0_i32, %c0_i32_0, %c0_i32_1 : i32, i32, i32
  }
  func.func @transform_8(%arg0: i32) -> (i32, i32) {
    %c0_i32 = arith.constant 0 : i32
    %c0_i32_0 = arith.constant 0 : i32
    %c0_i32_1 = arith.constant 0 : i32
    return %c0_i32, %c0_i32_0 : i32, i32
  }
  func.func @transform_9(%arg0: i32) -> (i32, i32, i32) {
    %c0_i32 = arith.constant 0 : i32
    %c0_i32_0 = arith.constant 0 : i32
    %c0_i32_1 = arith.constant 0 : i32
    %c0_i32_2 = arith.constant 0 : i32
    return %c0_i32, %c0_i32_0, %c0_i32_1 : i32, i32, i32
  }
  func.func @transform_10(%arg0: i32) -> (i32, i32) {
    %c0_i32 = arith.constant 0 : i32
    %c0_i32_0 = arith.constant 0 : i32
    %c0_i32_1 = arith.constant 0 : i32
    return %c0_i32, %c0_i32_0 : i32, i32
  }
  func.func @transform_11(%arg0: i32) -> (i32, i32) {
    %c0_i32 = arith.constant 0 : i32
    %c0_i32_0 = arith.constant 0 : i32
    %c0_i32_1 = arith.constant 0 : i32
    return %c0_i32, %c0_i32_0 : i32, i32
  }
  func.func @transform_12(%arg0: i32) -> (i32, i32) {
    %c0_i32 = arith.constant 0 : i32
    %c0_i32_0 = arith.constant 0 : i32
    %c0_i32_1 = arith.constant 0 : i32
    return %c0_i32, %c0_i32_0 : i32, i32
  }
  func.func @transform_13(%arg0: i32) -> (i32, i32) {
    %c0_i32 = arith.constant 0 : i32
    %c0_i32_0 = arith.constant 0 : i32
    %c0_i32_1 = arith.constant 0 : i32
    return %c0_i32, %c0_i32_0 : i32, i32
  }
}

</mosaic_0001>

<bundles_post_ra>
// kernel: discriminator_forward.1
= control target key start
LH: loop header
LB: loop body
LE: loop exit
PB: predicated region body
PF: predicated region fallthrough
CT: control target
= control target key end

     0   :  { %19 = vsyncpa [#allocation10], 0  ;;  %vm744_vm0 = vcmask 1040384   ;;  %vm745_vm1 = vcmask 1041408   ;;  %vm315_vm2 = vcmask 23552   ;;  %v14894_v1 = vmov 65535   ;;  %s20074_s0 = inlined_call_operand.vmem [shape: f32[2,34,34,3], index: 0, kind: input, shape index: {}]   ;;  %s20075_s1 = inlined_call_operand.vmem [shape: bf16[9,3,16], index: 1, kind: input, shape index: {}]   ;;  %s20076_s2 = inlined_call_operand.vmem [shape: f32[3,16], index: 2, kind: input, shape index: {}]   ;;  %s20077_s3 = inlined_call_operand.vmem [shape: bf16[9,16,32], index: 3, kind: input, shape index: {}]   ;;  %s20078_s4 = inlined_call_operand.vmem [shape: f32[3,32], index: 4, kind: input, shape index: {}]   ;;  %s20079_s5 = inlined_call_operand.vmem [shape: bf16[9,32,64], index: 5, kind: input, shape index: {}]   ;;  %s20080_s6 = inlined_call_operand.vmem [shape: f32[3,64], index: 6, kind: input, shape index: {}]   ;;  %s20081_s7 = inlined_call_operand.vmem [shape: bf16[9,64,128], index: 7, kind: input, shape index: {}]   ;;  %s20082_s8 = inlined_call_operand.vmem [shape: f32[3,128], index: 8, kind: input, shape index: {}]   ;;  %s20083_s9 = inlined_call_operand.vmem [shape: bf16[4,128,13], index: 9, kind: input, shape index: {}]   ;;  %s20084_s10 = inlined_call_operand.vmem [shape: f32[1,13], index: 10, kind: input, shape index: {}]   ;;  %s20085_s11 = inlined_call_operand.vmem [shape: f32[2,1], index: 11, kind: output, shape index: {0}]   ;;  %s20086_s12 = inlined_call_operand.hbm [shape: f32[2,10], index: 12, kind: output, shape index: {1}]   ;;  %s20087_s13 = inlined_call_operand.hbm [shape: f32[2,2], index: 13, kind: output, shape index: {2}]  }
   0x1   :  { %v11610_v0 = vld [vmem:[%s20075_s1 + $0xc] sm:$0x3]  ;;  %v746_v2 = vsel %vm744_vm0, 4294967295, %v14894_v1  ;;  %v11413_v3 = vld [vmem:[%s20074_s0 + $0x50] ss:$2 sm:$0xff] }
   0x2   :  { %v11414_v4 = vld [vmem:[%s20074_s0 + $0x60] ss:$2 sm:$0xff]  ;;  %v14980_v5 = vsel %vm745_vm1, %v746_v2, 0  ;;  %320 = vst.msk [vmem:[#allocation5 + $0x20] sm:$0xff] %vm315_vm2, %v11413_v3  ;;  %v11418_v10 = vld [vmem:[%s20074_s0 + $0xb0] ss:$2 sm:$0xff] }
   0x3   :  { %321 = vst.msk [vmem:[#allocation5 + $0x28] sm:$0xff] %vm315_vm2, %v11414_v4  ;;  %v1624_v6 = vand.u32 %v11610_v0, %v14980_v5  ;;  %v11779_v7 = vld [vmem:[%s20075_s1 + $0x2] sm:$0x3]  ;;  %v11647_v11 = vld [vmem:[%s20074_s0 + $0x51] ss:$2 sm:$0xff]  ;;  %325 = vst.msk [vmem:[#allocation5 + $0x48] sm:$0xff] %vm315_vm2, %v11418_v10 }
   0x4   :  { %v11417_v8 = vld [vmem:[%s20074_s0 + $0xa0] ss:$2 sm:$0xff]  ;;  %v14992_v9 = vand.u32 %v11779_v7, %v14980_v5  ;;  %v11421_v12 = vld [vmem:[%s20074_s0 + $0xf0] ss:$2 sm:$0xff]  ;;  %v11648_v14 = vld [vmem:[%s20074_s0 + $0x61] ss:$2 sm:$0xff] }
   0x5   :  { %13107 = vmatprep.subr.bf16.mxu0 %v1624_v6  ;;  %324 = vst.msk [vmem:[#allocation5 + $0x40] sm:$0xff] %vm315_vm2, %v11417_v8  ;;  %v11422_v13 = vld [vmem:[%s20074_s0 + $0x100] ss:$2 sm:$0xff]  ;;  %328 = vst.msk [vmem:[#allocation5 + $0x60] sm:$0xff] %vm315_vm2, %v11421_v12  ;;  %v11426_v16 = vld [vmem:[%s20074_s0 + $0x150] ss:$2 sm:$0xff] }
   0x6   :  { %13108 = vmatpush3.bf16.msra.mxu0 %v1624_v6  ;;  %329 = vst.msk [vmem:[#allocation5 + $0x68] sm:$0xff] %vm315_vm2, %v11422_v13  ;;  %v11425_v15 = vld [vmem:[%s20074_s0 + $0x140] ss:$2 sm:$0xff]  ;;  %v11651_v17 = vld [vmem:[%s20074_s0 + $0xa1] ss:$2 sm:$0xff]  ;;  %333 = vst.msk [vmem:[#allocation5 + $0x88] sm:$0xff] %vm315_vm2, %v11426_v16 }
   0x7   :  { %13173 = vmatprep.subr.bf16.mxu0 %v14992_v9  ;;  %332 = vst.msk [vmem:[#allocation5 + $0x80] sm:$0xff] %vm315_vm2, %v11425_v15  ;;  %v11429_v18 = vld [vmem:[%s20074_s0 + $0x190] ss:$2 sm:$0xff]  ;;  %v11652_v21 = vld [vmem:[%s20074_s0 + $0xb1] ss:$2 sm:$0xff] }
   0x8   :  { %v11430_v22 = vld [vmem:[%s20074_s0 + $0x1a0] ss:$2 sm:$0xff]  ;;  %336 = vst.msk [vmem:[#allocation5 + $0xa0] sm:$0xff] %vm315_vm2, %v11429_v18  ;;  %v11655_v24 = vld [vmem:[%s20074_s0 + $0xf1] ss:$2 sm:$0xff] }
   0x9   :  { %v454_v19 = vld [vmem:[#allocation5 + $0x20] sm:$0xff]  ;;  %337 = vst.msk [vmem:[#allocation5 + $0xa8] sm:$0xff] %vm315_vm2, %v11430_v22  ;;  %v11660_v28 = vld [vmem:[%s20074_s0 + $0x151] ss:$2 sm:$0xff]  ;;  %v11434_v29 = vld [vmem:[%s20074_s0 + $0x1f0] ss:$2 sm:$0xff] }
   0xa   :  { %v455_v20 = vld [vmem:[#allocation5 + $0x28] sm:$0xff]  ;;  %2255 = vst.msk [vmem:[#allocation5 + $0x20] sm:$0xff] %vm315_vm2, %v11647_v11  ;;  %341 = vst.msk [vmem:[#allocation5 + $0xc8] sm:$0xff] %vm315_vm2, %v11434_v29  ;;  %v11437_v31 = vld [vmem:[%s20074_s0 + $0x230] ss:$2 sm:$0xff] }
   0xb   :  { %v15035_v23 = vpack.c.bf16 %v455_v20, %v454_v19  ;;  %2256 = vst.msk [vmem:[#allocation5 + $0x28] sm:$0xff] %vm315_vm2, %v11648_v14  ;;  %v11656_v25 = vld [vmem:[%s20074_s0 + $0x101] ss:$2 sm:$0xff]  ;;  %v11433_v26 = vld [vmem:[%s20074_s0 + $0x1e0] ss:$2 sm:$0xff]  ;;  %344 = vst.msk [vmem:[#allocation5 + $0xe0] sm:$0xff] %vm315_vm2, %v11437_v31 }
   0xc   :  { %v11659_v27 = vld [vmem:[%s20074_s0 + $0x141] ss:$2 sm:$0xff]  ;;  %340 = vst.msk [vmem:[#allocation5 + $0xc0] sm:$0xff] %vm315_vm2, %v11433_v26  ;;  %v11438_v32 = vld [vmem:[%s20074_s0 + $0x240] ss:$2 sm:$0xff] }
   0xd   :  { %20143 = vst [vmem:[#allocation15_spill] sm:$0xff] %v15035_v23  ;;  %13109 = vmatprep.mubr.msk.bf16.mxu0 %vm315_vm2, %v15035_v23  ;;  %v456_v30 = vld [vmem:[#allocation5 + $0x40] sm:$0xff]  ;;  %v457_v33 = vld [vmem:[#allocation5 + $0x48] sm:$0xff]  ;;  %v11663_v34 = vld [vmem:[%s20074_s0 + $0x191] ss:$2 sm:$0xff] }
   0xe   :  { %2259 = vst.msk [vmem:[#allocation5 + $0x40] sm:$0xff] %vm315_vm2, %v11651_v17  ;;  %v11664_v35 = vld [vmem:[%s20074_s0 + $0x1a1] ss:$2 sm:$0xff]  ;;  %345 = vst.msk [vmem:[#allocation5 + $0xe8] sm:$0xff] %vm315_vm2, %v11438_v32  ;;  %v15077_v36 = vpack.c.bf16 %v457_v33, %v456_v30  ;;  %v11441_v39 = vld [vmem:[%s20074_s0 + $0x280] ss:$2 sm:$0xff] }
   0xf   :  { %2260 = vst.msk [vmem:[#allocation5 + $0x48] sm:$0xff] %vm315_vm2, %v11652_v21  ;;  %v458_v37 = vld [vmem:[#allocation5 + $0x60] sm:$0xff]  ;;  %v459_v38 = vld [vmem:[#allocation5 + $0x68] sm:$0xff]  ;;  %v11442_v43 = vld [vmem:[%s20074_s0 + $0x290] ss:$2 sm:$0xff] }
  0x10   :  { %20144 = vst [vmem:[#allocation16_spill] sm:$0xff] %v15077_v36  ;;  %v15083_v40 = vpack.c.bf16 %v459_v38, %v458_v37  ;;  %2263 = vst.msk [vmem:[#allocation5 + $0x60] sm:$0xff] %vm315_vm2, %v11655_v24  ;;  %v460_v41 = vld [vmem:[#allocation5 + $0x80] sm:$0xff]  ;;  %v461_v42 = vld [vmem:[#allocation5 + $0x88] sm:$0xff]  ;;  %13110 = vmatmul.mubr.msk.bf16.vlgmr.msra.gmra.mrb[0].mxu0 %vm315_vm2, %v15077_v36 }
  0x11   :  { %2264 = vst.msk [vmem:[#allocation5 + $0x68] sm:$0xff] %vm315_vm2, %v11656_v25  ;;  %348 = vst.msk [vmem:[#allocation5 + $0x100] sm:$0xff] %vm315_vm2, %v11441_v39  ;;  %v462_v44 = vld [vmem:[#allocation5 + $0xa0] sm:$0xff]  ;;  %v11668_v46 = vld [vmem:[%s20074_s0 + $0x1f1] ss:$2 sm:$0xff]  ;;  %13174 = vmatpush3.bf16.msra.mxu0 %v14992_v9  ;;  %v15128_v56 = vpack.c.bf16 %v461_v42, %v460_v41 }
  0x12   :  { %20145 = vst [vmem:[#allocation17_spill] sm:$0xff] %v15083_v40  ;;  %2267 = vst.msk [vmem:[#allocation5 + $0x80] sm:$0xff] %vm315_vm2, %v11659_v27  ;;  %v11667_v45 = vld [vmem:[%s20074_s0 + $0x1e1] ss:$2 sm:$0xff]  ;;  %13113 = vmatprep.mubr.msk.bf16.mxu0 %vm315_vm2, %v15083_v40  ;;  %v11445_v48 = vld [vmem:[%s20074_s0 + $0x2d0] ss:$2 sm:$0xff] }
  0x13   :  { %2268 = vst.msk [vmem:[#allocation5 + $0x88] sm:$0xff] %vm315_vm2, %v11660_v28  ;;  %349 = vst.msk [vmem:[#allocation5 + $0x108] sm:$0xff] %vm315_vm2, %v11442_v43  ;;  %v463_v47 = vld [vmem:[#allocation5 + $0xa8] sm:$0xff]  ;;  %v464_v50 = vld [vmem:[#allocation5 + $0xc0] sm:$0xff] }
  0x14   :  { %2271 = vst.msk [vmem:[#allocation5 + $0xa0] sm:$0xff] %vm315_vm2, %v11663_v34  ;;  %v11446_v49 = vld [vmem:[%s20074_s0 + $0x2e0] ss:$2 sm:$0xff]  ;;  %2272 = vst.msk [vmem:[#allocation5 + $0xa8] sm:$0xff] %vm315_vm2, %v11664_v35  ;;  %v11671_v51 = vld [vmem:[%s20074_s0 + $0x231] ss:$2 sm:$0xff]  ;;  %v15136_v60 = vpack.c.bf16 %v463_v47, %v462_v44 }
  0x15   :  { %v11672_v52 = vld [vmem:[%s20074_s0 + $0x241] ss:$2 sm:$0xff]  ;;  %352 = vst.msk [vmem:[#allocation5 + $0x120] sm:$0xff] %vm315_vm2, %v11445_v48  ;;  %353 = vst.msk [vmem:[#allocation5 + $0x128] sm:$0xff] %vm315_vm2, %v11446_v49  ;;  %v11449_v54 = vld [vmem:[%s20074_s0 + $0x320] ss:$2 sm:$0xff] }
  0x16   :  { %v465_v53 = vld [vmem:[#allocation5 + $0xc8] sm:$0xff]  ;;  %2275 = vst.msk [vmem:[#allocation5 + $0xc0] sm:$0xff] %vm315_vm2, %v11667_v45  ;;  %v11450_v55 = vld [vmem:[%s20074_s0 + $0x330] ss:$2 sm:$0xff]  ;;  %20146 = vst [vmem:[#allocation18_spill] sm:$0xff] %v15128_v56 }
  0x17   :  { %2276 = vst.msk [vmem:[#allocation5 + $0xc8] sm:$0xff] %vm315_vm2, %v11668_v46  ;;  %v466_v57 = vld [vmem:[#allocation5 + $0xe0] sm:$0xff]  ;;  %v467_v58 = vld [vmem:[#allocation5 + $0xe8] sm:$0xff]  ;;  %356 = vst.msk [vmem:[#allocation5 + $0x140] sm:$0xff] %vm315_vm2, %v11449_v54  ;;  %v15212_v19 = vpack.c.bf16 %v465_v53, %v464_v50 }
  0x18   :  { %v11675_v59 = vld [vmem:[%s20074_s0 + $0x281] ss:$2 sm:$0xff]  ;;  %357 = vst.msk [vmem:[#allocation5 + $0x148] sm:$0xff] %vm315_vm2, %v11450_v55  ;;  %20147 = vst [vmem:[#allocation19_spill] sm:$0xff] %v15136_v60  ;;  %v11676_v61 = vld [vmem:[%s20074_s0 + $0x291] ss:$2 sm:$0xff]  ;;  %13114 = vmatmul.mubr.msk.bf16.gmra.mrb[4].mxu0 %vm315_vm2, %v15128_v56  ;;  %v15226_v24 = vpack.c.bf16 %v467_v58, %v466_v57 }
  0x19   :  { %2279 = vst.msk [vmem:[#allocation5 + $0xe0] sm:$0xff] %vm315_vm2, %v11671_v51  ;;  %2280 = vst.msk [vmem:[#allocation5 + $0xe8] sm:$0xff] %vm315_vm2, %v11672_v52  ;;  %v11453_v62 = vld [vmem:[%s20074_s0 + $0x370] ss:$2 sm:$0xff]  ;;  %v11454_v63 = vld [vmem:[%s20074_s0 + $0x380] ss:$2 sm:$0xff]  ;;  %13117 = vmatprep.mubr.msk.bf16.mxu0 %vm315_vm2, %v15136_v60 }
  0x1a   :  { %v15149_v0 = vld [vmem:[#allocation5 + $0x100] sm:$0xff]  ;;  %v11679_v1 = vld [vmem:[%s20074_s0 + $0x2d1] ss:$2 sm:$0xff]  ;;  %360 = vst.msk [vmem:[#allocation5 + $0x160] sm:$0xff] %vm315_vm2, %v11453_v62  ;;  %361 = vst.msk [vmem:[#allocation5 + $0x168] sm:$0xff] %vm315_vm2, %v11454_v63 }
  0x1b   :  { %v11680_v2 = vld [vmem:[%s20074_s0 + $0x2e1] ss:$2 sm:$0xff]  ;;  %2283 = vst.msk [vmem:[#allocation5 + $0x100] sm:$0xff] %vm315_vm2, %v11675_v59  ;;  %v11457_v4 = vld [vmem:[%s20074_s0 + $0x3c0] ss:$2 sm:$0xff]  ;;  %20148 = vst [vmem:[#allocation20_spill] sm:$0xff] %v15212_v19 }
  0x1c   :  { %v15159_v3 = vld [vmem:[#allocation5 + $0x108] sm:$0xff]  ;;  %v11458_v6 = vld [vmem:[%s20074_s0 + $0x3d0] ss:$2 sm:$0xff]  ;;  %v11684_v8 = vld [vmem:[%s20074_s0 + $0x331] ss:$2 sm:$0xff]  ;;  %364 = vst.msk [vmem:[#allocation5 + $0x180] sm:$0xff] %vm315_vm2, %v11457_v4 }
  0x1d   :  { %2284 = vst.msk [vmem:[#allocation5 + $0x108] sm:$0xff] %vm315_vm2, %v11676_v61  ;;  %v11683_v7 = vld [vmem:[%s20074_s0 + $0x321] ss:$2 sm:$0xff]  ;;  %365 = vst.msk [vmem:[#allocation5 + $0x188] sm:$0xff] %vm315_vm2, %v11458_v6  ;;  %v11461_v9 = vld [vmem:[%s20074_s0 + $0x410] ss:$2 sm:$0xff]  ;;  %v15302_v48 = vpack.c.bf16 %v15159_v3, %v15149_v0 }
  0x1e   :  { %v15184_v10 = vld [vmem:[#allocation5 + $0x120] sm:$0xff]  ;;  %v15186_v11 = vld [vmem:[#allocation5 + $0x128] sm:$0xff]  ;;  %368 = vst.msk [vmem:[#allocation5 + $0x1a0] sm:$0xff] %vm315_vm2, %v11461_v9  ;;  %v11687_v13 = vld [vmem:[%s20074_s0 + $0x371] ss:$2 sm:$0xff] }
  0x1f   :  { %v11462_v12 = vld [vmem:[%s20074_s0 + $0x420] ss:$2 sm:$0xff]  ;;  %2287 = vst.msk [vmem:[#allocation5 + $0x120] sm:$0xff] %vm315_vm2, %v11679_v1  ;;  %2288 = vst.msk [vmem:[#allocation5 + $0x128] sm:$0xff] %vm315_vm2, %v11680_v2  ;;  %v11688_v14 = vld [vmem:[%s20074_s0 + $0x381] ss:$2 sm:$0xff]  ;;  %v15317_v52 = vpack.c.bf16 %v15186_v11, %v15184_v10 }
  0x20   :  { %369 = vst.msk [vmem:[#allocation5 + $0x1a8] sm:$0xff] %vm315_vm2, %v11462_v12  ;;  %v11465_v15 = vld [vmem:[%s20074_s0 + $0x460] ss:$2 sm:$0xff]  ;;  %v11466_v18 = vld [vmem:[%s20074_s0 + $0x470] ss:$2 sm:$0xff]  ;;  %20149 = vst [vmem:[#allocation21_spill] sm:$0xff] %v15226_v24  ;;  %13118 = vmatmul.mubr.msk.bf16.gmra.mrb[8].mxu0 %vm315_vm2, %v15212_v19 }
  0x21   :  { %v15204_v16 = vld [vmem:[#allocation5 + $0x140] sm:$0xff]  ;;  %v15206_v17 = vld [vmem:[#allocation5 + $0x148] sm:$0xff]  ;;  %372 = vst.msk [vmem:[#allocation5 + $0x1c0] sm:$0xff] %vm315_vm2, %v11465_v15  ;;  %v11692_v21 = vld [vmem:[%s20074_s0 + $0x3d1] ss:$2 sm:$0xff]  ;;  %13121 = vmatprep.mubr.msk.bf16.mxu0 %vm315_vm2, %v15226_v24 }
  0x22   :  { %2291 = vst.msk [vmem:[#allocation5 + $0x140] sm:$0xff] %vm315_vm2, %v11683_v7  ;;  %2292 = vst.msk [vmem:[#allocation5 + $0x148] sm:$0xff] %vm315_vm2, %v11684_v8  ;;  %v11691_v20 = vld [vmem:[%s20074_s0 + $0x3c1] ss:$2 sm:$0xff]  ;;  %v11469_v22 = vld [vmem:[%s20074_s0 + $0x4b0] ss:$2 sm:$0xff] }
  0x23   :  { %373 = vst.msk [vmem:[#allocation5 + $0x1c8] sm:$0xff] %vm315_vm2, %v11466_v18  ;;  %v15228_v25 = vld [vmem:[#allocation5 + $0x160] sm:$0xff]  ;;  %v15230_v26 = vld [vmem:[#allocation5 + $0x168] sm:$0xff]  ;;  %376 = vst.msk [vmem:[#allocation5 + $0x1e0] sm:$0xff] %vm315_vm2, %v11469_v22 }
  0x24   :  { %v11470_v27 = vld [vmem:[%s20074_s0 + $0x4c0] ss:$2 sm:$0xff]  ;;  %2295 = vst.msk [vmem:[#allocation5 + $0x160] sm:$0xff] %vm315_vm2, %v11687_v13  ;;  %2296 = vst.msk [vmem:[#allocation5 + $0x168] sm:$0xff] %vm315_vm2, %v11688_v14  ;;  %v11695_v28 = vld [vmem:[%s20074_s0 + $0x411] ss:$2 sm:$0xff]  ;;  %v15394_v13 = vpack.c.bf16 %v15206_v17, %v15204_v16  ;;  %v15410_v16 = vpack.c.bf16 %v15230_v26, %v15228_v25 }
  0x25   :  { %v11696_v29 = vld [vmem:[%s20074_s0 + $0x421] ss:$2 sm:$0xff]  ;;  %377 = vst.msk [vmem:[#allocation5 + $0x1e8] sm:$0xff] %vm315_vm2, %v11470_v27  ;;  %v11473_v30 = vld [vmem:[%s20074_s0 + $0x500] ss:$2 sm:$0xff]  ;;  %20150 = vst [vmem:[#allocation22_spill] sm:$0xff] %v15302_v48 }
  0x26   :  { %v15248_v31 = vld [vmem:[#allocation5 + $0x180] sm:$0xff]  ;;  %v15250_v32 = vld [vmem:[#allocation5 + $0x188] sm:$0xff]  ;;  %v11474_v33 = vld [vmem:[%s20074_s0 + $0x510] ss:$2 sm:$0xff]  ;;  %380 = vst.msk [vmem:[#allocation5 + $0x200] sm:$0xff] %vm315_vm2, %v11473_v30 }
  0x27   :  { %2299 = vst.msk [vmem:[#allocation5 + $0x180] sm:$0xff] %vm315_vm2, %v11691_v20  ;;  %2300 = vst.msk [vmem:[#allocation5 + $0x188] sm:$0xff] %vm315_vm2, %v11692_v21  ;;  %v15260_v34 = vld [vmem:[#allocation5 + $0x1a0] sm:$0xff]  ;;  %v11700_v37 = vld [vmem:[%s20074_s0 + $0x471] ss:$2 sm:$0xff] }
  0x28   :  { %v11699_v35 = vld [vmem:[%s20074_s0 + $0x461] ss:$2 sm:$0xff]  ;;  %381 = vst.msk [vmem:[#allocation5 + $0x208] sm:$0xff] %vm315_vm2, %v11474_v33  ;;  %2303 = vst.msk [vmem:[#allocation5 + $0x1a0] sm:$0xff] %vm315_vm2, %v11695_v28  ;;  %v11481_v39 = vld [vmem:[%s20074_s0 + $0x5a0] ss:$2 sm:$0xff]  ;;  %13122 = vmatmul.mubr.msk.bf16.gmra.mrb[12].mxu0 %vm315_vm2, %v15302_v48 }
  0x29   :  { %v15271_v38 = vld [vmem:[#allocation5 + $0x1a8] sm:$0xff]  ;;  %v11482_v41 = vld [vmem:[%s20074_s0 + $0x5b0] ss:$2 sm:$0xff]  ;;  %v15281_v42 = vld [vmem:[#allocation5 + $0x1c0] sm:$0xff]  ;;  %388 = vst.msk [vmem:[#allocation5 + $0x240] sm:$0xff] %vm315_vm2, %v11481_v39  ;;  %13125 = vmatprep.mubr.msk.bf16.mxu0 %vm315_vm2, %v15317_v52 }
  0x2a   :  { %2304 = vst.msk [vmem:[#allocation5 + $0x1a8] sm:$0xff] %vm315_vm2, %v11696_v29  ;;  %v11703_v43 = vld [vmem:[%s20074_s0 + $0x4b1] ss:$2 sm:$0xff]  ;;  %v11704_v44 = vld [vmem:[%s20074_s0 + $0x4c1] ss:$2 sm:$0xff]  ;;  %389 = vst.msk [vmem:[#allocation5 + $0x248] sm:$0xff] %vm315_vm2, %v11482_v41 }
  0x2b   :  { %v15291_v45 = vld [vmem:[#allocation5 + $0x1c8] sm:$0xff]  ;;  %2307 = vst.msk [vmem:[#allocation5 + $0x1c0] sm:$0xff] %vm315_vm2, %v11699_v35  ;;  %v11485_v46 = vld [vmem:[%s20074_s0 + $0x5f0] ss:$2 sm:$0xff]  ;;  %v15305_v49 = vld [vmem:[#allocation5 + $0x1e0] sm:$0xff] }
  0x2c   :  { %v11486_v47 = vld [vmem:[%s20074_s0 + $0x600] ss:$2 sm:$0xff]  ;;  %2308 = vst.msk [vmem:[#allocation5 + $0x1c8] sm:$0xff] %vm315_vm2, %v11700_v37  ;;  %v11707_v50 = vld [vmem:[%s20074_s0 + $0x501] ss:$2 sm:$0xff]  ;;  %392 = vst.msk [vmem:[#allocation5 + $0x260] sm:$0xff] %vm315_vm2, %v11485_v46 }
  0x2d   :  { %v11708_v51 = vld [vmem:[%s20074_s0 + $0x511] ss:$2 sm:$0xff]  ;;  %393 = vst.msk [vmem:[#allocation5 + $0x268] sm:$0xff] %vm315_vm2, %v11486_v47  ;;  %20151 = vst [vmem:[#allocation23_spill] sm:$0xff] %v15317_v52  ;;  %v15319_v53 = vld [vmem:[#allocation5 + $0x1e8] sm:$0xff] }
  0x2e   :  { %2311 = vst.msk [vmem:[#allocation5 + $0x1e0] sm:$0xff] %vm315_vm2, %v11703_v43  ;;  %v11489_v54 = vld [vmem:[%s20074_s0 + $0x640] ss:$2 sm:$0xff]  ;;  %v11490_v55 = vld [vmem:[%s20074_s0 + $0x650] ss:$2 sm:$0xff]  ;;  %2312 = vst.msk [vmem:[#allocation5 + $0x1e8] sm:$0xff] %vm315_vm2, %v11704_v44 }
  0x2f   :  { %v15329_v57 = vld [vmem:[#allocation5 + $0x200] sm:$0xff]  ;;  %v11716_v59 = vld [vmem:[%s20074_s0 + $0x5b1] ss:$2 sm:$0xff]  ;;  %396 = vst.msk [vmem:[#allocation5 + $0x280] sm:$0xff] %vm315_vm2, %v11489_v54  ;;  %397 = vst.msk [vmem:[#allocation5 + $0x288] sm:$0xff] %vm315_vm2, %v11490_v55  ;;  %v15486_v54 = vpack.c.bf16 %v15250_v32, %v15248_v31  ;;  %v15501_v31 = vpack.c.bf16 %v15271_v38, %v15260_v34 }
  0x30   :  { %v11715_v58 = vld [vmem:[%s20074_s0 + $0x5a1] ss:$2 sm:$0xff]  ;;  %2315 = vst.msk [vmem:[#allocation5 + $0x200] sm:$0xff] %vm315_vm2, %v11707_v50  ;;  %v11493_v62 = vld [vmem:[%s20074_s0 + $0x690] ss:$2 sm:$0xff]  ;;  %20152 = vst [vmem:[#allocation24_spill] sm:$0xff] %v15394_v13  ;;  %13126 = vmatmul.mubr.msk.bf16.gmra.mrb[16].mxu0 %vm315_vm2, %v15394_v13 }
  0x31   :  { %v15339_v61 = vld [vmem:[#allocation5 + $0x208] sm:$0xff]  ;;  %v11719_v0 = vld [vmem:[%s20074_s0 + $0x5f1] ss:$2 sm:$0xff]  ;;  %400 = vst.msk [vmem:[#allocation5 + $0x2a0] sm:$0xff] %vm315_vm2, %v11493_v62  ;;  %v15364_v3 = vld [vmem:[#allocation5 + $0x240] sm:$0xff]  ;;  %13129 = vmatprep.mubr.msk.bf16.mxu0 %vm315_vm2, %v15410_v16 }
  0x32   :  { %v11494_v63 = vld [vmem:[%s20074_s0 + $0x6a0] ss:$2 sm:$0xff]  ;;  %2316 = vst.msk [vmem:[#allocation5 + $0x208] sm:$0xff] %vm315_vm2, %v11708_v51  ;;  %v11720_v1 = vld [vmem:[%s20074_s0 + $0x601] ss:$2 sm:$0xff]  ;;  %2323 = vst.msk [vmem:[#allocation5 + $0x240] sm:$0xff] %vm315_vm2, %v11715_v58 }
  0x33   :  { %401 = vst.msk [vmem:[#allocation5 + $0x2a8] sm:$0xff] %vm315_vm2, %v11494_v63  ;;  %v11497_v2 = vld [vmem:[%s20074_s0 + $0x6e0] ss:$2 sm:$0xff]  ;;  %v11498_v6 = vld [vmem:[%s20074_s0 + $0x6f0] ss:$2 sm:$0xff]  ;;  %20153 = vst [vmem:[#allocation25_spill] sm:$0xff] %v15410_v16 }
  0x34   :  { %v15366_v4 = vld [vmem:[#allocation5 + $0x248] sm:$0xff]  ;;  %404 = vst.msk [vmem:[#allocation5 + $0x2c0] sm:$0xff] %vm315_vm2, %v11497_v2  ;;  %v11724_v8 = vld [vmem:[%s20074_s0 + $0x651] ss:$2 sm:$0xff]  ;;  %405 = vst.msk [vmem:[#allocation5 + $0x2c8] sm:$0xff] %vm315_vm2, %v11498_v6 }
  0x35   :  { %2324 = vst.msk [vmem:[#allocation5 + $0x248] sm:$0xff] %vm315_vm2, %v11716_v59  ;;  %v11723_v7 = vld [vmem:[%s20074_s0 + $0x641] ss:$2 sm:$0xff]  ;;  %v11501_v9 = vld [vmem:[%s20074_s0 + $0x730] ss:$2 sm:$0xff]  ;;  %20154 = vst [vmem:[#allocation26_spill] sm:$0xff] %v15486_v54 }
  0x36   :  { %v15384_v10 = vld [vmem:[#allocation5 + $0x260] sm:$0xff]  ;;  %v15386_v11 = vld [vmem:[#allocation5 + $0x268] sm:$0xff]  ;;  %408 = vst.msk [vmem:[#allocation5 + $0x2e0] sm:$0xff] %vm315_vm2, %v11501_v9  ;;  %v11727_v14 = vld [vmem:[%s20074_s0 + $0x691] ss:$2 sm:$0xff] }
  0x37   :  { %v11502_v12 = vld [vmem:[%s20074_s0 + $0x740] ss:$2 sm:$0xff]  ;;  %2327 = vst.msk [vmem:[#allocation5 + $0x260] sm:$0xff] %vm315_vm2, %v11719_v0  ;;  %2328 = vst.msk [vmem:[#allocation5 + $0x268] sm:$0xff] %vm315_vm2, %v11720_v1  ;;  %v11728_v15 = vld [vmem:[%s20074_s0 + $0x6a1] ss:$2 sm:$0xff] }
  0x38   :  { %409 = vst.msk [vmem:[#allocation5 + $0x2e8] sm:$0xff] %vm315_vm2, %v11502_v12  ;;  %v11505_v18 = vld [vmem:[%s20074_s0 + $0x780] ss:$2 sm:$0xff]  ;;  %v11506_v21 = vld [vmem:[%s20074_s0 + $0x790] ss:$2 sm:$0xff]  ;;  %20155 = vst [vmem:[#allocation27_spill] sm:$0xff] %v15501_v31  ;;  %13130 = vmatmul.mubr.msk.bf16.gmra.mrb[20].mxu0 %vm315_vm2, %v15486_v54 }
  0x39   :  { %v15412_v17 = vld [vmem:[#allocation5 + $0x280] sm:$0xff]  ;;  %v15414_v20 = vld [vmem:[#allocation5 + $0x288] sm:$0xff]  ;;  %412 = vst.msk [vmem:[#allocation5 + $0x300] sm:$0xff] %vm315_vm2, %v11505_v18  ;;  %v11732_v25 = vld [vmem:[%s20074_s0 + $0x6f1] ss:$2 sm:$0xff]  ;;  %13133 = vmatprep.mubr.msk.bf16.mxu0 %vm315_vm2, %v15501_v31 }
  0x3a   :  { %2331 = vst.msk [vmem:[#allocation5 + $0x280] sm:$0xff] %vm315_vm2, %v11723_v7  ;;  %2332 = vst.msk [vmem:[#allocation5 + $0x288] sm:$0xff] %vm315_vm2, %v11724_v8  ;;  %v11731_v22 = vld [vmem:[%s20074_s0 + $0x6e1] ss:$2 sm:$0xff]  ;;  %v11509_v26 = vld [vmem:[%s20074_s0 + $0x7d0] ss:$2 sm:$0xff] }
  0x3b   :  { %413 = vst.msk [vmem:[#allocation5 + $0x308] sm:$0xff] %vm315_vm2, %v11506_v21  ;;  %v15432_v27 = vld [vmem:[#allocation5 + $0x2a0] sm:$0xff]  ;;  %v15434_v28 = vld [vmem:[#allocation5 + $0x2a8] sm:$0xff]  ;;  %416 = vst.msk [vmem:[#allocation5 + $0x320] sm:$0xff] %vm315_vm2, %v11509_v26 }
  0x3c   :  { %v11510_v29 = vld [vmem:[%s20074_s0 + $0x7e0] ss:$2 sm:$0xff]  ;;  %2335 = vst.msk [vmem:[#allocation5 + $0x2a0] sm:$0xff] %vm315_vm2, %v11727_v14  ;;  %2336 = vst.msk [vmem:[#allocation5 + $0x2a8] sm:$0xff] %vm315_vm2, %v11728_v15  ;;  %v11735_v33 = vld [vmem:[%s20074_s0 + $0x731] ss:$2 sm:$0xff] }
  0x3d   :  { %v15444_v30 = vld [vmem:[#allocation5 + $0x2c0] sm:$0xff]  ;;  %417 = vst.msk [vmem:[#allocation5 + $0x328] sm:$0xff] %vm315_vm2, %v11510_v29  ;;  %v15455_v37 = vld [vmem:[#allocation5 + $0x2c8] sm:$0xff]  ;;  %v11514_v41 = vld [vmem:[%s20074_s0 + $0x830] ss:$2 sm:$0xff] }
  0x3e   :  { %v11736_v35 = vld [vmem:[%s20074_s0 + $0x741] ss:$2 sm:$0xff]  ;;  %2339 = vst.msk [vmem:[#allocation5 + $0x2c0] sm:$0xff] %vm315_vm2, %v11731_v22  ;;  %v11513_v39 = vld [vmem:[%s20074_s0 + $0x820] ss:$2 sm:$0xff]  ;;  %2340 = vst.msk [vmem:[#allocation5 + $0x2c8] sm:$0xff] %vm315_vm2, %v11732_v25 }
  0x3f   :  { %v15465_v43 = vld [vmem:[#allocation5 + $0x2e0] sm:$0xff]  ;;  %v11740_v46 = vld [vmem:[%s20074_s0 + $0x791] ss:$2 sm:$0xff]  ;;  %420 = vst.msk [vmem:[#allocation5 + $0x340] sm:$0xff] %vm315_vm2, %v11513_v39  ;;  %421 = vst.msk [vmem:[#allocation5 + $0x348] sm:$0xff] %vm315_vm2, %v11514_v41 }
  0x40   :  { %v11739_v44 = vld [vmem:[%s20074_s0 + $0x781] ss:$2 sm:$0xff]  ;;  %2343 = vst.msk [vmem:[#allocation5 + $0x2e0] sm:$0xff] %vm315_vm2, %v11735_v33  ;;  %v11517_v50 = vld [vmem:[%s20074_s0 + $0x870] ss:$2 sm:$0xff]  ;;  %v15578_v33 = vpack.c.bf16 %v15291_v45, %v15281_v42  ;;  %v15594_v42 = vpack.c.bf16 %v15319_v53, %v15305_v49 }
  0x41   :  { %v15475_v47 = vld [vmem:[#allocation5 + $0x2e8] sm:$0xff]  ;;  %v15489_v55 = vld [vmem:[#allocation5 + $0x300] sm:$0xff]  ;;  %v11743_v58 = vld [vmem:[%s20074_s0 + $0x7d1] ss:$2 sm:$0xff]  ;;  %424 = vst.msk [vmem:[#allocation5 + $0x360] sm:$0xff] %vm315_vm2, %v11517_v50 }
  0x42   :  { %v11518_v51 = vld [vmem:[%s20074_s0 + $0x880] ss:$2 sm:$0xff]  ;;  %2344 = vst.msk [vmem:[#allocation5 + $0x2e8] sm:$0xff] %vm315_vm2, %v11736_v35  ;;  %v11744_v59 = vld [vmem:[%s20074_s0 + $0x7e1] ss:$2 sm:$0xff]  ;;  %2347 = vst.msk [vmem:[#allocation5 + $0x300] sm:$0xff] %vm315_vm2, %v11739_v44  ;;  %13134 = vmatmul.mubr.msk.bf16.gmra.mrb[24].mxu0 %vm315_vm2, %v15578_v33 }
  0x43   :  { %425 = vst.msk [vmem:[#allocation5 + $0x368] sm:$0xff] %vm315_vm2, %v11518_v51  ;;  %v15503_v32 = vld [vmem:[#allocation5 + $0x308] sm:$0xff]  ;;  %v11522_v63 = vld [vmem:[%s20074_s0 + $0x8d0] ss:$2 sm:$0xff]  ;;  %v15513_v0 = vld [vmem:[#allocation5 + $0x320] sm:$0xff]  ;;  %13137 = vmatprep.mubr.msk.bf16.mxu0 %vm315_vm2, %v15594_v42 }
  0x44   :  { %v11521_v62 = vld [vmem:[%s20074_s0 + $0x8c0] ss:$2 sm:$0xff]  ;;  %2348 = vst.msk [vmem:[#allocation5 + $0x308] sm:$0xff] %vm315_vm2, %v11740_v46  ;;  %v11747_v34 = vld [vmem:[%s20074_s0 + $0x821] ss:$2 sm:$0xff]  ;;  %429 = vst.msk [vmem:[#allocation5 + $0x388] sm:$0xff] %vm315_vm2, %v11522_v63 }
  0x45   :  { %v11748_v38 = vld [vmem:[%s20074_s0 + $0x831] ss:$2 sm:$0xff]  ;;  %428 = vst.msk [vmem:[#allocation5 + $0x380] sm:$0xff] %vm315_vm2, %v11521_v62  ;;  %v15523_v1 = vld [vmem:[#allocation5 + $0x328] sm:$0xff]  ;;  %2351 = vst.msk [vmem:[#allocation5 + $0x320] sm:$0xff] %vm315_vm2, %v11743_v58 }
  0x46   :  { %v11525_v2 = vld [vmem:[%s20074_s0 + $0x910] ss:$2 sm:$0xff]  ;;  %v11526_v6 = vld [vmem:[%s20074_s0 + $0x920] ss:$2 sm:$0xff]  ;;  %2352 = vst.msk [vmem:[#allocation5 + $0x328] sm:$0xff] %vm315_vm2, %v11744_v59  ;;  %20156 = vst [vmem:[#allocation28_spill] sm:$0xff] %v15578_v33 }
  0x47   :  { %v11751_v7 = vld [vmem:[%s20074_s0 + $0x871] ss:$2 sm:$0xff]  ;;  %v11752_v8 = vld [vmem:[%s20074_s0 + $0x881] ss:$2 sm:$0xff]  ;;  %432 = vst.msk [vmem:[#allocation5 + $0x3a0] sm:$0xff] %vm315_vm2, %v11525_v2  ;;  %433 = vst.msk [vmem:[#allocation5 + $0x3a8] sm:$0xff] %vm315_vm2, %v11526_v6 }
  0x48   :  { %v11529_v9 = vld [vmem:[%s20074_s0 + $0x960] ss:$2 sm:$0xff]  ;;  %v11530_v15 = vld [vmem:[%s20074_s0 + $0x970] ss:$2 sm:$0xff]  ;;  %v11755_v18 = vld [vmem:[%s20074_s0 + $0x8c1] ss:$2 sm:$0xff] }
  0x49   :  { %v15548_v12 = vld [vmem:[#allocation5 + $0x340] sm:$0xff]  ;;  %v15550_v14 = vld [vmem:[#allocation5 + $0x348] sm:$0xff]  ;;  %436 = vst.msk [vmem:[#allocation5 + $0x3c0] sm:$0xff] %vm315_vm2, %v11529_v9  ;;  %v11756_v21 = vld [vmem:[%s20074_s0 + $0x8d1] ss:$2 sm:$0xff] }
  0x4a   :  { %2355 = vst.msk [vmem:[#allocation5 + $0x340] sm:$0xff] %vm315_vm2, %v11747_v34  ;;  %2356 = vst.msk [vmem:[#allocation5 + $0x348] sm:$0xff] %vm315_vm2, %v11748_v38  ;;  %v11533_v22 = vld [vmem:[%s20074_s0 + $0x9b0] ss:$2 sm:$0xff]  ;;  %v15568_v25 = vld [vmem:[#allocation5 + $0x360] sm:$0xff] }
  0x4b   :  { %437 = vst.msk [vmem:[#allocation5 + $0x3c8] sm:$0xff] %vm315_vm2, %v11530_v15  ;;  %v15570_v26 = vld [vmem:[#allocation5 + $0x368] sm:$0xff]  ;;  %440 = vst.msk [vmem:[#allocation5 + $0x3e0] sm:$0xff] %vm315_vm2, %v11533_v22  ;;  %v11759_v35 = vld [vmem:[%s20074_s0 + $0x911] ss:$2 sm:$0xff] }
  0x4c   :  { %v11534_v29 = vld [vmem:[%s20074_s0 + $0x9c0] ss:$2 sm:$0xff]  ;;  %2359 = vst.msk [vmem:[#allocation5 + $0x360] sm:$0xff] %vm315_vm2, %v11751_v7  ;;  %2360 = vst.msk [vmem:[#allocation5 + $0x368] sm:$0xff] %vm315_vm2, %v11752_v8  ;;  %v11760_v39 = vld [vmem:[%s20074_s0 + $0x921] ss:$2 sm:$0xff] }
  0x4d   :  { %441 = vst.msk [vmem:[#allocation5 + $0x3e8] sm:$0xff] %vm315_vm2, %v11534_v29  ;;  %v11537_v41 = vld [vmem:[%s20074_s0 + $0xa00] ss:$2 sm:$0xff]  ;;  %20157 = vst [vmem:[#allocation29_spill] sm:$0xff] %v15594_v42  ;;  %v11538_v46 = vld [vmem:[%s20074_s0 + $0xa10] ss:$2 sm:$0xff] }
  0x4e   :  { %v15596_v45 = vld [vmem:[#allocation5 + $0x380] sm:$0xff]  ;;  %v15598_v44 = vld [vmem:[#allocation5 + $0x388] sm:$0xff]  ;;  %444 = vst.msk [vmem:[#allocation5 + $0x400] sm:$0xff] %vm315_vm2, %v11537_v41  ;;  %v11764_v49 = vld [vmem:[%s20074_s0 + $0x971] ss:$2 sm:$0xff] }
  0x4f   :  { %2363 = vst.msk [vmem:[#allocation5 + $0x380] sm:$0xff] %vm315_vm2, %v11755_v18  ;;  %2364 = vst.msk [vmem:[#allocation5 + $0x388] sm:$0xff] %vm315_vm2, %v11756_v21  ;;  %v11763_v50 = vld [vmem:[%s20074_s0 + $0x961] ss:$2 sm:$0xff]  ;;  %v11541_v53 = vld [vmem:[%s20074_s0 + $0xa50] ss:$2 sm:$0xff]  ;;  %v1508_v21 = vpack.c.bf16 %v15339_v61, %v15329_v57 }
  0x50   :  { %445 = vst.msk [vmem:[#allocation5 + $0x408] sm:$0xff] %vm315_vm2, %v11538_v46  ;;  %v15616_v51 = vld [vmem:[#allocation5 + $0x3a0] sm:$0xff]  ;;  %v15618_v58 = vld [vmem:[#allocation5 + $0x3a8] sm:$0xff]  ;;  %448 = vst.msk [vmem:[#allocation5 + $0x420] sm:$0xff] %vm315_vm2, %v11541_v53 }
  0x51   :  { %v11542_v59 = vld [vmem:[%s20074_s0 + $0xa60] ss:$2 sm:$0xff]  ;;  %2367 = vst.msk [vmem:[#allocation5 + $0x3a0] sm:$0xff] %vm315_vm2, %v11759_v35  ;;  %2368 = vst.msk [vmem:[#allocation5 + $0x3a8] sm:$0xff] %vm315_vm2, %v11760_v39  ;;  %v11767_v63 = vld [vmem:[%s20074_s0 + $0x9b1] ss:$2 sm:$0xff]  ;;  %v15678_v39 = vpack.c.bf16 %v15366_v4, %v15364_v3  ;;  %13138 = vmatmul.mubr.msk.bf16.gmra.mrb[28].mxu0 %vm315_vm2, %v1508_v21  ;;  %v15759_v21 = vpack.c.bf16 %v15455_v37, %v15444_v30  ;;  %v15779_v30 = vpack.c.bf16 %v15475_v47, %v15465_v43 }
  0x52   :  { %v15628_v62 = vld [vmem:[#allocation5 + $0x3c0] sm:$0xff]  ;;  %449 = vst.msk [vmem:[#allocation5 + $0x428] sm:$0xff] %vm315_vm2, %v11542_v59  ;;  %v15639_v38 = vld [vmem:[#allocation5 + $0x3c8] sm:$0xff]  ;;  %v11410_v6 = vld [vmem:[%s20074_s0 + $0x10] ss:$2 sm:$0xff]  ;;  %v15783_v37 = vpack.c.bf16 %v15503_v32, %v15489_v55  ;;  %v15805_v32 = vpack.c.bf16 %v15523_v1, %v15513_v0  ;;  %v15829_v0 = vpack.c.bf16 %v15618_v58, %v15616_v51 }
  0x53   :  { %v11768_v34 = vld [vmem:[%s20074_s0 + $0x9c1] ss:$2 sm:$0xff]  ;;  %2371 = vst.msk [vmem:[#allocation5 + $0x3c0] sm:$0xff] %vm315_vm2, %v11763_v50  ;;  %v44_v2 = vld [vmem:[%s20074_s0] ss:$2 sm:$0xff]  ;;  %2372 = vst.msk [vmem:[#allocation5 + $0x3c8] sm:$0xff] %vm315_vm2, %v11764_v49  ;;  %13141 = vmatprep.mubr.msk.bf16.mxu0 %vm315_vm2, %v15678_v39  ;;  %v15833_v1 = vpack.c.bf16 %v15639_v38, %v15628_v62 }
  0x54   :  { %v15649_v7 = vld [vmem:[#allocation5 + $0x3e0] sm:$0xff]  ;;  %316 = vst.msk [vmem:[#allocation5] sm:$0xff] %vm315_vm2, %v44_v2  ;;  %317 = vst.msk [vmem:[#allocation5 + $0x8] sm:$0xff] %vm315_vm2, %v11410_v6  ;;  %v15656_v9 = vld [vmem:[#allocation5 + $0x3e8] sm:$0xff]  ;;  %v15723_v2 = vpack.c.bf16 %v15386_v11, %v15384_v10  ;;  %v15727_v6 = vpack.c.bf16 %v15414_v20, %v15412_v17 }
  0x55   :  { %v11771_v8 = vld [vmem:[%s20074_s0 + $0xa01] ss:$2 sm:$0xff]  ;;  %2375 = vst.msk [vmem:[#allocation5 + $0x3e0] sm:$0xff] %vm315_vm2, %v11767_v63  ;;  %v11772_v15 = vld [vmem:[%s20074_s0 + $0xa11] ss:$2 sm:$0xff]  ;;  %2376 = vst.msk [vmem:[#allocation5 + $0x3e8] sm:$0xff] %vm315_vm2, %v11768_v34 }
  0x56   :  { %v11775_v18 = vld [vmem:[%s20074_s0 + $0xa51] ss:$2 sm:$0xff]  ;;  %v15668_v22 = vld [vmem:[#allocation5 + $0x400] sm:$0xff]  ;;  %v11812_v35 = vld [vmem:[%s20075_s1 + $0x8] sm:$0x3]  ;;  %20158 = vst [vmem:[#allocation30_spill] sm:$0xff] %v15678_v39 }
  0x57   :  { %v11776_v29 = vld [vmem:[%s20074_s0 + $0xa61] ss:$2 sm:$0xff]  ;;  %2379 = vst.msk [vmem:[#allocation5 + $0x400] sm:$0xff] %vm315_vm2, %v11771_v8  ;;  %v11644_v61 = vld [vmem:[%s20074_s0 + $0x11] ss:$2 sm:$0xff]  ;;  %v15690_v46 = vand.u32 %v11812_v35, %v14980_v5  ;;  %20161 = vst [vmem:[#allocation33_spill] sm:$0xff] %v15723_v2 }
  0x58   :  { %v15680_v41 = vld [vmem:[#allocation5 + $0x408] sm:$0xff]  ;;  %v15693_v50 = vld [vmem:[#allocation5 + $0x420] sm:$0xff]  ;;  %20162 = vst [vmem:[#allocation34_spill] sm:$0xff] %v15727_v6  ;;  %v11477_v17 = vld [vmem:[%s20074_s0 + $0x550] ss:$2 sm:$0xff] }
  0x59   :  { %v11643_v57 = vld [vmem:[%s20074_s0 + $0x1] ss:$2 sm:$0xff]  ;;  %2380 = vst.msk [vmem:[#allocation5 + $0x408] sm:$0xff] %vm315_vm2, %v11772_v15  ;;  %v11886_v4 = vld [vmem:[%s20074_s0 + $0xa2] ss:$2 sm:$0xff]  ;;  %2383 = vst.msk [vmem:[#allocation5 + $0x420] sm:$0xff] %vm315_vm2, %v11775_v18  ;;  %13239 = vmatprep.subr.bf16.mxu0 %v15690_v46  ;;  %13142 = vmatmul.mubr.msk.bf16.gmra.mrb[32].mxu0 %vm315_vm2, %v15723_v2  ;;  %v15755_v18 = vpack.c.bf16 %v15434_v28, %v15432_v27 }
  0x5a   :  { %v15695_v3 = vld [vmem:[#allocation5 + $0x40] sm:$0xff]  ;;  %v15700_v49 = vld [vmem:[#allocation5 + $0x428] sm:$0xff]  ;;  %13145 = vmatprep.mubr.msk.bf16.mxu0 %vm315_vm2, %v15727_v6  ;;  %384 = vst.msk [vmem:[#allocation5 + $0x220] sm:$0xff] %vm315_vm2, %v11477_v17  ;;  %20164 = vst [vmem:[#allocation36_spill] sm:$0xff] %v15759_v21 }
  0x5b   :  { %v15704_v53 = vld [vmem:[#allocation5 + $0x48] sm:$0xff]  ;;  %v11887_v59 = vld [vmem:[%s20074_s0 + $0xb2] ss:$2 sm:$0xff]  ;;  %4317 = vst.msk [vmem:[#allocation5 + $0x40] sm:$0xff] %vm315_vm2, %v11886_v4  ;;  %2384 = vst.msk [vmem:[#allocation5 + $0x428] sm:$0xff] %vm315_vm2, %v11776_v29  ;;  %v15809_v4 = vpack.c.bf16 %v15550_v14, %v15548_v12  ;;  %v15841_v12 = vpack.c.bf16 %v15656_v9, %v15649_v7  ;;  %v1524_v51 = vpack.c.bf16 %v15700_v49, %v15693_v50 }
  0x5c   :  { %4318 = vst.msk [vmem:[#allocation5 + $0x48] sm:$0xff] %vm315_vm2, %v11887_v59  ;;  %v15715_v63 = vld [vmem:[#allocation5] sm:$0xff]  ;;  %v15717_v34 = vld [vmem:[#allocation5 + $0x8] sm:$0xff]  ;;  %20163 = vst [vmem:[#allocation35_spill] sm:$0xff] %v15755_v18  ;;  %v15817_v59 = vpack.c.bf16 %v15570_v26, %v15568_v25  ;;  %v15851_v26 = vpack.c.bf16 %v15680_v41, %v15668_v22 }
  0x5d   :  { %20159 = vst [vmem:[#allocation31_spill] sm:$0xff] %v15715_v63  ;;  %20160 = vst [vmem:[#allocation32_spill] sm:$0xff] %v15717_v34  ;;  %v11878_v8 = vld [vmem:[%s20074_s0 + $0x2] ss:$2 sm:$0xff]  ;;  %v11879_v15 = vld [vmem:[%s20074_s0 + $0x12] ss:$2 sm:$0xff] }
  0x5e   :  { %2251 = vst.msk [vmem:[#allocation5] sm:$0xff] %vm315_vm2, %v11643_v57  ;;  %2252 = vst.msk [vmem:[#allocation5 + $0x8] sm:$0xff] %vm315_vm2, %v11644_v61  ;;  %v11478_v20 = vld [vmem:[%s20074_s0 + $0x560] ss:$2 sm:$0xff]  ;;  %v11711_v29 = vld [vmem:[%s20074_s0 + $0x551] ss:$2 sm:$0xff] }
  0x5f   :  { %385 = vst.msk [vmem:[#allocation5 + $0x228] sm:$0xff] %vm315_vm2, %v11478_v20  ;;  %v11712_v35 = vld [vmem:[%s20074_s0 + $0x561] ss:$2 sm:$0xff]  ;;  %20167 = vst [vmem:[#allocation39_spill] sm:$0xff] %v15779_v30  ;;  %v11946_v57 = vld [vmem:[%s20074_s0 + $0x552] ss:$2 sm:$0xff] }
  0x60   :  { %20168 = vst [vmem:[#allocation40_spill] sm:$0xff] %v15783_v37  ;;  %v11947_v61 = vld [vmem:[%s20074_s0 + $0x562] ss:$2 sm:$0xff]  ;;  %20169 = vst [vmem:[#allocation41_spill] sm:$0xff] %v15805_v32  ;;  %v11645_v38 = vld [vmem:[%s20074_s0 + $0x29] ss:$2 sm:$0xff] }
  0x61   :  { %13146 = vmatmul.mubr.msk.bf16.gmra.mrb[36].mxu0 %vm315_vm2, %v15755_v18  ;;  %v15771_v27 = vld [vmem:[#allocation5 + $0x220] sm:$0xff]  ;;  %20170 = vst [vmem:[#allocation42_spill] sm:$0xff] %v15809_v4  ;;  %20171 = vst [vmem:[#allocation43_spill] sm:$0xff] %v15817_v59  ;;  %v11411_v14 = vld [vmem:[%s20074_s0 + $0x28] ss:$2 sm:$0xff] }
  0x62   :  { %13149 = vmatprep.mubr.msk.bf16.mxu0 %vm315_vm2, %v15759_v21  ;;  %20165 = vst [vmem:[#allocation37_spill] sm:$0xff] %v15771_v27  ;;  %2319 = vst.msk [vmem:[#allocation5 + $0x220] sm:$0xff] %vm315_vm2, %v11711_v29  ;;  %v11412_v25 = vld [vmem:[%s20074_s0 + $0x38] ss:$2 sm:$0xff]  ;;  %v11646_v9 = vld [vmem:[%s20074_s0 + $0x39] ss:$2 sm:$0xff] }
  0x63   :  { %20173 = vst [vmem:[#allocation45_spill] sm:$0xff] %v15829_v0  ;;  %20174 = vst [vmem:[#allocation46_spill] sm:$0xff] %v15833_v1  ;;  %v11649_v50 = vld [vmem:[%s20074_s0 + $0x79] ss:$2 sm:$0xff]  ;;  %v11650_v49 = vld [vmem:[%s20074_s0 + $0x89] ss:$2 sm:$0xff] }
  0x64   :  { %20175 = vst [vmem:[#allocation47_spill] sm:$0xff] %v15841_v12  ;;  %20176 = vst [vmem:[#allocation48_spill] sm:$0xff] %v15851_v26  ;;  %v11420_v17 = vld [vmem:[%s20074_s0 + $0xd8] ss:$2 sm:$0xff]  ;;  %v11424_v29 = vld [vmem:[%s20074_s0 + $0x128] ss:$2 sm:$0xff] }
  0x65   :  { %v15739_v10 = vld [vmem:[#allocation5] sm:$0xff]  ;;  %v15741_v11 = vld [vmem:[#allocation5 + $0x8] sm:$0xff]  ;;  %318 = vst.msk [vmem:[#allocation5 + $0x10] sm:$0xff] %vm315_vm2, %v11411_v14  ;;  %319 = vst.msk [vmem:[#allocation5 + $0x18] sm:$0xff] %vm315_vm2, %v11412_v25 }
  0x66   :  { %4309 = vst.msk [vmem:[#allocation5] sm:$0xff] %vm315_vm2, %v11878_v8  ;;  %4310 = vst.msk [vmem:[#allocation5 + $0x8] sm:$0xff] %vm315_vm2, %v11879_v15  ;;  %v15773_v28 = vld [vmem:[#allocation5 + $0x228] sm:$0xff]  ;;  %v15821_v8 = vpack.c.bf16 %v15598_v44, %v15596_v45  ;;  %v11415_v45 = vld [vmem:[%s20074_s0 + $0x78] ss:$2 sm:$0xff]  ;;  %v2451_v7 = vpack.c.bf16 %v15741_v11, %v15739_v10 }
  0x67   :  { %20166 = vst [vmem:[#allocation38_spill] sm:$0xff] %v15773_v28  ;;  %2320 = vst.msk [vmem:[#allocation5 + $0x228] sm:$0xff] %vm315_vm2, %v11712_v35  ;;  %v11416_v44 = vld [vmem:[%s20074_s0 + $0x88] ss:$2 sm:$0xff]  ;;  %v2389_v10 = vld [vmem:[#allocation5 + $0x20] sm:$0xff] }
  0x68   :  { %20172 = vst [vmem:[#allocation44_spill] sm:$0xff] %v15821_v8  ;;  %322 = vst.msk [vmem:[#allocation5 + $0x30] sm:$0xff] %vm315_vm2, %v11415_v45  ;;  %v11419_v15 = vld [vmem:[%s20074_s0 + $0xc8] ss:$2 sm:$0xff]  ;;  %v11423_v20 = vld [vmem:[%s20074_s0 + $0x118] ss:$2 sm:$0xff] }
  0x69   :  { %13150 = vmatmul.mubr.msk.bf16.gmra.mrb[40].mxu0 %vm315_vm2, %v15779_v30  ;;  %v15795_v43 = vld [vmem:[#allocation5 + $0x220] sm:$0xff]  ;;  %323 = vst.msk [vmem:[#allocation5 + $0x38] sm:$0xff] %vm315_vm2, %v11416_v44  ;;  %v2390_v11 = vld [vmem:[#allocation5 + $0x28] sm:$0xff]  ;;  %326 = vst.msk [vmem:[#allocation5 + $0x50] sm:$0xff] %vm315_vm2, %v11419_v15 }
  0x6a   :  { %13153 = vmatprep.mubr.msk.bf16.mxu0 %vm315_vm2, %v15783_v37  ;;  %4377 = vst.msk [vmem:[#allocation5 + $0x220] sm:$0xff] %vm315_vm2, %v11946_v57  ;;  %327 = vst.msk [vmem:[#allocation5 + $0x58] sm:$0xff] %vm315_vm2, %v11420_v17  ;;  %v11880_v35 = vld [vmem:[%s20074_s0 + $0x2a] ss:$2 sm:$0xff]  ;;  %v11881_v57 = vld [vmem:[%s20074_s0 + $0x3a] ss:$2 sm:$0xff]  ;;  %v2452_v14 = vpack.c.bf16 %v2390_v11, %v2389_v10 }
  0x6b   :  { %330 = vst.msk [vmem:[#allocation5 + $0x70] sm:$0xff] %vm315_vm2, %v11423_v20  ;;  %331 = vst.msk [vmem:[#allocation5 + $0x78] sm:$0xff] %vm315_vm2, %v11424_v29  ;;  %v11653_v45 = vld [vmem:[%s20074_s0 + $0xc9] ss:$2 sm:$0xff]  ;;  %v11654_v44 = vld [vmem:[%s20074_s0 + $0xd9] ss:$2 sm:$0xff] }
  0x6c   :  { %v15869_v58 = vld [vmem:[#allocation5 + $0x10] sm:$0xff]  ;;  %v15871_v62 = vld [vmem:[#allocation5 + $0x18] sm:$0xff]  ;;  %v2393_v10 = vld [vmem:[#allocation5 + $0x60] sm:$0xff] }
  0x6d   :  { %20177 = vst [vmem:[#allocation49_spill] sm:$0xff] %v15869_v58  ;;  %20178 = vst [vmem:[#allocation50_spill] sm:$0xff] %v15871_v62  ;;  %v2394_v11 = vld [vmem:[#allocation5 + $0x68] sm:$0xff]  ;;  %v2397_v55 = vld [vmem:[#allocation5 + $0xa0] sm:$0xff] }
  0x6e   :  { %v15797_v47 = vld [vmem:[#allocation5 + $0x228] sm:$0xff]  ;;  %2253 = vst.msk [vmem:[#allocation5 + $0x10] sm:$0xff] %vm315_vm2, %v11645_v38  ;;  %2254 = vst.msk [vmem:[#allocation5 + $0x18] sm:$0xff] %vm315_vm2, %v11646_v9  ;;  %v2401_v37 = vld [vmem:[#allocation5 + $0xe0] sm:$0xff] }
  0x6f   :  { %4378 = vst.msk [vmem:[#allocation5 + $0x228] sm:$0xff] %vm315_vm2, %v11947_v61  ;;  %v15882_v22 = vld [vmem:[#allocation5 + $0x30] sm:$0xff]  ;;  %v11845_v61 = vld [vmem:[%s20075_s1 + $0xe] sm:$0x3]  ;;  %v11444_v30 = vld [vmem:[%s20074_s0 + $0x2b8] ss:$2 sm:$0xff] }
  0x70   :  { %20179 = vst [vmem:[#allocation51_spill] sm:$0xff] %v15882_v22  ;;  %v15884_v41 = vld [vmem:[#allocation5 + $0x38] sm:$0xff]  ;;  %2257 = vst.msk [vmem:[#allocation5 + $0x30] sm:$0xff] %vm315_vm2, %v11649_v50  ;;  %v11658_v9 = vld [vmem:[%s20074_s0 + $0x129] ss:$2 sm:$0xff] }
  0x71   :  { %13154 = vmatmul.mubr.msk.bf16.gmra.mrb[44].mxu0 %vm315_vm2, %v15805_v32  ;;  %20180 = vst [vmem:[#allocation52_spill] sm:$0xff] %v15884_v41  ;;  %2258 = vst.msk [vmem:[#allocation5 + $0x38] sm:$0xff] %vm315_vm2, %v11650_v49  ;;  %v15953_v15 = vld [vmem:[#allocation5 + $0x50] sm:$0xff]  ;;  %v15957_v20 = vld [vmem:[#allocation5 + $0x58] sm:$0xff] }
  0x72   :  { %13157 = vmatprep.mubr.msk.bf16.mxu0 %vm315_vm2, %v15809_v4  ;;  %20182 = vst [vmem:[#allocation54_spill] sm:$0xff] %v15953_v15  ;;  %20183 = vst [vmem:[#allocation55_spill] sm:$0xff] %v15957_v20  ;;  %v15960_v29 = vld [vmem:[#allocation5 + $0x70] sm:$0xff]  ;;  %v2396_v17 = vld [vmem:[#allocation5 + $0x88] sm:$0xff] }
  0x73   :  { %2261 = vst.msk [vmem:[#allocation5 + $0x50] sm:$0xff] %vm315_vm2, %v11653_v45  ;;  %20184 = vst [vmem:[#allocation56_spill] sm:$0xff] %v15960_v29  ;;  %v11427_v45 = vld [vmem:[%s20074_s0 + $0x168] ss:$2 sm:$0xff]  ;;  %v11439_v50 = vld [vmem:[%s20074_s0 + $0x258] ss:$2 sm:$0xff] }
  0x74   :  { %2262 = vst.msk [vmem:[#allocation5 + $0x58] sm:$0xff] %vm315_vm2, %v11654_v44  ;;  %v11428_v44 = vld [vmem:[%s20074_s0 + $0x178] ss:$2 sm:$0xff]  ;;  %334 = vst.msk [vmem:[#allocation5 + $0x90] sm:$0xff] %vm315_vm2, %v11427_v45  ;;  %v11435_v45 = vld [vmem:[%s20074_s0 + $0x208] ss:$2 sm:$0xff] }
  0x75   :  { %v15922_v25 = vld [vmem:[#allocation5 + $0x10] sm:$0xff]  ;;  %v15934_v38 = vld [vmem:[#allocation5 + $0x18] sm:$0xff]  ;;  %335 = vst.msk [vmem:[#allocation5 + $0x98] sm:$0xff] %vm315_vm2, %v11428_v44  ;;  %342 = vst.msk [vmem:[#allocation5 + $0xd0] sm:$0xff] %vm315_vm2, %v11435_v45 }
  0x76   :  { %4311 = vst.msk [vmem:[#allocation5 + $0x10] sm:$0xff] %vm315_vm2, %v11880_v35  ;;  %4312 = vst.msk [vmem:[#allocation5 + $0x18] sm:$0xff] %vm315_vm2, %v11881_v57  ;;  %v15962_v35 = vld [vmem:[#allocation5 + $0x78] sm:$0xff]  ;;  %v11440_v45 = vld [vmem:[%s20074_s0 + $0x268] ss:$2 sm:$0xff] }
  0x77   :  { %20185 = vst [vmem:[#allocation57_spill] sm:$0xff] %v15962_v35  ;;  %v11884_v57 = vld [vmem:[%s20074_s0 + $0x7a] ss:$2 sm:$0xff]  ;;  %2266 = vst.msk [vmem:[#allocation5 + $0x78] sm:$0xff] %vm315_vm2, %v11658_v9  ;;  %v2454_v9 = vpack.c.bf16 %v2394_v11, %v2393_v10  ;;  %v11662_v10 = vld [vmem:[%s20074_s0 + $0x179] ss:$2 sm:$0xff] }
  0x78   :  { %v15951_v49 = vld [vmem:[#allocation5 + $0x38] sm:$0xff]  ;;  %346 = vst.msk [vmem:[#allocation5 + $0xf0] sm:$0xff] %vm315_vm2, %v11439_v50  ;;  %347 = vst.msk [vmem:[#allocation5 + $0xf8] sm:$0xff] %vm315_vm2, %v11440_v45  ;;  %v2400_v45 = vld [vmem:[#allocation5 + $0xc8] sm:$0xff] }
  0x79   :  { %13158 = vmatmul.mubr.msk.bf16.gmra.mrb[48].mxu0 %vm315_vm2, %v15817_v59  ;;  %v11436_v11 = vld [vmem:[%s20074_s0 + $0x218] ss:$2 sm:$0xff]  ;;  %v11448_v21 = vld [vmem:[%s20074_s0 + $0x308] ss:$2 sm:$0xff]  ;;  %351 = vst.msk [vmem:[#allocation5 + $0x118] sm:$0xff] %vm315_vm2, %v11444_v30 }
  0x7a   :  { %13161 = vmatprep.mubr.msk.bf16.mxu0 %vm315_vm2, %v15821_v8  ;;  %343 = vst.msk [vmem:[#allocation5 + $0xd8] sm:$0xff] %vm315_vm2, %v11436_v11  ;;  %v11893_v50 = vld [vmem:[%s20074_s0 + $0x12a] ss:$2 sm:$0xff]  ;;  %v2403_v18 = vld [vmem:[#allocation5 + $0x100] sm:$0xff]  ;;  %355 = vst.msk [vmem:[#allocation5 + $0x138] sm:$0xff] %vm315_vm2, %v11448_v21 }
  0x7b   :  { %v16051_v59 = vld [vmem:[#allocation5 + $0x90] sm:$0xff]  ;;  %v11905_v39 = vld [vmem:[%s20074_s0 + $0x21a] ss:$2 sm:$0xff] }
  0x7c   :  { %20186 = vst [vmem:[#allocation58_spill] sm:$0xff] %v16051_v59  ;;  %v11904_v2 = vld [vmem:[%s20074_s0 + $0x20a] ss:$2 sm:$0xff]  ;;  %v11677_v30 = vld [vmem:[%s20074_s0 + $0x2a9] ss:$2 sm:$0xff]  ;;  %v2409_v52 = vld [vmem:[#allocation5 + $0x160] sm:$0xff] }
  0x7d   :  { %v11909_v16 = vld [vmem:[%s20074_s0 + $0x26a] ss:$2 sm:$0xff]  ;;  %v2413_v34 = vld [vmem:[#allocation5 + $0x1a0] sm:$0xff] }
  0x7e   :  { %v2408_v33 = vld [vmem:[#allocation5 + $0x148] sm:$0xff]  ;;  %v11463_v13 = vld [vmem:[%s20074_s0 + $0x438] ss:$2 sm:$0xff] }
  0x7f   :  { %v16090_v32 = vld [vmem:[#allocation5 + $0xf0] sm:$0xff]  ;;  %v2410_v48 = vld [vmem:[#allocation5 + $0x168] sm:$0xff]  ;;  %370 = vst.msk [vmem:[#allocation5 + $0x1b0] sm:$0xff] %vm315_vm2, %v11463_v13  ;;  %v11468_v63 = vld [vmem:[%s20074_s0 + $0x498] ss:$2 sm:$0xff] }
  0x80   :  { %20192 = vst [vmem:[#allocation64_spill] sm:$0xff] %v16090_v32  ;;  %v16170_v31 = vld [vmem:[#allocation5 + $0x118] sm:$0xff]  ;;  %375 = vst.msk [vmem:[#allocation5 + $0x1d8] sm:$0xff] %vm315_vm2, %v11468_v63  ;;  %v11701_v63 = vld [vmem:[%s20074_s0 + $0x489] ss:$2 sm:$0xff] }
  0x81   :  { %13162 = vmatmul.mubr.msk.bf16.gmra.mrb[52].mxu0 %vm315_vm2, %v15829_v0  ;;  %v16035_v0 = vld [vmem:[#allocation5 + $0x78] sm:$0xff]  ;;  %20195 = vst [vmem:[#allocation67_spill] sm:$0xff] %v16170_v31 }
  0x82   :  { %13165 = vmatprep.mubr.msk.bf16.mxu0 %vm315_vm2, %v15833_v1  ;;  %4324 = vst.msk [vmem:[#allocation5 + $0x78] sm:$0xff] %vm315_vm2, %v11893_v50  ;;  %v16069_v50 = vld [vmem:[#allocation5 + $0xd0] sm:$0xff] }
  0x83   :  { %20190 = vst [vmem:[#allocation62_spill] sm:$0xff] %v16069_v50  ;;  %v11917_v13 = vld [vmem:[%s20074_s0 + $0x30a] ss:$2 sm:$0xff] }
  0x84   :  { %v11981_v22 = vld [vmem:[%s20074_s0 + $0x80a] ss:$2 sm:$0xff] }
  0x86   :  { %v16300_v23 = vld [vmem:[#allocation5 + $0x1b0] sm:$0xff] }
  0x87   :  { %20204 = vst [vmem:[#allocation76_spill] sm:$0xff] %v16300_v23  ;;  %v2415_v23 = vld [vmem:[#allocation5 + $0x1c0] sm:$0xff] }
  0x89   :  { %13166 = vmatmul.mubr.msk.bf16.gmra.mrb[56].mxu0 %vm315_vm2, %v15841_v12  ;;  %v16030_v12 = vld [vmem:[#allocation5 + $0x58] sm:$0xff] }
  0x8a   :  { %13169 = vmatprep.mubr.msk.bf16.mxu0 %vm315_vm2, %v15851_v26  ;;  %v2398_v26 = vld [vmem:[#allocation5 + $0xa8] sm:$0xff] }
  0x91   :  { %13170 = vmatmul.mubr.msk.bf16.gmra.mrb[60].mxu0 %vm315_vm2, %v1524_v51  ;;  %v15932_v51 = vpack.c.bf16 %v15704_v53, %v15695_v3  ;;  %v15947_v3 = vand.u32 %v11845_v61, %v14980_v5  ;;  %v15949_v53 = vld [vmem:[#allocation5 + $0x30] sm:$0xff] }
  0x92   :  { %13175 = vmatprep.mubr.msk.bf16.mxu0 %vm315_vm2, %v2451_v7  ;;  %v11657_v7 = vld [vmem:[%s20074_s0 + $0x119] ss:$2 sm:$0xff]  ;;  %v11885_v61 = vld [vmem:[%s20074_s0 + $0x8a] ss:$2 sm:$0xff]  ;;  %4315 = vst.msk [vmem:[#allocation5 + $0x30] sm:$0xff] %vm315_vm2, %v11884_v57 }
  0x93   :  { %20181 = vst [vmem:[#allocation53_spill] sm:$0xff] %v15932_v51  ;;  %2265 = vst.msk [vmem:[#allocation5 + $0x70] sm:$0xff] %vm315_vm2, %v11657_v7  ;;  %v11432_v7 = vld [vmem:[%s20074_s0 + $0x1c8] ss:$2 sm:$0xff] }
  0x94   :  { %4316 = vst.msk [vmem:[#allocation5 + $0x38] sm:$0xff] %vm315_vm2, %v11885_v61  ;;  %339 = vst.msk [vmem:[#allocation5 + $0xb8] sm:$0xff] %vm315_vm2, %v11432_v7  ;;  %v11888_v57 = vld [vmem:[%s20074_s0 + $0xca] ss:$2 sm:$0xff]  ;;  %v11889_v61 = vld [vmem:[%s20074_s0 + $0xda] ss:$2 sm:$0xff] }
  0x95   :  { %v16015_v7 = vld [vmem:[#allocation5 + $0x50] sm:$0xff]  ;;  %4320 = vst.msk [vmem:[#allocation5 + $0x58] sm:$0xff] %vm315_vm2, %v11889_v61  ;;  %v16056_v61 = vld [vmem:[#allocation5 + $0x98] sm:$0xff] }
  0x96   :  { %4319 = vst.msk [vmem:[#allocation5 + $0x50] sm:$0xff] %vm315_vm2, %v11888_v57  ;;  %v11892_v57 = vld [vmem:[%s20074_s0 + $0x11a] ss:$2 sm:$0xff]  ;;  %20187 = vst [vmem:[#allocation59_spill] sm:$0xff] %v16056_v61 }
  0x97   :  { %2270 = vst.msk [vmem:[#allocation5 + $0x98] sm:$0xff] %vm315_vm2, %v11662_v10  ;;  %v11670_v10 = vld [vmem:[%s20074_s0 + $0x219] ss:$2 sm:$0xff]  ;;  %v2432_v61 = vld [vmem:[#allocation5 + $0x2e8] sm:$0xff] }
  0x99   :  { %13176 = vmatmul.mubr.msk.bf16.vlgmr.msra.gmra.mrb[0].mxu0 %vm315_vm2, %v2452_v14  ;;  %v2395_v14 = vld [vmem:[#allocation5 + $0x80] sm:$0xff] }
  0x9a   :  { %13240 = vmatpush3.bf16.msra.mxu0 %v15690_v46  ;;  %13179 = vmatprep.mubr.msk.bf16.mxu0 %vm315_vm2, %v15932_v51  ;;  %v11431_v46 = vld [vmem:[%s20074_s0 + $0x1b8] ss:$2 sm:$0xff]  ;;  %v2455_v44 = vpack.c.bf16 %v2396_v17, %v2395_v14  ;;  %v11665_v17 = vld [vmem:[%s20074_s0 + $0x1b9] ss:$2 sm:$0xff]  ;;  %v11666_v14 = vld [vmem:[%s20074_s0 + $0x1c9] ss:$2 sm:$0xff] }
  0x9b   :  { %13305 = vmatprep.subr.bf16.mxu0 %v15947_v3  ;;  %338 = vst.msk [vmem:[#allocation5 + $0xb0] sm:$0xff] %vm315_vm2, %v11431_v46  ;;  %v11661_v46 = vld [vmem:[%s20074_s0 + $0x169] ss:$2 sm:$0xff]  ;;  %v16062_v11 = vld [vmem:[#allocation5 + $0xb8] sm:$0xff] }
  0x9c   :  { %v16033_v1 = vld [vmem:[#allocation5 + $0x70] sm:$0xff]  ;;  %2269 = vst.msk [vmem:[#allocation5 + $0x90] sm:$0xff] %vm315_vm2, %v11661_v46  ;;  %20189 = vst [vmem:[#allocation61_spill] sm:$0xff] %v16062_v11 }
  0x9d   :  { %4323 = vst.msk [vmem:[#allocation5 + $0x70] sm:$0xff] %vm315_vm2, %v11892_v57  ;;  %2274 = vst.msk [vmem:[#allocation5 + $0xb8] sm:$0xff] %vm315_vm2, %v11666_v14  ;;  %v11896_v57 = vld [vmem:[%s20074_s0 + $0x16a] ss:$2 sm:$0xff]  ;;  %v11669_v46 = vld [vmem:[%s20074_s0 + $0x209] ss:$2 sm:$0xff] }
  0x9e   :  { %2277 = vst.msk [vmem:[#allocation5 + $0xd0] sm:$0xff] %vm315_vm2, %v11669_v46  ;;  %v11674_v14 = vld [vmem:[%s20074_s0 + $0x269] ss:$2 sm:$0xff] }
  0x9f   :  { %v2402_v46 = vld [vmem:[#allocation5 + $0xe8] sm:$0xff] }
  0xa1   :  { %13180 = vmatmul.mubr.msk.bf16.gmra.mrb[4].mxu0 %vm315_vm2, %v2454_v9  ;;  %v2399_v9 = vld [vmem:[#allocation5 + $0xc0] sm:$0xff] }
  0xa2   :  { %13183 = vmatprep.mubr.msk.bf16.mxu0 %vm315_vm2, %v2455_v44  ;;  %v16060_v8 = vld [vmem:[#allocation5 + $0xb0] sm:$0xff]  ;;  %v2456_v44 = vpack.c.bf16 %v2398_v26, %v2397_v55  ;;  %v2457_v4 = vpack.c.bf16 %v2400_v45, %v2399_v9  ;;  %v16080_v55 = vld [vmem:[#allocation5 + $0xd8] sm:$0xff] }
  0xa3   :  { %20188 = vst [vmem:[#allocation60_spill] sm:$0xff] %v16060_v8  ;;  %2273 = vst.msk [vmem:[#allocation5 + $0xb0] sm:$0xff] %vm315_vm2, %v11665_v17  ;;  %v11897_v17 = vld [vmem:[%s20074_s0 + $0x17a] ss:$2 sm:$0xff]  ;;  %v11673_v26 = vld [vmem:[%s20074_s0 + $0x259] ss:$2 sm:$0xff] }
  0xa4   :  { %20191 = vst [vmem:[#allocation63_spill] sm:$0xff] %v16080_v55  ;;  %2278 = vst.msk [vmem:[#allocation5 + $0xd8] sm:$0xff] %vm315_vm2, %v11670_v10  ;;  %v16092_v9 = vld [vmem:[#allocation5 + $0xf8] sm:$0xff]  ;;  %v11443_v45 = vld [vmem:[%s20074_s0 + $0x2a8] ss:$2 sm:$0xff] }
  0xa5   :  { %20193 = vst [vmem:[#allocation65_spill] sm:$0xff] %v16092_v9  ;;  %2281 = vst.msk [vmem:[#allocation5 + $0xf0] sm:$0xff] %vm315_vm2, %v11673_v26  ;;  %v11447_v10 = vld [vmem:[%s20074_s0 + $0x2f8] ss:$2 sm:$0xff]  ;;  %v2404_v26 = vld [vmem:[#allocation5 + $0x108] sm:$0xff] }
  0xa6   :  { %2282 = vst.msk [vmem:[#allocation5 + $0xf8] sm:$0xff] %vm315_vm2, %v11674_v14  ;;  %350 = vst.msk [vmem:[#allocation5 + $0x110] sm:$0xff] %vm315_vm2, %v11443_v45  ;;  %v16110_v6 = vld [vmem:[#allocation5 + $0x90] sm:$0xff]  ;;  %v11900_v14 = vld [vmem:[%s20074_s0 + $0x1ba] ss:$2 sm:$0xff]  ;;  %v2459_v27 = vpack.c.bf16 %v2404_v26, %v2403_v18 }
  0xa7   :  { %v11901_v45 = vld [vmem:[%s20074_s0 + $0x1ca] ss:$2 sm:$0xff]  ;;  %354 = vst.msk [vmem:[#allocation5 + $0x130] sm:$0xff] %vm315_vm2, %v11447_v10  ;;  %4327 = vst.msk [vmem:[#allocation5 + $0x90] sm:$0xff] %vm315_vm2, %v11896_v57  ;;  %v2458_v10 = vpack.c.bf16 %v2402_v46, %v2401_v37  ;;  %v11682_v37 = vld [vmem:[%s20074_s0 + $0x309] ss:$2 sm:$0xff] }
  0xa8   :  { %v16142_v28 = vld [vmem:[#allocation5 + $0xd0] sm:$0xff]  ;;  %v2406_v57 = vld [vmem:[#allocation5 + $0x128] sm:$0xff]  ;;  %v16175_v46 = vld [vmem:[#allocation5 + $0x138] sm:$0xff] }
  0xa9   :  { %13184 = vmatmul.mubr.msk.bf16.gmra.mrb[8].mxu0 %vm315_vm2, %v2456_v44  ;;  %v16122_v44 = vld [vmem:[#allocation5 + $0x98] sm:$0xff]  ;;  %4335 = vst.msk [vmem:[#allocation5 + $0xd0] sm:$0xff] %vm315_vm2, %v11904_v2  ;;  %v2405_v2 = vld [vmem:[#allocation5 + $0x120] sm:$0xff]  ;;  %20197 = vst [vmem:[#allocation69_spill] sm:$0xff] %v16175_v46 }
  0xaa   :  { %13187 = vmatprep.mubr.msk.bf16.mxu0 %vm315_vm2, %v2457_v4  ;;  %4328 = vst.msk [vmem:[#allocation5 + $0x98] sm:$0xff] %vm315_vm2, %v11897_v17  ;;  %v16134_v21 = vld [vmem:[#allocation5 + $0xb0] sm:$0xff]  ;;  %v16136_v4 = vld [vmem:[#allocation5 + $0xb8] sm:$0xff]  ;;  %2290 = vst.msk [vmem:[#allocation5 + $0x138] sm:$0xff] %vm315_vm2, %v11682_v37 }
  0xab   :  { %4331 = vst.msk [vmem:[#allocation5 + $0xb0] sm:$0xff] %vm315_vm2, %v11900_v14  ;;  %4332 = vst.msk [vmem:[#allocation5 + $0xb8] sm:$0xff] %vm315_vm2, %v11901_v45  ;;  %v11678_v17 = vld [vmem:[%s20074_s0 + $0x2b9] ss:$2 sm:$0xff]  ;;  %v11912_v37 = vld [vmem:[%s20074_s0 + $0x2aa] ss:$2 sm:$0xff] }
  0xac   :  { %v16150_v42 = vld [vmem:[#allocation5 + $0xd8] sm:$0xff]  ;;  %v16162_v45 = vld [vmem:[#allocation5 + $0xf0] sm:$0xff]  ;;  %2286 = vst.msk [vmem:[#allocation5 + $0x118] sm:$0xff] %vm315_vm2, %v11678_v17 }
  0xad   :  { %v11681_v14 = vld [vmem:[%s20074_s0 + $0x2f9] ss:$2 sm:$0xff]  ;;  %4336 = vst.msk [vmem:[#allocation5 + $0xd8] sm:$0xff] %vm315_vm2, %v11905_v39  ;;  %v16166_v26 = vld [vmem:[#allocation5 + $0x110] sm:$0xff]  ;;  %v11908_v39 = vld [vmem:[%s20074_s0 + $0x25a] ss:$2 sm:$0xff] }
  0xae   :  { %v16164_v18 = vld [vmem:[#allocation5 + $0xf8] sm:$0xff]  ;;  %20194 = vst [vmem:[#allocation66_spill] sm:$0xff] %v16166_v26  ;;  %2285 = vst.msk [vmem:[#allocation5 + $0x110] sm:$0xff] %vm315_vm2, %v11677_v30  ;;  %v16173_v54 = vld [vmem:[#allocation5 + $0x130] sm:$0xff] }
  0xaf   :  { %20196 = vst [vmem:[#allocation68_spill] sm:$0xff] %v16173_v54  ;;  %2289 = vst.msk [vmem:[#allocation5 + $0x130] sm:$0xff] %vm315_vm2, %v11681_v14  ;;  %v11451_v30 = vld [vmem:[%s20074_s0 + $0x348] ss:$2 sm:$0xff]  ;;  %v11452_v17 = vld [vmem:[%s20074_s0 + $0x358] ss:$2 sm:$0xff] }
  0xb0   :  { %4339 = vst.msk [vmem:[#allocation5 + $0xf0] sm:$0xff] %vm315_vm2, %v11908_v39  ;;  %4340 = vst.msk [vmem:[#allocation5 + $0xf8] sm:$0xff] %vm315_vm2, %v11909_v16  ;;  %v11455_v14 = vld [vmem:[%s20074_s0 + $0x398] ss:$2 sm:$0xff]  ;;  %v2460_v16 = vpack.c.bf16 %v2406_v57, %v2405_v2  ;;  %v11686_v57 = vld [vmem:[%s20074_s0 + $0x359] ss:$2 sm:$0xff] }
  0xb1   :  { %13188 = vmatmul.mubr.msk.bf16.gmra.mrb[12].mxu0 %vm315_vm2, %v2458_v10  ;;  %v2407_v10 = vld [vmem:[#allocation5 + $0x140] sm:$0xff]  ;;  %358 = vst.msk [vmem:[#allocation5 + $0x150] sm:$0xff] %vm315_vm2, %v11451_v30  ;;  %359 = vst.msk [vmem:[#allocation5 + $0x158] sm:$0xff] %vm315_vm2, %v11452_v17  ;;  %v11459_v30 = vld [vmem:[%s20074_s0 + $0x3e8] ss:$2 sm:$0xff] }
  0xb2   :  { %13191 = vmatprep.mubr.msk.bf16.mxu0 %vm315_vm2, %v2459_v27  ;;  %v11456_v27 = vld [vmem:[%s20074_s0 + $0x3a8] ss:$2 sm:$0xff]  ;;  %362 = vst.msk [vmem:[#allocation5 + $0x170] sm:$0xff] %vm315_vm2, %v11455_v14  ;;  %v2461_v17 = vpack.c.bf16 %v2408_v33, %v2407_v10  ;;  %v11685_v14 = vld [vmem:[%s20074_s0 + $0x349] ss:$2 sm:$0xff]  ;;  %366 = vst.msk [vmem:[#allocation5 + $0x190] sm:$0xff] %vm315_vm2, %v11459_v30 }
  0xb3   :  { %363 = vst.msk [vmem:[#allocation5 + $0x178] sm:$0xff] %vm315_vm2, %v11456_v27  ;;  %v11913_v39 = vld [vmem:[%s20074_s0 + $0x2ba] ss:$2 sm:$0xff]  ;;  %v11689_v33 = vld [vmem:[%s20074_s0 + $0x399] ss:$2 sm:$0xff] }
  0xb4   :  { %v11460_v2 = vld [vmem:[%s20074_s0 + $0x3f8] ss:$2 sm:$0xff]  ;;  %v11690_v10 = vld [vmem:[%s20074_s0 + $0x3a9] ss:$2 sm:$0xff]  ;;  %v11464_v30 = vld [vmem:[%s20074_s0 + $0x448] ss:$2 sm:$0xff] }
  0xb5   :  { %v16225_v27 = vld [vmem:[#allocation5 + $0x110] sm:$0xff]  ;;  %367 = vst.msk [vmem:[#allocation5 + $0x198] sm:$0xff] %vm315_vm2, %v11460_v2  ;;  %v16240_v24 = vld [vmem:[#allocation5 + $0x118] sm:$0xff]  ;;  %371 = vst.msk [vmem:[#allocation5 + $0x1b8] sm:$0xff] %vm315_vm2, %v11464_v30 }
  0xb6   :  { %4343 = vst.msk [vmem:[#allocation5 + $0x110] sm:$0xff] %vm315_vm2, %v11912_v37  ;;  %v16243_v19 = vld [vmem:[#allocation5 + $0x130] sm:$0xff]  ;;  %v16245_v60 = vld [vmem:[#allocation5 + $0x138] sm:$0xff]  ;;  %4344 = vst.msk [vmem:[#allocation5 + $0x118] sm:$0xff] %vm315_vm2, %v11913_v39 }
  0xb7   :  { %v11916_v37 = vld [vmem:[%s20074_s0 + $0x2fa] ss:$2 sm:$0xff]  ;;  %4348 = vst.msk [vmem:[#allocation5 + $0x138] sm:$0xff] %vm315_vm2, %v11917_v13 }
  0xb8   :  { %v16261_v40 = vld [vmem:[#allocation5 + $0x150] sm:$0xff]  ;;  %v2412_v30 = vld [vmem:[#allocation5 + $0x188] sm:$0xff]  ;;  %4347 = vst.msk [vmem:[#allocation5 + $0x130] sm:$0xff] %vm315_vm2, %v11916_v37  ;;  %v16266_v39 = vld [vmem:[#allocation5 + $0x158] sm:$0xff] }
  0xb9   :  { %13192 = vmatmul.mubr.msk.bf16.gmra.mrb[16].mxu0 %vm315_vm2, %v2460_v16  ;;  %20198 = vst [vmem:[#allocation70_spill] sm:$0xff] %v16261_v40  ;;  %v2411_v16 = vld [vmem:[#allocation5 + $0x180] sm:$0xff]  ;;  %20199 = vst [vmem:[#allocation71_spill] sm:$0xff] %v16266_v39  ;;  %v16270_v56 = vld [vmem:[#allocation5 + $0x170] sm:$0xff] }
  0xba   :  { %13195 = vmatprep.mubr.msk.bf16.mxu0 %vm315_vm2, %v2461_v17  ;;  %2293 = vst.msk [vmem:[#allocation5 + $0x150] sm:$0xff] %vm315_vm2, %v11685_v14  ;;  %2294 = vst.msk [vmem:[#allocation5 + $0x158] sm:$0xff] %vm315_vm2, %v11686_v57  ;;  %v16272_v2 = vld [vmem:[#allocation5 + $0x178] sm:$0xff]  ;;  %v2462_v17 = vpack.c.bf16 %v2410_v48, %v2409_v52  ;;  %v16279_v13 = vld [vmem:[#allocation5 + $0x190] sm:$0xff]  ;;  %v2463_v36 = vpack.c.bf16 %v2412_v30, %v2411_v16 }
  0xbb   :  { %20200 = vst [vmem:[#allocation72_spill] sm:$0xff] %v16270_v56  ;;  %20201 = vst [vmem:[#allocation73_spill] sm:$0xff] %v16272_v2  ;;  %v11920_v37 = vld [vmem:[%s20074_s0 + $0x34a] ss:$2 sm:$0xff]  ;;  %v11693_v14 = vld [vmem:[%s20074_s0 + $0x3e9] ss:$2 sm:$0xff] }
  0xbc   :  { %2297 = vst.msk [vmem:[#allocation5 + $0x170] sm:$0xff] %vm315_vm2, %v11689_v33  ;;  %2298 = vst.msk [vmem:[#allocation5 + $0x178] sm:$0xff] %vm315_vm2, %v11690_v10  ;;  %v11694_v57 = vld [vmem:[%s20074_s0 + $0x3f9] ss:$2 sm:$0xff]  ;;  %v11921_v33 = vld [vmem:[%s20074_s0 + $0x35a] ss:$2 sm:$0xff] }
  0xbd   :  { %20202 = vst [vmem:[#allocation74_spill] sm:$0xff] %v16279_v13  ;;  %v16290_v48 = vld [vmem:[#allocation5 + $0x198] sm:$0xff]  ;;  %2301 = vst.msk [vmem:[#allocation5 + $0x190] sm:$0xff] %vm315_vm2, %v11693_v14  ;;  %v11698_v10 = vld [vmem:[%s20074_s0 + $0x449] ss:$2 sm:$0xff] }
  0xbe   :  { %20203 = vst [vmem:[#allocation75_spill] sm:$0xff] %v16290_v48  ;;  %v11697_v52 = vld [vmem:[%s20074_s0 + $0x439] ss:$2 sm:$0xff]  ;;  %2302 = vst.msk [vmem:[#allocation5 + $0x198] sm:$0xff] %vm315_vm2, %v11694_v57  ;;  %v11467_v30 = vld [vmem:[%s20074_s0 + $0x488] ss:$2 sm:$0xff] }
  0xbf   :  { %v16302_v16 = vld [vmem:[#allocation5 + $0x1b8] sm:$0xff]  ;;  %v2414_v14 = vld [vmem:[#allocation5 + $0x1a8] sm:$0xff]  ;;  %2305 = vst.msk [vmem:[#allocation5 + $0x1b0] sm:$0xff] %vm315_vm2, %v11697_v52  ;;  %374 = vst.msk [vmem:[#allocation5 + $0x1d0] sm:$0xff] %vm315_vm2, %v11467_v30 }
  0xc0   :  { %20205 = vst [vmem:[#allocation77_spill] sm:$0xff] %v16302_v16  ;;  %2306 = vst.msk [vmem:[#allocation5 + $0x1b8] sm:$0xff] %vm315_vm2, %v11698_v10  ;;  %v11471_v57 = vld [vmem:[%s20074_s0 + $0x4d8] ss:$2 sm:$0xff]  ;;  %v11472_v16 = vld [vmem:[%s20074_s0 + $0x4e8] ss:$2 sm:$0xff] }
  0xc1   :  { %13196 = vmatmul.mubr.msk.bf16.gmra.mrb[20].mxu0 %vm315_vm2, %v2462_v17  ;;  %v2416_v52 = vld [vmem:[#allocation5 + $0x1c8] sm:$0xff]  ;;  %v16320_v48 = vld [vmem:[#allocation5 + $0x150] sm:$0xff]  ;;  %378 = vst.msk [vmem:[#allocation5 + $0x1f0] sm:$0xff] %vm315_vm2, %v11471_v57  ;;  %379 = vst.msk [vmem:[#allocation5 + $0x1f8] sm:$0xff] %vm315_vm2, %v11472_v16  ;;  %v2464_v57 = vpack.c.bf16 %v2414_v14, %v2413_v34 }
  0xc2   :  { %v11924_v10 = vld [vmem:[%s20074_s0 + $0x39a] ss:$2 sm:$0xff]  ;;  %v11925_v30 = vld [vmem:[%s20074_s0 + $0x3aa] ss:$2 sm:$0xff]  ;;  %13199 = vmatprep.mubr.msk.bf16.mxu0 %vm315_vm2, %v2463_v36  ;;  %4351 = vst.msk [vmem:[#allocation5 + $0x150] sm:$0xff] %vm315_vm2, %v11920_v37  ;;  %v2465_v39 = vpack.c.bf16 %v2416_v52, %v2415_v23 }
  0xc3   :  { %v16332_v17 = vld [vmem:[#allocation5 + $0x158] sm:$0xff]  ;;  %v16344_v16 = vld [vmem:[#allocation5 + $0x170] sm:$0xff] }
  0xc4   :  { %v11928_v13 = vld [vmem:[%s20074_s0 + $0x3ea] ss:$2 sm:$0xff]  ;;  %v11929_v2 = vld [vmem:[%s20074_s0 + $0x3fa] ss:$2 sm:$0xff]  ;;  %4352 = vst.msk [vmem:[#allocation5 + $0x158] sm:$0xff] %vm315_vm2, %v11921_v33  ;;  %4355 = vst.msk [vmem:[#allocation5 + $0x170] sm:$0xff] %vm315_vm2, %v11924_v10 }
  0xc5   :  { %v16346_v36 = vld [vmem:[#allocation5 + $0x178] sm:$0xff]  ;;  %v16352_v56 = vld [vmem:[#allocation5 + $0x190] sm:$0xff] }
  0xc6   :  { %4356 = vst.msk [vmem:[#allocation5 + $0x178] sm:$0xff] %vm315_vm2, %v11925_v30  ;;  %v11702_v33 = vld [vmem:[%s20074_s0 + $0x499] ss:$2 sm:$0xff]  ;;  %4359 = vst.msk [vmem:[#allocation5 + $0x190] sm:$0xff] %vm315_vm2, %v11928_v13  ;;  %v11706_v34 = vld [vmem:[%s20074_s0 + $0x4e9] ss:$2 sm:$0xff] }
  0xc7   :  { %v16360_v40 = vld [vmem:[#allocation5 + $0x198] sm:$0xff]  ;;  %v16372_v30 = vld [vmem:[#allocation5 + $0x1b0] sm:$0xff]  ;;  %v2418_v13 = vld [vmem:[#allocation5 + $0x1e8] sm:$0xff] }
  0xc8   :  { %v11705_v10 = vld [vmem:[%s20074_s0 + $0x4d9] ss:$2 sm:$0xff]  ;;  %4360 = vst.msk [vmem:[#allocation5 + $0x198] sm:$0xff] %vm315_vm2, %v11929_v2  ;;  %v16376_v52 = vld [vmem:[#allocation5 + $0x1d0] sm:$0xff]  ;;  %v11932_v2 = vld [vmem:[%s20074_s0 + $0x43a] ss:$2 sm:$0xff] }
  0xc9   :  { %v16374_v23 = vld [vmem:[#allocation5 + $0x1b8] sm:$0xff]  ;;  %20206 = vst [vmem:[#allocation78_spill] sm:$0xff] %v16376_v52  ;;  %2309 = vst.msk [vmem:[#allocation5 + $0x1d0] sm:$0xff] %vm315_vm2, %v11701_v63  ;;  %v16383_v46 = vld [vmem:[#allocation5 + $0x1f0] sm:$0xff]  ;;  %13200 = vmatmul.mubr.msk.bf16.gmra.mrb[24].mxu0 %vm315_vm2, %v2464_v57 }
  0xca   :  { %v16380_v37 = vld [vmem:[#allocation5 + $0x1d8] sm:$0xff]  ;;  %20208 = vst [vmem:[#allocation80_spill] sm:$0xff] %v16383_v46  ;;  %2313 = vst.msk [vmem:[#allocation5 + $0x1f0] sm:$0xff] %vm315_vm2, %v11705_v10  ;;  %13203 = vmatprep.mubr.msk.bf16.mxu0 %vm315_vm2, %v2465_v39  ;;  %v2417_v57 = vld [vmem:[#allocation5 + $0x1e0] sm:$0xff] }
  0xcb   :  { %20207 = vst [vmem:[#allocation79_spill] sm:$0xff] %v16380_v37  ;;  %v16385_v54 = vld [vmem:[#allocation5 + $0x1f8] sm:$0xff]  ;;  %2310 = vst.msk [vmem:[#allocation5 + $0x1d8] sm:$0xff] %vm315_vm2, %v11702_v33  ;;  %v11480_v33 = vld [vmem:[%s20074_s0 + $0x588] ss:$2 sm:$0xff] }
  0xcc   :  { %20209 = vst [vmem:[#allocation81_spill] sm:$0xff] %v16385_v54  ;;  %v11933_v14 = vld [vmem:[%s20074_s0 + $0x44a] ss:$2 sm:$0xff]  ;;  %2314 = vst.msk [vmem:[#allocation5 + $0x1f8] sm:$0xff] %vm315_vm2, %v11706_v34  ;;  %v2466_v34 = vpack.c.bf16 %v2418_v13, %v2417_v57  ;;  %v11714_v13 = vld [vmem:[%s20074_s0 + $0x589] ss:$2 sm:$0xff] }
  0xcd   :  { %v11479_v63 = vld [vmem:[%s20074_s0 + $0x578] ss:$2 sm:$0xff]  ;;  %4363 = vst.msk [vmem:[#allocation5 + $0x1b0] sm:$0xff] %vm315_vm2, %v11932_v2  ;;  %4364 = vst.msk [vmem:[#allocation5 + $0x1b8] sm:$0xff] %vm315_vm2, %v11933_v14  ;;  %v11483_v10 = vld [vmem:[%s20074_s0 + $0x5c8] ss:$2 sm:$0xff] }
  0xce   :  { %386 = vst.msk [vmem:[#allocation5 + $0x230] sm:$0xff] %vm315_vm2, %v11479_v63  ;;  %387 = vst.msk [vmem:[#allocation5 + $0x238] sm:$0xff] %vm315_vm2, %v11480_v33  ;;  %v11484_v39 = vld [vmem:[%s20074_s0 + $0x5d8] ss:$2 sm:$0xff]  ;;  %v11713_v33 = vld [vmem:[%s20074_s0 + $0x579] ss:$2 sm:$0xff] }
  0xcf   :  { %390 = vst.msk [vmem:[#allocation5 + $0x250] sm:$0xff] %vm315_vm2, %v11483_v10  ;;  %391 = vst.msk [vmem:[#allocation5 + $0x258] sm:$0xff] %vm315_vm2, %v11484_v39  ;;  %v11936_v14 = vld [vmem:[%s20074_s0 + $0x48a] ss:$2 sm:$0xff]  ;;  %v11937_v2 = vld [vmem:[%s20074_s0 + $0x49a] ss:$2 sm:$0xff] }
  0xd0   :  { %v11487_v63 = vld [vmem:[%s20074_s0 + $0x618] ss:$2 sm:$0xff]  ;;  %v11488_v57 = vld [vmem:[%s20074_s0 + $0x628] ss:$2 sm:$0xff]  ;;  %v11717_v39 = vld [vmem:[%s20074_s0 + $0x5c9] ss:$2 sm:$0xff] }
  0xd1   :  { %394 = vst.msk [vmem:[#allocation5 + $0x270] sm:$0xff] %vm315_vm2, %v11487_v63  ;;  %v16435_v10 = vld [vmem:[#allocation5 + $0x1d0] sm:$0xff]  ;;  %v11718_v54 = vld [vmem:[%s20074_s0 + $0x5d9] ss:$2 sm:$0xff]  ;;  %395 = vst.msk [vmem:[#allocation5 + $0x278] sm:$0xff] %vm315_vm2, %v11488_v57  ;;  %13204 = vmatmul.mubr.msk.bf16.gmra.mrb[28].mxu0 %vm315_vm2, %v2466_v34  ;;  %v20211_v34 = vpack.c.bf16 %v15797_v47, %v15795_v43 }
  0xd2   :  { %v11491_v46 = vld [vmem:[%s20074_s0 + $0x668] ss:$2 sm:$0xff]  ;;  %v11492_v63 = vld [vmem:[%s20074_s0 + $0x678] ss:$2 sm:$0xff]  ;;  %4367 = vst.msk [vmem:[#allocation5 + $0x1d0] sm:$0xff] %vm315_vm2, %v11936_v14 }
  0xd3   :  { %v2421_v37 = vld [vmem:[#allocation5 + $0x240] sm:$0xff]  ;;  %v2422_v52 = vld [vmem:[#allocation5 + $0x248] sm:$0xff]  ;;  %v16450_v31 = vld [vmem:[#allocation5 + $0x1d8] sm:$0xff]  ;;  %398 = vst.msk [vmem:[#allocation5 + $0x290] sm:$0xff] %vm315_vm2, %v11491_v46  ;;  %13207 = vmatprep.mubr.msk.bf16.mxu0 %vm315_vm2, %v20211_v34 }
  0xd4   :  { %v16453_v26 = vld [vmem:[#allocation5 + $0x1f0] sm:$0xff]  ;;  %v16455_v9 = vld [vmem:[#allocation5 + $0x1f8] sm:$0xff]  ;;  %399 = vst.msk [vmem:[#allocation5 + $0x298] sm:$0xff] %vm315_vm2, %v11492_v63  ;;  %4368 = vst.msk [vmem:[#allocation5 + $0x1d8] sm:$0xff] %vm315_vm2, %v11937_v2  ;;  %v2468_v43 = vpack.c.bf16 %v2422_v52, %v2421_v37 }
  0xd5   :  { %v11940_v14 = vld [vmem:[%s20074_s0 + $0x4da] ss:$2 sm:$0xff]  ;;  %v11941_v46 = vld [vmem:[%s20074_s0 + $0x4ea] ss:$2 sm:$0xff]  ;;  %v11725_v52 = vld [vmem:[%s20074_s0 + $0x669] ss:$2 sm:$0xff] }
  0xd6   :  { %v16471_v55 = vld [vmem:[#allocation5 + $0x230] sm:$0xff]  ;;  %v2423_v63 = vld [vmem:[#allocation5 + $0x260] sm:$0xff]  ;;  %v2424_v2 = vld [vmem:[#allocation5 + $0x268] sm:$0xff]  ;;  %4371 = vst.msk [vmem:[#allocation5 + $0x1f0] sm:$0xff] %vm315_vm2, %v11940_v14 }
  0xd7   :  { %20210 = vst [vmem:[#allocation82_spill] sm:$0xff] %v16471_v55  ;;  %4372 = vst.msk [vmem:[#allocation5 + $0x1f8] sm:$0xff] %vm315_vm2, %v11941_v46  ;;  %v16479_v32 = vld [vmem:[#allocation5 + $0x238] sm:$0xff]  ;;  %v16483_v57 = vld [vmem:[#allocation5 + $0x250] sm:$0xff]  ;;  %v2469_v46 = vpack.c.bf16 %v2424_v2, %v2423_v63 }
  0xd8   :  { %20212 = vst [vmem:[#allocation83_spill] sm:$0xff] %v16479_v32  ;;  %2321 = vst.msk [vmem:[#allocation5 + $0x230] sm:$0xff] %vm315_vm2, %v11713_v33  ;;  %v16485_v55 = vld [vmem:[#allocation5 + $0x258] sm:$0xff]  ;;  %v16492_v14 = vld [vmem:[#allocation5 + $0x270] sm:$0xff] }
  0xd9   :  { %2322 = vst.msk [vmem:[#allocation5 + $0x238] sm:$0xff] %vm315_vm2, %v11714_v13  ;;  %20213 = vst [vmem:[#allocation84_spill] sm:$0xff] %v16483_v57  ;;  %v11948_v47 = vld [vmem:[%s20074_s0 + $0x57a] ss:$2 sm:$0xff]  ;;  %v11721_v33 = vld [vmem:[%s20074_s0 + $0x619] ss:$2 sm:$0xff]  ;;  %13208 = vmatmul.mubr.msk.bf16.gmra.mrb[32].mxu0 %vm315_vm2, %v2468_v43 }
  0xda   :  { %20214 = vst [vmem:[#allocation85_spill] sm:$0xff] %v16485_v55  ;;  %2325 = vst.msk [vmem:[#allocation5 + $0x250] sm:$0xff] %vm315_vm2, %v11717_v39  ;;  %v11722_v13 = vld [vmem:[%s20074_s0 + $0x629] ss:$2 sm:$0xff]  ;;  %v16503_v37 = vld [vmem:[#allocation5 + $0x278] sm:$0xff]  ;;  %13211 = vmatprep.mubr.msk.bf16.mxu0 %vm315_vm2, %v2469_v46 }
  0xdb   :  { %2326 = vst.msk [vmem:[#allocation5 + $0x258] sm:$0xff] %vm315_vm2, %v11718_v54  ;;  %20215 = vst [vmem:[#allocation86_spill] sm:$0xff] %v16492_v14  ;;  %v11949_v54 = vld [vmem:[%s20074_s0 + $0x58a] ss:$2 sm:$0xff]  ;;  %v11726_v39 = vld [vmem:[%s20074_s0 + $0x679] ss:$2 sm:$0xff] }
  0xdc   :  { %20216 = vst [vmem:[#allocation87_spill] sm:$0xff] %v16503_v37  ;;  %2329 = vst.msk [vmem:[#allocation5 + $0x270] sm:$0xff] %vm315_vm2, %v11721_v33  ;;  %v16513_v34 = vld [vmem:[#allocation5 + $0x290] sm:$0xff]  ;;  %v16515_v63 = vld [vmem:[#allocation5 + $0x298] sm:$0xff] }
  0xdd   :  { %2330 = vst.msk [vmem:[#allocation5 + $0x278] sm:$0xff] %vm315_vm2, %v11722_v13  ;;  %20217 = vst [vmem:[#allocation88_spill] sm:$0xff] %v16513_v34  ;;  %v11495_v2 = vld [vmem:[%s20074_s0 + $0x6b8] ss:$2 sm:$0xff]  ;;  %v2426_v33 = vld [vmem:[#allocation5 + $0x288] sm:$0xff] }
  0xde   :  { %20218 = vst [vmem:[#allocation89_spill] sm:$0xff] %v16515_v63  ;;  %v2425_v37 = vld [vmem:[#allocation5 + $0x280] sm:$0xff]  ;;  %2333 = vst.msk [vmem:[#allocation5 + $0x290] sm:$0xff] %vm315_vm2, %v11725_v52  ;;  %v11496_v14 = vld [vmem:[%s20074_s0 + $0x6c8] ss:$2 sm:$0xff] }
  0xdf   :  { %2334 = vst.msk [vmem:[#allocation5 + $0x298] sm:$0xff] %vm315_vm2, %v11726_v39  ;;  %402 = vst.msk [vmem:[#allocation5 + $0x2b0] sm:$0xff] %vm315_vm2, %v11495_v2  ;;  %v11499_v13 = vld [vmem:[%s20074_s0 + $0x708] ss:$2 sm:$0xff]  ;;  %v11500_v63 = vld [vmem:[%s20074_s0 + $0x718] ss:$2 sm:$0xff] }
  0xe0   :  { %v2427_v34 = vld [vmem:[#allocation5 + $0x2a0] sm:$0xff]  ;;  %v2428_v52 = vld [vmem:[#allocation5 + $0x2a8] sm:$0xff]  ;;  %v16533_v55 = vld [vmem:[#allocation5 + $0x230] sm:$0xff]  ;;  %403 = vst.msk [vmem:[#allocation5 + $0x2b8] sm:$0xff] %vm315_vm2, %v11496_v14 }
  0xe1   :  { %v11952_v39 = vld [vmem:[%s20074_s0 + $0x5ca] ss:$2 sm:$0xff]  ;;  %v11953_v2 = vld [vmem:[%s20074_s0 + $0x5da] ss:$2 sm:$0xff]  ;;  %406 = vst.msk [vmem:[#allocation5 + $0x2d0] sm:$0xff] %vm315_vm2, %v11499_v13  ;;  %407 = vst.msk [vmem:[#allocation5 + $0x2d8] sm:$0xff] %vm315_vm2, %v11500_v63  ;;  %v2470_v13 = vpack.c.bf16 %v2426_v33, %v2425_v37  ;;  %v2471_v11 = vpack.c.bf16 %v2428_v52, %v2427_v34 }
  0xe2   :  { %v16545_v43 = vld [vmem:[#allocation5 + $0x238] sm:$0xff]  ;;  %4379 = vst.msk [vmem:[#allocation5 + $0x230] sm:$0xff] %vm315_vm2, %v11948_v47  ;;  %v16557_v63 = vld [vmem:[#allocation5 + $0x250] sm:$0xff]  ;;  %v2430_v47 = vld [vmem:[#allocation5 + $0x2c8] sm:$0xff] }
  0xe3   :  { %v11956_v57 = vld [vmem:[%s20074_s0 + $0x61a] ss:$2 sm:$0xff]  ;;  %v11957_v32 = vld [vmem:[%s20074_s0 + $0x62a] ss:$2 sm:$0xff]  ;;  %4380 = vst.msk [vmem:[#allocation5 + $0x238] sm:$0xff] %vm315_vm2, %v11949_v54  ;;  %4383 = vst.msk [vmem:[#allocation5 + $0x250] sm:$0xff] %vm315_vm2, %v11952_v39  ;;  %13212 = vmatmul.mubr.msk.bf16.gmra.mrb[36].mxu0 %vm315_vm2, %v2470_v13 }
  0xe4   :  { %v16559_v46 = vld [vmem:[#allocation5 + $0x258] sm:$0xff]  ;;  %v16565_v50 = vld [vmem:[#allocation5 + $0x270] sm:$0xff]  ;;  %13215 = vmatprep.mubr.msk.bf16.mxu0 %vm315_vm2, %v2471_v11  ;;  %v2431_v13 = vld [vmem:[#allocation5 + $0x2e0] sm:$0xff] }
  0xe5   :  { %4384 = vst.msk [vmem:[#allocation5 + $0x258] sm:$0xff] %vm315_vm2, %v11953_v2  ;;  %v11729_v14 = vld [vmem:[%s20074_s0 + $0x6b9] ss:$2 sm:$0xff]  ;;  %v11730_v54 = vld [vmem:[%s20074_s0 + $0x6c9] ss:$2 sm:$0xff]  ;;  %4387 = vst.msk [vmem:[#allocation5 + $0x270] sm:$0xff] %vm315_vm2, %v11956_v57 }
  0xe6   :  { %v16573_v8 = vld [vmem:[#allocation5 + $0x278] sm:$0xff]  ;;  %v11733_v39 = vld [vmem:[%s20074_s0 + $0x709] ss:$2 sm:$0xff]  ;;  %v2429_v57 = vld [vmem:[#allocation5 + $0x2c0] sm:$0xff] }
  0xe7   :  { %v11734_v37 = vld [vmem:[%s20074_s0 + $0x719] ss:$2 sm:$0xff]  ;;  %4388 = vst.msk [vmem:[#allocation5 + $0x278] sm:$0xff] %vm315_vm2, %v11957_v32  ;;  %v16585_v2 = vld [vmem:[#allocation5 + $0x290] sm:$0xff]  ;;  %v11508_v11 = vld [vmem:[%s20074_s0 + $0x7b8] ss:$2 sm:$0xff] }
  0xe8   :  { %v16587_v34 = vld [vmem:[#allocation5 + $0x298] sm:$0xff]  ;;  %v16589_v52 = vld [vmem:[#allocation5 + $0x2b0] sm:$0xff]  ;;  %415 = vst.msk [vmem:[#allocation5 + $0x318] sm:$0xff] %vm315_vm2, %v11508_v11 }
  0xe9   :  { %20219 = vst [vmem:[#allocation90_spill] sm:$0xff] %v16589_v52  ;;  %v16593_v59 = vld [vmem:[#allocation5 + $0x2b8] sm:$0xff]  ;;  %2337 = vst.msk [vmem:[#allocation5 + $0x2b0] sm:$0xff] %vm315_vm2, %v11729_v14  ;;  %v16596_v35 = vld [vmem:[#allocation5 + $0x2d0] sm:$0xff] }
  0xea   :  { %20220 = vst [vmem:[#allocation91_spill] sm:$0xff] %v16593_v59  ;;  %20221 = vst [vmem:[#allocation92_spill] sm:$0xff] %v16596_v35  ;;  %v16598_v33 = vld [vmem:[#allocation5 + $0x2d8] sm:$0xff]  ;;  %v2433_v35 = vld [vmem:[#allocation5 + $0x300] sm:$0xff] }
  0xeb   :  { %20222 = vst [vmem:[#allocation93_spill] sm:$0xff] %v16598_v33  ;;  %v11960_v32 = vld [vmem:[%s20074_s0 + $0x66a] ss:$2 sm:$0xff]  ;;  %v11961_v52 = vld [vmem:[%s20074_s0 + $0x67a] ss:$2 sm:$0xff]  ;;  %2338 = vst.msk [vmem:[#allocation5 + $0x2b8] sm:$0xff] %vm315_vm2, %v11730_v54 }
  0xec   :  { %2341 = vst.msk [vmem:[#allocation5 + $0x2d0] sm:$0xff] %vm315_vm2, %v11733_v39  ;;  %2342 = vst.msk [vmem:[#allocation5 + $0x2d8] sm:$0xff] %vm315_vm2, %v11734_v37  ;;  %v11503_v14 = vld [vmem:[%s20074_s0 + $0x758] ss:$2 sm:$0xff]  ;;  %v11504_v54 = vld [vmem:[%s20074_s0 + $0x768] ss:$2 sm:$0xff]  ;;  %v2472_v37 = vpack.c.bf16 %v2430_v47, %v2429_v57 }
  0xed   :  { %4391 = vst.msk [vmem:[#allocation5 + $0x290] sm:$0xff] %vm315_vm2, %v11960_v32  ;;  %4392 = vst.msk [vmem:[#allocation5 + $0x298] sm:$0xff] %vm315_vm2, %v11961_v52  ;;  %v11507_v39 = vld [vmem:[%s20074_s0 + $0x7a8] ss:$2 sm:$0xff]  ;;  %v11738_v47 = vld [vmem:[%s20074_s0 + $0x769] ss:$2 sm:$0xff] }
  0xee   :  { %410 = vst.msk [vmem:[#allocation5 + $0x2f0] sm:$0xff] %vm315_vm2, %v11503_v14  ;;  %411 = vst.msk [vmem:[#allocation5 + $0x2f8] sm:$0xff] %vm315_vm2, %v11504_v54  ;;  %v11964_v52 = vld [vmem:[%s20074_s0 + $0x6ba] ss:$2 sm:$0xff]  ;;  %v11965_v32 = vld [vmem:[%s20074_s0 + $0x6ca] ss:$2 sm:$0xff]  ;;  %v2473_v54 = vpack.c.bf16 %v2432_v61, %v2431_v13  ;;  %13216 = vmatmul.mubr.msk.bf16.gmra.mrb[40].mxu0 %vm315_vm2, %v2472_v37 }
  0xef   :  { %414 = vst.msk [vmem:[#allocation5 + $0x310] sm:$0xff] %vm315_vm2, %v11507_v39  ;;  %v11511_v14 = vld [vmem:[%s20074_s0 + $0x7f8] ss:$2 sm:$0xff]  ;;  %v11737_v39 = vld [vmem:[%s20074_s0 + $0x759] ss:$2 sm:$0xff]  ;;  %v2434_v59 = vld [vmem:[#allocation5 + $0x308] sm:$0xff] }
  0xf0   :  { %v11512_v57 = vld [vmem:[%s20074_s0 + $0x808] ss:$2 sm:$0xff]  ;;  %418 = vst.msk [vmem:[#allocation5 + $0x330] sm:$0xff] %vm315_vm2, %v11511_v14  ;;  %v11741_v61 = vld [vmem:[%s20074_s0 + $0x7a9] ss:$2 sm:$0xff]  ;;  %13219 = vmatprep.mubr.msk.bf16.mxu0 %vm315_vm2, %v2473_v54  ;;  %v2435_v37 = vld [vmem:[#allocation5 + $0x320] sm:$0xff]  ;;  %v2474_v54 = vpack.c.bf16 %v2434_v59, %v2433_v35 }
  0xf1   :  { %v16648_v11 = vld [vmem:[#allocation5 + $0x2b0] sm:$0xff]  ;;  %v11742_v13 = vld [vmem:[%s20074_s0 + $0x7b9] ss:$2 sm:$0xff]  ;;  %419 = vst.msk [vmem:[#allocation5 + $0x338] sm:$0xff] %vm315_vm2, %v11512_v57  ;;  %v11516_v14 = vld [vmem:[%s20074_s0 + $0x858] ss:$2 sm:$0xff] }
  0xf2   :  { %v11515_v33 = vld [vmem:[%s20074_s0 + $0x848] ss:$2 sm:$0xff]  ;;  %v16663_v29 = vld [vmem:[#allocation5 + $0x2b8] sm:$0xff]  ;;  %4395 = vst.msk [vmem:[#allocation5 + $0x2b0] sm:$0xff] %vm315_vm2, %v11964_v52  ;;  %423 = vst.msk [vmem:[#allocation5 + $0x358] sm:$0xff] %vm315_vm2, %v11516_v14 }
  0xf3   :  { %v16666_v20 = vld [vmem:[#allocation5 + $0x2d0] sm:$0xff]  ;;  %v16668_v15 = vld [vmem:[#allocation5 + $0x2d8] sm:$0xff]  ;;  %422 = vst.msk [vmem:[#allocation5 + $0x350] sm:$0xff] %vm315_vm2, %v11515_v33  ;;  %4396 = vst.msk [vmem:[#allocation5 + $0x2b8] sm:$0xff] %vm315_vm2, %v11965_v32 }
  0xf4   :  { %20223 = vst [vmem:[#allocation94_spill] sm:$0xff] %v16666_v20  ;;  %v11968_v52 = vld [vmem:[%s20074_s0 + $0x70a] ss:$2 sm:$0xff]  ;;  %v11969_v33 = vld [vmem:[%s20074_s0 + $0x71a] ss:$2 sm:$0xff] }
  0xf5   :  { %v16684_v41 = vld [vmem:[#allocation5 + $0x2f0] sm:$0xff]  ;;  %v2436_v14 = vld [vmem:[#allocation5 + $0x328] sm:$0xff]  ;;  %4399 = vst.msk [vmem:[#allocation5 + $0x2d0] sm:$0xff] %vm315_vm2, %v11968_v52  ;;  %4400 = vst.msk [vmem:[#allocation5 + $0x2d8] sm:$0xff] %vm315_vm2, %v11969_v33 }
  0xf6   :  { %20224 = vst [vmem:[#allocation95_spill] sm:$0xff] %v16684_v41  ;;  %v16689_v32 = vld [vmem:[#allocation5 + $0x2f8] sm:$0xff]  ;;  %2345 = vst.msk [vmem:[#allocation5 + $0x2f0] sm:$0xff] %vm315_vm2, %v11737_v39  ;;  %v16693_v51 = vld [vmem:[#allocation5 + $0x310] sm:$0xff]  ;;  %13220 = vmatmul.mubr.msk.bf16.gmra.mrb[44].mxu0 %vm315_vm2, %v2474_v54 }
  0xf7   :  { %20225 = vst [vmem:[#allocation96_spill] sm:$0xff] %v16689_v32  ;;  %2346 = vst.msk [vmem:[#allocation5 + $0x2f8] sm:$0xff] %vm315_vm2, %v11738_v47  ;;  %v16695_v57 = vld [vmem:[#allocation5 + $0x318] sm:$0xff]  ;;  %v16702_v33 = vld [vmem:[#allocation5 + $0x330] sm:$0xff] }
  0xf8   :  { %20226 = vst [vmem:[#allocation97_spill] sm:$0xff] %v16693_v51  ;;  %20227 = vst [vmem:[#allocation98_spill] sm:$0xff] %v16695_v57  ;;  %v11972_v52 = vld [vmem:[%s20074_s0 + $0x75a] ss:$2 sm:$0xff]  ;;  %v11745_v39 = vld [vmem:[%s20074_s0 + $0x7f9] ss:$2 sm:$0xff]  ;;  %v2475_v57 = vpack.c.bf16 %v2436_v14, %v2435_v37 }
  0xf9   :  { %2349 = vst.msk [vmem:[#allocation5 + $0x310] sm:$0xff] %vm315_vm2, %v11741_v61  ;;  %2350 = vst.msk [vmem:[#allocation5 + $0x318] sm:$0xff] %vm315_vm2, %v11742_v13  ;;  %v11746_v47 = vld [vmem:[%s20074_s0 + $0x809] ss:$2 sm:$0xff]  ;;  %v11973_v61 = vld [vmem:[%s20074_s0 + $0x76a] ss:$2 sm:$0xff] }
  0xfa   :  { %20228 = vst [vmem:[#allocation99_spill] sm:$0xff] %v16702_v33  ;;  %v16713_v59 = vld [vmem:[#allocation5 + $0x338] sm:$0xff]  ;;  %2353 = vst.msk [vmem:[#allocation5 + $0x330] sm:$0xff] %vm315_vm2, %v11745_v39  ;;  %v11749_v35 = vld [vmem:[%s20074_s0 + $0x849] ss:$2 sm:$0xff]  ;;  %13223 = vmatprep.mubr.msk.bf16.mxu0 %vm315_vm2, %v2475_v57 }
  0xfb   :  { %20229 = vst [vmem:[#allocation100_spill] sm:$0xff] %v16713_v59  ;;  %v11750_v13 = vld [vmem:[%s20074_s0 + $0x859] ss:$2 sm:$0xff]  ;;  %2354 = vst.msk [vmem:[#allocation5 + $0x338] sm:$0xff] %vm315_vm2, %v11746_v47  ;;  %v16723_v33 = vld [vmem:[#allocation5 + $0x350] sm:$0xff] }
  0xfc   :  { %20230 = vst [vmem:[#allocation101_spill] sm:$0xff] %v16723_v33  ;;  %v16725_v37 = vld [vmem:[#allocation5 + $0x358] sm:$0xff]  ;;  %v2437_v59 = vld [vmem:[#allocation5 + $0x340] sm:$0xff]  ;;  %v2438_v39 = vld [vmem:[#allocation5 + $0x348] sm:$0xff] }
  0xfd   :  { %20231 = vst [vmem:[#allocation102_spill] sm:$0xff] %v16725_v37  ;;  %v11519_v14 = vld [vmem:[%s20074_s0 + $0x898] ss:$2 sm:$0xff]  ;;  %2357 = vst.msk [vmem:[#allocation5 + $0x350] sm:$0xff] %vm315_vm2, %v11749_v35  ;;  %v11520_v51 = vld [vmem:[%s20074_s0 + $0x8a8] ss:$2 sm:$0xff] }
  0xfe   :  { %2358 = vst.msk [vmem:[#allocation5 + $0x358] sm:$0xff] %vm315_vm2, %v11750_v13  ;;  %426 = vst.msk [vmem:[#allocation5 + $0x370] sm:$0xff] %vm315_vm2, %v11519_v14  ;;  %v11523_v47 = vld [vmem:[%s20074_s0 + $0x8e8] ss:$2 sm:$0xff]  ;;  %v11524_v37 = vld [vmem:[%s20074_s0 + $0x8f8] ss:$2 sm:$0xff] }
  0xff   :  { %v2439_v33 = vld [vmem:[#allocation5 + $0x360] sm:$0xff]  ;;  %v2440_v35 = vld [vmem:[#allocation5 + $0x368] sm:$0xff]  ;;  %v16743_v32 = vld [vmem:[#allocation5 + $0x2f0] sm:$0xff]  ;;  %427 = vst.msk [vmem:[#allocation5 + $0x378] sm:$0xff] %vm315_vm2, %v11520_v51 }
 0x100   :  { %20232 = vst [vmem:[#allocation103_spill] sm:$0xff] %v16743_v32  ;;  %v11976_v13 = vld [vmem:[%s20074_s0 + $0x7aa] ss:$2 sm:$0xff]  ;;  %v11977_v14 = vld [vmem:[%s20074_s0 + $0x7ba] ss:$2 sm:$0xff]  ;;  %430 = vst.msk [vmem:[#allocation5 + $0x390] sm:$0xff] %vm315_vm2, %v11523_v47  ;;  %v2476_v47 = vpack.c.bf16 %v2438_v39, %v2437_v59  ;;  %v2477_v58 = vpack.c.bf16 %v2440_v35, %v2439_v33 }
 0x101   :  { %431 = vst.msk [vmem:[#allocation5 + $0x398] sm:$0xff] %vm315_vm2, %v11524_v37  ;;  %v16755_v54 = vld [vmem:[#allocation5 + $0x2f8] sm:$0xff]  ;;  %4403 = vst.msk [vmem:[#allocation5 + $0x2f0] sm:$0xff] %vm315_vm2, %v11972_v52  ;;  %v16767_v37 = vld [vmem:[#allocation5 + $0x310] sm:$0xff] }
 0x102   :  { %20233 = vst [vmem:[#allocation104_spill] sm:$0xff] %v16755_v54  ;;  %v11980_v41 = vld [vmem:[%s20074_s0 + $0x7fa] ss:$2 sm:$0xff]  ;;  %4404 = vst.msk [vmem:[#allocation5 + $0x2f8] sm:$0xff] %vm315_vm2, %v11973_v61  ;;  %v16775_v62 = vld [vmem:[#allocation5 + $0x330] sm:$0xff]  ;;  %13224 = vmatmul.mubr.msk.bf16.gmra.mrb[48].mxu0 %vm315_vm2, %v2476_v47 }
 0x103   :  { %20234 = vst [vmem:[#allocation105_spill] sm:$0xff] %v16767_v37  ;;  %v16769_v57 = vld [vmem:[#allocation5 + $0x318] sm:$0xff]  ;;  %4407 = vst.msk [vmem:[#allocation5 + $0x310] sm:$0xff] %vm315_vm2, %v11976_v13  ;;  %v11754_v61 = vld [vmem:[%s20074_s0 + $0x8a9] ss:$2 sm:$0xff]  ;;  %13227 = vmatprep.mubr.msk.bf16.mxu0 %vm315_vm2, %v2477_v58 }
 0x104   :  { %20235 = vst [vmem:[#allocation106_spill] sm:$0xff] %v16769_v57  ;;  %4408 = vst.msk [vmem:[#allocation5 + $0x318] sm:$0xff] %vm315_vm2, %v11977_v14  ;;  %v11753_v51 = vld [vmem:[%s20074_s0 + $0x899] ss:$2 sm:$0xff]  ;;  %v11757_v13 = vld [vmem:[%s20074_s0 + $0x8e9] ss:$2 sm:$0xff] }
 0x105   :  { %20236 = vst [vmem:[#allocation107_spill] sm:$0xff] %v16775_v62  ;;  %v16783_v32 = vld [vmem:[#allocation5 + $0x338] sm:$0xff]  ;;  %4411 = vst.msk [vmem:[#allocation5 + $0x330] sm:$0xff] %vm315_vm2, %v11980_v41  ;;  %v16795_v14 = vld [vmem:[#allocation5 + $0x350] sm:$0xff] }
 0x106   :  { %20237 = vst [vmem:[#allocation108_spill] sm:$0xff] %v16783_v32  ;;  %v11758_v59 = vld [vmem:[%s20074_s0 + $0x8f9] ss:$2 sm:$0xff]  ;;  %4412 = vst.msk [vmem:[#allocation5 + $0x338] sm:$0xff] %vm315_vm2, %v11981_v22  ;;  %v16799_v35 = vld [vmem:[#allocation5 + $0x370] sm:$0xff] }
 0x107   :  { %20238 = vst [vmem:[#allocation109_spill] sm:$0xff] %v16795_v14  ;;  %v16797_v33 = vld [vmem:[#allocation5 + $0x358] sm:$0xff]  ;;  %20240 = vst [vmem:[#allocation111_spill] sm:$0xff] %v16799_v35  ;;  %v2441_v41 = vld [vmem:[#allocation5 + $0x380] sm:$0xff] }
 0x108   :  { %20239 = vst [vmem:[#allocation110_spill] sm:$0xff] %v16797_v33  ;;  %v2442_v52 = vld [vmem:[#allocation5 + $0x388] sm:$0xff]  ;;  %v16803_v57 = vld [vmem:[#allocation5 + $0x378] sm:$0xff]  ;;  %2361 = vst.msk [vmem:[#allocation5 + $0x370] sm:$0xff] %vm315_vm2, %v11753_v51 }
 0x109   :  { %20241 = vst [vmem:[#allocation112_spill] sm:$0xff] %v16803_v57  ;;  %v16806_v54 = vld [vmem:[#allocation5 + $0x390] sm:$0xff]  ;;  %v16808_v39 = vld [vmem:[#allocation5 + $0x398] sm:$0xff]  ;;  %2362 = vst.msk [vmem:[#allocation5 + $0x378] sm:$0xff] %vm315_vm2, %v11754_v61 }
 0x10a   :  { %20242 = vst [vmem:[#allocation113_spill] sm:$0xff] %v16806_v54  ;;  %20243 = vst [vmem:[#allocation114_spill] sm:$0xff] %v16808_v39  ;;  %v11984_v22 = vld [vmem:[%s20074_s0 + $0x84a] ss:$2 sm:$0xff]  ;;  %v11985_v35 = vld [vmem:[%s20074_s0 + $0x85a] ss:$2 sm:$0xff] }
 0x10b   :  { %2365 = vst.msk [vmem:[#allocation5 + $0x390] sm:$0xff] %vm315_vm2, %v11757_v13  ;;  %2366 = vst.msk [vmem:[#allocation5 + $0x398] sm:$0xff] %vm315_vm2, %v11758_v59  ;;  %v11527_v51 = vld [vmem:[%s20074_s0 + $0x938] ss:$2 sm:$0xff]  ;;  %v2444_v37 = vld [vmem:[#allocation5 + $0x3a8] sm:$0xff]  ;;  %v2478_v59 = vpack.c.bf16 %v2442_v52, %v2441_v41 }
 0x10c   :  { %v2443_v47 = vld [vmem:[#allocation5 + $0x3a0] sm:$0xff]  ;;  %4415 = vst.msk [vmem:[#allocation5 + $0x350] sm:$0xff] %vm315_vm2, %v11984_v22  ;;  %4416 = vst.msk [vmem:[#allocation5 + $0x358] sm:$0xff] %vm315_vm2, %v11985_v35  ;;  %v11528_v61 = vld [vmem:[%s20074_s0 + $0x948] ss:$2 sm:$0xff] }
 0x10d   :  { %434 = vst.msk [vmem:[#allocation5 + $0x3b0] sm:$0xff] %vm315_vm2, %v11527_v51  ;;  %435 = vst.msk [vmem:[#allocation5 + $0x3b8] sm:$0xff] %vm315_vm2, %v11528_v61  ;;  %v11531_v13 = vld [vmem:[%s20074_s0 + $0x988] ss:$2 sm:$0xff]  ;;  %v11532_v58 = vld [vmem:[%s20074_s0 + $0x998] ss:$2 sm:$0xff]  ;;  %v2479_v61 = vpack.c.bf16 %v2444_v37, %v2443_v47  ;;  %13228 = vmatmul.mubr.msk.bf16.gmra.mrb[52].mxu0 %vm315_vm2, %v2478_v59 }
 0x10e   :  { %438 = vst.msk [vmem:[#allocation5 + $0x3d0] sm:$0xff] %vm315_vm2, %v11531_v13  ;;  %439 = vst.msk [vmem:[#allocation5 + $0x3d8] sm:$0xff] %vm315_vm2, %v11532_v58  ;;  %v11988_v35 = vld [vmem:[%s20074_s0 + $0x89a] ss:$2 sm:$0xff]  ;;  %v11989_v22 = vld [vmem:[%s20074_s0 + $0x8aa] ss:$2 sm:$0xff] }
 0x10f   :  { %v11535_v51 = vld [vmem:[%s20074_s0 + $0x9d8] ss:$2 sm:$0xff]  ;;  %v11761_v13 = vld [vmem:[%s20074_s0 + $0x939] ss:$2 sm:$0xff]  ;;  %v11762_v52 = vld [vmem:[%s20074_s0 + $0x949] ss:$2 sm:$0xff]  ;;  %13231 = vmatprep.mubr.msk.bf16.mxu0 %vm315_vm2, %v2479_v61 }
 0x110   :  { %v11536_v41 = vld [vmem:[%s20074_s0 + $0x9e8] ss:$2 sm:$0xff]  ;;  %442 = vst.msk [vmem:[#allocation5 + $0x3f0] sm:$0xff] %vm315_vm2, %v11535_v51  ;;  %v11765_v37 = vld [vmem:[%s20074_s0 + $0x989] ss:$2 sm:$0xff]  ;;  %v2445_v54 = vld [vmem:[#allocation5 + $0x3c0] sm:$0xff] }
 0x111   :  { %v16858_v58 = vld [vmem:[#allocation5 + $0x370] sm:$0xff]  ;;  %v11766_v47 = vld [vmem:[%s20074_s0 + $0x999] ss:$2 sm:$0xff]  ;;  %443 = vst.msk [vmem:[#allocation5 + $0x3f8] sm:$0xff] %vm315_vm2, %v11536_v41  ;;  %v11540_v51 = vld [vmem:[%s20074_s0 + $0xa38] ss:$2 sm:$0xff] }
 0x112   :  { %v11539_v39 = vld [vmem:[%s20074_s0 + $0xa28] ss:$2 sm:$0xff]  ;;  %v16873_v14 = vld [vmem:[#allocation5 + $0x378] sm:$0xff]  ;;  %4419 = vst.msk [vmem:[#allocation5 + $0x370] sm:$0xff] %vm315_vm2, %v11988_v35  ;;  %447 = vst.msk [vmem:[#allocation5 + $0x418] sm:$0xff] %vm315_vm2, %v11540_v51 }
 0x113   :  { %v2446_v57 = vld [vmem:[#allocation5 + $0x3c8] sm:$0xff]  ;;  %v16876_v33 = vld [vmem:[#allocation5 + $0x390] sm:$0xff]  ;;  %v16878_v62 = vld [vmem:[#allocation5 + $0x398] sm:$0xff]  ;;  %446 = vst.msk [vmem:[#allocation5 + $0x410] sm:$0xff] %vm315_vm2, %v11539_v39 }
 0x114   :  { %20244 = vst [vmem:[#allocation115_spill] sm:$0xff] %v16876_v33  ;;  %4420 = vst.msk [vmem:[#allocation5 + $0x378] sm:$0xff] %vm315_vm2, %v11989_v22  ;;  %v11992_v35 = vld [vmem:[%s20074_s0 + $0x8ea] ss:$2 sm:$0xff]  ;;  %v11993_v39 = vld [vmem:[%s20074_s0 + $0x8fa] ss:$2 sm:$0xff]  ;;  %v2480_v61 = vpack.c.bf16 %v2446_v57, %v2445_v54 }
 0x115   :  { %v16894_v20 = vld [vmem:[#allocation5 + $0x3b0] sm:$0xff]  ;;  %v2447_v59 = vld [vmem:[#allocation5 + $0x3e0] sm:$0xff]  ;;  %v2448_v51 = vld [vmem:[#allocation5 + $0x3e8] sm:$0xff]  ;;  %4423 = vst.msk [vmem:[#allocation5 + $0x390] sm:$0xff] %vm315_vm2, %v11992_v35 }
 0x116   :  { %20245 = vst [vmem:[#allocation116_spill] sm:$0xff] %v16894_v20  ;;  %4424 = vst.msk [vmem:[#allocation5 + $0x398] sm:$0xff] %vm315_vm2, %v11993_v39  ;;  %v16899_v22 = vld [vmem:[#allocation5 + $0x3b8] sm:$0xff]  ;;  %v16903_v32 = vld [vmem:[#allocation5 + $0x3d0] sm:$0xff]  ;;  %13232 = vmatmul.mubr.msk.bf16.gmra.mrb[56].mxu0 %vm315_vm2, %v2480_v61 }
 0x117   :  { %20246 = vst [vmem:[#allocation117_spill] sm:$0xff] %v16899_v22  ;;  %2369 = vst.msk [vmem:[#allocation5 + $0x3b0] sm:$0xff] %vm315_vm2, %v11761_v13  ;;  %v16905_v41 = vld [vmem:[#allocation5 + $0x3d8] sm:$0xff]  ;;  %v16912_v39 = vld [vmem:[#allocation5 + $0x3f0] sm:$0xff] }
 0x118   :  { %2370 = vst.msk [vmem:[#allocation5 + $0x3b8] sm:$0xff] %vm315_vm2, %v11762_v52  ;;  %20247 = vst [vmem:[#allocation118_spill] sm:$0xff] %v16903_v32  ;;  %v11996_v35 = vld [vmem:[%s20074_s0 + $0x93a] ss:$2 sm:$0xff]  ;;  %v11769_v13 = vld [vmem:[%s20074_s0 + $0x9d9] ss:$2 sm:$0xff] }
 0x119   :  { %20248 = vst [vmem:[#allocation119_spill] sm:$0xff] %v16905_v41  ;;  %2373 = vst.msk [vmem:[#allocation5 + $0x3d0] sm:$0xff] %vm315_vm2, %v11765_v37  ;;  %v11770_v52 = vld [vmem:[%s20074_s0 + $0x9e9] ss:$2 sm:$0xff]  ;;  %v2481_v41 = vpack.c.bf16 %v2448_v51, %v2447_v59  ;;  %v11997_v37 = vld [vmem:[%s20074_s0 + $0x94a] ss:$2 sm:$0xff] }
 0x11a   :  { %2374 = vst.msk [vmem:[#allocation5 + $0x3d8] sm:$0xff] %vm315_vm2, %v11766_v47  ;;  %20249 = vst [vmem:[#allocation120_spill] sm:$0xff] %v16912_v39  ;;  %v16923_v54 = vld [vmem:[#allocation5 + $0x3f8] sm:$0xff]  ;;  %v11773_v57 = vld [vmem:[%s20074_s0 + $0xa29] ss:$2 sm:$0xff] }
 0x11b   :  { %20250 = vst [vmem:[#allocation121_spill] sm:$0xff] %v16923_v54  ;;  %2377 = vst.msk [vmem:[#allocation5 + $0x3f0] sm:$0xff] %vm315_vm2, %v11769_v13  ;;  %v11774_v47 = vld [vmem:[%s20074_s0 + $0xa39] ss:$2 sm:$0xff]  ;;  %v16933_v39 = vld [vmem:[#allocation5 + $0x410] sm:$0xff]  ;;  %13235 = vmatprep.mubr.msk.bf16.mxu0 %vm315_vm2, %v2481_v41 }
 0x11c   :  { %2378 = vst.msk [vmem:[#allocation5 + $0x3f8] sm:$0xff] %vm315_vm2, %v11770_v52  ;;  %20251 = vst [vmem:[#allocation122_spill] sm:$0xff] %v16933_v39  ;;  %v16935_v59 = vld [vmem:[#allocation5 + $0x418] sm:$0xff]  ;;  %v2449_v51 = vld [vmem:[#allocation5 + $0x400] sm:$0xff] }
 0x11d   :  { %20252 = vst [vmem:[#allocation123_spill] sm:$0xff] %v16935_v59  ;;  %v2450_v32 = vld [vmem:[#allocation5 + $0x408] sm:$0xff]  ;;  %2381 = vst.msk [vmem:[#allocation5 + $0x410] sm:$0xff] %vm315_vm2, %v11773_v57 }
 0x11e   :  { %2382 = vst.msk [vmem:[#allocation5 + $0x418] sm:$0xff] %vm315_vm2, %v11774_v47  ;;  %v16940_v13 = vld [vmem:[#allocation5 + $0x3b0] sm:$0xff]  ;;  %v12001_v52 = vld [vmem:[%s20074_s0 + $0x99a] ss:$2 sm:$0xff]  ;;  %v2482_v22 = vpack.c.bf16 %v2450_v32, %v2449_v51 }
 0x11f   :  { %20253 = vst [vmem:[#allocation124_spill] sm:$0xff] %v16940_v13  ;;  %v12000_v54 = vld [vmem:[%s20074_s0 + $0x98a] ss:$2 sm:$0xff]  ;;  %4427 = vst.msk [vmem:[#allocation5 + $0x3b0] sm:$0xff] %vm315_vm2, %v11996_v35  ;;  %v12004_v61 = vld [vmem:[%s20074_s0 + $0x9da] ss:$2 sm:$0xff] }
 0x120   :  { %v16949_v59 = vld [vmem:[#allocation5 + $0x3b8] sm:$0xff]  ;;  %v16961_v39 = vld [vmem:[#allocation5 + $0x3d0] sm:$0xff]  ;;  %13236 = vmatmul.mubr.msk.bf16.gmra.mrb[60].mxu0 %vm315_vm2, %v2482_v22  ;;  %v16998_v22 = vld [vmem:[#allocation5 + $0x28] sm:$0xff] }
 0x121   :  { %v12005_v57 = vld [vmem:[%s20074_s0 + $0x9ea] ss:$2 sm:$0xff]  ;;  %4428 = vst.msk [vmem:[#allocation5 + $0x3b8] sm:$0xff] %vm315_vm2, %v11997_v37  ;;  %4431 = vst.msk [vmem:[#allocation5 + $0x3d0] sm:$0xff] %vm315_vm2, %v12000_v54  ;;  %v12009_v51 = vld [vmem:[%s20074_s0 + $0xa3a] ss:$2 sm:$0xff] }
 0x122   :  { %v16963_v41 = vld [vmem:[#allocation5 + $0x3d8] sm:$0xff]  ;;  %v16969_v20 = vld [vmem:[#allocation5 + $0x3f0] sm:$0xff] }
 0x123   :  { %4432 = vst.msk [vmem:[#allocation5 + $0x3d8] sm:$0xff] %vm315_vm2, %v12001_v52  ;;  %v16971_v33 = vld [vmem:[#allocation5 + $0x3f8] sm:$0xff]  ;;  %4435 = vst.msk [vmem:[#allocation5 + $0x3f0] sm:$0xff] %vm315_vm2, %v12004_v61  ;;  %v16990_v52 = vld [vmem:[#allocation5 + $0x20] sm:$0xff]  ;;  %v20254_v61 = vpack.c.bf16 %v15934_v38, %v15922_v25 }
 0x124   :  { %4436 = vst.msk [vmem:[#allocation5 + $0x3f8] sm:$0xff] %vm315_vm2, %v12005_v57  ;;  %v16977_v47 = vld [vmem:[#allocation5 + $0x410] sm:$0xff]  ;;  %v12014_v25 = vld [vmem:[%s20075_s1 + $0x4] sm:$0x3] }
 0x125   :  { %v16979_v13 = vld [vmem:[#allocation5 + $0x418] sm:$0xff]  ;;  %13241 = vmatprep.mubr.msk.bf16.mxu0 %vm315_vm2, %v20254_v61  ;;  %v11883_v54 = vld [vmem:[%s20074_s0 + $0x62] ss:$2 sm:$0xff] }
 0x126   :  { %v12008_v32 = vld [vmem:[%s20074_s0 + $0xa2a] ss:$2 sm:$0xff]  ;;  %4440 = vst.msk [vmem:[#allocation5 + $0x418] sm:$0xff] %vm315_vm2, %v12009_v51  ;;  %4314 = vst.msk [vmem:[#allocation5 + $0x28] sm:$0xff] %vm315_vm2, %v11883_v54 }
 0x127   :  { %4439 = vst.msk [vmem:[#allocation5 + $0x410] sm:$0xff] %vm315_vm2, %v12008_v32  ;;  %v11882_v57 = vld [vmem:[%s20074_s0 + $0x52] ss:$2 sm:$0xff] }
 0x128   :  { %4313 = vst.msk [vmem:[#allocation5 + $0x20] sm:$0xff] %vm315_vm2, %v11882_v57 }
 0x129   :  { %20 = vsyncpa [#allocation12], 0  ;;  %v17014_v38 = vand.u32 %v12014_v25, %v14980_v5  ;;  %v20255_v32 = vpack.c.bf16 %v15951_v49, %v15949_v53  ;;  %v20256_v51 = vpack.c.bf16 %v16030_v12, %v16015_v7  ;;  %v17025_v54 = vld [vmem:[#allocation5 + $0x60] sm:$0xff]  ;;  %v17027_v61 = vld [vmem:[#allocation5 + $0x68] sm:$0xff]  ;;  %v20257_v25 = vpack.c.bf16 %v16035_v0, %v16033_v1  ;;  %s14897_s28 = smov 127   ;;  %s14900_s29 = smov [#allocation11]  }
 0x12a   :  { %v11890_v57 = vld [vmem:[%s20074_s0 + $0xf2] ss:$2 sm:$0xff]  ;;  %v17041_v49 = vld [vmem:[#allocation5 + $0x88] sm:$0xff]  ;;  %v20260_v7 = vpack.c.bf16 %v16150_v42, %v16142_v28  ;;  %vm6494_vm3 = vcmask 130048   ;;  %vm6497_vm4 = vcmask 123904  }
 0x12b   :  { %13242 = vmatmul.mubr.msk.bf16.vlgmr.msra.gmra.mrb[0].mxu0 %vm315_vm2, %v20255_v32  ;;  %4321 = vst.msk [vmem:[#allocation5 + $0x60] sm:$0xff] %vm315_vm2, %v11890_v57  ;;  %v17039_v12 = vld [vmem:[#allocation5 + $0x80] sm:$0xff]  ;;  %v17064_v0 = vld [vmem:[#allocation5 + $0xa8] sm:$0xff]  ;;  %v20280_v53 = vld [vmem:[#allocation104_spill] sm:$0xff] }
 0x12c   :  { %13306 = vmatpush3.bf16.msra.mxu0 %v15947_v3  ;;  %13245 = vmatprep.mubr.msk.bf16.mxu0 %vm315_vm2, %v20256_v51  ;;  %v11891_v3 = vld [vmem:[%s20074_s0 + $0x102] ss:$2 sm:$0xff]  ;;  %v11895_v51 = vld [vmem:[%s20074_s0 + $0x152] ss:$2 sm:$0xff] }
 0x12d   :  { %13371 = vmatprep.subr.bf16.mxu0 %v17014_v38  ;;  %4322 = vst.msk [vmem:[#allocation5 + $0x68] sm:$0xff] %vm315_vm2, %v11891_v3  ;;  %v11894_v32 = vld [vmem:[%s20074_s0 + $0x142] ss:$2 sm:$0xff]  ;;  %v20258_v3 = vpack.c.bf16 %v16122_v44, %v16110_v6  ;;  %4326 = vst.msk [vmem:[#allocation5 + $0x88] sm:$0xff] %vm315_vm2, %v11895_v51  ;;  %v11898_v1 = vld [vmem:[%s20074_s0 + $0x192] ss:$2 sm:$0xff]  ;;  %v20259_v51 = vpack.c.bf16 %v16136_v4, %v16134_v21 }
 0x12e   :  { %v17056_v57 = vld [vmem:[#allocation5 + $0xa0] sm:$0xff]  ;;  %4325 = vst.msk [vmem:[#allocation5 + $0x80] sm:$0xff] %vm315_vm2, %v11894_v32  ;;  %v17078_v44 = vld [vmem:[#allocation5 + $0xc8] sm:$0xff]  ;;  %v20262_v32 = vpack.c.bf16 %v16240_v24, %v16225_v27 }
 0x12f   :  { %4329 = vst.msk [vmem:[#allocation5 + $0xa0] sm:$0xff] %vm315_vm2, %v11898_v1  ;;  %v17076_v6 = vld [vmem:[#allocation5 + $0xc0] sm:$0xff]  ;;  %v17100_v21 = vld [vmem:[#allocation5 + $0xe8] sm:$0xff] }
 0x130   :  { %v11903_v1 = vld [vmem:[%s20074_s0 + $0x1f2] ss:$2 sm:$0xff]  ;;  %v17114_v28 = vld [vmem:[#allocation5 + $0x108] sm:$0xff] }
 0x131   :  { %4334 = vst.msk [vmem:[#allocation5 + $0xc8] sm:$0xff] %vm315_vm2, %v11903_v1  ;;  %v11906_v4 = vld [vmem:[%s20074_s0 + $0x232] ss:$2 sm:$0xff]  ;;  %v11910_v1 = vld [vmem:[%s20074_s0 + $0x282] ss:$2 sm:$0xff] }
 0x132   :  { %v17112_v42 = vld [vmem:[#allocation5 + $0x100] sm:$0xff]  ;;  %v17150_v27 = vld [vmem:[#allocation5 + $0x148] sm:$0xff] }
 0x133   :  { %13246 = vmatmul.mubr.msk.bf16.gmra.mrb[4].mxu0 %vm315_vm2, %v20257_v25  ;;  %v11899_v25 = vld [vmem:[%s20074_s0 + $0x1a2] ss:$2 sm:$0xff]  ;;  %4341 = vst.msk [vmem:[#allocation5 + $0x100] sm:$0xff] %vm315_vm2, %v11910_v1  ;;  %v20263_v1 = vpack.c.bf16 %v16245_v60, %v16243_v19  ;;  %v11922_v19 = vld [vmem:[%s20074_s0 + $0x372] ss:$2 sm:$0xff] }
 0x134   :  { %13249 = vmatprep.mubr.msk.bf16.mxu0 %vm315_vm2, %v20258_v3  ;;  %4330 = vst.msk [vmem:[#allocation5 + $0xa8] sm:$0xff] %vm315_vm2, %v11899_v25  ;;  %v11902_v3 = vld [vmem:[%s20074_s0 + $0x1e2] ss:$2 sm:$0xff] }
 0x135   :  { %v17092_v25 = vld [vmem:[#allocation5 + $0xe0] sm:$0xff]  ;;  %4333 = vst.msk [vmem:[#allocation5 + $0xc0] sm:$0xff] %vm315_vm2, %v11902_v3  ;;  %v20261_v3 = vpack.c.bf16 %v16164_v18, %v16162_v45  ;;  %v17136_v45 = vld [vmem:[#allocation5 + $0x128] sm:$0xff] }
 0x136   :  { %4337 = vst.msk [vmem:[#allocation5 + $0xe0] sm:$0xff] %vm315_vm2, %v11906_v4  ;;  %v11911_v4 = vld [vmem:[%s20074_s0 + $0x292] ss:$2 sm:$0xff]  ;;  %v17172_v60 = vld [vmem:[#allocation5 + $0x168] sm:$0xff] }
 0x137   :  { %4342 = vst.msk [vmem:[#allocation5 + $0x108] sm:$0xff] %vm315_vm2, %v11911_v4  ;;  %v11914_v18 = vld [vmem:[%s20074_s0 + $0x2d2] ss:$2 sm:$0xff]  ;;  %v11918_v4 = vld [vmem:[%s20074_s0 + $0x322] ss:$2 sm:$0xff] }
 0x138   :  { %v17148_v24 = vld [vmem:[#allocation5 + $0x140] sm:$0xff]  ;;  %v20281_v37 = vld [vmem:[#allocation103_spill] sm:$0xff] }
 0x139   :  { %4349 = vst.msk [vmem:[#allocation5 + $0x140] sm:$0xff] %vm315_vm2, %v11918_v4  ;;  %v20265_v4 = vpack.c.bf16 %v16346_v36, %v16344_v16  ;;  %v17208_v16 = vld [vmem:[#allocation5 + $0x1a8] sm:$0xff]  ;;  %v11930_v36 = vld [vmem:[%s20074_s0 + $0x412] ss:$2 sm:$0xff]  ;;  %v20282_v35 = vpack.c.bf16 %v20280_v53, %v20281_v37 }
 0x13a   :  { %v17402_v37 = vld [vmem:[#allocation5 + $0x328] sm:$0xff]  ;;  %v11986_v53 = vld [vmem:[%s20074_s0 + $0x872] ss:$2 sm:$0xff] }
 0x13b   :  { %13250 = vmatmul.mubr.msk.bf16.gmra.mrb[8].mxu0 %vm315_vm2, %v20259_v51  ;;  %v11907_v51 = vld [vmem:[%s20074_s0 + $0x242] ss:$2 sm:$0xff] }
 0x13c   :  { %13253 = vmatprep.mubr.msk.bf16.mxu0 %vm315_vm2, %v20260_v7  ;;  %4338 = vst.msk [vmem:[#allocation5 + $0xe8] sm:$0xff] %vm315_vm2, %v11907_v51  ;;  %v17128_v51 = vld [vmem:[#allocation5 + $0x120] sm:$0xff]  ;;  %v20264_v7 = vpack.c.bf16 %v16332_v17, %v16320_v48  ;;  %v17186_v17 = vld [vmem:[#allocation5 + $0x188] sm:$0xff] }
 0x13d   :  { %4345 = vst.msk [vmem:[#allocation5 + $0x120] sm:$0xff] %vm315_vm2, %v11914_v18  ;;  %v11919_v18 = vld [vmem:[%s20074_s0 + $0x332] ss:$2 sm:$0xff] }
 0x13e   :  { %4350 = vst.msk [vmem:[#allocation5 + $0x148] sm:$0xff] %vm315_vm2, %v11919_v18  ;;  %v17184_v48 = vld [vmem:[#allocation5 + $0x180] sm:$0xff] }
 0x13f   :  { %v11926_v18 = vld [vmem:[%s20074_s0 + $0x3c2] ss:$2 sm:$0xff] }
 0x140   :  { %4357 = vst.msk [vmem:[#allocation5 + $0x180] sm:$0xff] %vm315_vm2, %v11926_v18  ;;  %v20267_v18 = vpack.c.bf16 %v16374_v23, %v16372_v30  ;;  %v17244_v30 = vld [vmem:[#allocation5 + $0x1e8] sm:$0xff]  ;;  %v11938_v23 = vld [vmem:[%s20074_s0 + $0x4b2] ss:$2 sm:$0xff] }
 0x143   :  { %13254 = vmatmul.mubr.msk.bf16.gmra.mrb[12].mxu0 %vm315_vm2, %v20261_v3  ;;  %v11915_v3 = vld [vmem:[%s20074_s0 + $0x2e2] ss:$2 sm:$0xff] }
 0x144   :  { %13257 = vmatprep.mubr.msk.bf16.mxu0 %vm315_vm2, %v20262_v32  ;;  %4346 = vst.msk [vmem:[#allocation5 + $0x128] sm:$0xff] %vm315_vm2, %v11915_v3  ;;  %v17164_v3 = vld [vmem:[#allocation5 + $0x160] sm:$0xff]  ;;  %v20266_v32 = vpack.c.bf16 %v16360_v40, %v16352_v56  ;;  %v17222_v56 = vld [vmem:[#allocation5 + $0x1c8] sm:$0xff] }
 0x145   :  { %4353 = vst.msk [vmem:[#allocation5 + $0x160] sm:$0xff] %vm315_vm2, %v11922_v19  ;;  %v11927_v19 = vld [vmem:[%s20074_s0 + $0x3d2] ss:$2 sm:$0xff] }
 0x146   :  { %4358 = vst.msk [vmem:[#allocation5 + $0x188] sm:$0xff] %vm315_vm2, %v11927_v19  ;;  %v17220_v40 = vld [vmem:[#allocation5 + $0x1c0] sm:$0xff] }
 0x147   :  { %v11934_v19 = vld [vmem:[%s20074_s0 + $0x462] ss:$2 sm:$0xff] }
 0x148   :  { %4365 = vst.msk [vmem:[#allocation5 + $0x1c0] sm:$0xff] %vm315_vm2, %v11934_v19  ;;  %v20269_v19 = vpack.c.bf16 %v16455_v9, %v16453_v26  ;;  %v17280_v9 = vld [vmem:[#allocation5 + $0x248] sm:$0xff] }
 0x149   :  { %v11950_v26 = vld [vmem:[%s20074_s0 + $0x5a2] ss:$2 sm:$0xff] }
 0x14b   :  { %13258 = vmatmul.mubr.msk.bf16.gmra.mrb[16].mxu0 %vm315_vm2, %v20263_v1  ;;  %v11923_v1 = vld [vmem:[%s20074_s0 + $0x382] ss:$2 sm:$0xff] }
 0x14c   :  { %13261 = vmatprep.mubr.msk.bf16.mxu0 %vm315_vm2, %v20264_v7  ;;  %4354 = vst.msk [vmem:[#allocation5 + $0x168] sm:$0xff] %vm315_vm2, %v11923_v1  ;;  %v17200_v1 = vld [vmem:[#allocation5 + $0x1a0] sm:$0xff]  ;;  %v20268_v7 = vpack.c.bf16 %v16450_v31, %v16435_v10  ;;  %v17258_v10 = vld [vmem:[#allocation5 + $0x208] sm:$0xff] }
 0x14d   :  { %4361 = vst.msk [vmem:[#allocation5 + $0x1a0] sm:$0xff] %vm315_vm2, %v11930_v36  ;;  %v11935_v36 = vld [vmem:[%s20074_s0 + $0x472] ss:$2 sm:$0xff] }
 0x14e   :  { %4366 = vst.msk [vmem:[#allocation5 + $0x1c8] sm:$0xff] %vm315_vm2, %v11935_v36  ;;  %v17256_v31 = vld [vmem:[#allocation5 + $0x200] sm:$0xff] }
 0x14f   :  { %v11942_v36 = vld [vmem:[%s20074_s0 + $0x502] ss:$2 sm:$0xff] }
 0x150   :  { %4373 = vst.msk [vmem:[#allocation5 + $0x200] sm:$0xff] %vm315_vm2, %v11942_v36  ;;  %v20271_v36 = vpack.c.bf16 %v16559_v46, %v16557_v63  ;;  %v17316_v63 = vld [vmem:[#allocation5 + $0x288] sm:$0xff] }
 0x151   :  { %v11958_v46 = vld [vmem:[%s20074_s0 + $0x642] ss:$2 sm:$0xff] }
 0x153   :  { %13262 = vmatmul.mubr.msk.bf16.gmra.mrb[20].mxu0 %vm315_vm2, %v20265_v4  ;;  %v11931_v4 = vld [vmem:[%s20074_s0 + $0x422] ss:$2 sm:$0xff] }
 0x154   :  { %13265 = vmatprep.mubr.msk.bf16.mxu0 %vm315_vm2, %v20266_v32  ;;  %4362 = vst.msk [vmem:[#allocation5 + $0x1a8] sm:$0xff] %vm315_vm2, %v11931_v4  ;;  %v17236_v4 = vld [vmem:[#allocation5 + $0x1e0] sm:$0xff]  ;;  %v20270_v32 = vpack.c.bf16 %v16545_v43, %v16533_v55  ;;  %v17294_v43 = vld [vmem:[#allocation5 + $0x268] sm:$0xff] }
 0x155   :  { %4369 = vst.msk [vmem:[#allocation5 + $0x1e0] sm:$0xff] %vm315_vm2, %v11938_v23  ;;  %v11943_v23 = vld [vmem:[%s20074_s0 + $0x512] ss:$2 sm:$0xff] }
 0x156   :  { %4374 = vst.msk [vmem:[#allocation5 + $0x208] sm:$0xff] %vm315_vm2, %v11943_v23  ;;  %v17292_v55 = vld [vmem:[#allocation5 + $0x260] sm:$0xff] }
 0x157   :  { %v11954_v23 = vld [vmem:[%s20074_s0 + $0x5f2] ss:$2 sm:$0xff] }
 0x158   :  { %4385 = vst.msk [vmem:[#allocation5 + $0x260] sm:$0xff] %vm315_vm2, %v11954_v23  ;;  %v20273_v23 = vpack.c.bf16 %v16587_v34, %v16585_v2  ;;  %v17352_v2 = vld [vmem:[#allocation5 + $0x2c8] sm:$0xff] }
 0x159   :  { %v11966_v34 = vld [vmem:[%s20074_s0 + $0x6e2] ss:$2 sm:$0xff] }
 0x15b   :  { %13266 = vmatmul.mubr.msk.bf16.gmra.mrb[24].mxu0 %vm315_vm2, %v20267_v18  ;;  %v11939_v18 = vld [vmem:[%s20074_s0 + $0x4c2] ss:$2 sm:$0xff] }
 0x15c   :  { %13269 = vmatprep.mubr.msk.bf16.mxu0 %vm315_vm2, %v20268_v7  ;;  %4370 = vst.msk [vmem:[#allocation5 + $0x1e8] sm:$0xff] %vm315_vm2, %v11939_v18  ;;  %v17272_v18 = vld [vmem:[#allocation5 + $0x240] sm:$0xff]  ;;  %v20272_v7 = vpack.c.bf16 %v16573_v8, %v16565_v50  ;;  %v17330_v50 = vld [vmem:[#allocation5 + $0x2a8] sm:$0xff] }
 0x15d   :  { %4381 = vst.msk [vmem:[#allocation5 + $0x240] sm:$0xff] %vm315_vm2, %v11950_v26  ;;  %v11955_v26 = vld [vmem:[%s20074_s0 + $0x602] ss:$2 sm:$0xff] }
 0x15e   :  { %4386 = vst.msk [vmem:[#allocation5 + $0x268] sm:$0xff] %vm315_vm2, %v11955_v26  ;;  %v17328_v8 = vld [vmem:[#allocation5 + $0x2a0] sm:$0xff] }
 0x15f   :  { %v11962_v26 = vld [vmem:[%s20074_s0 + $0x692] ss:$2 sm:$0xff] }
 0x160   :  { %4393 = vst.msk [vmem:[#allocation5 + $0x2a0] sm:$0xff] %vm315_vm2, %v11962_v26  ;;  %v20277_v26 = vld [vmem:[#allocation94_spill] sm:$0xff] }
 0x163   :  { %13270 = vmatmul.mubr.msk.bf16.gmra.mrb[28].mxu0 %vm315_vm2, %v20269_v19  ;;  %v11951_v19 = vld [vmem:[%s20074_s0 + $0x5b2] ss:$2 sm:$0xff] }
 0x164   :  { %13273 = vmatprep.mubr.msk.bf16.mxu0 %vm315_vm2, %v20270_v32  ;;  %4382 = vst.msk [vmem:[#allocation5 + $0x248] sm:$0xff] %vm315_vm2, %v11951_v19  ;;  %v17308_v19 = vld [vmem:[#allocation5 + $0x280] sm:$0xff]  ;;  %v20274_v32 = vpack.c.bf16 %v16663_v29, %v16648_v11  ;;  %v17366_v11 = vld [vmem:[#allocation5 + $0x2e8] sm:$0xff] }
 0x165   :  { %4389 = vst.msk [vmem:[#allocation5 + $0x280] sm:$0xff] %vm315_vm2, %v11958_v46  ;;  %v11963_v46 = vld [vmem:[%s20074_s0 + $0x6a2] ss:$2 sm:$0xff]  ;;  %20276 = vst [vmem:[#allocation126_spill] sm:$0xff] %v17366_v11 }
 0x166   :  { %4394 = vst.msk [vmem:[#allocation5 + $0x2a8] sm:$0xff] %vm315_vm2, %v11963_v46  ;;  %v17364_v29 = vld [vmem:[#allocation5 + $0x2e0] sm:$0xff]  ;;  %v20278_v46 = vpack.c.bf16 %v16668_v15, %v20277_v26  ;;  %v17388_v15 = vld [vmem:[#allocation5 + $0x308] sm:$0xff] }
 0x167   :  { %20275 = vst [vmem:[#allocation125_spill] sm:$0xff] %v17364_v29  ;;  %20283 = vst [vmem:[#allocation104_spill] sm:$0xff] %v17388_v15  ;;  %v11974_v26 = vld [vmem:[%s20074_s0 + $0x782] ss:$2 sm:$0xff] }
 0x168   :  { %v20290_v15 = vld [vmem:[#allocation107_spill] sm:$0xff] }
 0x16b   :  { %13274 = vmatmul.mubr.msk.bf16.gmra.mrb[32].mxu0 %vm315_vm2, %v20271_v36  ;;  %v11959_v36 = vld [vmem:[%s20074_s0 + $0x652] ss:$2 sm:$0xff] }
 0x16c   :  { %13277 = vmatprep.mubr.msk.bf16.mxu0 %vm315_vm2, %v20272_v7  ;;  %4390 = vst.msk [vmem:[#allocation5 + $0x288] sm:$0xff] %vm315_vm2, %v11959_v36  ;;  %v17344_v36 = vld [vmem:[#allocation5 + $0x2c0] sm:$0xff] }
 0x16d   :  { %4397 = vst.msk [vmem:[#allocation5 + $0x2c0] sm:$0xff] %vm315_vm2, %v11966_v34  ;;  %v11970_v7 = vld [vmem:[%s20074_s0 + $0x732] ss:$2 sm:$0xff]  ;;  %v11971_v34 = vld [vmem:[%s20074_s0 + $0x742] ss:$2 sm:$0xff] }
 0x16e   :  { %4401 = vst.msk [vmem:[#allocation5 + $0x2e0] sm:$0xff] %vm315_vm2, %v11970_v7  ;;  %4402 = vst.msk [vmem:[#allocation5 + $0x2e8] sm:$0xff] %vm315_vm2, %v11971_v34  ;;  %v20285_v7 = vld [vmem:[#allocation106_spill] sm:$0xff]  ;;  %v20286_v34 = vld [vmem:[#allocation105_spill] sm:$0xff] }
 0x16f   :  { %v20287_v29 = vpack.c.bf16 %v20285_v7, %v20286_v34  ;;  %v11982_v7 = vld [vmem:[%s20074_s0 + $0x822] ss:$2 sm:$0xff]  ;;  %v11983_v34 = vld [vmem:[%s20074_s0 + $0x832] ss:$2 sm:$0xff] }
 0x173   :  { %13278 = vmatmul.mubr.msk.bf16.gmra.mrb[36].mxu0 %vm315_vm2, %v20273_v23  ;;  %v11967_v23 = vld [vmem:[%s20074_s0 + $0x6f2] ss:$2 sm:$0xff] }
 0x174   :  { %13281 = vmatprep.mubr.msk.bf16.mxu0 %vm315_vm2, %v20274_v32  ;;  %4398 = vst.msk [vmem:[#allocation5 + $0x2c8] sm:$0xff] %vm315_vm2, %v11967_v23  ;;  %v17380_v23 = vld [vmem:[#allocation5 + $0x300] sm:$0xff] }
 0x175   :  { %20279 = vst [vmem:[#allocation94_spill] sm:$0xff] %v17380_v23  ;;  %4405 = vst.msk [vmem:[#allocation5 + $0x300] sm:$0xff] %vm315_vm2, %v11974_v26  ;;  %v11978_v32 = vld [vmem:[%s20074_s0 + $0x7d2] ss:$2 sm:$0xff]  ;;  %v11979_v26 = vld [vmem:[%s20074_s0 + $0x7e2] ss:$2 sm:$0xff] }
 0x176   :  { %v20289_v23 = vld [vmem:[#allocation108_spill] sm:$0xff]  ;;  %4410 = vst.msk [vmem:[#allocation5 + $0x328] sm:$0xff] %vm315_vm2, %v11979_v26  ;;  %v20293_v26 = vld [vmem:[#allocation109_spill] sm:$0xff] }
 0x177   :  { %v20291_v11 = vpack.c.bf16 %v20289_v23, %v20290_v15  ;;  %v20292_v15 = vld [vmem:[#allocation110_spill] sm:$0xff]  ;;  %v11994_v23 = vld [vmem:[%s20074_s0 + $0x912] ss:$2 sm:$0xff] }
 0x17b   :  { %13282 = vmatmul.mubr.msk.bf16.gmra.mrb[40].mxu0 %vm315_vm2, %v20278_v46  ;;  %v11975_v46 = vld [vmem:[%s20074_s0 + $0x792] ss:$2 sm:$0xff] }
 0x17c   :  { %13285 = vmatprep.mubr.msk.bf16.mxu0 %vm315_vm2, %v20282_v35  ;;  %4406 = vst.msk [vmem:[#allocation5 + $0x308] sm:$0xff] %vm315_vm2, %v11975_v46  ;;  %v17400_v35 = vld [vmem:[#allocation5 + $0x320] sm:$0xff] }
 0x17d   :  { %20284 = vst [vmem:[#allocation103_spill] sm:$0xff] %v17400_v35  ;;  %v17416_v46 = vld [vmem:[#allocation5 + $0x340] sm:$0xff]  ;;  %4409 = vst.msk [vmem:[#allocation5 + $0x320] sm:$0xff] %vm315_vm2, %v11978_v32  ;;  %v17438_v32 = vld [vmem:[#allocation5 + $0x368] sm:$0xff]  ;;  %v20294_v35 = vpack.c.bf16 %v20292_v15, %v20293_v26 }
 0x17e   :  { %20288 = vst [vmem:[#allocation106_spill] sm:$0xff] %v17416_v46  ;;  %4413 = vst.msk [vmem:[#allocation5 + $0x340] sm:$0xff] %vm315_vm2, %v11982_v7  ;;  %v11987_v7 = vld [vmem:[%s20074_s0 + $0x882] ss:$2 sm:$0xff]  ;;  %v20296_v46 = vpack.c.bf16 %v16873_v14, %v16858_v58  ;;  %v11991_v26 = vld [vmem:[%s20074_s0 + $0x8d2] ss:$2 sm:$0xff] }
 0x17f   :  { %4418 = vst.msk [vmem:[#allocation5 + $0x368] sm:$0xff] %vm315_vm2, %v11987_v7  ;;  %v11990_v15 = vld [vmem:[%s20074_s0 + $0x8c2] ss:$2 sm:$0xff] }
 0x180   :  { %v17472_v14 = vld [vmem:[#allocation5 + $0x3a0] sm:$0xff]  ;;  %v17474_v58 = vld [vmem:[#allocation5 + $0x3a8] sm:$0xff] }
 0x181   :  { %4425 = vst.msk [vmem:[#allocation5 + $0x3a0] sm:$0xff] %vm315_vm2, %v11994_v23  ;;  %v17510_v23 = vld [vmem:[#allocation5 + $0x3e8] sm:$0xff] }
 0x183   :  { %13286 = vmatmul.mubr.msk.bf16.gmra.mrb[44].mxu0 %vm315_vm2, %v20287_v29  ;;  %v17424_v29 = vld [vmem:[#allocation5 + $0x348] sm:$0xff] }
 0x184   :  { %13289 = vmatprep.mubr.msk.bf16.mxu0 %vm315_vm2, %v20291_v11  ;;  %4414 = vst.msk [vmem:[#allocation5 + $0x348] sm:$0xff] %vm315_vm2, %v11983_v34  ;;  %v17436_v11 = vld [vmem:[#allocation5 + $0x360] sm:$0xff] }
 0x185   :  { %v17452_v34 = vld [vmem:[#allocation5 + $0x380] sm:$0xff]  ;;  %4417 = vst.msk [vmem:[#allocation5 + $0x360] sm:$0xff] %vm315_vm2, %v11986_v53  ;;  %v20304_v53 = vpack.c.bf16 %v16971_v33, %v16969_v20  ;;  %v17546_v33 = vld [vmem:[#allocation5 + $0x428] sm:$0xff] }
 0x186   :  { %20295 = vst [vmem:[#allocation105_spill] sm:$0xff] %v17452_v34  ;;  %4421 = vst.msk [vmem:[#allocation5 + $0x380] sm:$0xff] %vm315_vm2, %v11990_v15  ;;  %v11995_v15 = vld [vmem:[%s20074_s0 + $0x922] ss:$2 sm:$0xff]  ;;  %v20300_v34 = vld [vmem:[#allocation124_spill] sm:$0xff] }
 0x187   :  { %4426 = vst.msk [vmem:[#allocation5 + $0x3a8] sm:$0xff] %vm315_vm2, %v11995_v15  ;;  %v12002_v15 = vld [vmem:[%s20074_s0 + $0x9b2] ss:$2 sm:$0xff]  ;;  %20306 = vst [vmem:[#allocation109_spill] sm:$0xff] %v17546_v33 }
 0x188   :  { %v17544_v20 = vld [vmem:[#allocation5 + $0x420] sm:$0xff] }
 0x189   :  { %20305 = vst [vmem:[#allocation110_spill] sm:$0xff] %v17544_v20  ;;  %v20309_v20 = vld [vmem:[#allocation50_spill] sm:$0xff] }
 0x18b   :  { %13290 = vmatmul.mubr.msk.bf16.gmra.mrb[48].mxu0 %vm315_vm2, %v20294_v35  ;;  %v17460_v35 = vld [vmem:[#allocation5 + $0x388] sm:$0xff] }
 0x18c   :  { %13293 = vmatprep.mubr.msk.bf16.mxu0 %vm315_vm2, %v20296_v46  ;;  %20297 = vst [vmem:[#allocation108_spill] sm:$0xff] %v17460_v35  ;;  %4422 = vst.msk [vmem:[#allocation5 + $0x388] sm:$0xff] %vm315_vm2, %v11991_v26  ;;  %v20298_v46 = vld [vmem:[#allocation115_spill] sm:$0xff]  ;;  %v17488_v26 = vld [vmem:[#allocation5 + $0x3c0] sm:$0xff]  ;;  %v20301_v35 = vpack.c.bf16 %v16949_v59, %v20300_v34  ;;  %v20307_v34 = vpack.c.bf16 %v16979_v13, %v16977_v47 }
 0x18d   :  { %v20299_v7 = vpack.c.bf16 %v16878_v62, %v20298_v46  ;;  %v17496_v62 = vld [vmem:[#allocation5 + $0x3c8] sm:$0xff]  ;;  %v17508_v59 = vld [vmem:[#allocation5 + $0x3e0] sm:$0xff]  ;;  %v20312_v47 = vld [vmem:[#allocation52_spill] sm:$0xff] }
 0x18e   :  { %v11998_v46 = vld [vmem:[%s20074_s0 + $0x962] ss:$2 sm:$0xff]  ;;  %4433 = vst.msk [vmem:[#allocation5 + $0x3e0] sm:$0xff] %vm315_vm2, %v12002_v15 }
 0x18f   :  { %4429 = vst.msk [vmem:[#allocation5 + $0x3c0] sm:$0xff] %vm315_vm2, %v11998_v46  ;;  %v12003_v46 = vld [vmem:[%s20074_s0 + $0x9c2] ss:$2 sm:$0xff] }
 0x190   :  { %4434 = vst.msk [vmem:[#allocation5 + $0x3e8] sm:$0xff] %vm315_vm2, %v12003_v46  ;;  %v11545_v15 = vld [vmem:[%s20075_s1 + $0x6] sm:$0x3]  ;;  %v20311_v13 = vld [vmem:[#allocation51_spill] sm:$0xff] }
 0x191   :  { %v749_v46 = vand.u32 %v11545_v15, %v14980_v5 }
 0x193   :  { %13294 = vmatmul.mubr.msk.bf16.gmra.mrb[52].mxu0 %vm315_vm2, %v20299_v7  ;;  %v11999_v7 = vld [vmem:[%s20074_s0 + $0x972] ss:$2 sm:$0xff]  ;;  %12975 = vmatprep.subr.bf16.mxu1 %v749_v46 }
 0x194   :  { %13297 = vmatprep.mubr.msk.bf16.mxu0 %vm315_vm2, %v20301_v35  ;;  %4430 = vst.msk [vmem:[#allocation5 + $0x3c8] sm:$0xff] %vm315_vm2, %v11999_v7  ;;  %v20302_v35 = vpack.c.bf16 %v16963_v41, %v16961_v39  ;;  %v17524_v7 = vld [vmem:[#allocation5 + $0x400] sm:$0xff]  ;;  %v17532_v39 = vld [vmem:[#allocation5 + $0x408] sm:$0xff]  ;;  %12976 = vmatpush3.bf16.msra.mxu1 %v749_v46  ;;  %v20317_v46 = vld [vmem:[#allocation56_spill] sm:$0xff] }
 0x195   :  { %20303 = vst [vmem:[#allocation107_spill] sm:$0xff] %v17524_v7  ;;  %v12006_v41 = vld [vmem:[%s20074_s0 + $0xa02] ss:$2 sm:$0xff]  ;;  %v20310_v7 = vpack.c.bf16 %v16998_v22, %v16990_v52 }
 0x196   :  { %4437 = vst.msk [vmem:[#allocation5 + $0x400] sm:$0xff] %vm315_vm2, %v12006_v41  ;;  %v12010_v41 = vld [vmem:[%s20074_s0 + $0xa52] ss:$2 sm:$0xff] }
 0x197   :  { %4441 = vst.msk [vmem:[#allocation5 + $0x420] sm:$0xff] %vm315_vm2, %v12010_v41  ;;  %v20313_v22 = vld [vmem:[#allocation53_spill] sm:$0xff] }
 0x198   :  { %v20318_v41 = vld [vmem:[#allocation57_spill] sm:$0xff] }
 0x19b   :  { %13298 = vmatmul.mubr.msk.bf16.gmra.mrb[56].mxu0 %vm315_vm2, %v20302_v35  ;;  %v12007_v35 = vld [vmem:[%s20074_s0 + $0xa12] ss:$2 sm:$0xff] }
 0x19c   :  { %13301 = vmatprep.mubr.msk.bf16.mxu0 %vm315_vm2, %v20304_v53  ;;  %4438 = vst.msk [vmem:[#allocation5 + $0x408] sm:$0xff] %vm315_vm2, %v12007_v35  ;;  %v12011_v35 = vld [vmem:[%s20074_s0 + $0xa62] ss:$2 sm:$0xff] }
 0x19d   :  { %v20308_v53 = vld [vmem:[#allocation49_spill] sm:$0xff]  ;;  %4442 = vst.msk [vmem:[#allocation5 + $0x428] sm:$0xff] %vm315_vm2, %v12011_v35  ;;  %v617_v35 = vpack.c.bf16 %v20318_v41, %v20317_v46  ;;  %v20333_v46 = vld [vmem:[#allocation67_spill] sm:$0xff] }
 0x19e   :  { %v614_v33 = vpack.c.bf16 %v20309_v20, %v20308_v53  ;;  %v12047_v20 = vld [vmem:[%s20075_s1 + $0xa] sm:$0x3]  ;;  %v20316_v53 = vld [vmem:[#allocation55_spill] sm:$0xff] }
 0x19f   :  { %v17580_v52 = vand.u32 %v12047_v20, %v14980_v5  ;;  %v20324_v20 = vld [vmem:[#allocation61_spill] sm:$0xff] }
 0x1a0   :  { %12977 = vmatprep.mubr.msk.bf16.mxu1 %vm315_vm2, %v614_v33  ;;  %v20315_v33 = vld [vmem:[#allocation54_spill] sm:$0xff] }
 0x1a1   :  { %v616_v15 = vpack.c.bf16 %v20316_v53, %v20315_v33  ;;  %v20330_v53 = vld [vmem:[#allocation65_spill] sm:$0xff] }
 0x1a3   :  { %13302 = vmatmul.mubr.msk.bf16.gmra.mrb[60].mxu0 %vm315_vm2, %v20307_v34  ;;  %v615_v34 = vpack.c.bf16 %v20312_v47, %v20311_v13  ;;  %v20322_v47 = vpack.c.bf16 %v17064_v0, %v17056_v57  ;;  %v20328_v57 = vpack.c.bf16 %v17100_v21, %v17092_v25  ;;  %v20329_v0 = vld [vmem:[#allocation64_spill] sm:$0xff]  ;;  %v20334_v25 = vpack.c.bf16 %v17136_v45, %v17128_v51 }
 0x1a4   :  { %13307 = vmatprep.mubr.msk.bf16.mxu0 %vm315_vm2, %v20310_v7  ;;  %v20314_v7 = vpack.c.bf16 %v17027_v61, %v17025_v54  ;;  %v20320_v54 = vld [vmem:[#allocation58_spill] sm:$0xff]  ;;  %v20321_v61 = vld [vmem:[#allocation59_spill] sm:$0xff]  ;;  %v20335_v21 = vld [vmem:[#allocation68_spill] sm:$0xff]  ;;  %v20340_v51 = vpack.c.bf16 %v17172_v60, %v17164_v3  ;;  %v20346_v3 = vpack.c.bf16 %v17208_v16, %v17200_v1  ;;  %v20352_v1 = vpack.c.bf16 %v17244_v30, %v17236_v4 }
 0x1a5   :  { %12978 = vmatmul.mubr.msk.bf16.vlgmr.msra.gmra.mrb[0].mxu1 %vm315_vm2, %v615_v34  ;;  %v618_v13 = vpack.c.bf16 %v20321_v61, %v20320_v54  ;;  %v20323_v34 = vld [vmem:[#allocation60_spill] sm:$0xff]  ;;  %v20339_v54 = vld [vmem:[#allocation71_spill] sm:$0xff]  ;;  %v20358_v4 = vpack.c.bf16 %v17280_v9, %v17272_v18  ;;  %v20364_v18 = vpack.c.bf16 %v17316_v63, %v17308_v19  ;;  %v20370_v19 = vpack.c.bf16 %v17352_v2, %v17344_v36  ;;  %v20381_v2 = vld [vmem:[#allocation97_spill] sm:$0xff] }
 0x1a6   :  { %12981 = vmatprep.mubr.msk.bf16.mxu1 %vm315_vm2, %v616_v15  ;;  %v621_v15 = vpack.c.bf16 %v20330_v53, %v20329_v0  ;;  %v20341_v45 = vld [vmem:[#allocation72_spill] sm:$0xff]  ;;  %v20357_v0 = vld [vmem:[#allocation83_spill] sm:$0xff] }
 0x1a7   :  { %v20347_v60 = vld [vmem:[#allocation76_spill] sm:$0xff] }
 0x1a8   :  { %v20353_v16 = vld [vmem:[#allocation80_spill] sm:$0xff] }
 0x1a9   :  { %v20359_v30 = vld [vmem:[#allocation84_spill] sm:$0xff] }
 0x1aa   :  { %v20365_v9 = vld [vmem:[#allocation88_spill] sm:$0xff] }
 0x1ab   :  { %13308 = vmatmul.mubr.msk.bf16.vlgmr.msra.gmra.mrb[0].mxu0 %vm315_vm2, %v20313_v22  ;;  %v619_v22 = vpack.c.bf16 %v20324_v20, %v20323_v34  ;;  %v20345_v34 = vld [vmem:[#allocation75_spill] sm:$0xff]  ;;  %v20371_v63 = vld [vmem:[#allocation92_spill] sm:$0xff] }
 0x1ac   :  { %13372 = vmatpush3.bf16.msra.mxu0 %v17014_v38  ;;  %13311 = vmatprep.mubr.msk.bf16.mxu0 %vm315_vm2, %v20314_v7  ;;  %v20319_v38 = vpack.c.bf16 %v17041_v49, %v17039_v12  ;;  %v20325_v12 = vpack.c.bf16 %v17078_v44, %v17076_v6  ;;  %v20326_v49 = vld [vmem:[#allocation62_spill] sm:$0xff]  ;;  %v20327_v7 = vld [vmem:[#allocation63_spill] sm:$0xff]  ;;  %v20331_v6 = vpack.c.bf16 %v17114_v28, %v17112_v42 }
 0x1ad   :  { %13437 = vmatprep.subr.bf16.mxu0 %v17580_v52  ;;  %12982 = vmatmul.mubr.msk.bf16.gmra.mrb[4].mxu1 %vm315_vm2, %v617_v35  ;;  %v620_v33 = vpack.c.bf16 %v20327_v7, %v20326_v49  ;;  %v20332_v44 = vld [vmem:[#allocation66_spill] sm:$0xff]  ;;  %v20336_v35 = vld [vmem:[#allocation69_spill] sm:$0xff]  ;;  %v20337_v42 = vpack.c.bf16 %v17150_v27, %v17148_v24  ;;  %v20343_v24 = vpack.c.bf16 %v17186_v17, %v17184_v48  ;;  %v20351_v49 = vld [vmem:[#allocation79_spill] sm:$0xff] }
 0x1ae   :  { %12985 = vmatprep.mubr.msk.bf16.mxu1 %vm315_vm2, %v618_v13  ;;  %v622_v41 = vpack.c.bf16 %v20333_v46, %v20332_v44  ;;  %v20338_v28 = vld [vmem:[#allocation70_spill] sm:$0xff]  ;;  %v20342_v13 = vld [vmem:[#allocation73_spill] sm:$0xff]  ;;  %v20349_v48 = vpack.c.bf16 %v17222_v56, %v17220_v40  ;;  %v20355_v40 = vpack.c.bf16 %v17258_v10, %v17256_v31  ;;  %v20361_v31 = vpack.c.bf16 %v17294_v43, %v17292_v55  ;;  %v20363_v44 = vld [vmem:[#allocation87_spill] sm:$0xff] }
 0x1af   :  { %v624_v61 = vpack.c.bf16 %v20339_v54, %v20338_v28  ;;  %v20344_v27 = vld [vmem:[#allocation74_spill] sm:$0xff]  ;;  %v20367_v55 = vpack.c.bf16 %v17330_v50, %v17328_v8  ;;  %v20374_v54 = vld [vmem:[#allocation125_spill] sm:$0xff]  ;;  %v20376_v50 = vld [vmem:[#allocation95_spill] sm:$0xff] }
 0x1b0   :  { %v626_v20 = vpack.c.bf16 %v20345_v34, %v20344_v27  ;;  %v20350_v17 = vld [vmem:[#allocation78_spill] sm:$0xff]  ;;  %v20383_v27 = vld [vmem:[#allocation103_spill] sm:$0xff] }
 0x1b1   :  { %v628_v7 = vpack.c.bf16 %v20351_v49, %v20350_v17  ;;  %v20356_v56 = vld [vmem:[#allocation82_spill] sm:$0xff]  ;;  %v20384_v34 = vpack.c.bf16 %v17402_v37, %v20383_v27  ;;  %v20391_v37 = vpack.c.bf16 %v17438_v32, %v17436_v11  ;;  %v20399_v11 = vpack.c.bf16 %v17474_v58, %v17472_v14  ;;  %v20400_v32 = vld [vmem:[#allocation116_spill] sm:$0xff] }
 0x1b2   :  { %v630_v53 = vpack.c.bf16 %v20357_v0, %v20356_v56  ;;  %v20362_v10 = vld [vmem:[#allocation86_spill] sm:$0xff]  ;;  %v20405_v14 = vpack.c.bf16 %v17510_v23, %v17508_v59  ;;  %v20406_v58 = vld [vmem:[#allocation120_spill] sm:$0xff]  ;;  %v548_v59 = vld [vmem:[%s20075_s1] sm:$0x3] }
 0x1b3   :  { %13312 = vmatmul.mubr.msk.bf16.gmra.mrb[4].mxu0 %vm315_vm2, %v20319_v38  ;;  %v623_v38 = vpack.c.bf16 %v20336_v35, %v20335_v21  ;;  %v632_v46 = vpack.c.bf16 %v20363_v44, %v20362_v10  ;;  %v20368_v43 = vld [vmem:[#allocation90_spill] sm:$0xff]  ;;  %v20369_v21 = vld [vmem:[#allocation91_spill] sm:$0xff]  ;;  %v20407_v10 = vld [vmem:[#allocation121_spill] sm:$0xff]  ;;  %v1137_v23 = vand.u32 %v14980_v5, %v548_v59 }
 0x1b4   :  { %13315 = vmatprep.mubr.msk.bf16.mxu0 %vm315_vm2, %v20322_v47  ;;  %v625_v47 = vpack.c.bf16 %v20342_v13, %v20341_v45  ;;  %v634_v35 = vpack.c.bf16 %v20369_v21, %v20368_v43  ;;  %v20373_v28 = vld [vmem:[#allocation126_spill] sm:$0xff]  ;;  %v20378_v45 = vld [vmem:[#allocation104_spill] sm:$0xff]  ;;  %v644_v44 = vpack.c.bf16 %v20407_v10, %v20406_v58  ;;  %v20412_v43 = vld [vmem:[#allocation109_spill] sm:$0xff] }
 0x1b5   :  { %12986 = vmatmul.mubr.msk.bf16.gmra.mrb[8].mxu1 %vm315_vm2, %v619_v22  ;;  %v20348_v22 = vld [vmem:[#allocation77_spill] sm:$0xff]  ;;  %v20375_v8 = vpack.c.bf16 %v20373_v28, %v20374_v54  ;;  %v20379_v13 = vld [vmem:[#allocation94_spill] sm:$0xff]  ;;  %13041 = vmatprep.subr.bf16.mxu1 %v1137_v23  ;;  %v20426_v58 = vld [vmem:[#allocation24_spill] sm:$0xff] }
 0x1b6   :  { %12989 = vmatprep.mubr.msk.bf16.mxu1 %vm315_vm2, %v620_v33  ;;  %v20354_v33 = vld [vmem:[#allocation81_spill] sm:$0xff]  ;;  %v20380_v36 = vpack.c.bf16 %v20378_v45, %v20379_v13  ;;  %v20390_v17 = vld [vmem:[#allocation102_spill] sm:$0xff]  ;;  %13042 = vmatpush3.bf16.msra.mxu1 %v1137_v23  ;;  %v20429_v59 = vld [vmem:[#allocation27_spill] sm:$0xff] }
 0x1b7   :  { %v20398_v56 = vld [vmem:[#allocation114_spill] sm:$0xff] }
 0x1b8   :  { %v4449_v28 = vld [vmem:[#allocation5 + $0x40] sm:$0xff]  ;;  %v4450_v54 = vld [vmem:[#allocation5 + $0x48] sm:$0xff] }
 0x1b9   :  { %v4451_v13 = vld [vmem:[#allocation5 + $0x60] sm:$0xff] }
 0x1ba   :  { %v4475_v23 = vld [vmem:[#allocation5 + $0x1e0] sm:$0xff] }
 0x1bb   :  { %13316 = vmatmul.mubr.msk.bf16.gmra.mrb[8].mxu0 %vm315_vm2, %v20325_v12  ;;  %v627_v12 = vpack.c.bf16 %v20348_v22, %v20347_v60  ;;  %v20387_v22 = vld [vmem:[#allocation106_spill] sm:$0xff] }
 0x1bc   :  { %13319 = vmatprep.mubr.msk.bf16.mxu0 %vm315_vm2, %v20328_v57  ;;  %v629_v57 = vpack.c.bf16 %v20354_v33, %v20353_v16  ;;  %v20394_v33 = vld [vmem:[#allocation108_spill] sm:$0xff] }
 0x1bd   :  { %12990 = vmatmul.mubr.msk.bf16.gmra.mrb[12].mxu1 %vm315_vm2, %v621_v15  ;;  %v20360_v15 = vld [vmem:[#allocation85_spill] sm:$0xff] }
 0x1be   :  { %12993 = vmatprep.mubr.msk.bf16.mxu1 %vm315_vm2, %v622_v41  ;;  %v20366_v41 = vld [vmem:[#allocation89_spill] sm:$0xff] }
 0x1c3   :  { %13320 = vmatmul.mubr.msk.bf16.gmra.mrb[12].mxu0 %vm315_vm2, %v20331_v6  ;;  %v631_v6 = vpack.c.bf16 %v20360_v15, %v20359_v30  ;;  %v20402_v30 = vpack.c.bf16 %v17496_v62, %v17488_v26  ;;  %v20403_v15 = vld [vmem:[#allocation118_spill] sm:$0xff] }
 0x1c4   :  { %13323 = vmatprep.mubr.msk.bf16.mxu0 %vm315_vm2, %v20334_v25  ;;  %v633_v25 = vpack.c.bf16 %v20366_v41, %v20365_v9  ;;  %v20410_v62 = vld [vmem:[#allocation122_spill] sm:$0xff] }
 0x1c5   :  { %12994 = vmatmul.mubr.msk.bf16.gmra.mrb[16].mxu1 %vm315_vm2, %v623_v38  ;;  %v20372_v38 = vld [vmem:[#allocation93_spill] sm:$0xff] }
 0x1c6   :  { %12997 = vmatprep.mubr.msk.bf16.mxu1 %vm315_vm2, %v624_v61  ;;  %v20377_v61 = vld [vmem:[#allocation96_spill] sm:$0xff]  ;;  %v4445_v41 = vld [vmem:[#allocation5] sm:$0xff] }
 0x1cb   :  { %13324 = vmatmul.mubr.msk.bf16.gmra.mrb[16].mxu0 %vm315_vm2, %v20337_v42  ;;  %v635_v42 = vpack.c.bf16 %v20372_v38, %v20371_v63  ;;  %v4447_v38 = vld [vmem:[#allocation5 + $0x20] sm:$0xff] }
 0x1cc   :  { %13327 = vmatprep.mubr.msk.bf16.mxu0 %vm315_vm2, %v20340_v51  ;;  %v636_v51 = vpack.c.bf16 %v20377_v61, %v20376_v50  ;;  %v17809_v61 = vpack.c.bf16 %v4450_v54, %v4449_v28  ;;  %v20433_v28 = vld [vmem:[#allocation38_spill] sm:$0xff] }
 0x1cd   :  { %12998 = vmatmul.mubr.msk.bf16.gmra.mrb[20].mxu1 %vm315_vm2, %v625_v47  ;;  %v20382_v47 = vld [vmem:[#allocation98_spill] sm:$0xff] }
 0x1ce   :  { %13001 = vmatprep.mubr.msk.bf16.mxu1 %vm315_vm2, %v626_v20  ;;  %v20385_v20 = vld [vmem:[#allocation99_spill] sm:$0xff] }
 0x1d3   :  { %13328 = vmatmul.mubr.msk.bf16.gmra.mrb[20].mxu0 %vm315_vm2, %v20343_v24  ;;  %v637_v24 = vpack.c.bf16 %v20382_v47, %v20381_v2  ;;  %v4453_v2 = vld [vmem:[#allocation5 + $0x80] sm:$0xff]  ;;  %v4454_v47 = vld [vmem:[#allocation5 + $0x88] sm:$0xff] }
 0x1d4   :  { %13331 = vmatprep.mubr.msk.bf16.mxu0 %vm315_vm2, %v20346_v3  ;;  %v20386_v3 = vld [vmem:[#allocation100_spill] sm:$0xff] }
 0x1d5   :  { %13002 = vmatmul.mubr.msk.bf16.gmra.mrb[24].mxu1 %vm315_vm2, %v627_v12  ;;  %v638_v60 = vpack.c.bf16 %v20386_v3, %v20385_v20  ;;  %v20388_v12 = vpack.c.bf16 %v17424_v29, %v20387_v22  ;;  %v4456_v20 = vld [vmem:[#allocation5 + $0xa8] sm:$0xff]  ;;  %v4457_v3 = vld [vmem:[#allocation5 + $0xc0] sm:$0xff] }
 0x1d6   :  { %13005 = vmatprep.mubr.msk.bf16.mxu1 %vm315_vm2, %v628_v7  ;;  %v20392_v7 = vld [vmem:[#allocation111_spill] sm:$0xff]  ;;  %v20420_v22 = vld [vmem:[#allocation18_spill] sm:$0xff] }
 0x1db   :  { %13332 = vmatmul.mubr.msk.bf16.gmra.mrb[24].mxu0 %vm315_vm2, %v20349_v48  ;;  %v20389_v48 = vld [vmem:[#allocation101_spill] sm:$0xff] }
 0x1dc   :  { %13335 = vmatprep.mubr.msk.bf16.mxu0 %vm315_vm2, %v20352_v1  ;;  %v639_v49 = vpack.c.bf16 %v20390_v17, %v20389_v48  ;;  %v20393_v1 = vld [vmem:[#allocation112_spill] sm:$0xff]  ;;  %v20421_v17 = vld [vmem:[#allocation19_spill] sm:$0xff] }
 0x1dd   :  { %13006 = vmatmul.mubr.msk.bf16.gmra.mrb[28].mxu1 %vm315_vm2, %v629_v57  ;;  %v640_v16 = vpack.c.bf16 %v20393_v1, %v20392_v7  ;;  %v20395_v57 = vld [vmem:[#allocation105_spill] sm:$0xff]  ;;  %v4462_v1 = vld [vmem:[#allocation5 + $0x108] sm:$0xff] }
 0x1de   :  { %13009 = vmatprep.mubr.msk.bf16.mxu1 %vm315_vm2, %v630_v53  ;;  %v20396_v29 = vpack.c.bf16 %v20394_v33, %v20395_v57  ;;  %v20401_v53 = vld [vmem:[#allocation117_spill] sm:$0xff] }
 0x1df   :  { %v4461_v7 = vld [vmem:[#allocation5 + $0x100] sm:$0xff] }
 0x1e0   :  { %v17850_v57 = vpack.c.bf16 %v4462_v1, %v4461_v7  ;;  %v4488_v7 = vld [vmem:[#allocation5 + $0x2c8] sm:$0xff]  ;;  %v4489_v1 = vld [vmem:[#allocation5 + $0x2e0] sm:$0xff] }
 0x1e3   :  { %13336 = vmatmul.mubr.msk.bf16.gmra.mrb[28].mxu0 %vm315_vm2, %v20355_v40  ;;  %v20397_v40 = vld [vmem:[#allocation113_spill] sm:$0xff] }
 0x1e4   :  { %13339 = vmatprep.mubr.msk.bf16.mxu0 %vm315_vm2, %v20358_v4  ;;  %v641_v0 = vpack.c.bf16 %v20398_v56, %v20397_v40  ;;  %v642_v4 = vpack.c.bf16 %v20401_v53, %v20400_v32  ;;  %v4463_v40 = vld [vmem:[#allocation5 + $0x120] sm:$0xff]  ;;  %v4464_v56 = vld [vmem:[#allocation5 + $0x128] sm:$0xff] }
 0x1e5   :  { %13010 = vmatmul.mubr.msk.bf16.gmra.mrb[32].mxu1 %vm315_vm2, %v631_v6  ;;  %v20404_v6 = vld [vmem:[#allocation119_spill] sm:$0xff]  ;;  %v20424_v32 = vld [vmem:[#allocation22_spill] sm:$0xff]  ;;  %v17860_v53 = vpack.c.bf16 %v4464_v56, %v4463_v40 }
 0x1e6   :  { %13013 = vmatprep.mubr.msk.bf16.mxu1 %vm315_vm2, %v632_v46  ;;  %v20408_v46 = vld [vmem:[#allocation107_spill] sm:$0xff] }
 0x1e7   :  { %v20409_v26 = vpack.c.bf16 %v17532_v39, %v20408_v46  ;;  %v20413_v39 = vld [vmem:[#allocation110_spill] sm:$0xff]  ;;  %v20427_v46 = vld [vmem:[#allocation25_spill] sm:$0xff] }
 0x1e8   :  { %v20414_v21 = vpack.c.bf16 %v20412_v43, %v20413_v39  ;;  %v4476_v43 = vld [vmem:[#allocation5 + $0x1e8] sm:$0xff]  ;;  %v4477_v39 = vld [vmem:[#allocation5 + $0x220] sm:$0xff] }
 0x1eb   :  { %13340 = vmatmul.mubr.msk.bf16.gmra.mrb[32].mxu0 %vm315_vm2, %v20361_v31  ;;  %v643_v31 = vpack.c.bf16 %v20404_v6, %v20403_v15  ;;  %v4467_v15 = vld [vmem:[#allocation5 + $0x160] sm:$0xff]  ;;  %v4468_v6 = vld [vmem:[#allocation5 + $0x168] sm:$0xff] }
 0x1ec   :  { %13343 = vmatprep.mubr.msk.bf16.mxu0 %vm315_vm2, %v20364_v18  ;;  %v20411_v18 = vld [vmem:[#allocation123_spill] sm:$0xff]  ;;  %v17872_v10 = vpack.c.bf16 %v4468_v6, %v4467_v15 }
 0x1ed   :  { %13014 = vmatmul.mubr.msk.bf16.gmra.mrb[36].mxu1 %vm315_vm2, %v633_v25  ;;  %v645_v9 = vpack.c.bf16 %v20411_v18, %v20410_v62  ;;  %v4446_v25 = vld [vmem:[#allocation5 + $0x8] sm:$0xff]  ;;  %v4473_v18 = vld [vmem:[#allocation5 + $0x1c0] sm:$0xff] }
 0x1ee   :  { %13017 = vmatprep.mubr.msk.bf16.mxu1 %vm315_vm2, %v634_v35  ;;  %v20415_v35 = vld [vmem:[#allocation31_spill] sm:$0xff] }
 0x1ef   :  { %v4472_v62 = vld [vmem:[#allocation5 + $0x1a8] sm:$0xff] }
 0x1f0   :  { %v4494_v15 = vld [vmem:[#allocation5 + $0x328] sm:$0xff] }
 0x1f1   :  { %v20439_v6 = vld [vmem:[#allocation39_spill] sm:$0xff] }
 0x1f3   :  { %13344 = vmatmul.mubr.msk.bf16.gmra.mrb[36].mxu0 %vm315_vm2, %v20367_v55  ;;  %v4509_v55 = vpack.c.bf16 %v4446_v25, %v4445_v41  ;;  %v20428_v41 = vld [vmem:[#allocation26_spill] sm:$0xff] }
 0x1f4   :  { %13347 = vmatprep.mubr.msk.bf16.mxu0 %vm315_vm2, %v20370_v19  ;;  %v20416_v19 = vld [vmem:[#allocation32_spill] sm:$0xff] }
 0x1f5   :  { %13018 = vmatmul.mubr.msk.bf16.gmra.mrb[40].mxu1 %vm315_vm2, %v635_v42  ;;  %v516_v63 = vpack.c.bf16 %v20416_v19, %v20415_v35  ;;  %v4448_v42 = vld [vmem:[#allocation5 + $0x28] sm:$0xff]  ;;  %v20430_v35 = vld [vmem:[#allocation28_spill] sm:$0xff]  ;;  %v17896_v19 = vpack.c.bf16 %v4476_v43, %v4475_v23  ;;  %v4499_v43 = vld [vmem:[#allocation5 + $0x380] sm:$0xff] }
 0x1f6   :  { %13021 = vmatprep.mubr.msk.bf16.mxu1 %vm315_vm2, %v636_v51  ;;  %v17807_v50 = vpack.c.bf16 %v4448_v42, %v4447_v38  ;;  %v20417_v51 = vld [vmem:[#allocation15_spill] sm:$0xff]  ;;  %v20431_v38 = vld [vmem:[#allocation29_spill] sm:$0xff]  ;;  %v20442_v23 = vld [vmem:[#allocation42_spill] sm:$0xff] }
 0x1f7   :  { %v20432_v42 = vld [vmem:[#allocation37_spill] sm:$0xff] }
 0x1f8   :  { %v532_v54 = vpack.c.bf16 %v20433_v28, %v20432_v42  ;;  %v20444_v28 = vld [vmem:[#allocation44_spill] sm:$0xff] }
 0x1fb   :  { %13348 = vmatmul.mubr.msk.bf16.gmra.mrb[40].mxu0 %vm315_vm2, %v20375_v8  ;;  %v12080_v8 = vld [vmem:[%s20075_s1 + $0x10] sm:$0x3] }
 0x1fc   :  { %13351 = vmatprep.mubr.msk.bf16.mxu0 %vm315_vm2, %v20380_v36  ;;  %v17814_v45 = vand.u32 %v12080_v8, %v14980_v5  ;;  %v4452_v36 = vld [vmem:[#allocation5 + $0x68] sm:$0xff]  ;;  %v17826_v5 = vpack.c.bf16 %v4454_v47, %v4453_v2  ;;  %v4479_v8 = vld [vmem:[#allocation5 + $0x240] sm:$0xff] }
 0x1fd   :  { %13022 = vmatmul.mubr.msk.bf16.gmra.mrb[44].mxu1 %vm315_vm2, %v637_v24  ;;  %v20418_v24 = vld [vmem:[#allocation16_spill] sm:$0xff]  ;;  %v17824_v27 = vpack.c.bf16 %v4452_v36, %v4451_v13  ;;  %v4481_v13 = vld [vmem:[#allocation5 + $0x260] sm:$0xff]  ;;  %v4482_v36 = vld [vmem:[#allocation5 + $0x268] sm:$0xff] }
 0x1fe   :  { %13025 = vmatprep.mubr.msk.bf16.mxu1 %vm315_vm2, %v638_v60  ;;  %v4458_v60 = vld [vmem:[#allocation5 + $0xc8] sm:$0xff]  ;;  %v17908_v47 = vpack.c.bf16 %v4482_v36, %v4481_v13  ;;  %v20445_v36 = vld [vmem:[#allocation45_spill] sm:$0xff] }
 0x1ff   :  { %v17838_v48 = vpack.c.bf16 %v4458_v60, %v4457_v3  ;;  %v4486_v3 = vld [vmem:[#allocation5 + $0x2a8] sm:$0xff]  ;;  %v20435_v60 = vld [vmem:[#allocation33_spill] sm:$0xff] }
 0x200   :  { %v4506_v13 = vld [vmem:[#allocation5 + $0x3e8] sm:$0xff] }
 0x203   :  { %13352 = vmatmul.mubr.msk.bf16.gmra.mrb[44].mxu0 %vm315_vm2, %v20384_v34  ;;  %v20419_v34 = vld [vmem:[#allocation17_spill] sm:$0xff] }
 0x204   :  { %13355 = vmatprep.mubr.msk.bf16.mxu0 %vm315_vm2, %v20388_v12 }
 0x205   :  { %13026 = vmatmul.mubr.msk.bf16.gmra.mrb[48].mxu1 %vm315_vm2, %v639_v49  ;;  %v4459_v49 = vld [vmem:[#allocation5 + $0xe0] sm:$0xff] }
 0x206   :  { %13029 = vmatprep.mubr.msk.bf16.mxu1 %vm315_vm2, %v640_v16  ;;  %v20422_v16 = vld [vmem:[#allocation20_spill] sm:$0xff] }
 0x20b   :  { %13356 = vmatmul.mubr.msk.bf16.gmra.mrb[48].mxu0 %vm315_vm2, %v20391_v37  ;;  %v4460_v37 = vld [vmem:[#allocation5 + $0xe8] sm:$0xff] }
 0x20c   :  { %13359 = vmatprep.mubr.msk.bf16.mxu0 %vm315_vm2, %v20396_v29  ;;  %v17848_v33 = vpack.c.bf16 %v4460_v37, %v4459_v49  ;;  %v20423_v29 = vld [vmem:[#allocation21_spill] sm:$0xff]  ;;  %v20436_v49 = vld [vmem:[#allocation34_spill] sm:$0xff] }
 0x20d   :  { %13030 = vmatmul.mubr.msk.bf16.gmra.mrb[52].mxu1 %vm315_vm2, %v641_v0  ;;  %v4465_v0 = vld [vmem:[#allocation5 + $0x140] sm:$0xff] }
 0x20e   :  { %13033 = vmatprep.mubr.msk.bf16.mxu1 %vm315_vm2, %v642_v4  ;;  %v4487_v37 = vld [vmem:[#allocation5 + $0x2c0] sm:$0xff] }
 0x20f   :  { %v17930_v40 = vpack.c.bf16 %v4488_v7, %v4487_v37  ;;  %v20447_v37 = vld [vmem:[#allocation47_spill] sm:$0xff] }
 0x213   :  { %13360 = vmatmul.mubr.msk.bf16.gmra.mrb[52].mxu0 %vm315_vm2, %v20399_v11  ;;  %v4466_v11 = vld [vmem:[#allocation5 + $0x148] sm:$0xff] }
 0x214   :  { %13363 = vmatprep.mubr.msk.bf16.mxu0 %vm315_vm2, %v20402_v30  ;;  %v17862_v4 = vpack.c.bf16 %v4466_v11, %v4465_v0  ;;  %v20425_v30 = vld [vmem:[#allocation23_spill] sm:$0xff]  ;;  %v20438_v0 = vld [vmem:[#allocation36_spill] sm:$0xff]  ;;  %v4491_v11 = vld [vmem:[#allocation5 + $0x300] sm:$0xff] }
 0x215   :  { %13034 = vmatmul.mubr.msk.bf16.gmra.mrb[56].mxu1 %vm315_vm2, %v643_v31  ;;  %v4469_v31 = vld [vmem:[#allocation5 + $0x180] sm:$0xff] }
 0x216   :  { %13037 = vmatprep.mubr.msk.bf16.mxu1 %vm315_vm2, %v644_v44 }
 0x21b   :  { %13364 = vmatmul.mubr.msk.bf16.gmra.mrb[56].mxu0 %vm315_vm2, %v20405_v14  ;;  %v4470_v14 = vld [vmem:[#allocation5 + $0x188] sm:$0xff] }
 0x21c   :  { %13367 = vmatprep.mubr.msk.bf16.mxu0 %vm315_vm2, %v20409_v26  ;;  %v17874_v44 = vpack.c.bf16 %v4470_v14, %v4469_v31  ;;  %v4471_v26 = vld [vmem:[#allocation5 + $0x1a0] sm:$0xff] }
 0x21d   :  { %13038 = vmatmul.mubr.msk.bf16.gmra.mrb[60].mxu1 %vm315_vm2, %v645_v9  ;;  %v4474_v9 = vld [vmem:[#allocation5 + $0x1c8] sm:$0xff]  ;;  %v17884_v25 = vpack.c.bf16 %v4472_v62, %v4471_v26  ;;  %v4497_v62 = vld [vmem:[#allocation5 + $0x360] sm:$0xff] }
 0x21e   :  { %13043 = vmatprep.mubr.msk.bf16.mxu1 %vm315_vm2, %v516_v63  ;;  %v4496_v26 = vld [vmem:[#allocation5 + $0x348] sm:$0xff] }
 0x223   :  { %13368 = vmatmul.mubr.msk.bf16.gmra.mrb[60].mxu0 %vm315_vm2, %v20414_v21  ;;  %v4478_v21 = vld [vmem:[#allocation5 + $0x228] sm:$0xff] }
 0x224   :  { %13373 = vmatprep.mubr.msk.bf16.mxu0 %vm315_vm2, %v4509_v55  ;;  %v17886_v55 = vpack.c.bf16 %v4474_v9, %v4473_v18  ;;  %v4525_v63 = vpack.c.bf16 %v4478_v21, %v4477_v39  ;;  %v4498_v18 = vld [vmem:[#allocation5 + $0x368] sm:$0xff]  ;;  %v20441_v9 = vld [vmem:[#allocation41_spill] sm:$0xff] }
 0x225   :  { %13044 = vmatmul.mubr.msk.bf16.vlgmr.msra.gmra.mrb[0].mxu1 %vm315_vm2, %v20417_v51  ;;  %v4480_v51 = vld [vmem:[#allocation5 + $0x248] sm:$0xff]  ;;  %v4501_v21 = vld [vmem:[#allocation5 + $0x3a0] sm:$0xff] }
 0x226   :  { %13047 = vmatprep.mubr.msk.bf16.mxu1 %vm315_vm2, %v20418_v24  ;;  %v17906_v2 = vpack.c.bf16 %v4480_v51, %v4479_v8  ;;  %v20434_v24 = vld [vmem:[#allocation30_spill] sm:$0xff] }
 0x227   :  { %v4500_v39 = vld [vmem:[#allocation5 + $0x388] sm:$0xff]  ;;  %v4505_v51 = vld [vmem:[#allocation5 + $0x3e0] sm:$0xff] }
 0x228   :  { %v4504_v8 = vld [vmem:[#allocation5 + $0x3c8] sm:$0xff] }
 0x22b   :  { %13374 = vmatmul.mubr.msk.bf16.vlgmr.msra.gmra.mrb[0].mxu0 %vm315_vm2, %v17807_v50 }
 0x22c   :  { %13438 = vmatpush3.bf16.msra.mxu0 %v17580_v52  ;;  %13377 = vmatprep.mubr.msk.bf16.mxu0 %vm315_vm2, %v17809_v61  ;;  %v4455_v52 = vld [vmem:[#allocation5 + $0xa0] sm:$0xff] }
 0x22d   :  { %13503 = vmatprep.subr.bf16.mxu0 %v17814_v45  ;;  %13048 = vmatmul.mubr.msk.bf16.gmra.mrb[4].mxu1 %vm315_vm2, %v20419_v34  ;;  %v17836_v12 = vpack.c.bf16 %v4456_v20, %v4455_v52  ;;  %v4483_v34 = vld [vmem:[#allocation5 + $0x280] sm:$0xff]  ;;  %v4484_v52 = vld [vmem:[#allocation5 + $0x288] sm:$0xff] }
 0x22e   :  { %13051 = vmatprep.mubr.msk.bf16.mxu1 %vm315_vm2, %v20420_v22  ;;  %v4485_v20 = vld [vmem:[#allocation5 + $0x2a0] sm:$0xff]  ;;  %v17918_v22 = vpack.c.bf16 %v4484_v52, %v4483_v34  ;;  %v17980_v34 = vpack.c.bf16 %v4506_v13, %v4505_v51  ;;  %v5013_v13 = vld [vmem:[#allocation5 + $0x130] sm:$0xff] }
 0x22f   :  { %v20446_v52 = vld [vmem:[#allocation46_spill] sm:$0xff] }
 0x233   :  { %13378 = vmatmul.mubr.msk.bf16.gmra.mrb[4].mxu0 %vm315_vm2, %v17824_v27 }
 0x234   :  { %13381 = vmatprep.mubr.msk.bf16.mxu0 %vm315_vm2, %v17826_v5 }
 0x235   :  { %13052 = vmatmul.mubr.msk.bf16.gmra.mrb[8].mxu1 %vm315_vm2, %v20421_v17  ;;  %v17920_v17 = vpack.c.bf16 %v4486_v3, %v4485_v20  ;;  %v4507_v20 = vld [vmem:[#allocation5 + $0x400] sm:$0xff]  ;;  %v4508_v3 = vld [vmem:[#allocation5 + $0x408] sm:$0xff] }
 0x236   :  { %13055 = vmatprep.mubr.msk.bf16.mxu1 %vm315_vm2, %v20422_v16  ;;  %v4490_v16 = vld [vmem:[#allocation5 + $0x2e8] sm:$0xff]  ;;  %v17990_v7 = vpack.c.bf16 %v4508_v3, %v4507_v20  ;;  %v5016_v20 = vld [vmem:[#allocation5 + $0x158] sm:$0xff] }
 0x237   :  { %v17932_v56 = vpack.c.bf16 %v4490_v16, %v4489_v1  ;;  %v20448_v16 = vld [vmem:[#allocation48_spill] sm:$0xff] }
 0x23b   :  { %13382 = vmatmul.mubr.msk.bf16.gmra.mrb[8].mxu0 %vm315_vm2, %v17836_v12 }
 0x23c   :  { %13385 = vmatprep.mubr.msk.bf16.mxu0 %vm315_vm2, %v17838_v48 }
 0x23d   :  { %13056 = vmatmul.mubr.msk.bf16.gmra.mrb[12].mxu1 %vm315_vm2, %v20423_v29  ;;  %v20437_v29 = vld [vmem:[#allocation35_spill] sm:$0xff] }
 0x23e   :  { %13059 = vmatprep.mubr.msk.bf16.mxu1 %vm315_vm2, %v20424_v32  ;;  %v4492_v32 = vld [vmem:[#allocation5 + $0x308] sm:$0xff] }
 0x23f   :  { %v17942_v31 = vpack.c.bf16 %v4492_v32, %v4491_v11  ;;  %v4999_v11 = vld [vmem:[#allocation5 + $0x50] sm:$0xff]  ;;  %v5000_v32 = vld [vmem:[#allocation5 + $0x58] sm:$0xff] }
 0x243   :  { %13386 = vmatmul.mubr.msk.bf16.gmra.mrb[12].mxu0 %vm315_vm2, %v17848_v33 }
 0x244   :  { %13389 = vmatprep.mubr.msk.bf16.mxu0 %vm315_vm2, %v17850_v57 }
 0x245   :  { %13060 = vmatmul.mubr.msk.bf16.gmra.mrb[16].mxu1 %vm315_vm2, %v20425_v30  ;;  %v4493_v30 = vld [vmem:[#allocation5 + $0x320] sm:$0xff] }
 0x246   :  { %13063 = vmatprep.mubr.msk.bf16.mxu1 %vm315_vm2, %v20426_v58  ;;  %v17944_v14 = vpack.c.bf16 %v4494_v15, %v4493_v30  ;;  %v20440_v58 = vld [vmem:[#allocation40_spill] sm:$0xff]  ;;  %v5061_v15 = vpack.c.bf16 %v5000_v32, %v4999_v11 }
 0x247   :  { %v5021_v11 = vld [vmem:[#allocation5 + $0x1b0] sm:$0xff]  ;;  %v5022_v32 = vld [vmem:[#allocation5 + $0x1b8] sm:$0xff] }
 0x24b   :  { %13390 = vmatmul.mubr.msk.bf16.gmra.mrb[16].mxu0 %vm315_vm2, %v17860_v53 }
 0x24c   :  { %13393 = vmatprep.mubr.msk.bf16.mxu0 %vm315_vm2, %v17862_v4 }
 0x24d   :  { %13064 = vmatmul.mubr.msk.bf16.gmra.mrb[20].mxu1 %vm315_vm2, %v20427_v46  ;;  %v4495_v46 = vld [vmem:[#allocation5 + $0x340] sm:$0xff] }
 0x24e   :  { %13067 = vmatprep.mubr.msk.bf16.mxu1 %vm315_vm2, %v20428_v41  ;;  %v17954_v41 = vpack.c.bf16 %v4496_v26, %v4495_v46  ;;  %v5003_v46 = vld [vmem:[#allocation5 + $0x90] sm:$0xff]  ;;  %v5004_v26 = vld [vmem:[#allocation5 + $0x98] sm:$0xff] }
 0x253   :  { %13394 = vmatmul.mubr.msk.bf16.gmra.mrb[20].mxu0 %vm315_vm2, %v17872_v10 }
 0x254   :  { %13397 = vmatprep.mubr.msk.bf16.mxu0 %vm315_vm2, %v17874_v44 }
 0x255   :  { %13068 = vmatmul.mubr.msk.bf16.gmra.mrb[24].mxu1 %vm315_vm2, %v20429_v59  ;;  %v17956_v59 = vpack.c.bf16 %v4498_v18, %v4497_v62  ;;  %v5063_v18 = vpack.c.bf16 %v5004_v26, %v5003_v46  ;;  %v5025_v46 = vld [vmem:[#allocation5 + $0x1f0] sm:$0xff]  ;;  %v5026_v26 = vld [vmem:[#allocation5 + $0x1f8] sm:$0xff] }
 0x256   :  { %13071 = vmatprep.mubr.msk.bf16.mxu1 %vm315_vm2, %v20430_v35  ;;  %v4502_v35 = vld [vmem:[#allocation5 + $0x3a8] sm:$0xff] }
 0x257   :  { %v17968_v42 = vpack.c.bf16 %v4502_v35, %v4501_v21 }
 0x25b   :  { %13398 = vmatmul.mubr.msk.bf16.gmra.mrb[24].mxu0 %vm315_vm2, %v17884_v25 }
 0x25c   :  { %13401 = vmatprep.mubr.msk.bf16.mxu0 %vm315_vm2, %v17886_v55 }
 0x25d   :  { %13072 = vmatmul.mubr.msk.bf16.gmra.mrb[28].mxu1 %vm315_vm2, %v20431_v38  ;;  %v17966_v38 = vpack.c.bf16 %v4500_v39, %v4499_v43  ;;  %v5007_v43 = vld [vmem:[#allocation5 + $0xd0] sm:$0xff]  ;;  %v5008_v39 = vld [vmem:[#allocation5 + $0xd8] sm:$0xff] }
 0x25e   :  { %13075 = vmatprep.mubr.msk.bf16.mxu1 %vm315_vm2, %v532_v54  ;;  %v4503_v54 = vld [vmem:[#allocation5 + $0x3c0] sm:$0xff]  ;;  %v5065_v35 = vpack.c.bf16 %v5008_v39, %v5007_v43  ;;  %v5029_v43 = vld [vmem:[#allocation5 + $0x250] sm:$0xff]  ;;  %v5030_v39 = vld [vmem:[#allocation5 + $0x258] sm:$0xff] }
 0x263   :  { %13402 = vmatmul.mubr.msk.bf16.gmra.mrb[28].mxu0 %vm315_vm2, %v17896_v19 }
 0x264   :  { %13405 = vmatprep.mubr.msk.bf16.mxu0 %vm315_vm2, %v4525_v63  ;;  %v20443_v63 = vld [vmem:[#allocation43_spill] sm:$0xff] }
 0x265   :  { %13076 = vmatmul.mubr.msk.bf16.gmra.mrb[32].mxu1 %vm315_vm2, %v20434_v24  ;;  %v17978_v24 = vpack.c.bf16 %v4504_v8, %v4503_v54  ;;  %v5012_v54 = vld [vmem:[#allocation5 + $0x118] sm:$0xff] }
 0x266   :  { %13079 = vmatprep.mubr.msk.bf16.mxu1 %vm315_vm2, %v20435_v60  ;;  %v4995_v60 = vld [vmem:[#allocation5 + $0x10] sm:$0xff] }
 0x26b   :  { %13406 = vmatmul.mubr.msk.bf16.gmra.mrb[32].mxu0 %vm315_vm2, %v17906_v2 }
 0x26c   :  { %13409 = vmatprep.mubr.msk.bf16.mxu0 %vm315_vm2, %v17908_v47 }
 0x26d   :  { %13080 = vmatmul.mubr.msk.bf16.gmra.mrb[36].mxu1 %vm315_vm2, %v20436_v49  ;;  %v4996_v49 = vld [vmem:[#allocation5 + $0x18] sm:$0xff] }
 0x26e   :  { %13083 = vmatprep.mubr.msk.bf16.mxu1 %vm315_vm2, %v20437_v29  ;;  %v5059_v1 = vpack.c.bf16 %v4996_v49, %v4995_v60  ;;  %v4997_v29 = vld [vmem:[#allocation5 + $0x30] sm:$0xff] }
 0x26f   :  { %v5017_v49 = vld [vmem:[#allocation5 + $0x170] sm:$0xff] }
 0x273   :  { %13410 = vmatmul.mubr.msk.bf16.gmra.mrb[36].mxu0 %vm315_vm2, %v17918_v22 }
 0x274   :  { %13413 = vmatprep.mubr.msk.bf16.mxu0 %vm315_vm2, %v17920_v17 }
 0x275   :  { %13084 = vmatmul.mubr.msk.bf16.gmra.mrb[40].mxu1 %vm315_vm2, %v20438_v0  ;;  %v4998_v0 = vld [vmem:[#allocation5 + $0x38] sm:$0xff] }
 0x276   :  { %13087 = vmatprep.mubr.msk.bf16.mxu1 %vm315_vm2, %v20439_v6  ;;  %v5060_v30 = vpack.c.bf16 %v4998_v0, %v4997_v29  ;;  %v5001_v6 = vld [vmem:[#allocation5 + $0x70] sm:$0xff] }
 0x27b   :  { %13414 = vmatmul.mubr.msk.bf16.gmra.mrb[40].mxu0 %vm315_vm2, %v17930_v40 }
 0x27c   :  { %13417 = vmatprep.mubr.msk.bf16.mxu0 %vm315_vm2, %v17932_v56 }
 0x27d   :  { %13088 = vmatmul.mubr.msk.bf16.gmra.mrb[44].mxu1 %vm315_vm2, %v20440_v58  ;;  %v5002_v58 = vld [vmem:[#allocation5 + $0x78] sm:$0xff] }
 0x27e   :  { %13091 = vmatprep.mubr.msk.bf16.mxu1 %vm315_vm2, %v20441_v9  ;;  %v5062_v62 = vpack.c.bf16 %v5002_v58, %v5001_v6  ;;  %v5005_v9 = vld [vmem:[#allocation5 + $0xb0] sm:$0xff]  ;;  %v5072_v6 = vpack.c.bf16 %v5022_v32, %v5021_v11  ;;  %v5044_v32 = vld [vmem:[#allocation5 + $0x338] sm:$0xff] }
 0x27f   :  { %v5043_v11 = vld [vmem:[#allocation5 + $0x330] sm:$0xff] }
 0x283   :  { %13418 = vmatmul.mubr.msk.bf16.gmra.mrb[44].mxu0 %vm315_vm2, %v17942_v31 }
 0x284   :  { %13421 = vmatprep.mubr.msk.bf16.mxu0 %vm315_vm2, %v17944_v14 }
 0x285   :  { %13092 = vmatmul.mubr.msk.bf16.gmra.mrb[48].mxu1 %vm315_vm2, %v20442_v23  ;;  %v5006_v23 = vld [vmem:[#allocation5 + $0xb8] sm:$0xff] }
 0x286   :  { %13095 = vmatprep.mubr.msk.bf16.mxu1 %vm315_vm2, %v20443_v63  ;;  %v5064_v21 = vpack.c.bf16 %v5006_v23, %v5005_v9  ;;  %v5010_v63 = vld [vmem:[#allocation5 + $0xf8] sm:$0xff]  ;;  %v5074_v9 = vpack.c.bf16 %v5026_v26, %v5025_v46  ;;  %v5045_v26 = vld [vmem:[#allocation5 + $0x350] sm:$0xff] }
 0x28b   :  { %13422 = vmatmul.mubr.msk.bf16.gmra.mrb[48].mxu0 %vm315_vm2, %v17954_v41 }
 0x28c   :  { %13425 = vmatprep.mubr.msk.bf16.mxu0 %vm315_vm2, %v17956_v59 }
 0x28d   :  { %13096 = vmatmul.mubr.msk.bf16.gmra.mrb[52].mxu1 %vm315_vm2, %v20444_v28  ;;  %v5011_v28 = vld [vmem:[#allocation5 + $0x110] sm:$0xff] }
 0x28e   :  { %13099 = vmatprep.mubr.msk.bf16.mxu1 %vm315_vm2, %v20445_v36  ;;  %v5067_v51 = vpack.c.bf16 %v5012_v54, %v5011_v28  ;;  %v5014_v36 = vld [vmem:[#allocation5 + $0x138] sm:$0xff]  ;;  %v5033_v28 = vld [vmem:[#allocation5 + $0x290] sm:$0xff] }
 0x28f   :  { %v5068_v3 = vpack.c.bf16 %v5014_v36, %v5013_v13  ;;  %v5034_v54 = vld [vmem:[#allocation5 + $0x298] sm:$0xff] }
 0x290   :  { %v5078_v13 = vpack.c.bf16 %v5034_v54, %v5033_v28  ;;  %v5050_v28 = vld [vmem:[#allocation5 + $0x398] sm:$0xff] }
 0x293   :  { %13426 = vmatmul.mubr.msk.bf16.gmra.mrb[52].mxu0 %vm315_vm2, %v17966_v38 }
 0x294   :  { %13429 = vmatprep.mubr.msk.bf16.mxu0 %vm315_vm2, %v17968_v42 }
 0x295   :  { %13100 = vmatmul.mubr.msk.bf16.gmra.mrb[56].mxu1 %vm315_vm2, %v20446_v52  ;;  %v5015_v52 = vld [vmem:[#allocation5 + $0x150] sm:$0xff] }
 0x296   :  { %13103 = vmatprep.mubr.msk.bf16.mxu1 %vm315_vm2, %v20447_v37  ;;  %v5069_v60 = vpack.c.bf16 %v5016_v20, %v5015_v52  ;;  %v5018_v37 = vld [vmem:[#allocation5 + $0x178] sm:$0xff]  ;;  %v5037_v52 = vld [vmem:[#allocation5 + $0x2d0] sm:$0xff] }
 0x297   :  { %v5070_v29 = vpack.c.bf16 %v5018_v37, %v5017_v49  ;;  %v5038_v20 = vld [vmem:[#allocation5 + $0x2d8] sm:$0xff] }
 0x298   :  { %v5080_v49 = vpack.c.bf16 %v5038_v20, %v5037_v52 }
 0x29b   :  { %13430 = vmatmul.mubr.msk.bf16.gmra.mrb[56].mxu0 %vm315_vm2, %v17978_v24 }
 0x29c   :  { %13433 = vmatprep.mubr.msk.bf16.mxu0 %vm315_vm2, %v17980_v34 }
 0x29d   :  { %13104 = vmatmul.mubr.msk.bf16.gmra.mrb[60].mxu1 %vm315_vm2, %v20448_v16  ;;  %v5020_v16 = vld [vmem:[#allocation5 + $0x198] sm:$0xff] }
 0x2a3   :  { %13434 = vmatmul.mubr.msk.bf16.gmra.mrb[60].mxu0 %vm315_vm2, %v17990_v7 }
 0x2a4   :  { %13439 = vmatprep.mubr.msk.bf16.mxu0 %vm315_vm2, %v5059_v1  ;;  %v5019_v1 = vld [vmem:[#allocation5 + $0x190] sm:$0xff] }
 0x2a5   :  { %v5071_v0 = vpack.c.bf16 %v5020_v16, %v5019_v1  ;;  %v5041_v16 = vld [vmem:[#allocation5 + $0x310] sm:$0xff] }
 0x2ab   :  { %13440 = vmatmul.mubr.msk.bf16.vlgmr.msra.gmra.mrb[0].mxu0 %vm315_vm2, %v5060_v30  ;;  %v5023_v30 = vld [vmem:[#allocation5 + $0x1d0] sm:$0xff] }
 0x2ac   :  { %13504 = vmatpush3.bf16.msra.mxu0 %v17814_v45  ;;  %13443 = vmatprep.mubr.msk.bf16.mxu0 %vm315_vm2, %v5061_v15  ;;  %v5009_v45 = vld [vmem:[#allocation5 + $0xf0] sm:$0xff]  ;;  %v5024_v15 = vld [vmem:[#allocation5 + $0x1d8] sm:$0xff] }
 0x2ad   :  { %v5066_v8 = vpack.c.bf16 %v5010_v63, %v5009_v45  ;;  %v5073_v58 = vpack.c.bf16 %v5024_v15, %v5023_v30  ;;  %v5076_v45 = vpack.c.bf16 %v5030_v39, %v5029_v43 }
 0x2b3   :  { %13444 = vmatmul.mubr.msk.bf16.gmra.mrb[4].mxu0 %vm315_vm2, %v5062_v62  ;;  %v5027_v62 = vld [vmem:[#allocation5 + $0x230] sm:$0xff] }
 0x2b4   :  { %13447 = vmatprep.mubr.msk.bf16.mxu0 %vm315_vm2, %v5063_v18  ;;  %v5028_v18 = vld [vmem:[#allocation5 + $0x238] sm:$0xff] }
 0x2b5   :  { %v5075_v23 = vpack.c.bf16 %v5028_v18, %v5027_v62  ;;  %v5046_v62 = vld [vmem:[#allocation5 + $0x358] sm:$0xff] }
 0x2bb   :  { %13448 = vmatmul.mubr.msk.bf16.gmra.mrb[8].mxu0 %vm315_vm2, %v5064_v21  ;;  %v5031_v21 = vld [vmem:[#allocation5 + $0x270] sm:$0xff] }
 0x2bc   :  { %13451 = vmatprep.mubr.msk.bf16.mxu0 %vm315_vm2, %v5065_v35  ;;  %v5032_v35 = vld [vmem:[#allocation5 + $0x278] sm:$0xff] }
 0x2bd   :  { %v5077_v63 = vpack.c.bf16 %v5032_v35, %v5031_v21  ;;  %v5084_v21 = vpack.c.bf16 %v5046_v62, %v5045_v26  ;;  %v5057_v62 = vld [vmem:[#allocation5 + $0x410] sm:$0xff] }
 0x2c3   :  { %13452 = vmatmul.mubr.msk.bf16.gmra.mrb[12].mxu0 %vm315_vm2, %v5066_v8  ;;  %v5035_v8 = vld [vmem:[#allocation5 + $0x2b0] sm:$0xff] }
 0x2c4   :  { %13455 = vmatprep.mubr.msk.bf16.mxu0 %vm315_vm2, %v5067_v51  ;;  %v5036_v51 = vld [vmem:[#allocation5 + $0x2b8] sm:$0xff] }
 0x2c5   :  { %v5079_v36 = vpack.c.bf16 %v5036_v51, %v5035_v8  ;;  %v5051_v8 = vld [vmem:[#allocation5 + $0x3b0] sm:$0xff]  ;;  %v5052_v51 = vld [vmem:[#allocation5 + $0x3b8] sm:$0xff] }
 0x2c6   :  { %v5087_v20 = vpack.c.bf16 %v5052_v51, %v5051_v8 }
 0x2cb   :  { %13456 = vmatmul.mubr.msk.bf16.gmra.mrb[16].mxu0 %vm315_vm2, %v5068_v3  ;;  %v5039_v3 = vld [vmem:[#allocation5 + $0x2f0] sm:$0xff] }
 0x2cc   :  { %13459 = vmatprep.mubr.msk.bf16.mxu0 %vm315_vm2, %v5069_v60  ;;  %v5040_v60 = vld [vmem:[#allocation5 + $0x2f8] sm:$0xff] }
 0x2cd   :  { %v5081_v37 = vpack.c.bf16 %v5040_v60, %v5039_v3  ;;  %v5053_v60 = vld [vmem:[#allocation5 + $0x3d0] sm:$0xff] }
 0x2d3   :  { %13460 = vmatmul.mubr.msk.bf16.gmra.mrb[20].mxu0 %vm315_vm2, %v5070_v29  ;;  %v5042_v29 = vld [vmem:[#allocation5 + $0x318] sm:$0xff] }
 0x2d4   :  { %13463 = vmatprep.mubr.msk.bf16.mxu0 %vm315_vm2, %v5071_v0 }
 0x2db   :  { %13464 = vmatmul.mubr.msk.bf16.gmra.mrb[24].mxu0 %vm315_vm2, %v5072_v6  ;;  %v5082_v6 = vpack.c.bf16 %v5042_v29, %v5041_v16  ;;  %v5055_v16 = vld [vmem:[#allocation5 + $0x3f0] sm:$0xff]  ;;  %v5056_v29 = vld [vmem:[#allocation5 + $0x3f8] sm:$0xff] }
 0x2dc   :  { %13467 = vmatprep.mubr.msk.bf16.mxu0 %vm315_vm2, %v5073_v58  ;;  %v5083_v58 = vpack.c.bf16 %v5044_v32, %v5043_v11 }
 0x2e3   :  { %13468 = vmatmul.mubr.msk.bf16.gmra.mrb[28].mxu0 %vm315_vm2, %v5074_v9  ;;  %v5047_v9 = vld [vmem:[#allocation5 + $0x370] sm:$0xff] }
 0x2e4   :  { %13471 = vmatprep.mubr.msk.bf16.mxu0 %vm315_vm2, %v5075_v23  ;;  %v5048_v23 = vld [vmem:[#allocation5 + $0x378] sm:$0xff] }
 0x2e5   :  { %v5085_v35 = vpack.c.bf16 %v5048_v23, %v5047_v9  ;;  %v5058_v9 = vld [vmem:[#allocation5 + $0x418] sm:$0xff] }
 0x2eb   :  { %13472 = vmatmul.mubr.msk.bf16.gmra.mrb[32].mxu0 %vm315_vm2, %v5076_v45 }
 0x2ec   :  { %13475 = vmatprep.mubr.msk.bf16.mxu0 %vm315_vm2, %v5077_v63  ;;  %v5049_v63 = vld [vmem:[#allocation5 + $0x390] sm:$0xff] }
 0x2ed   :  { %v5086_v52 = vpack.c.bf16 %v5050_v28, %v5049_v63  ;;  %v5090_v63 = vpack.c.bf16 %v5058_v9, %v5057_v62 }
 0x2f3   :  { %13476 = vmatmul.mubr.msk.bf16.gmra.mrb[36].mxu0 %vm315_vm2, %v5078_v13 }
 0x2f4   :  { %13479 = vmatprep.mubr.msk.bf16.mxu0 %vm315_vm2, %v5079_v36 }
 0x2f8   :  { %v18019_v1 = vpop.f32.mrb[0].mxu1 }
 0x2f9   :  { %v18022_v0 = vpop.f32.mrb[1].mxu1 }
 0x2fa   :  { %v18024_v30 = vpop.f32.mrb[2].mxu1 }
 0x2fb   :  { %13480 = vmatmul.mubr.msk.bf16.gmra.mrb[40].mxu0 %vm315_vm2, %v5080_v49  ;;  %v18026_v15 = vpop.f32.mrb[3].mxu1  ;;  %v5054_v49 = vld [vmem:[#allocation5 + $0x3d8] sm:$0xff] }
 0x2fc   :  { %13483 = vmatprep.mubr.msk.bf16.mxu0 %vm315_vm2, %v5081_v37 }
 0x300   :  { %v18029_v46 = vpop.f32.mrb[4].mxu1 }
 0x301   :  { %v18032_v18 = vpop.f32.mrb[5].mxu1 }
 0x302   :  { %v18034_v43 = vpop.f32.mrb[6].mxu1 }
 0x303   :  { %13484 = vmatmul.mubr.msk.bf16.gmra.mrb[44].mxu0 %vm315_vm2, %v5082_v6  ;;  %v18036_v39 = vpop.f32.mrb[7].mxu1  ;;  %v5088_v6 = vpack.c.bf16 %v5054_v49, %v5053_v60 }
 0x304   :  { %13487 = vmatprep.mubr.msk.bf16.mxu0 %vm315_vm2, %v5083_v58  ;;  %v5089_v58 = vpack.c.bf16 %v5056_v29, %v5055_v16 }
 0x308   :  { %v18039_v45 = vpop.f32.mrb[8].mxu1 }
 0x309   :  { %v18042_v54 = vpop.f32.mrb[9].mxu1 }
 0x30a   :  { %v18044_v13 = vpop.f32.mrb[10].mxu1 }
 0x30b   :  { %13488 = vmatmul.mubr.msk.bf16.gmra.mrb[48].mxu0 %vm315_vm2, %v5084_v21  ;;  %v18046_v36 = vpop.f32.mrb[11].mxu1 }
 0x30c   :  { %13491 = vmatprep.mubr.msk.bf16.mxu0 %vm315_vm2, %v5085_v35 }
 0x310   :  { %v18049_v3 = vpop.f32.mrb[12].mxu1 }
 0x311   :  { %v18052_v37 = vpop.f32.mrb[13].mxu1 }
 0x312   :  { %v18054_v11 = vpop.f32.mrb[14].mxu1 }
 0x313   :  { %13492 = vmatmul.mubr.msk.bf16.gmra.mrb[52].mxu0 %vm315_vm2, %v5086_v52  ;;  %v18056_v32 = vpop.f32.mrb[15].mxu1 }
 0x314   :  { %13495 = vmatprep.mubr.msk.bf16.mxu0 %vm315_vm2, %v5087_v20 }
 0x318   :  { %v18059_v26 = vpop.f32.mrb[16].mxu1 }
 0x319   :  { %v18062_v23 = vpop.f32.mrb[17].mxu1 }
 0x31a   :  { %v18064_v21 = vpop.f32.mrb[18].mxu1 }
 0x31b   :  { %13496 = vmatmul.mubr.msk.bf16.gmra.mrb[56].mxu0 %vm315_vm2, %v5088_v6  ;;  %v18066_v35 = vpop.f32.mrb[19].mxu1 }
 0x31c   :  { %13499 = vmatprep.mubr.msk.bf16.mxu0 %vm315_vm2, %v5089_v58 }
 0x320   :  { %v18069_v28 = vpop.f32.mrb[20].mxu1 }
 0x321   :  { %v18073_v8 = vpop.f32.mrb[21].mxu1 }
 0x322   :  { %v18075_v51 = vpop.f32.mrb[22].mxu1 }
 0x323   :  { %13500 = vmatmul.mubr.msk.bf16.gmra.mrb[60].mxu0 %vm315_vm2, %v5090_v63  ;;  %v18077_v52 = vpop.f32.mrb[23].mxu1 }
 0x324   :  { %13505 = vmatprep.mubr.msk.bf16.mxu0 %vm315_vm2, %v17807_v50 }
 0x328   :  { %v18081_v20 = vpop.f32.mrb[24].mxu1 }
 0x329   :  { %v18085_v60 = vpop.f32.mrb[25].mxu1 }
 0x32a   :  { %v18087_v49 = vpop.f32.mrb[26].mxu1 }
 0x32b   :  { %13506 = vmatmul.mubr.msk.bf16.vlgmr.msra.gmra.mrb[0].mxu0 %vm315_vm2, %v17809_v61  ;;  %v18089_v16 = vpop.f32.mrb[27].mxu1 }
 0x32c   :  { %13509 = vmatprep.mubr.msk.bf16.mxu0 %vm315_vm2, %v17824_v27 }
 0x330   :  { %v18093_v50 = vpop.f32.mrb[28].mxu1 }
 0x331   :  { %v18097_v61 = vpop.f32.mrb[29].mxu1 }
 0x332   :  { %v18099_v29 = vpop.f32.mrb[30].mxu1 }
 0x333   :  { %13510 = vmatmul.mubr.msk.bf16.gmra.mrb[4].mxu0 %vm315_vm2, %v17826_v5  ;;  %v18101_v6 = vpop.f32.mrb[31].mxu1 }
 0x334   :  { %13513 = vmatprep.mubr.msk.bf16.mxu0 %vm315_vm2, %v17836_v12 }
 0x338   :  { %v18105_v27 = vpop.f32.mrb[32].mxu1 }
 0x339   :  { %v18109_v5 = vpop.f32.mrb[33].mxu1 }
 0x33a   :  { %v18111_v58 = vpop.f32.mrb[34].mxu1 }
 0x33b   :  { %13514 = vmatmul.mubr.msk.bf16.gmra.mrb[8].mxu0 %vm315_vm2, %v17838_v48  ;;  %v18113_v62 = vpop.f32.mrb[35].mxu1 }
 0x33c   :  { %13517 = vmatprep.mubr.msk.bf16.mxu0 %vm315_vm2, %v17848_v33  ;;  %20449 = vst [vmem:[#allocation115_spill] sm:$0xff] %v18113_v62 }
 0x340   :  { %v18117_v12 = vpop.f32.mrb[36].mxu1 }
 0x341   :  { %20450 = vst [vmem:[#allocation124_spill] sm:$0xff] %v18117_v12  ;;  %v18121_v48 = vpop.f32.mrb[37].mxu1 }
 0x342   :  { %v18123_v9 = vpop.f32.mrb[38].mxu1 }
 0x343   :  { %13518 = vmatmul.mubr.msk.bf16.gmra.mrb[12].mxu0 %vm315_vm2, %v17850_v57  ;;  %v18125_v63 = vpop.f32.mrb[39].mxu1 }
 0x344   :  { %13521 = vmatprep.mubr.msk.bf16.mxu0 %vm315_vm2, %v17860_v53  ;;  %20451 = vst [vmem:[#allocation49_spill] sm:$0xff] %v18125_v63 }
 0x348   :  { %v18129_v33 = vpop.f32.mrb[40].mxu1 }
 0x349   :  { %20452 = vst [vmem:[#allocation50_spill] sm:$0xff] %v18129_v33  ;;  %v18133_v57 = vpop.f32.mrb[41].mxu1 }
 0x34a   :  { %v18135_v12 = vpop.f32.mrb[42].mxu1 }
 0x34b   :  { %13522 = vmatmul.mubr.msk.bf16.gmra.mrb[16].mxu0 %vm315_vm2, %v17862_v4  ;;  %20453 = vst [vmem:[#allocation51_spill] sm:$0xff] %v18135_v12  ;;  %v18137_v62 = vpop.f32.mrb[43].mxu1 }
 0x34c   :  { %13525 = vmatprep.mubr.msk.bf16.mxu0 %vm315_vm2, %v17872_v10  ;;  %20454 = vst [vmem:[#allocation52_spill] sm:$0xff] %v18137_v62  ;;  %v5576_v62 = vld [vmem:[#allocation5 + $0x208] sm:$0xff] }
 0x350   :  { %v18141_v53 = vpop.f32.mrb[44].mxu1 }
 0x351   :  { %20455 = vst [vmem:[#allocation53_spill] sm:$0xff] %v18141_v53  ;;  %v18145_v4 = vpop.f32.mrb[45].mxu1 }
 0x352   :  { %20456 = vst [vmem:[#allocation54_spill] sm:$0xff] %v18145_v4  ;;  %v18147_v33 = vpop.f32.mrb[46].mxu1 }
 0x353   :  { %13526 = vmatmul.mubr.msk.bf16.gmra.mrb[20].mxu0 %vm315_vm2, %v17874_v44  ;;  %v18149_v63 = vpop.f32.mrb[47].mxu1  ;;  %v5575_v44 = vld [vmem:[#allocation5 + $0x200] sm:$0xff] }
 0x354   :  { %13529 = vmatprep.mubr.msk.bf16.mxu0 %vm315_vm2, %v17884_v25  ;;  %20457 = vst [vmem:[#allocation55_spill] sm:$0xff] %v18149_v63  ;;  %v5624_v4 = vpack.c.bf16 %v5576_v62, %v5575_v44 }
 0x358   :  { %v18153_v10 = vpop.f32.mrb[48].mxu1 }
 0x359   :  { %20458 = vst [vmem:[#allocation56_spill] sm:$0xff] %v18153_v10  ;;  %v18157_v53 = vpop.f32.mrb[49].mxu1 }
 0x35a   :  { %v18159_v12 = vpop.f32.mrb[50].mxu1 }
 0x35b   :  { %13530 = vmatmul.mubr.msk.bf16.gmra.mrb[24].mxu0 %vm315_vm2, %v17886_v55  ;;  %20459 = vst [vmem:[#allocation57_spill] sm:$0xff] %v18159_v12  ;;  %v18161_v25 = vpop.f32.mrb[51].mxu1 }
 0x35c   :  { %13533 = vmatprep.mubr.msk.bf16.mxu0 %vm315_vm2, %v17896_v19 }
 0x360   :  { %v18164_v63 = vpop.f32.mrb[52].mxu1 }
 0x361   :  { %v18168_v55 = vpop.f32.mrb[53].mxu1 }
 0x362   :  { %v18170_v10 = vpop.f32.mrb[54].mxu1 }
 0x363   :  { %13534 = vmatmul.mubr.msk.bf16.gmra.mrb[28].mxu0 %vm315_vm2, %v5624_v4  ;;  %v18172_v19 = vpop.f32.mrb[55].mxu1 }
 0x364   :  { %13537 = vmatprep.mubr.msk.bf16.mxu0 %vm315_vm2, %v17906_v2  ;;  %20460 = vst [vmem:[#allocation58_spill] sm:$0xff] %v18172_v19 }
 0x368   :  { %v18176_v12 = vpop.f32.mrb[56].mxu1 }
 0x369   :  { %20461 = vst [vmem:[#allocation59_spill] sm:$0xff] %v18176_v12  ;;  %v18180_v62 = vpop.f32.mrb[57].mxu1 }
 0x36a   :  { %v18182_v4 = vpop.f32.mrb[58].mxu1 }
 0x36b   :  { %13538 = vmatmul.mubr.msk.bf16.gmra.mrb[32].mxu0 %vm315_vm2, %v17908_v47  ;;  %v18184_v44 = vpop.f32.mrb[59].mxu1 }
 0x36c   :  { %13541 = vmatprep.mubr.msk.bf16.mxu0 %vm315_vm2, %v17918_v22  ;;  %20462 = vst [vmem:[#allocation60_spill] sm:$0xff] %v18184_v44  ;;  %v20141_v22 = vmov 0.0  }
 0x36d   :  { %6502 = vst.msk [vmem:[#allocation2 + $0x30] sm:$0xff] %vm6494_vm3, %v20141_v22  ;;  %6503 = vst.msk [vmem:[#allocation2 + $0x38] sm:$0xff] %vm6494_vm3, %v20141_v22 }
 0x36e   :  { %6495 = vst.msk [vmem:[#allocation2] sm:$0xff] %vm6494_vm3, %v20141_v22  ;;  %6496 = vst.msk [vmem:[#allocation2 + $0x8] sm:$0xff] %vm6494_vm3, %v20141_v22 }
 0x36f   :  { %6499 = vst.msk [vmem:[#allocation2 + $0x18] sm:$0xff] %vm6494_vm3, %v20141_v22  ;;  %6500 = vst.msk [vmem:[#allocation2 + $0x20] sm:$0xff] %vm6494_vm3, %v20141_v22 }
 0x370   :  { %v18188_v2 = vpop.f32.mrb[60].mxu1  ;;  %6505 = vst.msk [vmem:[#allocation2 + $0x48] sm:$0xff] %vm6494_vm3, %v20141_v22  ;;  %6506 = vst.msk [vmem:[#allocation2 + $0x50] sm:$0xff] %vm6494_vm3, %v20141_v22 }
 0x371   :  { %20463 = vst [vmem:[#allocation61_spill] sm:$0xff] %v18188_v2  ;;  %v18192_v47 = vpop.f32.mrb[61].mxu1  ;;  %6508 = vst.msk [vmem:[#allocation2 + $0x60] sm:$0xff] %vm6494_vm3, %v20141_v22 }
 0x372   :  { %20464 = vst [vmem:[#allocation62_spill] sm:$0xff] %v18192_v47  ;;  %v18194_v12 = vpop.f32.mrb[62].mxu1  ;;  %6509 = vst.msk [vmem:[#allocation2 + $0x68] sm:$0xff] %vm6494_vm3, %v20141_v22 }
 0x373   :  { %13542 = vmatmul.mubr.msk.bf16.gmra.mrb[36].mxu0 %vm315_vm2, %v17920_v17  ;;  %20465 = vst [vmem:[#allocation63_spill] sm:$0xff] %v18194_v12  ;;  %v18196_v19 = vpop.f32.mrb[63].mxu1  ;;  %6511 = vst.msk [vmem:[#allocation2 + $0x78] sm:$0xff] %vm6494_vm3, %v20141_v22  ;;  %v14671_v17 = vld [vmem:[%s20077_s3 + $0x18] sm:$0xff]  }
 0x374   :  { %13545 = vmatprep.mubr.msk.bf16.mxu0 %vm315_vm2, %v17930_v40  ;;  %20466 = vst [vmem:[#allocation64_spill] sm:$0xff] %v18196_v19  ;;  %6512 = vst.msk [vmem:[#allocation2 + $0x80] sm:$0xff] %vm6494_vm3, %v20141_v22  ;;  %13569 = vmatprep.subr.bf16.mxu1 %v14671_v17 }
 0x375   :  { %6514 = vst.msk [vmem:[#allocation2 + $0x90] sm:$0xff] %vm6494_vm3, %v20141_v22  ;;  %6515 = vst.msk [vmem:[#allocation2 + $0x98] sm:$0xff] %vm6494_vm3, %v20141_v22  ;;  %13570 = vmatpush3.bf16.msra.mxu1 %v14671_v17  ;;  %v6669_v40 = vld [vmem:[#allocation2] ss:$2 sm:$0xff] }
 0x376   :  { %6517 = vst.msk [vmem:[#allocation2 + $0xa8] sm:$0xff] %vm6494_vm3, %v20141_v22  ;;  %6518 = vst.msk [vmem:[#allocation2 + $0xb0] sm:$0xff] %vm6494_vm3, %v20141_v22 }
 0x377   :  { %6520 = vst.msk [vmem:[#allocation2 + $0xc0] sm:$0xff] %vm6494_vm3, %v20141_v22  ;;  %6521 = vst.msk [vmem:[#allocation2 + $0xc8] sm:$0xff] %vm6494_vm3, %v20141_v22 }
 0x378   :  { %6523 = vst.msk [vmem:[#allocation2 + $0xd8] sm:$0xff] %vm6494_vm3, %v20141_v22  ;;  %6524 = vst.msk [vmem:[#allocation2 + $0xe0] sm:$0xff] %vm6494_vm3, %v20141_v22 }
 0x379   :  { %6526 = vst.msk [vmem:[#allocation2 + $0xf0] sm:$0xff] %vm6494_vm3, %v20141_v22  ;;  %6527 = vst.msk [vmem:[#allocation2 + $0xf8] sm:$0xff] %vm6494_vm3, %v20141_v22 }
 0x37a   :  { %6529 = vst.msk [vmem:[#allocation2 + $0x108] sm:$0xff] %vm6494_vm3, %v20141_v22  ;;  %6530 = vst.msk [vmem:[#allocation2 + $0x110] sm:$0xff] %vm6494_vm3, %v20141_v22 }
 0x37b   :  { %13546 = vmatmul.mubr.msk.bf16.gmra.mrb[40].mxu0 %vm315_vm2, %v17932_v56  ;;  %6532 = vst.msk [vmem:[#allocation2 + $0x120] sm:$0xff] %vm6494_vm3, %v20141_v22  ;;  %6533 = vst.msk [vmem:[#allocation2 + $0x128] sm:$0xff] %vm6494_vm3, %v20141_v22  ;;  %v5607_v56 = vld [vmem:[#allocation5 + $0x420] sm:$0xff] }
 0x37c   :  { %13549 = vmatprep.mubr.msk.bf16.mxu0 %vm315_vm2, %v17942_v31  ;;  %6535 = vst.msk [vmem:[#allocation2 + $0x138] sm:$0xff] %vm6494_vm3, %v20141_v22  ;;  %6536 = vst.msk [vmem:[#allocation2 + $0x140] sm:$0xff] %vm6494_vm3, %v20141_v22  ;;  %v5608_v31 = vld [vmem:[#allocation5 + $0x428] sm:$0xff] }
 0x37d   :  { %6538 = vst.msk [vmem:[#allocation2 + $0x150] sm:$0xff] %vm6494_vm3, %v20141_v22  ;;  %6539 = vst.msk [vmem:[#allocation2 + $0x158] sm:$0xff] %vm6494_vm3, %v20141_v22 }
 0x37e   :  { %6541 = vst.msk [vmem:[#allocation2 + $0x168] sm:$0xff] %vm6494_vm3, %v20141_v22  ;;  %6542 = vst.msk [vmem:[#allocation2 + $0x170] sm:$0xff] %vm6494_vm3, %v20141_v22 }
 0x37f   :  { %6544 = vst.msk [vmem:[#allocation2 + $0x180] sm:$0xff] %vm6494_vm3, %v20141_v22  ;;  %6545 = vst.msk [vmem:[#allocation2 + $0x188] sm:$0xff] %vm6494_vm3, %v20141_v22 }
 0x380   :  { %6547 = vst.msk [vmem:[#allocation2 + $0x198] sm:$0xff] %vm6494_vm3, %v20141_v22  ;;  %6548 = vst.msk [vmem:[#allocation2 + $0x1a0] sm:$0xff] %vm6494_vm3, %v20141_v22 }
 0x381   :  { %6550 = vst.msk [vmem:[#allocation2 + $0x1b0] sm:$0xff] %vm6494_vm3, %v20141_v22  ;;  %6551 = vst.msk [vmem:[#allocation2 + $0x1b8] sm:$0xff] %vm6494_vm3, %v20141_v22 }
 0x382   :  { %6553 = vst.msk [vmem:[#allocation2 + $0x1c8] sm:$0xff] %vm6494_vm3, %v20141_v22  ;;  %6554 = vst.msk [vmem:[#allocation2 + $0x1d0] sm:$0xff] %vm6494_vm3, %v20141_v22 }
 0x383   :  { %13550 = vmatmul.mubr.msk.bf16.gmra.mrb[44].mxu0 %vm315_vm2, %v17944_v14  ;;  %6556 = vst.msk [vmem:[#allocation2 + $0x1e0] sm:$0xff] %vm6494_vm3, %v20141_v22  ;;  %6557 = vst.msk [vmem:[#allocation2 + $0x1e8] sm:$0xff] %vm6494_vm3, %v20141_v22 }
 0x384   :  { %13553 = vmatprep.mubr.msk.bf16.mxu0 %vm315_vm2, %v17954_v41  ;;  %6559 = vst.msk [vmem:[#allocation2 + $0x1f8] sm:$0xff] %vm6494_vm3, %v20141_v22  ;;  %6560 = vst.msk [vmem:[#allocation2 + $0x200] sm:$0xff] %vm6494_vm3, %v20141_v22  ;;  %v7256_v41 = vld [vmem:[#allocation2 + $0x1] ss:$2 sm:$0xff] }
 0x385   :  { %6562 = vst.msk [vmem:[#allocation2 + $0x210] sm:$0xff] %vm6494_vm3, %v20141_v22  ;;  %6563 = vst.msk [vmem:[#allocation2 + $0x218] sm:$0xff] %vm6494_vm3, %v20141_v22 }
 0x386   :  { %6565 = vst.msk [vmem:[#allocation2 + $0x228] sm:$0xff] %vm6494_vm3, %v20141_v22  ;;  %6566 = vst.msk [vmem:[#allocation2 + $0x230] sm:$0xff] %vm6494_vm3, %v20141_v22 }
 0x387   :  { %6568 = vst.msk [vmem:[#allocation2 + $0x240] sm:$0xff] %vm6494_vm3, %v20141_v22  ;;  %6569 = vst.msk [vmem:[#allocation2 + $0x248] sm:$0xff] %vm6494_vm3, %v20141_v22 }
 0x388   :  { %6571 = vst.msk [vmem:[#allocation2 + $0x258] sm:$0xff] %vm6494_vm3, %v20141_v22  ;;  %6572 = vst.msk [vmem:[#allocation2 + $0x260] sm:$0xff] %vm6494_vm3, %v20141_v22 }
 0x389   :  { %6574 = vst.msk [vmem:[#allocation2 + $0x270] sm:$0xff] %vm6494_vm3, %v20141_v22  ;;  %6575 = vst.msk [vmem:[#allocation2 + $0x278] sm:$0xff] %vm6494_vm3, %v20141_v22 }
 0x38a   :  { %6577 = vst.msk [vmem:[#allocation2 + $0x288] sm:$0xff] %vm6494_vm3, %v20141_v22  ;;  %6578 = vst.msk [vmem:[#allocation2 + $0x290] sm:$0xff] %vm6494_vm3, %v20141_v22 }
 0x38b   :  { %6580 = vst.msk [vmem:[#allocation2 + $0x2a0] sm:$0xff] %vm6494_vm3, %v20141_v22  ;;  %6581 = vst.msk [vmem:[#allocation2 + $0x2a8] sm:$0xff] %vm6494_vm3, %v20141_v22  ;;  %13554 = vmatmul.mubr.msk.bf16.gmra.mrb[48].mxu0 %vm315_vm2, %v17956_v59  ;;  %v5640_v59 = vpack.c.bf16 %v5608_v31, %v5607_v56  ;;  %v18455_v31 = vld [vmem:[%s20076_s2] ss:$0 sm:$0xff] }
 0x38c   :  { %6583 = vst.msk [vmem:[#allocation2 + $0x2b8] sm:$0xff] %vm6494_vm3, %v20141_v22  ;;  %6584 = vst.msk [vmem:[#allocation2 + $0x2c0] sm:$0xff] %vm6494_vm3, %v20141_v22  ;;  %13557 = vmatprep.mubr.msk.bf16.mxu0 %vm315_vm2, %v17966_v38 }
 0x38d   :  { %6586 = vst.msk [vmem:[#allocation2 + $0x2d0] sm:$0xff] %vm6494_vm3, %v20141_v22  ;;  %6587 = vst.msk [vmem:[#allocation2 + $0x2d8] sm:$0xff] %vm6494_vm3, %v20141_v22 }
 0x38e   :  { %6589 = vst.msk [vmem:[#allocation2 + $0x2e8] sm:$0xff] %vm6494_vm3, %v20141_v22  ;;  %6590 = vst.msk [vmem:[#allocation2 + $0x2f0] sm:$0xff] %vm6494_vm3, %v20141_v22 }
 0x38f   :  { %6592 = vst.msk [vmem:[#allocation2 + $0x300] sm:$0xff] %vm6494_vm3, %v20141_v22  ;;  %6593 = vst.msk [vmem:[#allocation2 + $0x308] sm:$0xff] %vm6494_vm3, %v20141_v22 }
 0x390   :  { %6595 = vst.msk [vmem:[#allocation2 + $0x318] sm:$0xff] %vm6494_vm3, %v20141_v22  ;;  %6596 = vst.msk [vmem:[#allocation2 + $0x320] sm:$0xff] %vm6494_vm3, %v20141_v22 }
 0x391   :  { %6598 = vst.msk [vmem:[#allocation2 + $0x330] sm:$0xff] %vm6494_vm3, %v20141_v22  ;;  %6599 = vst.msk [vmem:[#allocation2 + $0x338] sm:$0xff] %vm6494_vm3, %v20141_v22 }
 0x392   :  { %6601 = vst.msk [vmem:[#allocation2 + $0x348] sm:$0xff] %vm6494_vm3, %v20141_v22  ;;  %6602 = vst.msk [vmem:[#allocation2 + $0x350] sm:$0xff] %vm6494_vm3, %v20141_v22 }
 0x393   :  { %6504 = vst.msk [vmem:[#allocation2 + $0x40] sm:$0x3] %vm6497_vm4, %v20141_v22  ;;  %6498 = vst.msk [vmem:[#allocation2 + $0x10] sm:$0x3] %vm6497_vm4, %v20141_v22  ;;  %13558 = vmatmul.mubr.msk.bf16.gmra.mrb[52].mxu0 %vm315_vm2, %v17968_v42 }
 0x394   :  { %6501 = vst.msk [vmem:[#allocation2 + $0x28] sm:$0x3] %vm6497_vm4, %v20141_v22  ;;  %6507 = vst.msk [vmem:[#allocation2 + $0x58] sm:$0x3] %vm6497_vm4, %v20141_v22  ;;  %13561 = vmatprep.mubr.msk.bf16.mxu0 %vm315_vm2, %v17978_v24  ;;  %v6705_v24 = vld [vmem:[#allocation2 + $0x1b0] ss:$2 sm:$0xff] }
 0x395   :  { %6510 = vst.msk [vmem:[#allocation2 + $0x70] sm:$0x3] %vm6497_vm4, %v20141_v22  ;;  %6513 = vst.msk [vmem:[#allocation2 + $0x88] sm:$0x3] %vm6497_vm4, %v20141_v22 }
 0x396   :  { %6516 = vst.msk [vmem:[#allocation2 + $0xa0] sm:$0x3] %vm6497_vm4, %v20141_v22  ;;  %6519 = vst.msk [vmem:[#allocation2 + $0xb8] sm:$0x3] %vm6497_vm4, %v20141_v22 }
 0x397   :  { %6522 = vst.msk [vmem:[#allocation2 + $0xd0] sm:$0x3] %vm6497_vm4, %v20141_v22  ;;  %6525 = vst.msk [vmem:[#allocation2 + $0xe8] sm:$0x3] %vm6497_vm4, %v20141_v22 }
 0x398   :  { %6528 = vst.msk [vmem:[#allocation2 + $0x100] sm:$0x3] %vm6497_vm4, %v20141_v22  ;;  %6531 = vst.msk [vmem:[#allocation2 + $0x118] sm:$0x3] %vm6497_vm4, %v20141_v22 }
 0x399   :  { %6534 = vst.msk [vmem:[#allocation2 + $0x130] sm:$0x3] %vm6497_vm4, %v20141_v22  ;;  %6537 = vst.msk [vmem:[#allocation2 + $0x148] sm:$0x3] %vm6497_vm4, %v20141_v22 }
 0x39a   :  { %6540 = vst.msk [vmem:[#allocation2 + $0x160] sm:$0x3] %vm6497_vm4, %v20141_v22  ;;  %6543 = vst.msk [vmem:[#allocation2 + $0x178] sm:$0x3] %vm6497_vm4, %v20141_v22  ;;  %v7874_v42 = vld [vmem:[#allocation2 + $0x2] ss:$2 sm:$0xff] }
 0x39b   :  { %6546 = vst.msk [vmem:[#allocation2 + $0x190] sm:$0x3] %vm6497_vm4, %v20141_v22  ;;  %6549 = vst.msk [vmem:[#allocation2 + $0x1a8] sm:$0x3] %vm6497_vm4, %v20141_v22  ;;  %13562 = vmatmul.mubr.msk.bf16.gmra.mrb[56].mxu0 %vm315_vm2, %v17980_v34 }
 0x39c   :  { %6552 = vst.msk [vmem:[#allocation2 + $0x1c0] sm:$0x3] %vm6497_vm4, %v20141_v22  ;;  %6555 = vst.msk [vmem:[#allocation2 + $0x1d8] sm:$0x3] %vm6497_vm4, %v20141_v22  ;;  %13565 = vmatprep.mubr.msk.bf16.mxu0 %vm315_vm2, %v17990_v7  ;;  %v7292_v7 = vld [vmem:[#allocation2 + $0x1b1] ss:$2 sm:$0xff] }
 0x39d   :  { %6558 = vst.msk [vmem:[#allocation2 + $0x1f0] sm:$0x3] %vm6497_vm4, %v20141_v22  ;;  %6561 = vst.msk [vmem:[#allocation2 + $0x208] sm:$0x3] %vm6497_vm4, %v20141_v22 }
 0x39e   :  { %6564 = vst.msk [vmem:[#allocation2 + $0x220] sm:$0x3] %vm6497_vm4, %v20141_v22  ;;  %6567 = vst.msk [vmem:[#allocation2 + $0x238] sm:$0x3] %vm6497_vm4, %v20141_v22 }
 0x39f   :  { %6570 = vst.msk [vmem:[#allocation2 + $0x250] sm:$0x3] %vm6497_vm4, %v20141_v22  ;;  %6573 = vst.msk [vmem:[#allocation2 + $0x268] sm:$0x3] %vm6497_vm4, %v20141_v22 }
 0x3a0   :  { %6576 = vst.msk [vmem:[#allocation2 + $0x280] sm:$0x3] %vm6497_vm4, %v20141_v22  ;;  %6579 = vst.msk [vmem:[#allocation2 + $0x298] sm:$0x3] %vm6497_vm4, %v20141_v22 }
 0x3a1   :  { %6582 = vst.msk [vmem:[#allocation2 + $0x2b0] sm:$0x3] %vm6497_vm4, %v20141_v22  ;;  %6585 = vst.msk [vmem:[#allocation2 + $0x2c8] sm:$0x3] %vm6497_vm4, %v20141_v22 }
 0x3a2   :  { %6588 = vst.msk [vmem:[#allocation2 + $0x2e0] sm:$0x3] %vm6497_vm4, %v20141_v22  ;;  %6591 = vst.msk [vmem:[#allocation2 + $0x2f8] sm:$0x3] %vm6497_vm4, %v20141_v22 }
 0x3a3   :  { %6594 = vst.msk [vmem:[#allocation2 + $0x310] sm:$0x3] %vm6497_vm4, %v20141_v22  ;;  %6597 = vst.msk [vmem:[#allocation2 + $0x328] sm:$0x3] %vm6497_vm4, %v20141_v22  ;;  %13566 = vmatmul.mubr.msk.bf16.gmra.mrb[60].mxu0 %vm315_vm2, %v5640_v59 }
 0x3a4   :  { %6600 = vst.msk [vmem:[#allocation2 + $0x340] sm:$0x3] %vm6497_vm4, %v20141_v22  ;;  %6603 = vst.msk [vmem:[#allocation2 + $0x358] sm:$0x3] %vm6497_vm4, %v20141_v22 }
 0x3a5   :  { %6740 = vst.msk [vmem:[#allocation6] sm:$0xff] %vm6494_vm3, %v6669_v40  ;;  %6758 = vst.msk [vmem:[#allocation6 + $0x90] sm:$0xff] %vm6494_vm3, %v6705_v24  ;;  %v7910_v40 = vld [vmem:[#allocation2 + $0x1b2] ss:$2 sm:$0xff] }
 0x3ac   :  { %v18438_v14 = vld [vmem:[#allocation6] sm:$0xff]  ;;  %v18446_v34 = vld [vmem:[#allocation6 + $0x90] sm:$0xff] }
 0x3ad   :  { %20467 = vst [vmem:[#allocation65_spill] sm:$0xff] %v18438_v14  ;;  %7327 = vst.msk [vmem:[#allocation6] sm:$0xff] %vm6494_vm3, %v7256_v41  ;;  %v18466_v14 = vld [vmem:[%s20076_s2 + $0x1] ss:$0 sm:$0xff] }
 0x3ae   :  { %20469 = vst [vmem:[#allocation67_spill] sm:$0xff] %v18446_v34  ;;  %7345 = vst.msk [vmem:[#allocation6 + $0x90] sm:$0xff] %vm6494_vm3, %v7292_v7 }
 0x3b4   :  { %v18442_v38 = vld [vmem:[#allocation6] sm:$0xff] }
 0x3b5   :  { %20468 = vst [vmem:[#allocation66_spill] sm:$0xff] %v18442_v38  ;;  %7945 = vst.msk [vmem:[#allocation6] sm:$0xff] %vm6494_vm3, %v7874_v42  ;;  %v18449_v17 = vld [vmem:[#allocation6 + $0x90] sm:$0xff] }
 0x3b6   :  { %20470 = vst [vmem:[#allocation68_spill] sm:$0xff] %v18449_v17  ;;  %7963 = vst.msk [vmem:[#allocation6 + $0x90] sm:$0xff] %vm6494_vm3, %v7910_v40 }
 0x3fe   :  { %v13507_v56 = vpop.f32.mrb[0].mxu0 }
 0x3ff   :  { %v13991_v41 = vadd.f32 %v13507_v56, %v18019_v1  ;;  %v5776_v59 = vpop.f32.mrb[1].mxu0 }
 0x400   :  { %v13992_v42 = vadd.f32 %v5776_v59, %v18022_v0  ;;  %v13508_v24 = vpop.f32.mrb[2].mxu0 }
 0x401   :  { %v6102_v22 = vadd.f32 %v13991_v41, %v18455_v31  ;;  %v13993_v7 = vadd.f32 %v13508_v24, %v18024_v30  ;;  %v5779_v17 = vpop.f32.mrb[3].mxu0  ;;  %v18473_v30 = vld [vmem:[%s20076_s2 + $0x2] ss:$0 sm:$0xff] }
 0x402   :  { %v6100_v38 = vadd.f32 %v13992_v42, %v18455_v31  ;;  %v13994_v40 = vadd.f32 %v5779_v17, %v18026_v15  ;;  %v18478_v17 = vld [vmem:[%s20077_s3] sm:$0xff]  }
 0x403   :  { %vm6166_vm5 = vcmp.ge.f32.partialorder %v6102_v22, 0.0  ;;  %v6230_v34 = vmul.f32 0.2, %v6102_v22  ;;  %v6103_v1 = vadd.f32 %v13993_v7, %v18455_v31  ;;  %13587 = vmatprep.subr.bf16.mxu1 %v18478_v17 }
 0x404   :  { %vm6164_vm6 = vcmp.ge.f32.partialorder %v6100_v38, 0.0  ;;  %v6228_v0 = vmul.f32 0.2, %v6100_v38  ;;  %v6101_v56 = vadd.f32 %v13994_v40, %v18455_v31 }
 0x405   :  { %v6294_v41 = vsel %vm6166_vm5, %v6102_v22, %v6230_v34  ;;  %vm6167_vm7 = vcmp.ge.f32.partialorder %v6103_v1, 0.0  ;;  %v6231_v15 = vmul.f32 0.2, %v6103_v1 }
 0x406   :  { %v6363_v59 = vmul.f32 %v18466_v14, %v6294_v41  ;;  %v6292_v42 = vsel %vm6164_vm6, %v6100_v38, %v6228_v0  ;;  %vm6165_vm8 = vcmp.ge.f32.partialorder %v6101_v56, 0.0  ;;  %v6229_v24 = vmul.f32 0.2, %v6101_v56  ;;  %v13511_v7 = vpop.f32.mrb[4].mxu0 }
 0x407   :  { %v6361_v22 = vmul.f32 %v18466_v14, %v6292_v42  ;;  %v6295_v34 = vsel %vm6167_vm7, %v6103_v1, %v6231_v15  ;;  %v13995_v40 = vadd.f32 %v13511_v7, %v18029_v46  ;;  %v5792_v19 = vpop.f32.mrb[5].mxu0 }
 0x408   :  { %v6432_v12 = vadd.f32 %v18473_v30, %v6363_v59  ;;  %v6364_v47 = vmul.f32 %v18466_v14, %v6295_v34  ;;  %v6293_v2 = vsel %vm6165_vm8, %v6101_v56, %v6229_v24  ;;  %v13996_v44 = vadd.f32 %v5792_v19, %v18032_v18  ;;  %v13512_v41 = vpop.f32.mrb[6].mxu0 }
 0x409   :  { %v6430_v38 = vadd.f32 %v18473_v30, %v6361_v22  ;;  %v6362_v0 = vmul.f32 %v18466_v14, %v6293_v2  ;;  %v6106_v42 = vadd.f32 %v13995_v40, %v18455_v31  ;;  %v13997_v1 = vadd.f32 %v13512_v41, %v18034_v43  ;;  %v5795_v46 = vpop.f32.mrb[7].mxu0 }
 0x40a   :  { %6607 = vst.msk [vmem:[#allocation2 + $0x31] sm:$0xff] %vm6494_vm3, %v6432_v12  ;;  %v6433_v15 = vadd.f32 %v18473_v30, %v6364_v47  ;;  %v6104_v59 = vadd.f32 %v13996_v44, %v18455_v31  ;;  %v13998_v56 = vadd.f32 %v5795_v46, %v18036_v39 }
 0x40b   :  { %6605 = vst.msk [vmem:[#allocation2 + $0x19] sm:$0xff] %vm6494_vm3, %v6430_v38  ;;  %v6431_v18 = vadd.f32 %v18473_v30, %v6362_v0  ;;  %vm6170_vm9 = vcmp.ge.f32.partialorder %v6106_v42, 0.0  ;;  %v6234_v19 = vmul.f32 0.2, %v6106_v42  ;;  %v6107_v2 = vadd.f32 %v13997_v1, %v18455_v31 }
 0x40c   :  { %6608 = vst.msk [vmem:[#allocation2 + $0x39] sm:$0xff] %vm6494_vm3, %v6433_v15  ;;  %vm6168_vm10 = vcmp.ge.f32.partialorder %v6104_v59, 0.0  ;;  %v6232_v43 = vmul.f32 0.2, %v6104_v59  ;;  %v6105_v12 = vadd.f32 %v13998_v56, %v18455_v31 }
 0x40d   :  { %6606 = vst.msk [vmem:[#allocation2 + $0x21] sm:$0xff] %vm6494_vm3, %v6431_v18  ;;  %v6298_v47 = vsel %vm6170_vm9, %v6106_v42, %v6234_v19  ;;  %vm6171_vm11 = vcmp.ge.f32.partialorder %v6107_v2, 0.0  ;;  %v6235_v44 = vmul.f32 0.2, %v6107_v2 }
 0x40e   :  { %v6367_v39 = vmul.f32 %v18466_v14, %v6298_v47  ;;  %v6296_v24 = vsel %vm6168_vm10, %v6104_v59, %v6232_v43  ;;  %vm6169_vm12 = vcmp.ge.f32.partialorder %v6105_v12, 0.0  ;;  %v6233_v7 = vmul.f32 0.2, %v6105_v12  ;;  %v13515_v22 = vpop.f32.mrb[8].mxu0 }
 0x40f   :  { %v6365_v34 = vmul.f32 %v18466_v14, %v6296_v24  ;;  %v6299_v40 = vsel %vm6171_vm11, %v6107_v2, %v6235_v44  ;;  %v13999_v41 = vadd.f32 %v13515_v22, %v18039_v45  ;;  %v5808_v38 = vpop.f32.mrb[9].mxu0 }
 0x410   :  { %v6436_v0 = vadd.f32 %v18473_v30, %v6367_v39  ;;  %v6368_v1 = vmul.f32 %v18466_v14, %v6299_v40  ;;  %v6297_v46 = vsel %vm6169_vm12, %v6105_v12, %v6233_v7  ;;  %v14000_v42 = vadd.f32 %v5808_v38, %v18042_v54  ;;  %v13516_v15 = vpop.f32.mrb[10].mxu0 }
 0x411   :  { %v6434_v56 = vadd.f32 %v18473_v30, %v6365_v34  ;;  %v6366_v59 = vmul.f32 %v18466_v14, %v6297_v46  ;;  %v6110_v18 = vadd.f32 %v13999_v41, %v18455_v31  ;;  %v14001_v19 = vadd.f32 %v13516_v15, %v18044_v13  ;;  %v5811_v2 = vpop.f32.mrb[11].mxu0 }
 0x412   :  { %6611 = vst.msk [vmem:[#allocation2 + $0x61] sm:$0xff] %vm6494_vm3, %v6436_v0  ;;  %v6437_v45 = vadd.f32 %v18473_v30, %v6368_v1  ;;  %v6108_v43 = vadd.f32 %v14000_v42, %v18455_v31  ;;  %v14002_v12 = vadd.f32 %v5811_v2, %v18046_v36 }
 0x413   :  { %6609 = vst.msk [vmem:[#allocation2 + $0x49] sm:$0xff] %vm6494_vm3, %v6434_v56  ;;  %v6435_v54 = vadd.f32 %v18473_v30, %v6366_v59  ;;  %vm6174_vm13 = vcmp.ge.f32.partialorder %v6110_v18, 0.0  ;;  %v6238_v47 = vmul.f32 0.2, %v6110_v18  ;;  %v6111_v44 = vadd.f32 %v14001_v19, %v18455_v31  ;;  %v6673_v39 = vld [vmem:[#allocation2 + $0x30] ss:$2 sm:$0xff] }
 0x414   :  { %6612 = vst.msk [vmem:[#allocation2 + $0x69] sm:$0xff] %vm6494_vm3, %v6437_v45  ;;  %vm6172_vm14 = vcmp.ge.f32.partialorder %v6108_v43, 0.0  ;;  %v6236_v13 = vmul.f32 0.2, %v6108_v43  ;;  %v6109_v24 = vadd.f32 %v14002_v12, %v18455_v31  ;;  %v6671_v7 = vld [vmem:[#allocation2 + $0x18] ss:$2 sm:$0xff] }
 0x415   :  { %6742 = vst.msk [vmem:[#allocation6 + $0x10] sm:$0xff] %vm6494_vm3, %v6673_v39  ;;  %6610 = vst.msk [vmem:[#allocation2 + $0x51] sm:$0xff] %vm6494_vm3, %v6435_v54  ;;  %v6302_v36 = vsel %vm6174_vm13, %v6110_v18, %v6238_v47  ;;  %vm6175_vm15 = vcmp.ge.f32.partialorder %v6111_v44, 0.0  ;;  %v6239_v22 = vmul.f32 0.2, %v6111_v44 }
 0x416   :  { %6741 = vst.msk [vmem:[#allocation6 + $0x8] sm:$0xff] %vm6494_vm3, %v6671_v7  ;;  %v6371_v34 = vmul.f32 %v18466_v14, %v6302_v36  ;;  %v6300_v40 = vsel %vm6172_vm14, %v6108_v43, %v6236_v13  ;;  %vm6173_vm0 = vcmp.ge.f32.partialorder %v6109_v24, 0.0  ;;  %v6237_v41 = vmul.f32 0.2, %v6109_v24  ;;  %v13519_v38 = vpop.f32.mrb[12].mxu0 }
 0x417   :  { %v6369_v0 = vmul.f32 %v18466_v14, %v6300_v40  ;;  %v6303_v1 = vsel %vm6175_vm15, %v6111_v44, %v6239_v22  ;;  %v14003_v46 = vadd.f32 %v13519_v38, %v18049_v3  ;;  %v5824_v42 = vpop.f32.mrb[13].mxu0  ;;  %v7258_v39 = vld [vmem:[#allocation2 + $0x19] ss:$2 sm:$0xff] }
 0x418   :  { %v6440_v15 = vadd.f32 %v18473_v30, %v6371_v34  ;;  %v6372_v56 = vmul.f32 %v18466_v14, %v6303_v1  ;;  %v6301_v59 = vsel %vm6173_vm0, %v6109_v24, %v6237_v41  ;;  %v14004_v18 = vadd.f32 %v5824_v42, %v18052_v37  ;;  %v13520_v19 = vpop.f32.mrb[14].mxu0  ;;  %v7260_v37 = vld [vmem:[#allocation2 + $0x31] ss:$2 sm:$0xff] }
 0x419   :  { %v6438_v2 = vadd.f32 %v18473_v30, %v6369_v0  ;;  %v6370_v45 = vmul.f32 %v18466_v14, %v6301_v59  ;;  %v6114_v43 = vadd.f32 %v14003_v46, %v18455_v31  ;;  %v14005_v12 = vadd.f32 %v13520_v19, %v18054_v11  ;;  %v5827_v54 = vpop.f32.mrb[15].mxu0 }
 0x41a   :  { %6615 = vst.msk [vmem:[#allocation2 + $0x91] sm:$0xff] %vm6494_vm3, %v6440_v15  ;;  %v6441_v3 = vadd.f32 %v18473_v30, %v6372_v56  ;;  %v6112_v47 = vadd.f32 %v14004_v18, %v18455_v31  ;;  %v14006_v44 = vadd.f32 %v5827_v54, %v18056_v32 }
 0x41b   :  { %v6677_v13 = vld [vmem:[#allocation2 + $0x60] ss:$2 sm:$0xff]  ;;  %6613 = vst.msk [vmem:[#allocation2 + $0x79] sm:$0xff] %vm6494_vm3, %v6438_v2  ;;  %v6439_v24 = vadd.f32 %v18473_v30, %v6370_v45  ;;  %vm6178_vm1 = vcmp.ge.f32.partialorder %v6114_v43, 0.0  ;;  %v6242_v7 = vmul.f32 0.2, %v6114_v43  ;;  %v6115_v11 = vadd.f32 %v14005_v12, %v18455_v31 }
 0x41c   :  { %v18540_v36 = vld [vmem:[#allocation6 + $0x10] sm:$0xff]  ;;  %6744 = vst.msk [vmem:[#allocation6 + $0x20] sm:$0xff] %vm6494_vm3, %v6677_v13  ;;  %6616 = vst.msk [vmem:[#allocation2 + $0x99] sm:$0xff] %vm6494_vm3, %v6441_v3  ;;  %vm6176_vm2 = vcmp.ge.f32.partialorder %v6112_v47, 0.0  ;;  %v6240_v22 = vmul.f32 0.2, %v6112_v47  ;;  %v6113_v32 = vadd.f32 %v14006_v44, %v18455_v31 }
 0x41d   :  { %v6675_v34 = vld [vmem:[#allocation2 + $0x48] ss:$2 sm:$0xff]  ;;  %7329 = vst.msk [vmem:[#allocation6 + $0x10] sm:$0xff] %vm6494_vm3, %v7260_v37  ;;  %6614 = vst.msk [vmem:[#allocation2 + $0x81] sm:$0xff] %vm6494_vm3, %v6439_v24  ;;  %v6306_v41 = vsel %vm6178_vm1, %v6114_v43, %v6242_v7  ;;  %vm6179_vm4 = vcmp.ge.f32.partialorder %v6115_v11, 0.0 }
 0x41e   :  { %v18545_v40 = vld [vmem:[#allocation6 + $0x8] sm:$0xff]  ;;  %v6243_v38 = vmul.f32 0.2, %v6115_v11  ;;  %6743 = vst.msk [vmem:[#allocation6 + $0x18] sm:$0xff] %vm6494_vm3, %v6675_v34  ;;  %v6375_v0 = vmul.f32 %v18466_v14, %v6306_v41  ;;  %v6304_v1 = vsel %vm6176_vm2, %v6112_v47, %v6240_v22  ;;  %vm6177_vm5 = vcmp.ge.f32.partialorder %v6113_v32, 0.0  ;;  %v13523_v42 = vpop.f32.mrb[16].mxu0 }
 0x41f   :  { %7328 = vst.msk [vmem:[#allocation6 + $0x8] sm:$0xff] %vm6494_vm3, %v7258_v39  ;;  %v6241_v46 = vmul.f32 0.2, %v6113_v32  ;;  %v6373_v15 = vmul.f32 %v18466_v14, %v6304_v1  ;;  %v14007_v59 = vadd.f32 %v13523_v42, %v18059_v26  ;;  %v5840_v18 = vpop.f32.mrb[17].mxu0  ;;  %v7262_v24 = vld [vmem:[#allocation2 + $0x49] ss:$2 sm:$0xff] }
 0x420   :  { %v6307_v56 = vsel %vm6179_vm4, %v6115_v11, %v6243_v38  ;;  %v6444_v19 = vadd.f32 %v18473_v30, %v6375_v0  ;;  %v14008_v43 = vadd.f32 %v5840_v18, %v18062_v23  ;;  %v13524_v12 = vpop.f32.mrb[18].mxu0  ;;  %v7264_v23 = vld [vmem:[#allocation2 + $0x61] ss:$2 sm:$0xff] }
 0x421   :  { %v6376_v2 = vmul.f32 %v18466_v14, %v6307_v56  ;;  %v6305_v45 = vsel %vm6177_vm5, %v6113_v32, %v6241_v46  ;;  %v6442_v54 = vadd.f32 %v18473_v30, %v6373_v15  ;;  %v6118_v47 = vadd.f32 %v14007_v59, %v18455_v31  ;;  %v5843_v39 = vpop.f32.mrb[19].mxu0  ;;  %v7878_v56 = vld [vmem:[#allocation2 + $0x32] ss:$2 sm:$0xff] }
 0x422   :  { %v6374_v3 = vmul.f32 %v18466_v14, %v6305_v45  ;;  %v14009_v44 = vadd.f32 %v13524_v12, %v18064_v21  ;;  %6619 = vst.msk [vmem:[#allocation2 + $0xc1] sm:$0xff] %vm6494_vm3, %v6444_v19  ;;  %v6116_v37 = vadd.f32 %v14008_v43, %v18455_v31  ;;  %v14010_v13 = vadd.f32 %v5843_v39, %v18066_v35 }
 0x423   :  { %v6445_v26 = vadd.f32 %v18473_v30, %v6376_v2  ;;  %v6681_v7 = vld [vmem:[#allocation2 + $0x90] ss:$2 sm:$0xff]  ;;  %6617 = vst.msk [vmem:[#allocation2 + $0xa9] sm:$0xff] %vm6494_vm3, %v6442_v54  ;;  %vm6182_vm6 = vcmp.ge.f32.partialorder %v6118_v47, 0.0  ;;  %v6246_v22 = vmul.f32 0.2, %v6118_v47 }
 0x424   :  { %v6443_v11 = vadd.f32 %v18473_v30, %v6374_v3  ;;  %v6119_v21 = vadd.f32 %v14009_v44, %v18455_v31  ;;  %v18568_v32 = vld [vmem:[#allocation6 + $0x20] sm:$0xff]  ;;  %6746 = vst.msk [vmem:[#allocation6 + $0x30] sm:$0xff] %vm6494_vm3, %v6681_v7  ;;  %vm6180_vm7 = vcmp.ge.f32.partialorder %v6116_v37, 0.0  ;;  %v6244_v34 = vmul.f32 0.2, %v6116_v37  ;;  %v18580_v15 = vld [vmem:[#allocation6 + $0x10] sm:$0xff] }
 0x425   :  { %6620 = vst.msk [vmem:[#allocation2 + $0xc9] sm:$0xff] %vm6494_vm3, %v6445_v26  ;;  %v6117_v35 = vadd.f32 %v14010_v13, %v18455_v31  ;;  %v6804_v41 = vld [vmem:[#allocation6 + $0x18] sm:$0xff]  ;;  %v7101_v0 = vpack.c.bf16 %v18568_v32, %v18540_v36  ;;  %7331 = vst.msk [vmem:[#allocation6 + $0x20] sm:$0xff] %vm6494_vm3, %v7264_v23  ;;  %v6310_v1 = vsel %vm6182_vm6, %v6118_v47, %v6246_v22 }
 0x426   :  { %v6679_v38 = vld [vmem:[#allocation2 + $0x78] ss:$2 sm:$0xff]  ;;  %6618 = vst.msk [vmem:[#allocation2 + $0xb1] sm:$0xff] %vm6494_vm3, %v6443_v11  ;;  %vm6183_vm8 = vcmp.ge.f32.partialorder %v6119_v21, 0.0  ;;  %v6247_v46 = vmul.f32 0.2, %v6119_v21  ;;  %v6819_v42 = vpack.c.bf16 %v6804_v41, %v18545_v40  ;;  %v6379_v59 = vmul.f32 %v18466_v14, %v6310_v1 }
 0x427   :  { %7330 = vst.msk [vmem:[#allocation6 + $0x18] sm:$0xff] %vm6494_vm3, %v7262_v24  ;;  %6745 = vst.msk [vmem:[#allocation6 + $0x28] sm:$0xff] %vm6494_vm3, %v6679_v38  ;;  %v6308_v18 = vsel %vm6180_vm7, %v6116_v37, %v6244_v34  ;;  %vm6181_vm9 = vcmp.ge.f32.partialorder %v6117_v35, 0.0  ;;  %v6245_v19 = vmul.f32 0.2, %v6117_v35  ;;  %v13527_v2 = vpop.f32.mrb[20].mxu0 }
 0x428   :  { %7947 = vst.msk [vmem:[#allocation6 + $0x10] sm:$0xff] %vm6494_vm3, %v7878_v56  ;;  %v6377_v45 = vmul.f32 %v18466_v14, %v6308_v18  ;;  %v6311_v43 = vsel %vm6183_vm8, %v6119_v21, %v6247_v46  ;;  %v14011_v40 = vadd.f32 %v13527_v2, %v18069_v28  ;;  %v5856_v12 = vpop.f32.mrb[21].mxu0  ;;  %13571 = vmatprep.mubr.msk.bf16.mxu1 %vm6494_vm3, %v6819_v42  ;;  %v18588_v54 = vld [vmem:[#allocation6 + $0x8] sm:$0xff]  ;;  %v7266_v21 = vld [vmem:[#allocation2 + $0x79] ss:$2 sm:$0xff] }
 0x429   :  { %v7876_v3 = vld [vmem:[#allocation2 + $0x1a] ss:$2 sm:$0xff]  ;;  %v6448_v47 = vadd.f32 %v18473_v30, %v6379_v59  ;;  %v6380_v44 = vmul.f32 %v18466_v14, %v6311_v43  ;;  %v6309_v39 = vsel %vm6181_vm9, %v6117_v35, %v6245_v19  ;;  %v14012_v26 = vadd.f32 %v5856_v12, %v18073_v8  ;;  %v13528_v37 = vpop.f32.mrb[22].mxu0  ;;  %v7268_v34 = vld [vmem:[#allocation2 + $0x91] ss:$2 sm:$0xff] }
 0x42a   :  { %7946 = vst.msk [vmem:[#allocation6 + $0x8] sm:$0xff] %vm6494_vm3, %v7876_v3  ;;  %v6446_v13 = vadd.f32 %v18473_v30, %v6377_v45  ;;  %v6378_v28 = vmul.f32 %v18466_v14, %v6309_v39  ;;  %v6122_v24 = vadd.f32 %v14011_v40, %v18455_v31  ;;  %v14013_v23 = vadd.f32 %v13528_v37, %v18075_v51  ;;  %v5859_v7 = vpop.f32.mrb[23].mxu0  ;;  %v7882_v45 = vld [vmem:[#allocation2 + $0x62] ss:$2 sm:$0xff] }
 0x42b   :  { %6623 = vst.msk [vmem:[#allocation2 + $0xf1] sm:$0xff] %vm6494_vm3, %v6448_v47  ;;  %v6449_v11 = vadd.f32 %v18473_v30, %v6380_v44  ;;  %v6120_v22 = vadd.f32 %v14012_v26, %v18455_v31  ;;  %v14014_v8 = vadd.f32 %v5859_v7, %v18077_v52  ;;  %v18605_v51 = vld [vmem:[#allocation6 + $0x30] sm:$0xff] }
 0x42c   :  { %6621 = vst.msk [vmem:[#allocation2 + $0xd9] sm:$0xff] %vm6494_vm3, %v6446_v13  ;;  %v6447_v35 = vadd.f32 %v18473_v30, %v6378_v28  ;;  %vm6186_vm10 = vcmp.ge.f32.partialorder %v6122_v24, 0.0  ;;  %v6250_v41 = vmul.f32 0.2, %v6122_v24  ;;  %v6123_v38 = vadd.f32 %v14013_v23, %v18455_v31  ;;  %v6685_v1 = vld [vmem:[#allocation2 + $0xc0] ss:$2 sm:$0xff] }
 0x42d   :  { %6624 = vst.msk [vmem:[#allocation2 + $0xf9] sm:$0xff] %vm6494_vm3, %v6449_v11  ;;  %vm6184_vm11 = vcmp.ge.f32.partialorder %v6120_v22, 0.0  ;;  %v6248_v46 = vmul.f32 0.2, %v6120_v22  ;;  %v6121_v42 = vadd.f32 %v14014_v8, %v18455_v31  ;;  %v6683_v52 = vld [vmem:[#allocation2 + $0xa8] ss:$2 sm:$0xff]  ;;  %v6793_v59 = vpack.c.bf16 %v18605_v51, %v18568_v32 }
 0x42e   :  { %v18609_v56 = vld [vmem:[#allocation6 + $0x28] sm:$0xff]  ;;  %6748 = vst.msk [vmem:[#allocation6 + $0x40] sm:$0xff] %vm6494_vm3, %v6685_v1  ;;  %7333 = vst.msk [vmem:[#allocation6 + $0x30] sm:$0xff] %vm6494_vm3, %v7268_v34  ;;  %v6314_v18 = vsel %vm6186_vm10, %v6122_v24, %v6250_v41  ;;  %vm6187_vm12 = vcmp.ge.f32.partialorder %v6123_v38, 0.0  ;;  %v6251_v19 = vmul.f32 0.2, %v6123_v38 }
 0x42f   :  { %6622 = vst.msk [vmem:[#allocation2 + $0xe1] sm:$0xff] %vm6494_vm3, %v6447_v35  ;;  %6747 = vst.msk [vmem:[#allocation6 + $0x38] sm:$0xff] %vm6494_vm3, %v6683_v52  ;;  %v18618_v2 = vld [vmem:[#allocation6 + $0x20] sm:$0xff]  ;;  %v6383_v43 = vmul.f32 %v18466_v14, %v6314_v18  ;;  %v6312_v40 = vsel %vm6184_vm11, %v6120_v22, %v6248_v46  ;;  %vm6185_vm13 = vcmp.ge.f32.partialorder %v6121_v42, 0.0  ;;  %v6249_v12 = vmul.f32 0.2, %v6121_v42 }
 0x430   :  { %7332 = vst.msk [vmem:[#allocation6 + $0x28] sm:$0xff] %vm6494_vm3, %v7266_v21  ;;  %v13531_v3 = vpop.f32.mrb[24].mxu0  ;;  %7949 = vst.msk [vmem:[#allocation6 + $0x20] sm:$0xff] %vm6494_vm3, %v7882_v45  ;;  %v6381_v47 = vmul.f32 %v18466_v14, %v6312_v40  ;;  %v6315_v44 = vsel %vm6187_vm12, %v6123_v38, %v6251_v19  ;;  %v18625_v37 = vld [vmem:[#allocation6 + $0x18] sm:$0xff]  ;;  %v7270_v1 = vld [vmem:[#allocation2 + $0xa9] ss:$2 sm:$0xff] }
 0x431   :  { %v14015_v39 = vadd.f32 %v13531_v3, %v18081_v20  ;;  %v5872_v26 = vpop.f32.mrb[25].mxu0  ;;  %v7880_v13 = vld [vmem:[#allocation2 + $0x4a] ss:$2 sm:$0xff]  ;;  %v6452_v24 = vadd.f32 %v18473_v30, %v6383_v43  ;;  %v6384_v23 = vmul.f32 %v18466_v14, %v6315_v44  ;;  %v6313_v7 = vsel %vm6185_vm13, %v6121_v42, %v6249_v12  ;;  %v7272_v46 = vld [vmem:[#allocation2 + $0xc1] ss:$2 sm:$0xff] }
 0x432   :  { %v14016_v11 = vadd.f32 %v5872_v26, %v18085_v60  ;;  %v13532_v22 = vpop.f32.mrb[26].mxu0  ;;  %7948 = vst.msk [vmem:[#allocation6 + $0x18] sm:$0xff] %vm6494_vm3, %v7880_v13  ;;  %v6450_v8 = vadd.f32 %v18473_v30, %v6381_v47  ;;  %v6382_v20 = vmul.f32 %v18466_v14, %v6313_v7  ;;  %v14673_v19 = vld [vmem:[%s20077_s3 + $0x30] sm:$0xff]  }
 0x433   :  { %v6126_v21 = vadd.f32 %v14015_v39, %v18455_v31  ;;  %v14017_v34 = vadd.f32 %v13532_v22, %v18087_v49  ;;  %v5875_v35 = vpop.f32.mrb[27].mxu0  ;;  %6627 = vst.msk [vmem:[#allocation2 + $0x121] sm:$0xff] %vm6494_vm3, %v6452_v24  ;;  %v6453_v41 = vadd.f32 %v18473_v30, %v6384_v23  ;;  %v7886_v24 = vld [vmem:[#allocation2 + $0x92] ss:$2 sm:$0xff] }
 0x434   :  { %v6124_v38 = vadd.f32 %v14016_v11, %v18455_v31  ;;  %v14018_v60 = vadd.f32 %v5875_v35, %v18089_v16  ;;  %6625 = vst.msk [vmem:[#allocation2 + $0x109] sm:$0xff] %vm6494_vm3, %v6450_v8  ;;  %v6451_v52 = vadd.f32 %v18473_v30, %v6382_v20  ;;  %v6689_v45 = vld [vmem:[#allocation2 + $0xf0] ss:$2 sm:$0xff] }
 0x435   :  { %vm6190_vm14 = vcmp.ge.f32.partialorder %v6126_v21, 0.0  ;;  %v6254_v49 = vmul.f32 0.2, %v6126_v21  ;;  %v6127_v18 = vadd.f32 %v14017_v34, %v18455_v31  ;;  %v18649_v43 = vld [vmem:[#allocation6 + $0x40] sm:$0xff]  ;;  %6628 = vst.msk [vmem:[#allocation2 + $0x129] sm:$0xff] %vm6494_vm3, %v6453_v41  ;;  %6750 = vst.msk [vmem:[#allocation6 + $0x50] sm:$0xff] %vm6494_vm3, %v6689_v45 }
 0x436   :  { %vm6188_vm15 = vcmp.ge.f32.partialorder %v6124_v38, 0.0  ;;  %v6252_v16 = vmul.f32 0.2, %v6124_v38  ;;  %v6125_v40 = vadd.f32 %v14018_v60, %v18455_v31  ;;  %v6806_v12 = vld [vmem:[#allocation6 + $0x38] sm:$0xff]  ;;  %7335 = vst.msk [vmem:[#allocation6 + $0x40] sm:$0xff] %vm6494_vm3, %v7272_v46  ;;  %6626 = vst.msk [vmem:[#allocation2 + $0x111] sm:$0xff] %vm6494_vm3, %v6451_v52 }
 0x437   :  { %v6687_v3 = vld [vmem:[#allocation2 + $0xd8] ss:$2 sm:$0xff]  ;;  %v6318_v44 = vsel %vm6190_vm14, %v6126_v21, %v6254_v49  ;;  %vm6191_vm0 = vcmp.ge.f32.partialorder %v6127_v18, 0.0  ;;  %v6255_v39 = vmul.f32 0.2, %v6127_v18  ;;  %v6820_v26 = vpack.c.bf16 %v6806_v12, %v18609_v56  ;;  %7334 = vst.msk [vmem:[#allocation6 + $0x38] sm:$0xff] %vm6494_vm3, %v7270_v1 }
 0x438   :  { %6749 = vst.msk [vmem:[#allocation6 + $0x48] sm:$0xff] %vm6494_vm3, %v6687_v3  ;;  %v18662_v13 = vld [vmem:[#allocation6 + $0x30] sm:$0xff]  ;;  %v6387_v23 = vmul.f32 %v18466_v14, %v6318_v44  ;;  %v6316_v7 = vsel %vm6188_vm15, %v6124_v38, %v6252_v16  ;;  %vm6189_vm1 = vcmp.ge.f32.partialorder %v6125_v40, 0.0  ;;  %v6253_v11 = vmul.f32 0.2, %v6125_v40  ;;  %v13535_v22 = vpop.f32.mrb[28].mxu0 }
 0x439   :  { %7951 = vst.msk [vmem:[#allocation6 + $0x30] sm:$0xff] %vm6494_vm3, %v7886_v24  ;;  %v6385_v8 = vmul.f32 %v18466_v14, %v6316_v7  ;;  %v6319_v20 = vsel %vm6191_vm0, %v6127_v18, %v6255_v39  ;;  %v14019_v56 = vadd.f32 %v13535_v22, %v18093_v50  ;;  %v5888_v21 = vpop.f32.mrb[29].mxu0  ;;  %13572 = vmatmul.mubr.msk.bf16.vlgmr.msra.gmra.mrb[64].mxu1 %vm6494_vm3, %v6820_v26  ;;  %v18672_v35 = vld [vmem:[#allocation6 + $0x28] sm:$0xff]  ;;  %v7274_v12 = vld [vmem:[#allocation2 + $0xd9] ss:$2 sm:$0xff] }
 0x43a   :  { %v7884_v41 = vld [vmem:[#allocation2 + $0x7a] ss:$2 sm:$0xff]  ;;  %v6456_v38 = vadd.f32 %v18473_v30, %v6387_v23  ;;  %v6388_v60 = vmul.f32 %v18466_v14, %v6319_v20  ;;  %v6317_v1 = vsel %vm6189_vm1, %v6125_v40, %v6253_v11  ;;  %v14020_v46 = vadd.f32 %v5888_v21, %v18097_v61  ;;  %v13536_v52 = vpop.f32.mrb[30].mxu0  ;;  %13588 = vmatpush3.bf16.msra.mxu1 %v18478_v17  ;;  %v7276_v3 = vld [vmem:[#allocation2 + $0xf1] ss:$2 sm:$0xff] }
 0x43b   :  { %7950 = vst.msk [vmem:[#allocation6 + $0x28] sm:$0xff] %vm6494_vm3, %v7884_v41  ;;  %v6454_v50 = vadd.f32 %v18473_v30, %v6385_v8  ;;  %v6386_v49 = vmul.f32 %v18466_v14, %v6317_v1  ;;  %v6130_v18 = vadd.f32 %v14019_v56, %v18455_v31  ;;  %v14021_v45 = vadd.f32 %v13536_v52, %v18099_v29  ;;  %v5891_v16 = vpop.f32.mrb[31].mxu0  ;;  %v7890_v56 = vld [vmem:[#allocation2 + $0xc2] ss:$2 sm:$0xff] }
 0x43c   :  { %13605 = vmatprep.subr.bf16.mxu1 %v14673_v19  ;;  %6631 = vst.msk [vmem:[#allocation2 + $0x151] sm:$0xff] %vm6494_vm3, %v6456_v38  ;;  %v6457_v40 = vadd.f32 %v18473_v30, %v6388_v60  ;;  %v6128_v61 = vadd.f32 %v14020_v46, %v18455_v31  ;;  %v14022_v17 = vadd.f32 %v5891_v16, %v18101_v6  ;;  %v18690_v26 = vld [vmem:[#allocation6 + $0x50] sm:$0xff]  ;;  %v6693_v19 = vld [vmem:[#allocation2 + $0x120] ss:$2 sm:$0xff] }
 0x43d   :  { %6629 = vst.msk [vmem:[#allocation2 + $0x139] sm:$0xff] %vm6494_vm3, %v6454_v50  ;;  %v6455_v44 = vadd.f32 %v18473_v30, %v6386_v49  ;;  %vm6194_vm2 = vcmp.ge.f32.partialorder %v6130_v18, 0.0  ;;  %v6258_v39 = vmul.f32 0.2, %v6130_v18  ;;  %v6131_v29 = vadd.f32 %v14021_v45, %v18455_v31  ;;  %v6691_v6 = vld [vmem:[#allocation2 + $0x108] ss:$2 sm:$0xff] }
 0x43e   :  { %6632 = vst.msk [vmem:[#allocation2 + $0x159] sm:$0xff] %vm6494_vm3, %v6457_v40  ;;  %vm6192_vm4 = vcmp.ge.f32.partialorder %v6128_v61, 0.0  ;;  %v6256_v24 = vmul.f32 0.2, %v6128_v61  ;;  %v6129_v23 = vadd.f32 %v14022_v17, %v18455_v31  ;;  %v6794_v11 = vpack.c.bf16 %v18690_v26, %v18649_v43  ;;  %6752 = vst.msk [vmem:[#allocation6 + $0x60] sm:$0xff] %vm6494_vm3, %v6693_v19  ;;  %v18703_v20 = vld [vmem:[#allocation6 + $0x40] sm:$0xff] }
 0x43f   :  { %v18694_v7 = vld [vmem:[#allocation6 + $0x48] sm:$0xff]  ;;  %7337 = vst.msk [vmem:[#allocation6 + $0x50] sm:$0xff] %vm6494_vm3, %v7276_v3  ;;  %6630 = vst.msk [vmem:[#allocation2 + $0x141] sm:$0xff] %vm6494_vm3, %v6455_v44  ;;  %v6322_v22 = vsel %vm6194_vm2, %v6130_v18, %v6258_v39  ;;  %vm6195_vm5 = vcmp.ge.f32.partialorder %v6131_v29, 0.0  ;;  %v6259_v8 = vmul.f32 0.2, %v6131_v29 }
 0x440   :  { %6751 = vst.msk [vmem:[#allocation6 + $0x58] sm:$0xff] %vm6494_vm3, %v6691_v6  ;;  %7336 = vst.msk [vmem:[#allocation6 + $0x48] sm:$0xff] %vm6494_vm3, %v7274_v12  ;;  %v6391_v21 = vmul.f32 %v18466_v14, %v6322_v22  ;;  %v6320_v41 = vsel %vm6192_vm4, %v6128_v61, %v6256_v24  ;;  %vm6193_vm6 = vcmp.ge.f32.partialorder %v6129_v23, 0.0  ;;  %v6257_v38 = vmul.f32 0.2, %v6129_v23  ;;  %v13539_v60 = vpop.f32.mrb[32].mxu0 }
 0x441   :  { %7953 = vst.msk [vmem:[#allocation6 + $0x40] sm:$0xff] %vm6494_vm3, %v7890_v56  ;;  %v6389_v1 = vmul.f32 %v18466_v14, %v6320_v41  ;;  %v6323_v46 = vsel %vm6195_vm5, %v6131_v29, %v6259_v8  ;;  %v14023_v52 = vadd.f32 %v13539_v60, %v18105_v27  ;;  %v5904_v50 = vpop.f32.mrb[33].mxu0  ;;  %v18710_v49 = vld [vmem:[#allocation6 + $0x38] sm:$0xff]  ;;  %v7278_v6 = vld [vmem:[#allocation2 + $0x109] ss:$2 sm:$0xff] }
 0x442   :  { %v7888_v18 = vld [vmem:[#allocation2 + $0xaa] ss:$2 sm:$0xff]  ;;  %v6460_v16 = vadd.f32 %v18473_v30, %v6391_v21  ;;  %v6392_v40 = vmul.f32 %v18466_v14, %v6323_v46  ;;  %v6321_v61 = vsel %vm6193_vm6, %v6129_v23, %v6257_v38  ;;  %v14024_v17 = vadd.f32 %v5904_v50, %v18109_v5  ;;  %v13540_v12 = vpop.f32.mrb[34].mxu0  ;;  %v7280_v22 = vld [vmem:[#allocation2 + $0x121] ss:$2 sm:$0xff] }
 0x443   :  { %7952 = vst.msk [vmem:[#allocation6 + $0x38] sm:$0xff] %vm6494_vm3, %v7888_v18  ;;  %v6458_v3 = vadd.f32 %v18473_v30, %v6389_v1  ;;  %v6390_v27 = vmul.f32 %v18466_v14, %v6321_v61  ;;  %v6134_v44 = vadd.f32 %v14023_v52, %v18455_v31  ;;  %v14025_v39 = vadd.f32 %v13540_v12, %v18111_v58  ;;  %v5907_v29 = vpop.f32.mrb[35].mxu0  ;;  %v20471_v23 = vld [vmem:[#allocation115_spill] sm:$0xff] }
 0x444   :  { %6635 = vst.msk [vmem:[#allocation2 + $0x181] sm:$0xff] %vm6494_vm3, %v6460_v16  ;;  %v6461_v19 = vadd.f32 %v18473_v30, %v6392_v40  ;;  %v6132_v24 = vadd.f32 %v14024_v17, %v18455_v31  ;;  %v14026_v5 = vadd.f32 %v5907_v29, %v20471_v23  ;;  %v7894_v17 = vld [vmem:[#allocation2 + $0xf2] ss:$2 sm:$0xff] }
 0x445   :  { %6633 = vst.msk [vmem:[#allocation2 + $0x169] sm:$0xff] %vm6494_vm3, %v6458_v3  ;;  %v6459_v56 = vadd.f32 %v18473_v30, %v6390_v27  ;;  %vm6198_vm7 = vcmp.ge.f32.partialorder %v6134_v44, 0.0  ;;  %v6262_v58 = vmul.f32 0.2, %v6134_v44  ;;  %v6135_v21 = vadd.f32 %v14025_v39, %v18455_v31  ;;  %v6697_v41 = vld [vmem:[#allocation2 + $0x150] ss:$2 sm:$0xff] }
 0x446   :  { %v18731_v38 = vld [vmem:[#allocation6 + $0x60] sm:$0xff]  ;;  %6636 = vst.msk [vmem:[#allocation2 + $0x189] sm:$0xff] %vm6494_vm3, %v6461_v19  ;;  %vm6196_vm8 = vcmp.ge.f32.partialorder %v6132_v24, 0.0  ;;  %v6260_v60 = vmul.f32 0.2, %v6132_v24  ;;  %v6133_v1 = vadd.f32 %v14026_v5, %v18455_v31  ;;  %6754 = vst.msk [vmem:[#allocation6 + $0x70] sm:$0xff] %vm6494_vm3, %v6697_v41 }
 0x447   :  { %v6808_v46 = vld [vmem:[#allocation6 + $0x58] sm:$0xff]  ;;  %7339 = vst.msk [vmem:[#allocation6 + $0x60] sm:$0xff] %vm6494_vm3, %v7280_v22  ;;  %6634 = vst.msk [vmem:[#allocation2 + $0x171] sm:$0xff] %vm6494_vm3, %v6459_v56  ;;  %v6326_v18 = vsel %vm6198_vm7, %v6134_v44, %v6262_v58  ;;  %vm6199_vm9 = vcmp.ge.f32.partialorder %v6135_v21, 0.0  ;;  %v6263_v16 = vmul.f32 0.2, %v6135_v21 }
 0x448   :  { %v6695_v52 = vld [vmem:[#allocation2 + $0x138] ss:$2 sm:$0xff]  ;;  %v6821_v40 = vpack.c.bf16 %v6808_v46, %v18694_v7  ;;  %7338 = vst.msk [vmem:[#allocation6 + $0x58] sm:$0xff] %vm6494_vm3, %v7278_v6  ;;  %v18743_v61 = vld [vmem:[#allocation6 + $0x50] sm:$0xff]  ;;  %v6395_v12 = vmul.f32 %v18466_v14, %v6326_v18  ;;  %v6324_v3 = vsel %vm6196_vm8, %v6132_v24, %v6260_v60  ;;  %vm6197_vm10 = vcmp.ge.f32.partialorder %v6133_v1, 0.0  ;;  %v13543_v39 = vpop.f32.mrb[36].mxu0 }
 0x449   :  { %6753 = vst.msk [vmem:[#allocation6 + $0x68] sm:$0xff] %vm6494_vm3, %v6695_v52  ;;  %v6261_v27 = vmul.f32 0.2, %v6133_v1  ;;  %7955 = vst.msk [vmem:[#allocation6 + $0x50] sm:$0xff] %vm6494_vm3, %v7894_v17  ;;  %v6393_v44 = vmul.f32 %v18466_v14, %v6324_v3  ;;  %v6327_v29 = vsel %vm6199_vm9, %v6135_v21, %v6263_v16  ;;  %v20472_v7 = vld [vmem:[#allocation124_spill] sm:$0xff]  ;;  %v5920_v23 = vpop.f32.mrb[37].mxu0 }
 0x44a   :  { %v14027_v19 = vadd.f32 %v13543_v39, %v20472_v7  ;;  %13575 = vmatprep.mubr.msk.bf16.mxu1 %vm6494_vm3, %v6821_v40  ;;  %v18753_v6 = vld [vmem:[#allocation6 + $0x48] sm:$0xff]  ;;  %v6464_v24 = vadd.f32 %v18473_v30, %v6395_v12  ;;  %v6396_v56 = vmul.f32 %v18466_v14, %v6327_v29  ;;  %v14028_v41 = vadd.f32 %v5920_v23, %v18121_v48  ;;  %v13544_v60 = vpop.f32.mrb[38].mxu0  ;;  %v20473_v17 = vld [vmem:[#allocation49_spill] sm:$0xff] }
 0x44b   :  { %v7892_v22 = vld [vmem:[#allocation2 + $0xda] ss:$2 sm:$0xff]  ;;  %v6325_v58 = vsel %vm6197_vm10, %v6133_v1, %v6261_v27  ;;  %v6462_v21 = vadd.f32 %v18473_v30, %v6393_v44  ;;  %v14029_v18 = vadd.f32 %v13544_v60, %v18123_v9  ;;  %v5923_v16 = vpop.f32.mrb[39].mxu0  ;;  %v7282_v12 = vld [vmem:[#allocation2 + $0x139] ss:$2 sm:$0xff] }
 0x44c   :  { %7954 = vst.msk [vmem:[#allocation6 + $0x48] sm:$0xff] %vm6494_vm3, %v7892_v22  ;;  %v6394_v46 = vmul.f32 %v18466_v14, %v6325_v58  ;;  %v6138_v52 = vadd.f32 %v14027_v19, %v18455_v31  ;;  %6639 = vst.msk [vmem:[#allocation2 + $0x1e1] sm:$0xff] %vm6494_vm3, %v6464_v24  ;;  %v6465_v40 = vadd.f32 %v18473_v30, %v6396_v56  ;;  %v7284_v3 = vld [vmem:[#allocation2 + $0x151] ss:$2 sm:$0xff]  ;;  %v7898_v60 = vld [vmem:[#allocation2 + $0x122] ss:$2 sm:$0xff] }
 0x44d   :  { %v6136_v1 = vadd.f32 %v14028_v41, %v18455_v31  ;;  %v14030_v48 = vadd.f32 %v5923_v16, %v20473_v17  ;;  %6637 = vst.msk [vmem:[#allocation2 + $0x1c9] sm:$0xff] %vm6494_vm3, %v6462_v21  ;;  %v6139_v44 = vadd.f32 %v14029_v18, %v18455_v31  ;;  %v18770_v9 = vld [vmem:[#allocation6 + $0x70] sm:$0xff]  ;;  %v6701_v29 = vld [vmem:[#allocation2 + $0x180] ss:$2 sm:$0xff] }
 0x44e   :  { %v6463_v27 = vadd.f32 %v18473_v30, %v6394_v46  ;;  %vm6202_vm11 = vcmp.ge.f32.partialorder %v6138_v52, 0.0  ;;  %v6266_v39 = vmul.f32 0.2, %v6138_v52  ;;  %6640 = vst.msk [vmem:[#allocation2 + $0x1e9] sm:$0xff] %vm6494_vm3, %v6465_v40  ;;  %v6699_v23 = vld [vmem:[#allocation2 + $0x168] ss:$2 sm:$0xff]  ;;  %v6795_v24 = vpack.c.bf16 %v18770_v9, %v18731_v38 }
 0x44f   :  { %vm6200_vm12 = vcmp.ge.f32.partialorder %v6136_v1, 0.0  ;;  %v6264_v7 = vmul.f32 0.2, %v6136_v1  ;;  %v6137_v19 = vadd.f32 %v14030_v48, %v18455_v31  ;;  %6756 = vst.msk [vmem:[#allocation6 + $0x80] sm:$0xff] %vm6494_vm3, %v6701_v29  ;;  %7341 = vst.msk [vmem:[#allocation6 + $0x70] sm:$0xff] %vm6494_vm3, %v7284_v3  ;;  %vm6203_vm13 = vcmp.ge.f32.partialorder %v6139_v44, 0.0 }
 0x450   :  { %v18774_v22 = vld [vmem:[#allocation6 + $0x68] sm:$0xff]  ;;  %6638 = vst.msk [vmem:[#allocation2 + $0x1d1] sm:$0xff] %vm6494_vm3, %v6463_v27  ;;  %v6330_v56 = vsel %vm6202_vm11, %v6138_v52, %v6266_v39  ;;  %v6267_v58 = vmul.f32 0.2, %v6139_v44  ;;  %6755 = vst.msk [vmem:[#allocation6 + $0x78] sm:$0xff] %vm6494_vm3, %v6699_v23  ;;  %v18783_v41 = vld [vmem:[#allocation6 + $0x60] sm:$0xff] }
 0x451   :  { %7340 = vst.msk [vmem:[#allocation6 + $0x68] sm:$0xff] %vm6494_vm3, %v7282_v12  ;;  %v6399_v21 = vmul.f32 %v18466_v14, %v6330_v56  ;;  %v6328_v46 = vsel %vm6200_vm12, %v6136_v1, %v6264_v7  ;;  %vm6201_vm14 = vcmp.ge.f32.partialorder %v6137_v19, 0.0  ;;  %v6265_v18 = vmul.f32 0.2, %v6137_v19  ;;  %v13547_v16 = vpop.f32.mrb[40].mxu0  ;;  %7957 = vst.msk [vmem:[#allocation6 + $0x60] sm:$0xff] %vm6494_vm3, %v7898_v60 }
 0x452   :  { %v6397_v52 = vmul.f32 %v18466_v14, %v6328_v46  ;;  %v6331_v40 = vsel %vm6203_vm13, %v6139_v44, %v6267_v58  ;;  %v20474_v17 = vld [vmem:[#allocation50_spill] sm:$0xff]  ;;  %v5936_v3 = vpop.f32.mrb[41].mxu0  ;;  %v18790_v27 = vld [vmem:[#allocation6 + $0x58] sm:$0xff]  ;;  %v20475_v46 = vld [vmem:[#allocation51_spill] sm:$0xff] }
 0x453   :  { %v14031_v48 = vadd.f32 %v13547_v16, %v20474_v17  ;;  %v7896_v12 = vld [vmem:[#allocation2 + $0x10a] ss:$2 sm:$0xff]  ;;  %v6468_v29 = vadd.f32 %v18473_v30, %v6399_v21  ;;  %v6400_v1 = vmul.f32 %v18466_v14, %v6331_v40  ;;  %v6329_v7 = vsel %vm6201_vm14, %v6137_v19, %v6265_v18  ;;  %v13548_v56 = vpop.f32.mrb[42].mxu0  ;;  %v7286_v40 = vld [vmem:[#allocation2 + $0x169] ss:$2 sm:$0xff] }
 0x454   :  { %v14032_v23 = vadd.f32 %v5936_v3, %v18133_v57  ;;  %7956 = vst.msk [vmem:[#allocation6 + $0x58] sm:$0xff] %vm6494_vm3, %v7896_v12  ;;  %v6466_v44 = vadd.f32 %v18473_v30, %v6397_v52  ;;  %v6398_v58 = vmul.f32 %v18466_v14, %v6329_v7  ;;  %v14033_v16 = vadd.f32 %v13548_v56, %v20475_v46  ;;  %v5939_v17 = vpop.f32.mrb[43].mxu0  ;;  %v20476_v18 = vld [vmem:[#allocation52_spill] sm:$0xff]  ;;  %v7288_v3 = vld [vmem:[#allocation2 + $0x181] ss:$2 sm:$0xff] }
 0x455   :  { %v6142_v60 = vadd.f32 %v14031_v48, %v18455_v31  ;;  %6643 = vst.msk [vmem:[#allocation2 + $0x211] sm:$0xff] %vm6494_vm3, %v6468_v29  ;;  %v6469_v21 = vadd.f32 %v18473_v30, %v6400_v1  ;;  %v14034_v57 = vadd.f32 %v5939_v17, %v20476_v18  ;;  %v18813_v12 = vld [vmem:[%s20076_s2] ss:$0 sm:$0xff]  ;;  %v18834_v18 = vld [vmem:[%s20076_s2 + $0x1] ss:$0 sm:$0xff] }
 0x456   :  { %v6140_v19 = vadd.f32 %v14032_v23, %v18455_v31  ;;  %6641 = vst.msk [vmem:[#allocation2 + $0x1f9] sm:$0xff] %vm6494_vm3, %v6466_v44  ;;  %v6467_v14 = vadd.f32 %v18473_v30, %v6398_v58  ;;  %v6143_v31 = vadd.f32 %v18813_v12, %v14033_v16  ;;  %v6709_v29 = vld [vmem:[#allocation2 + $0x1e0] ss:$2 sm:$0xff]  ;;  %v18829_v17 = vld [vmem:[#allocation6 + $0x70] sm:$0xff] }
 0x457   :  { %vm6206_vm15 = vcmp.ge.f32.partialorder %v6142_v60, 0.0  ;;  %v6270_v48 = vmul.f32 0.2, %v6142_v60  ;;  %v18816_v1 = vld [vmem:[#allocation6 + $0x80] sm:$0xff]  ;;  %6644 = vst.msk [vmem:[#allocation2 + $0x219] sm:$0xff] %vm6494_vm3, %v6469_v21  ;;  %v6141_v23 = vadd.f32 %v18813_v12, %v14034_v57  ;;  %v6810_v56 = vld [vmem:[#allocation6 + $0x78] sm:$0xff] }
 0x458   :  { %vm6204_vm0 = vcmp.ge.f32.partialorder %v6140_v19, 0.0  ;;  %v6268_v7 = vmul.f32 0.2, %v6140_v19  ;;  %v6707_v30 = vld [vmem:[#allocation2 + $0x1c8] ss:$2 sm:$0xff]  ;;  %6760 = vst.msk [vmem:[#allocation6 + $0xa0] sm:$0xff] %vm6494_vm3, %v6709_v29  ;;  %v6822_v16 = vpack.c.bf16 %v6810_v56, %v18774_v22 }
 0x459   :  { %7343 = vst.msk [vmem:[#allocation6 + $0x80] sm:$0xff] %vm6494_vm3, %v7288_v3  ;;  %6642 = vst.msk [vmem:[#allocation2 + $0x201] sm:$0xff] %vm6494_vm3, %v6467_v14  ;;  %v6334_v58 = vsel %vm6206_vm15, %v6142_v60, %v6270_v48  ;;  %vm6207_vm1 = vcmp.ge.f32.partialorder %v6143_v31, 0.0  ;;  %v6271_v46 = vmul.f32 0.2, %v6143_v31  ;;  %vm6205_vm2 = vcmp.ge.f32.partialorder %v6141_v23, 0.0 }
 0x45a   :  { %7342 = vst.msk [vmem:[#allocation6 + $0x78] sm:$0xff] %vm6494_vm3, %v7286_v40  ;;  %6759 = vst.msk [vmem:[#allocation6 + $0x98] sm:$0xff] %vm6494_vm3, %v6707_v30  ;;  %v7902_v21 = vld [vmem:[#allocation2 + $0x152] ss:$2 sm:$0xff]  ;;  %v6403_v57 = vmul.f32 %v18834_v18, %v6334_v58  ;;  %v6332_v60 = vsel %vm6204_vm0, %v6140_v19, %v6268_v7  ;;  %v6269_v3 = vmul.f32 0.2, %v6141_v23  ;;  %13576 = vmatmul.mubr.msk.bf16.gmra.mrb[68].mxu1 %vm6494_vm3, %v6822_v16 }
 0x45b   :  { %v13551_v14 = vpop.f32.mrb[44].mxu0  ;;  %7959 = vst.msk [vmem:[#allocation6 + $0x70] sm:$0xff] %vm6494_vm3, %v7902_v21  ;;  %v6401_v22 = vmul.f32 %v18834_v18, %v6332_v60  ;;  %v6335_v40 = vsel %vm6207_vm1, %v6143_v31, %v6271_v46  ;;  %v20477_v48 = vld [vmem:[#allocation53_spill] sm:$0xff]  ;;  %v18844_v39 = vld [vmem:[#allocation6 + $0x68] sm:$0xff] }
 0x45c   :  { %v14035_v29 = vadd.f32 %v13551_v14, %v20477_v48  ;;  %v5952_v56 = vpop.f32.mrb[45].mxu0  ;;  %v7900_v58 = vld [vmem:[#allocation2 + $0x13a] ss:$2 sm:$0xff]  ;;  %v6404_v31 = vmul.f32 %v18834_v18, %v6335_v40  ;;  %v6333_v46 = vsel %vm6205_vm2, %v6141_v23, %v6269_v3  ;;  %v20479_v3 = vld [vmem:[#allocation55_spill] sm:$0xff] }
 0x45d   :  { %v18849_v19 = vld [vmem:[%s20076_s2 + $0x2] ss:$0 sm:$0xff]  ;;  %v20478_v21 = vld [vmem:[#allocation54_spill] sm:$0xff]  ;;  %v13552_v14 = vpop.f32.mrb[46].mxu0  ;;  %7958 = vst.msk [vmem:[#allocation6 + $0x68] sm:$0xff] %vm6494_vm3, %v7900_v58  ;;  %v6402_v48 = vmul.f32 %v18834_v18, %v6333_v46 }
 0x45e   :  { %v6472_v7 = vadd.f32 %v18849_v19, %v6403_v57  ;;  %v14036_v60 = vadd.f32 %v5952_v56, %v20478_v21  ;;  %v6470_v16 = vadd.f32 %v18849_v19, %v6401_v22  ;;  %v6146_v45 = vadd.f32 %v18813_v12, %v14035_v29  ;;  %v5955_v52 = vpop.f32.mrb[47].mxu0  ;;  %v7294_v56 = vld [vmem:[#allocation2 + $0x1c9] ss:$2 sm:$0xff]  ;;  %v6713_v46 = vld [vmem:[#allocation2 + $0x210] ss:$2 sm:$0xff] }
 0x45f   :  { %v14037_v28 = vadd.f32 %v13552_v14, %v18147_v33  ;;  %v6473_v57 = vadd.f32 %v18849_v19, %v6404_v31  ;;  %v14038_v40 = vadd.f32 %v5955_v52, %v20479_v3  ;;  %v7296_v21 = vld [vmem:[#allocation2 + $0x1e1] ss:$2 sm:$0xff]  ;;  %v6471_v22 = vadd.f32 %v18849_v19, %v6402_v48  ;;  %6762 = vst.msk [vmem:[#allocation6 + $0xb0] sm:$0xff] %vm6494_vm3, %v6713_v46  ;;  %v7904_v48 = vld [vmem:[#allocation2 + $0x16a] ss:$2 sm:$0xff]  ;;  %v13555_v46 = vpop.f32.mrb[48].mxu0 }
 0x460   :  { %6647 = vst.msk [vmem:[#allocation2 + $0x241] sm:$0xff] %vm6494_vm3, %v6472_v7  ;;  %v6144_v23 = vadd.f32 %v18813_v12, %v14036_v60  ;;  %6645 = vst.msk [vmem:[#allocation2 + $0x229] sm:$0xff] %vm6494_vm3, %v6470_v16  ;;  %vm6210_vm4 = vcmp.ge.f32.partialorder %v6146_v45, 0.0  ;;  %v6274_v58 = vmul.f32 0.2, %v6146_v45  ;;  %v18866_v33 = vld [vmem:[#allocation6 + $0xa0] sm:$0xff] }
 0x461   :  { %v6147_v29 = vadd.f32 %v18813_v12, %v14037_v28  ;;  %6648 = vst.msk [vmem:[#allocation2 + $0x249] sm:$0xff] %vm6494_vm3, %v6473_v57  ;;  %v6145_v31 = vadd.f32 %v18813_v12, %v14038_v40  ;;  %v6711_v52 = vld [vmem:[#allocation2 + $0x1f8] ss:$2 sm:$0xff]  ;;  %7347 = vst.msk [vmem:[#allocation6 + $0xa0] sm:$0xff] %vm6494_vm3, %v7296_v21 }
 0x462   :  { %vm6208_vm5 = vcmp.ge.f32.partialorder %v6144_v23, 0.0  ;;  %v6272_v7 = vmul.f32 0.2, %v6144_v23  ;;  %v18870_v60 = vld [vmem:[#allocation6 + $0x98] sm:$0xff]  ;;  %6646 = vst.msk [vmem:[#allocation2 + $0x231] sm:$0xff] %vm6494_vm3, %v6471_v22  ;;  %v6338_v14 = vsel %vm6210_vm4, %v6146_v45, %v6274_v58  ;;  %6761 = vst.msk [vmem:[#allocation6 + $0xa8] sm:$0xff] %vm6494_vm3, %v6711_v52 }
 0x463   :  { %vm6211_vm6 = vcmp.ge.f32.partialorder %v6147_v29, 0.0  ;;  %v6275_v28 = vmul.f32 0.2, %v6147_v29  ;;  %7346 = vst.msk [vmem:[#allocation6 + $0x98] sm:$0xff] %vm6494_vm3, %v7294_v56  ;;  %v18877_v16 = vld [vmem:[#allocation6 + $0x78] sm:$0xff]  ;;  %v6407_v57 = vmul.f32 %v18834_v18, %v6338_v14  ;;  %vm6209_vm7 = vcmp.ge.f32.partialorder %v6145_v31, 0.0 }
 0x464   :  { %v6336_v3 = vsel %vm6208_vm5, %v6144_v23, %v6272_v7  ;;  %v6273_v40 = vmul.f32 0.2, %v6145_v31  ;;  %7960 = vst.msk [vmem:[#allocation6 + $0x78] sm:$0xff] %vm6494_vm3, %v7904_v48  ;;  %v20480_v22 = vld [vmem:[#allocation56_spill] sm:$0xff]  ;;  %v5968_v52 = vpop.f32.mrb[49].mxu0  ;;  %v18886_v8 = vld [vmem:[#allocation6 + $0x80] sm:$0xff] }
 0x465   :  { %v6405_v45 = vmul.f32 %v18834_v18, %v6336_v3  ;;  %v6339_v21 = vsel %vm6211_vm6, %v6147_v29, %v6275_v28  ;;  %v14039_v58 = vadd.f32 %v13555_v46, %v20480_v22  ;;  %v7906_v42 = vld [vmem:[#allocation2 + $0x182] ss:$2 sm:$0xff]  ;;  %v6476_v14 = vadd.f32 %v18849_v19, %v6407_v57  ;;  %v13556_v48 = vpop.f32.mrb[50].mxu0 }
 0x466   :  { %v6408_v23 = vmul.f32 %v18834_v18, %v6339_v21  ;;  %v6337_v7 = vsel %vm6209_vm7, %v6145_v31, %v6273_v40  ;;  %v14040_v30 = vadd.f32 %v5968_v52, %v18157_v53  ;;  %7961 = vst.msk [vmem:[#allocation6 + $0x80] sm:$0xff] %vm6494_vm3, %v7906_v42  ;;  %v20481_v46 = vld [vmem:[#allocation57_spill] sm:$0xff]  ;;  %v5971_v56 = vpop.f32.mrb[51].mxu0 }
 0x467   :  { %v6474_v29 = vadd.f32 %v18849_v19, %v6405_v45  ;;  %v6406_v28 = vmul.f32 %v18834_v18, %v6337_v7  ;;  %v6150_v3 = vadd.f32 %v18813_v12, %v14039_v58  ;;  %v14041_v22 = vadd.f32 %v13556_v48, %v20481_v46  ;;  %6651 = vst.msk [vmem:[#allocation2 + $0x271] sm:$0xff] %vm6494_vm3, %v6476_v14  ;;  %v7298_v40 = vld [vmem:[#allocation2 + $0x1f9] ss:$2 sm:$0xff]  ;;  %v18905_v7 = vld [vmem:[#allocation6 + $0xb0] sm:$0xff]  ;;  %v13559_v42 = vpop.f32.mrb[52].mxu0 }
 0x468   :  { %v6477_v57 = vadd.f32 %v18849_v19, %v6408_v23  ;;  %v6148_v31 = vadd.f32 %v18813_v12, %v14040_v30  ;;  %v14042_v53 = vadd.f32 %v5971_v56, %v18161_v25  ;;  %v7300_v21 = vld [vmem:[#allocation2 + $0x211] ss:$2 sm:$0xff]  ;;  %v6717_v14 = vld [vmem:[#allocation2 + $0x240] ss:$2 sm:$0xff]  ;;  %v20494_v32 = vpack.c.bf16 %v18905_v7, %v18866_v33 }
 0x469   :  { %6649 = vst.msk [vmem:[#allocation2 + $0x259] sm:$0xff] %vm6494_vm3, %v6474_v29  ;;  %v6475_v45 = vadd.f32 %v18849_v19, %v6406_v28  ;;  %vm6214_vm8 = vcmp.ge.f32.partialorder %v6150_v3, 0.0  ;;  %v6278_v58 = vmul.f32 0.2, %v6150_v3  ;;  %v6151_v52 = vadd.f32 %v18813_v12, %v14041_v22  ;;  %v6812_v56 = vld [vmem:[#allocation6 + $0xa8] sm:$0xff]  ;;  %6764 = vst.msk [vmem:[#allocation6 + $0xc0] sm:$0xff] %vm6494_vm3, %v6717_v14 }
 0x46a   :  { %6652 = vst.msk [vmem:[#allocation2 + $0x279] sm:$0xff] %vm6494_vm3, %v6477_v57  ;;  %vm6212_vm9 = vcmp.ge.f32.partialorder %v6148_v31, 0.0  ;;  %v6276_v25 = vmul.f32 0.2, %v6148_v31  ;;  %v6149_v30 = vadd.f32 %v18813_v12, %v14042_v53  ;;  %v6715_v23 = vld [vmem:[#allocation2 + $0x228] ss:$2 sm:$0xff]  ;;  %v6823_v46 = vpack.c.bf16 %v6812_v56, %v18870_v60 }
 0x46b   :  { %7349 = vst.msk [vmem:[#allocation6 + $0xb0] sm:$0xff] %vm6494_vm3, %v7300_v21  ;;  %6650 = vst.msk [vmem:[#allocation2 + $0x261] sm:$0xff] %vm6494_vm3, %v6475_v45  ;;  %v6342_v29 = vsel %vm6214_vm8, %v6150_v3, %v6278_v58  ;;  %vm6215_vm10 = vcmp.ge.f32.partialorder %v6151_v52, 0.0  ;;  %v6279_v28 = vmul.f32 0.2, %v6151_v52  ;;  %v18917_v22 = vld [vmem:[#allocation6 + $0xa0] sm:$0xff]  ;;  %v14043_v60 = vadd.f32 %v13559_v42, %v18164_v63 }
 0x46c   :  { %7348 = vst.msk [vmem:[#allocation6 + $0xa8] sm:$0xff] %vm6494_vm3, %v7298_v40  ;;  %6763 = vst.msk [vmem:[#allocation6 + $0xb8] sm:$0xff] %vm6494_vm3, %v6715_v23  ;;  %v7914_v57 = vld [vmem:[#allocation2 + $0x1e2] ss:$2 sm:$0xff]  ;;  %v6411_v53 = vmul.f32 %v18834_v18, %v6342_v29  ;;  %v6340_v14 = vsel %vm6212_vm9, %v6148_v31, %v6276_v25  ;;  %vm6213_vm11 = vcmp.ge.f32.partialorder %v6149_v30, 0.0  ;;  %v5984_v40 = vpop.f32.mrb[53].mxu0  ;;  %13579 = vmatprep.mubr.msk.bf16.mxu1 %vm6494_vm3, %v6823_v46 }
 0x46d   :  { %v6277_v21 = vmul.f32 0.2, %v6149_v30  ;;  %7965 = vst.msk [vmem:[#allocation6 + $0xa0] sm:$0xff] %vm6494_vm3, %v7914_v57  ;;  %v6409_v3 = vmul.f32 %v18834_v18, %v6340_v14  ;;  %v6343_v45 = vsel %vm6215_vm10, %v6151_v52, %v6279_v28  ;;  %v18925_v58 = vld [vmem:[#allocation6 + $0x98] sm:$0xff]  ;;  %v14044_v29 = vadd.f32 %v5984_v40, %v18168_v55  ;;  %v13560_v5 = vpop.f32.mrb[54].mxu0 }
 0x46e   :  { %v7912_v56 = vld [vmem:[#allocation2 + $0x1ca] ss:$2 sm:$0xff]  ;;  %v6480_v23 = vadd.f32 %v18849_v19, %v6411_v53  ;;  %v6412_v31 = vmul.f32 %v18834_v18, %v6343_v45  ;;  %v6154_v42 = vadd.f32 %v18813_v12, %v14043_v60  ;;  %v14045_v28 = vadd.f32 %v13560_v5, %v18170_v10  ;;  %v5987_v46 = vpop.f32.mrb[55].mxu0  ;;  %v7302_v14 = vld [vmem:[#allocation2 + $0x229] ss:$2 sm:$0xff] }
 0x46f   :  { %v6341_v25 = vsel %vm6213_vm11, %v6149_v30, %v6277_v21  ;;  %7964 = vst.msk [vmem:[#allocation6 + $0x98] sm:$0xff] %vm6494_vm3, %v7912_v56  ;;  %v6478_v52 = vadd.f32 %v18849_v19, %v6409_v3  ;;  %v6152_v30 = vadd.f32 %v18813_v12, %v14044_v29  ;;  %v20482_v53 = vld [vmem:[#allocation58_spill] sm:$0xff]  ;;  %vm8602_vm9 = vcmask 261120  }
 0x470   :  { %v6410_v63 = vmul.f32 %v18834_v18, %v6341_v25  ;;  %6655 = vst.msk [vmem:[#allocation2 + $0x2a1] sm:$0xff] %vm6494_vm3, %v6480_v23  ;;  %v6481_v57 = vadd.f32 %v18849_v19, %v6412_v31  ;;  %v14046_v55 = vadd.f32 %v5987_v46, %v20482_v53  ;;  %v7304_v21 = vld [vmem:[#allocation2 + $0x241] ss:$2 sm:$0xff]  ;;  %vm6218_vm12 = vcmp.ge.f32.partialorder %v6154_v42, 0.0 }
 0x471   :  { %6653 = vst.msk [vmem:[#allocation2 + $0x289] sm:$0xff] %vm6494_vm3, %v6478_v52  ;;  %v6282_v45 = vmul.f32 0.2, %v6154_v42  ;;  %v6155_v60 = vadd.f32 %v18813_v12, %v14045_v28  ;;  %v18942_v10 = vld [vmem:[#allocation6 + $0xc0] sm:$0xff]  ;;  %v6721_v5 = vld [vmem:[#allocation2 + $0x270] ss:$2 sm:$0xff] }
 0x472   :  { %v6479_v3 = vadd.f32 %v18849_v19, %v6410_v63  ;;  %6656 = vst.msk [vmem:[#allocation2 + $0x2a9] sm:$0xff] %vm6494_vm3, %v6481_v57  ;;  %vm6216_vm13 = vcmp.ge.f32.partialorder %v6152_v30, 0.0  ;;  %v6280_v40 = vmul.f32 0.2, %v6152_v30  ;;  %v6153_v56 = vadd.f32 %v18813_v12, %v14046_v55  ;;  %v6719_v23 = vld [vmem:[#allocation2 + $0x258] ss:$2 sm:$0xff] }
 0x473   :  { %v18946_v31 = vld [vmem:[#allocation6 + $0xb8] sm:$0xff]  ;;  %v6797_v25 = vpack.c.bf16 %v18942_v10, %v18905_v7  ;;  %6766 = vst.msk [vmem:[#allocation6 + $0xd0] sm:$0xff] %vm6494_vm3, %v6721_v5  ;;  %7351 = vst.msk [vmem:[#allocation6 + $0xc0] sm:$0xff] %vm6494_vm3, %v7304_v21  ;;  %v6346_v29 = vsel %vm6218_vm12, %v6154_v42, %v6282_v45  ;;  %vm6219_vm14 = vcmp.ge.f32.partialorder %v6155_v60, 0.0  ;;  %v6283_v52 = vmul.f32 0.2, %v6155_v60 }
 0x474   :  { %6654 = vst.msk [vmem:[#allocation2 + $0x291] sm:$0xff] %vm6494_vm3, %v6479_v3  ;;  %6765 = vst.msk [vmem:[#allocation6 + $0xc8] sm:$0xff] %vm6494_vm3, %v6719_v23  ;;  %v18955_v63 = vld [vmem:[#allocation6 + $0xb0] sm:$0xff]  ;;  %v6415_v46 = vmul.f32 %v18834_v18, %v6346_v29  ;;  %v6344_v57 = vsel %vm6216_vm13, %v6152_v30, %v6280_v40  ;;  %vm6217_vm15 = vcmp.ge.f32.partialorder %v6153_v56, 0.0  ;;  %v6281_v53 = vmul.f32 0.2, %v6153_v56 }
 0x475   :  { %7350 = vst.msk [vmem:[#allocation6 + $0xb8] sm:$0xff] %vm6494_vm3, %v7302_v14  ;;  %v7918_v28 = vld [vmem:[#allocation2 + $0x212] ss:$2 sm:$0xff]  ;;  %v13563_v55 = vpop.f32.mrb[56].mxu0  ;;  %v6413_v42 = vmul.f32 %v18834_v18, %v6344_v57  ;;  %v6347_v21 = vsel %vm6219_vm14, %v6155_v60, %v6283_v52  ;;  %v18962_v23 = vld [vmem:[#allocation6 + $0xa8] sm:$0xff]  ;;  %vm8604_vm10 = vcmask 254976  }
 0x476   :  { %7967 = vst.msk [vmem:[#allocation6 + $0xb0] sm:$0xff] %vm6494_vm3, %v7918_v28  ;;  %v20483_v3 = vld [vmem:[#allocation59_spill] sm:$0xff]  ;;  %v6000_v5 = vpop.f32.mrb[57].mxu0  ;;  %v7916_v14 = vld [vmem:[#allocation2 + $0x1fa] ss:$2 sm:$0xff]  ;;  %v6484_v29 = vadd.f32 %v18849_v19, %v6415_v46  ;;  %v6416_v30 = vmul.f32 %v18834_v18, %v6347_v21  ;;  %v6345_v40 = vsel %vm6217_vm15, %v6153_v56, %v6281_v53 }
 0x477   :  { %v14047_v45 = vadd.f32 %v13563_v55, %v20483_v3  ;;  %v14048_v48 = vadd.f32 %v6000_v5, %v18180_v62  ;;  %v13564_v28 = vpop.f32.mrb[58].mxu0  ;;  %7966 = vst.msk [vmem:[#allocation6 + $0xa8] sm:$0xff] %vm6494_vm3, %v7916_v14  ;;  %v6482_v60 = vadd.f32 %v18849_v19, %v6413_v42  ;;  %v6414_v52 = vmul.f32 %v18834_v18, %v6345_v40  ;;  %v20484_v53 = vld [vmem:[#allocation60_spill] sm:$0xff] }
 0x478   :  { %v14049_v55 = vadd.f32 %v13564_v28, %v18182_v4  ;;  %v6003_v3 = vpop.f32.mrb[59].mxu0  ;;  %6659 = vst.msk [vmem:[#allocation2 + $0x2d1] sm:$0xff] %vm6494_vm3, %v6484_v29  ;;  %v6485_v46 = vadd.f32 %v18849_v19, %v6416_v30  ;;  %v7306_v21 = vld [vmem:[#allocation2 + $0x259] ss:$2 sm:$0xff] }
 0x479   :  { %v6158_v57 = vadd.f32 %v18813_v12, %v14047_v45  ;;  %v6156_v56 = vadd.f32 %v18813_v12, %v14048_v48  ;;  %v14050_v62 = vadd.f32 %v6003_v3, %v20484_v53  ;;  %v7308_v5 = vld [vmem:[#allocation2 + $0x271] ss:$2 sm:$0xff]  ;;  %6657 = vst.msk [vmem:[#allocation2 + $0x2b9] sm:$0xff] %vm6494_vm3, %v6482_v60  ;;  %v6483_v45 = vadd.f32 %v18849_v19, %v6414_v52  ;;  %v6725_v29 = vld [vmem:[#allocation2 + $0x2a0] ss:$2 sm:$0xff]  ;;  %v13567_v42 = vpop.f32.mrb[60].mxu0 }
 0x47a   :  { %v6159_v14 = vadd.f32 %v18813_v12, %v14049_v55  ;;  %v18983_v40 = vld [vmem:[#allocation6 + $0xd0] sm:$0xff]  ;;  %6660 = vst.msk [vmem:[#allocation2 + $0x2d9] sm:$0xff] %vm6494_vm3, %v6485_v46  ;;  %6768 = vst.msk [vmem:[#allocation6 + $0xe0] sm:$0xff] %vm6494_vm3, %v6725_v29  ;;  %v18995_v53 = vld [vmem:[#allocation6 + $0xc0] sm:$0xff] }
 0x47b   :  { %vm6222_vm0 = vcmp.ge.f32.partialorder %v6158_v57, 0.0  ;;  %v6286_v4 = vmul.f32 0.2, %v6158_v57  ;;  %vm6220_vm1 = vcmp.ge.f32.partialorder %v6156_v56, 0.0  ;;  %v6284_v48 = vmul.f32 0.2, %v6156_v56 }
 0x47c   :  { %v6157_v30 = vadd.f32 %v18813_v12, %v14050_v62  ;;  %v6814_v28 = vld [vmem:[#allocation6 + $0xc8] sm:$0xff]  ;;  %7353 = vst.msk [vmem:[#allocation6 + $0xd0] sm:$0xff] %vm6494_vm3, %v7308_v5  ;;  %6658 = vst.msk [vmem:[#allocation2 + $0x2c1] sm:$0xff] %vm6494_vm3, %v6483_v45  ;;  %vm6223_vm2 = vcmp.ge.f32.partialorder %v6159_v14, 0.0  ;;  %v6287_v55 = vmul.f32 0.2, %v6159_v14 }
 0x47d   :  { %v6723_v3 = vld [vmem:[#allocation2 + $0x288] ss:$2 sm:$0xff]  ;;  %v6350_v52 = vsel %vm6222_vm0, %v6158_v57, %v6286_v4  ;;  %v6824_v46 = vpack.c.bf16 %v6814_v28, %v18946_v31  ;;  %7352 = vst.msk [vmem:[#allocation6 + $0xc8] sm:$0xff] %vm6494_vm3, %v7306_v21  ;;  %v6348_v34 = vsel %vm6220_vm1, %v6156_v56, %v6284_v48  ;;  %v20485_v31 = vld [vmem:[#allocation61_spill] sm:$0xff]  ;;  %v6016_v21 = vpop.f32.mrb[61].mxu0 }
 0x47e   :  { %6767 = vst.msk [vmem:[#allocation6 + $0xd8] sm:$0xff] %vm6494_vm3, %v6723_v3  ;;  %v7922_v62 = vld [vmem:[#allocation2 + $0x242] ss:$2 sm:$0xff]  ;;  %v6419_v29 = vmul.f32 %v18834_v18, %v6350_v52  ;;  %vm6221_vm4 = vcmp.ge.f32.partialorder %v6157_v30, 0.0  ;;  %v6285_v5 = vmul.f32 0.2, %v6157_v30  ;;  %v6417_v57 = vmul.f32 %v18834_v18, %v6348_v34 }
 0x47f   :  { %7969 = vst.msk [vmem:[#allocation6 + $0xc0] sm:$0xff] %vm6494_vm3, %v7922_v62  ;;  %v6351_v45 = vsel %vm6223_vm2, %v6159_v14, %v6287_v55  ;;  %v14051_v4 = vadd.f32 %v13567_v42, %v20485_v31  ;;  %13580 = vmatmul.mubr.msk.bf16.gmra.mrb[72].mxu1 %vm6494_vm3, %v6824_v46  ;;  %v19005_v3 = vld [vmem:[#allocation6 + $0xb8] sm:$0xff]  ;;  %v20486_v62 = vld [vmem:[#allocation62_spill] sm:$0xff]  ;;  %v13568_v34 = vpop.f32.mrb[62].mxu0  ;;  %v20487_v46 = vld [vmem:[#allocation63_spill] sm:$0xff] }
 0x480   :  { %v7920_v52 = vld [vmem:[#allocation2 + $0x22a] ss:$2 sm:$0xff]  ;;  %v6488_v56 = vadd.f32 %v18849_v19, %v6419_v29  ;;  %v6420_v48 = vmul.f32 %v18834_v18, %v6351_v45  ;;  %v6349_v60 = vsel %vm6221_vm4, %v6157_v30, %v6285_v5  ;;  %v14052_v44 = vadd.f32 %v6016_v21, %v20486_v62  ;;  %v6019_v28 = vpop.f32.mrb[63].mxu0  ;;  %v7310_v21 = vld [vmem:[#allocation2 + $0x289] ss:$2 sm:$0xff] }
 0x481   :  { %7968 = vst.msk [vmem:[#allocation6 + $0xb8] sm:$0xff] %vm6494_vm3, %v7920_v52  ;;  %v6486_v42 = vadd.f32 %v18849_v19, %v6417_v57  ;;  %v6418_v14 = vmul.f32 %v18834_v18, %v6349_v60  ;;  %v6162_v55 = vadd.f32 %v18813_v12, %v14051_v4  ;;  %v14053_v31 = vadd.f32 %v13568_v34, %v20487_v46  ;;  %v20488_v5 = vld [vmem:[#allocation64_spill] sm:$0xff]  ;;  %v7312_v62 = vld [vmem:[#allocation2 + $0x2a1] ss:$2 sm:$0xff] }
 0x482   :  { %6663 = vst.msk [vmem:[#allocation2 + $0x301] sm:$0xff] %vm6494_vm3, %v6488_v56  ;;  %v6489_v29 = vadd.f32 %v18849_v19, %v6420_v48  ;;  %v6160_v30 = vadd.f32 %v18813_v12, %v14052_v44  ;;  %v14054_v45 = vadd.f32 %v6019_v28, %v20488_v5  ;;  %v19022_v52 = vld [vmem:[#allocation6 + $0xe0] sm:$0xff]  ;;  %v6729_v34 = vld [vmem:[#allocation2 + $0x2d0] ss:$2 sm:$0xff] }
 0x483   :  { %6661 = vst.msk [vmem:[#allocation2 + $0x2e9] sm:$0xff] %vm6494_vm3, %v6486_v42  ;;  %v6487_v57 = vadd.f32 %v18849_v19, %v6418_v14  ;;  %vm6226_vm5 = vcmp.ge.f32.partialorder %v6162_v55, 0.0  ;;  %v6290_v60 = vmul.f32 0.2, %v6162_v55  ;;  %v6163_v4 = vadd.f32 %v18813_v12, %v14053_v31  ;;  %v6727_v28 = vld [vmem:[#allocation2 + $0x2b8] ss:$2 sm:$0xff] }
 0x484   :  { %6664 = vst.msk [vmem:[#allocation2 + $0x309] sm:$0xff] %vm6494_vm3, %v6489_v29  ;;  %vm6224_vm6 = vcmp.ge.f32.partialorder %v6160_v30, 0.0  ;;  %v6288_v56 = vmul.f32 0.2, %v6160_v30  ;;  %v6161_v44 = vadd.f32 %v18813_v12, %v14054_v45  ;;  %6770 = vst.msk [vmem:[#allocation6 + $0xf0] sm:$0xff] %vm6494_vm3, %v6729_v34  ;;  %v19031_v46 = vld [vmem:[#allocation6 + $0xd0] sm:$0xff] }
 0x485   :  { %v6815_v48 = vld [vmem:[#allocation6 + $0xd8] sm:$0xff]  ;;  %7355 = vst.msk [vmem:[#allocation6 + $0xe0] sm:$0xff] %vm6494_vm3, %v7312_v62  ;;  %6662 = vst.msk [vmem:[#allocation2 + $0x2f1] sm:$0xff] %vm6494_vm3, %v6487_v57  ;;  %v6354_v42 = vsel %vm6226_vm5, %v6162_v55, %v6290_v60  ;;  %vm6227_vm7 = vcmp.ge.f32.partialorder %v6163_v4, 0.0  ;;  %v6291_v14 = vmul.f32 0.2, %v6163_v4 }
 0x486   :  { %6769 = vst.msk [vmem:[#allocation6 + $0xe8] sm:$0xff] %vm6494_vm3, %v6727_v28  ;;  %7354 = vst.msk [vmem:[#allocation6 + $0xd8] sm:$0xff] %vm6494_vm3, %v7310_v21  ;;  %v7926_v31 = vld [vmem:[#allocation2 + $0x272] ss:$2 sm:$0xff]  ;;  %v6423_v12 = vmul.f32 %v18834_v18, %v6354_v42  ;;  %v6352_v29 = vsel %vm6224_vm6, %v6160_v30, %v6288_v56  ;;  %vm6225_vm8 = vcmp.ge.f32.partialorder %v6161_v44, 0.0  ;;  %v19035_v45 = vld [vmem:[#allocation6 + $0xc8] sm:$0xff] }
 0x487   :  { %v6289_v5 = vmul.f32 0.2, %v6161_v44  ;;  %v7924_v62 = vld [vmem:[#allocation2 + $0x25a] ss:$2 sm:$0xff]  ;;  %7971 = vst.msk [vmem:[#allocation6 + $0xd0] sm:$0xff] %vm6494_vm3, %v7926_v31  ;;  %v6421_v55 = vmul.f32 %v18834_v18, %v6352_v29  ;;  %v6355_v57 = vsel %vm6227_vm7, %v6163_v4, %v6291_v14 }
 0x488   :  { %7970 = vst.msk [vmem:[#allocation6 + $0xc8] sm:$0xff] %vm6494_vm3, %v7924_v62  ;;  %v6492_v30 = vadd.f32 %v18849_v19, %v6423_v12  ;;  %v6424_v34 = vmul.f32 %v18834_v18, %v6355_v57  ;;  %v7316_v62 = vld [vmem:[#allocation2 + $0x2d1] ss:$2 sm:$0xff]  ;;  %v7928_v12 = vld [vmem:[#allocation2 + $0x28a] ss:$2 sm:$0xff] }
 0x489   :  { %v6353_v56 = vsel %vm6225_vm8, %v6161_v44, %v6289_v5  ;;  %v6490_v28 = vadd.f32 %v18849_v19, %v6421_v55  ;;  %v7314_v5 = vld [vmem:[#allocation2 + $0x2b9] ss:$2 sm:$0xff] }
 0x48a   :  { %v6422_v42 = vmul.f32 %v18834_v18, %v6353_v56  ;;  %6667 = vst.msk [vmem:[#allocation2 + $0x331] sm:$0xff] %vm6494_vm3, %v6492_v30  ;;  %v6493_v4 = vadd.f32 %v18849_v19, %v6424_v34  ;;  %v7930_v34 = vld [vmem:[#allocation2 + $0x2a2] ss:$2 sm:$0xff] }
 0x48b   :  { %6665 = vst.msk [vmem:[#allocation2 + $0x319] sm:$0xff] %vm6494_vm3, %v6490_v28  ;;  %v6733_v31 = vld [vmem:[#allocation2 + $0x300] ss:$2 sm:$0xff]  ;;  %v19052_v29 = vld [vmem:[#allocation6 + $0xf0] sm:$0xff] }
 0x48c   :  { %v6491_v14 = vadd.f32 %v18849_v19, %v6422_v42  ;;  %6668 = vst.msk [vmem:[#allocation2 + $0x339] sm:$0xff] %vm6494_vm3, %v6493_v4  ;;  %v6731_v55 = vld [vmem:[#allocation2 + $0x2e8] ss:$2 sm:$0xff]  ;;  %6772 = vst.msk [vmem:[#allocation6 + $0x100] sm:$0xff] %vm6494_vm3, %v6733_v31  ;;  %v19062_v57 = vld [vmem:[#allocation6 + $0xe0] sm:$0xff] }
 0x48d   :  { %v6816_v44 = vld [vmem:[#allocation6 + $0xe8] sm:$0xff]  ;;  %7357 = vst.msk [vmem:[#allocation6 + $0xf0] sm:$0xff] %vm6494_vm3, %v7316_v62  ;;  %6771 = vst.msk [vmem:[#allocation6 + $0xf8] sm:$0xff] %vm6494_vm3, %v6731_v55  ;;  %v19064_v30 = vld [vmem:[#allocation6 + $0xd8] sm:$0xff] }
 0x48e   :  { %6666 = vst.msk [vmem:[#allocation2 + $0x321] sm:$0xff] %vm6494_vm3, %v6491_v14  ;;  %v6825_v19 = vpack.c.bf16 %v6816_v44, %v6815_v48  ;;  %7356 = vst.msk [vmem:[#allocation6 + $0xe8] sm:$0xff] %vm6494_vm3, %v7314_v5  ;;  %v7320_v42 = vld [vmem:[#allocation2 + $0x301] ss:$2 sm:$0xff]  ;;  %v7932_v4 = vld [vmem:[#allocation2 + $0x2ba] ss:$2 sm:$0xff] }
 0x48f   :  { %7972 = vst.msk [vmem:[#allocation6 + $0xd8] sm:$0xff] %vm6494_vm3, %v7928_v12  ;;  %7973 = vst.msk [vmem:[#allocation6 + $0xe0] sm:$0xff] %vm6494_vm3, %v7930_v34  ;;  %v7318_v62 = vld [vmem:[#allocation2 + $0x2e9] ss:$2 sm:$0xff]  ;;  %v7934_v5 = vld [vmem:[#allocation2 + $0x2d2] ss:$2 sm:$0xff] }
 0x490   :  { %13583 = vmatprep.mubr.msk.bf16.mxu1 %vm6494_vm3, %v6825_v19  ;;  %v7936_v34 = vld [vmem:[#allocation2 + $0x2ea] ss:$2 sm:$0xff]  ;;  %v20489_v19 = vld [vmem:[#allocation65_spill] sm:$0xff] }
 0x491   :  { %v6792_v18 = vpack.c.bf16 %v18540_v36, %v20489_v19  ;;  %v20493_v36 = vpack.c.bf16 %v18816_v1, %v18770_v9  ;;  %v20498_v9 = vpack.c.bf16 %v18662_v13, %v18618_v2  ;;  %v20499_v1 = vpack.c.bf16 %v18743_v61, %v18703_v20  ;;  %v7992_v19 = vld [vmem:[#allocation6 + $0xc0] sm:$0xff] }
 0x493   :  { %v19071_v28 = vld [vmem:[#allocation6 + $0x100] sm:$0xff]  ;;  %v6737_v48 = vld [vmem:[#allocation2 + $0x330] ss:$2 sm:$0xff] }
 0x494   :  { %v6817_v31 = vld [vmem:[#allocation6 + $0xf8] sm:$0xff]  ;;  %6774 = vst.msk [vmem:[#allocation6 + $0x110] sm:$0xff] %vm6494_vm3, %v6737_v48  ;;  %7359 = vst.msk [vmem:[#allocation6 + $0x100] sm:$0xff] %vm6494_vm3, %v7320_v42  ;;  %v19077_v12 = vld [vmem:[#allocation6 + $0xf0] sm:$0xff] }
 0x495   :  { %v6735_v14 = vld [vmem:[#allocation2 + $0x318] ss:$2 sm:$0xff]  ;;  %7358 = vst.msk [vmem:[#allocation6 + $0xf8] sm:$0xff] %vm6494_vm3, %v7318_v62  ;;  %v19079_v44 = vld [vmem:[#allocation6 + $0xe8] sm:$0xff]  ;;  %7975 = vst.msk [vmem:[#allocation6 + $0xf0] sm:$0xff] %vm6494_vm3, %v7934_v5 }
 0x496   :  { %6773 = vst.msk [vmem:[#allocation6 + $0x108] sm:$0xff] %vm6494_vm3, %v6735_v14  ;;  %7974 = vst.msk [vmem:[#allocation6 + $0xe8] sm:$0xff] %vm6494_vm3, %v7932_v4  ;;  %v7938_v48 = vld [vmem:[#allocation2 + $0x302] ss:$2 sm:$0xff]  ;;  %v7324_v14 = vld [vmem:[#allocation2 + $0x331] ss:$2 sm:$0xff] }
 0x497   :  { %v7322_v21 = vld [vmem:[#allocation2 + $0x319] ss:$2 sm:$0xff]  ;;  %v7940_v47 = vld [vmem:[#allocation2 + $0x31a] ss:$2 sm:$0xff] }
 0x49b   :  { %v7100_v42 = vld [vmem:[#allocation6 + $0x110] sm:$0xff]  ;;  %v19087_v62 = vld [vmem:[#allocation6 + $0x100] sm:$0xff] }
 0x49c   :  { %v7108_v56 = vpack.c.bf16 %v7100_v42, %v19071_v28  ;;  %7361 = vst.msk [vmem:[#allocation6 + $0x110] sm:$0xff] %vm6494_vm3, %v7324_v14  ;;  %v7386_v4 = vpack.c.bf16 %v19087_v62, %v19077_v12  ;;  %v19093_v55 = vld [vmem:[#allocation6 + $0xf8] sm:$0xff]  ;;  %7977 = vst.msk [vmem:[#allocation6 + $0x100] sm:$0xff] %vm6494_vm3, %v7938_v48 }
 0x49d   :  { %v6818_v60 = vld [vmem:[#allocation6 + $0x108] sm:$0xff]  ;;  %7976 = vst.msk [vmem:[#allocation6 + $0xf8] sm:$0xff] %vm6494_vm3, %v7936_v34  ;;  %v7942_v14 = vld [vmem:[#allocation2 + $0x332] ss:$2 sm:$0xff] }
 0x49e   :  { %v6826_v5 = vpack.c.bf16 %v6818_v60, %v6817_v31  ;;  %7360 = vst.msk [vmem:[#allocation6 + $0x108] sm:$0xff] %vm6494_vm3, %v7322_v21  ;;  %v14674_v21 = vld [vmem:[%s20077_s3 + $0x8] sm:$0xff]   ;;  %v7994_v34 = vld [vmem:[#allocation6 + $0xe0] sm:$0xff] }
 0x49f   :  { %v20490_v31 = vld [vmem:[#allocation67_spill] sm:$0xff] }
 0x4a0   :  { %13584 = vmatmul.mubr.msk.bf16.gmra.mrb[76].mxu1 %vm6494_vm3, %v6826_v5  ;;  %v7993_v5 = vld [vmem:[#allocation6 + $0xd0] sm:$0xff] }
 0x4a1   :  { %13589 = vmatprep.mubr.msk.bf16.mxu1 %vm6494_vm3, %v6792_v18  ;;  %v14827_v18 = vld [vmem:[%s20077_s3 + $0x30] sm:$0xff]  }
 0x4a3   :  { %v19102_v42 = vld [vmem:[#allocation6 + $0x110] sm:$0xff] }
 0x4a4   :  { %v7726_v48 = vpack.c.bf16 %v19102_v42, %v19087_v62  ;;  %7979 = vst.msk [vmem:[#allocation6 + $0x110] sm:$0xff] %vm6494_vm3, %v7942_v14  ;;  %v7991_v62 = vld [vmem:[#allocation6 + $0xb0] sm:$0xff]  ;;  %v8003_v42 = vpack.c.bf16 %v7994_v34, %v7993_v5  ;;  %v7996_v14 = vld [vmem:[#allocation6 + $0x100] sm:$0xff] }
 0x4a5   :  { %v7548_v50 = vld [vmem:[#allocation6 + $0x108] sm:$0xff] }
 0x4a6   :  { %v7556_v60 = vpack.c.bf16 %v7548_v50, %v19093_v55  ;;  %7978 = vst.msk [vmem:[#allocation6 + $0x108] sm:$0xff] %vm6494_vm3, %v7940_v47  ;;  %v6796_v50 = vpack.c.bf16 %v18866_v33, %v20490_v31  ;;  %v6799_v47 = vpack.c.bf16 %v19071_v28, %v19052_v29  ;;  %v20500_v33 = vld [vmem:[#allocation68_spill] sm:$0xff]  ;;  %v20505_v28 = vpack.c.bf16 %v18710_v49, %v18672_v35 }
 0x4a7   :  { %v7383_v7 = vpack.c.bf16 %v18917_v22, %v20500_v33  ;;  %v20506_v55 = vpack.c.bf16 %v18790_v27, %v18753_v6  ;;  %v20509_v35 = vpack.c.bf16 %v19035_v45, %v19005_v3  ;;  %v20510_v49 = vpack.c.bf16 %v19079_v44, %v19064_v30  ;;  %v14678_v27 = vld [vmem:[%s20077_s3 + $0x28] sm:$0xff]   ;;  %v7989_v45 = vld [vmem:[#allocation6 + $0x90] sm:$0xff]  ;;  %v7987_v30 = vld [vmem:[#allocation6 + $0x60] sm:$0xff] }
 0x4a8   :  { %13590 = vmatmul.mubr.msk.bf16.vlgmr.msra.gmra.mrb[64].mxu1 %vm6494_vm3, %v6793_v59  ;;  %v6798_v59 = vpack.c.bf16 %v19022_v52, %v18983_v40  ;;  %v20511_v6 = vpack.c.bf16 %v18618_v2, %v18580_v15  ;;  %v20515_v2 = vpack.c.bf16 %v18955_v63, %v18917_v22  ;;  %v19275_v22 = vld [vmem:[#allocation6 + $0x50] sm:$0xff] }
 0x4a9   :  { %13606 = vmatpush3.bf16.msra.mxu1 %v14827_v18  ;;  %13593 = vmatprep.mubr.msk.bf16.mxu1 %vm6494_vm3, %v6794_v11  ;;  %v14675_v11 = vld [vmem:[%s20077_s3 + $0x20] sm:$0xff]   ;;  %v8151_v18 = vld [vmem:[#allocation6 + $0x8] sm:$0xff] }
 0x4aa   :  { %13623 = vmatprep.subr.bf16.mxu1 %v14674_v21 }
 0x4b0   :  { %13594 = vmatmul.mubr.msk.bf16.gmra.mrb[68].mxu1 %vm6494_vm3, %v6795_v24  ;;  %v20491_v24 = vpack.c.bf16 %v18649_v43, %v18605_v51  ;;  %v20496_v51 = vpack.c.bf16 %v19052_v29, %v19022_v52  ;;  %v20497_v43 = vld [vmem:[#allocation66_spill] sm:$0xff]  ;;  %v20503_v52 = vpack.c.bf16 %v19062_v57, %v19031_v46  ;;  %v20504_v29 = vpack.c.bf16 %v18625_v37, %v18588_v54 }
 0x4b1   :  { %13597 = vmatprep.mubr.msk.bf16.mxu1 %vm6494_vm3, %v6796_v50  ;;  %v20507_v54 = vpack.c.bf16 %v18877_v16, %v18844_v39  ;;  %v20508_v37 = vpack.c.bf16 %v18962_v23, %v18925_v58  ;;  %v20512_v39 = vpack.c.bf16 %v18703_v20, %v18662_v13  ;;  %v20513_v16 = vpack.c.bf16 %v18783_v41, %v18743_v61  ;;  %v7981_v61 = vld [vmem:[#allocation6] sm:$0xff]  ;;  %v8154_v50 = vld [vmem:[#allocation6 + $0x38] sm:$0xff] }
 0x4b2   :  { %v20516_v13 = vpack.c.bf16 %v19031_v46, %v18995_v53  ;;  %v20517_v20 = vpack.c.bf16 %v19077_v12, %v19062_v57  ;;  %v19277_v58 = vld [vmem:[#allocation6 + $0x20] sm:$0xff]  ;;  %v19290_v46 = vld [vmem:[#allocation6 + $0x70] sm:$0xff] }
 0x4b3   :  { %v19281_v23 = vld [vmem:[#allocation6 + $0x40] sm:$0xff]  ;;  %v8000_v12 = vpack.c.bf16 %v19290_v46, %v7987_v30 }
 0x4b4   :  { %v7999_v3 = vpack.c.bf16 %v19275_v22, %v19281_v23  ;;  %v7990_v57 = vld [vmem:[#allocation6 + $0xa0] sm:$0xff] }
 0x4b5   :  { %v8001_v44 = vpack.c.bf16 %v7990_v57, %v7989_v45 }
 0x4b8   :  { %13598 = vmatmul.mubr.msk.bf16.gmra.mrb[72].mxu1 %vm6494_vm3, %v6797_v25  ;;  %v20492_v25 = vpack.c.bf16 %v18731_v38, %v18690_v26  ;;  %v7379_v26 = vpack.c.bf16 %v18580_v15, %v20497_v43  ;;  %v14676_v38 = vld [vmem:[%s20077_s3 + $0x38] sm:$0xff]   ;;  %v20514_v15 = vpack.c.bf16 %v18886_v8, %v18829_v17 }
 0x4b9   :  { %13601 = vmatprep.mubr.msk.bf16.mxu1 %vm6494_vm3, %v6798_v59  ;;  %v8156_v59 = vld [vmem:[#allocation6 + $0x58] sm:$0xff] }
 0x4ba   :  { %v8159_v43 = vld [vmem:[#allocation6 + $0x98] sm:$0xff] }
 0x4c0   :  { %13602 = vmatmul.mubr.msk.bf16.gmra.mrb[76].mxu1 %vm6494_vm3, %v6799_v47  ;;  %v8153_v47 = vld [vmem:[#allocation6 + $0x28] sm:$0xff] }
 0x4c1   :  { %13607 = vmatprep.mubr.msk.bf16.mxu1 %vm6494_vm3, %v7101_v0  ;;  %v20495_v0 = vpack.c.bf16 %v18983_v40, %v18942_v10  ;;  %v20501_v10 = vpack.c.bf16 %v18829_v17, %v18783_v41  ;;  %v20502_v40 = vpack.c.bf16 %v18995_v53, %v18955_v63  ;;  %v19265_v41 = vld [vmem:[#allocation6 + $0x10] sm:$0xff]  ;;  %v14679_v53 = vld [vmem:[%s20077_s3 + $0x40] sm:$0xff]  }
 0x4c2   :  { %v7997_v8 = vpack.c.bf16 %v19265_v41, %v7981_v61  ;;  %v19273_v17 = vld [vmem:[#allocation6 + $0x30] sm:$0xff] }
 0x4c3   :  { %v7998_v63 = vpack.c.bf16 %v19273_v17, %v19277_v58 }
 0x4c8   :  { %13608 = vmatmul.mubr.msk.bf16.vlgmr.msra.gmra.mrb[64].mxu1 %vm6494_vm3, %v20491_v24  ;;  %v8155_v24 = vld [vmem:[#allocation6 + $0x48] sm:$0xff] }
 0x4c9   :  { %13624 = vmatpush3.bf16.msra.mxu1 %v14674_v21  ;;  %13611 = vmatprep.mubr.msk.bf16.mxu1 %vm6494_vm3, %v20492_v25  ;;  %v7995_v21 = vld [vmem:[#allocation6 + $0xf0] sm:$0xff]  ;;  %v8169_v25 = vpack.c.bf16 %v8156_v59, %v8155_v24 }
 0x4ca   :  { %13641 = vmatprep.subr.bf16.mxu1 %v14675_v11 }
 0x4d0   :  { %13612 = vmatmul.mubr.msk.bf16.gmra.mrb[68].mxu1 %vm6494_vm3, %v20493_v36  ;;  %v8158_v36 = vld [vmem:[#allocation6 + $0x78] sm:$0xff] }
 0x4d1   :  { %13615 = vmatprep.mubr.msk.bf16.mxu1 %vm6494_vm3, %v20494_v32  ;;  %v8160_v32 = vld [vmem:[#allocation6 + $0xa8] sm:$0xff] }
 0x4d8   :  { %13616 = vmatmul.mubr.msk.bf16.gmra.mrb[72].mxu1 %vm6494_vm3, %v20495_v0  ;;  %v8157_v0 = vld [vmem:[#allocation6 + $0x68] sm:$0xff] }
 0x4d9   :  { %13619 = vmatprep.mubr.msk.bf16.mxu1 %vm6494_vm3, %v20496_v51  ;;  %v8170_v51 = vpack.c.bf16 %v8158_v36, %v8157_v0 }
 0x4e0   :  { %13620 = vmatmul.mubr.msk.bf16.gmra.mrb[76].mxu1 %vm6494_vm3, %v7108_v56  ;;  %v14677_v56 = vld [vmem:[%s20077_s3 + $0x10] sm:$0xff]  }
 0x4e1   :  { %13625 = vmatprep.mubr.msk.bf16.mxu1 %vm6494_vm3, %v7379_v26  ;;  %v8171_v26 = vpack.c.bf16 %v8160_v32, %v8159_v43 }
 0x4e8   :  { %13626 = vmatmul.mubr.msk.bf16.vlgmr.msra.gmra.mrb[64].mxu1 %vm6494_vm3, %v20498_v9  ;;  %v8164_v9 = vld [vmem:[#allocation6 + $0xe8] sm:$0xff] }
 0x4e9   :  { %13642 = vmatpush3.bf16.msra.mxu1 %v14675_v11  ;;  %13629 = vmatprep.mubr.msk.bf16.mxu1 %vm6494_vm3, %v20499_v1  ;;  %v8168_v11 = vpack.c.bf16 %v8154_v50, %v8153_v47  ;;  %v8161_v1 = vld [vmem:[#allocation6 + $0xb8] sm:$0xff] }
 0x4ea   :  { %13659 = vmatprep.subr.bf16.mxu1 %v14676_v38 }
 0x4f0   :  { %13630 = vmatmul.mubr.msk.bf16.gmra.mrb[68].mxu1 %vm6494_vm3, %v20501_v10 }
 0x4f1   :  { %13633 = vmatprep.mubr.msk.bf16.mxu1 %vm6494_vm3, %v7383_v7  ;;  %v8163_v7 = vld [vmem:[#allocation6 + $0xd8] sm:$0xff] }
 0x4f2   :  { %v8173_v10 = vpack.c.bf16 %v8164_v9, %v8163_v7 }
 0x4f8   :  { %13634 = vmatmul.mubr.msk.bf16.gmra.mrb[72].mxu1 %vm6494_vm3, %v20502_v40  ;;  %v8166_v40 = vld [vmem:[#allocation6 + $0x108] sm:$0xff] }
 0x4f9   :  { %13637 = vmatprep.mubr.msk.bf16.mxu1 %vm6494_vm3, %v20503_v52  ;;  %v8165_v52 = vld [vmem:[#allocation6 + $0xf8] sm:$0xff] }
 0x500   :  { %13638 = vmatmul.mubr.msk.bf16.gmra.mrb[76].mxu1 %vm6494_vm3, %v7386_v4  ;;  %v8002_v4 = vpack.c.bf16 %v7992_v19, %v7991_v62 }
 0x501   :  { %13643 = vmatprep.mubr.msk.bf16.mxu1 %vm6494_vm3, %v20504_v29  ;;  %v8174_v29 = vpack.c.bf16 %v8166_v40, %v8165_v52 }
 0x508   :  { %13644 = vmatmul.mubr.msk.bf16.vlgmr.msra.gmra.mrb[64].mxu1 %vm6494_vm3, %v20505_v28  ;;  %v8338_v28 = vpack.c.bf16 %v19281_v23, %v19273_v17 }
 0x509   :  { %13660 = vmatpush3.bf16.msra.mxu1 %v14676_v38  ;;  %13647 = vmatprep.mubr.msk.bf16.mxu1 %vm6494_vm3, %v20506_v55  ;;  %v8162_v38 = vld [vmem:[#allocation6 + $0xc8] sm:$0xff]  ;;  %v8339_v55 = vpack.c.bf16 %v7987_v30, %v19275_v22 }
 0x50a   :  { %13677 = vmatprep.subr.bf16.mxu1 %v14677_v56  ;;  %v8172_v33 = vpack.c.bf16 %v8162_v38, %v8161_v1 }
 0x510   :  { %13648 = vmatmul.mubr.msk.bf16.gmra.mrb[68].mxu1 %vm6494_vm3, %v20507_v54  ;;  %v8328_v54 = vld [vmem:[#allocation6 + $0x80] sm:$0xff] }
 0x511   :  { %13651 = vmatprep.mubr.msk.bf16.mxu1 %vm6494_vm3, %v20508_v37  ;;  %v8340_v37 = vpack.c.bf16 %v8328_v54, %v19290_v46 }
 0x518   :  { %13652 = vmatmul.mubr.msk.bf16.gmra.mrb[72].mxu1 %vm6494_vm3, %v20509_v35  ;;  %v8341_v35 = vpack.c.bf16 %v7991_v62, %v7990_v57 }
 0x519   :  { %13655 = vmatprep.mubr.msk.bf16.mxu1 %vm6494_vm3, %v20510_v49  ;;  %v8342_v49 = vpack.c.bf16 %v7993_v5, %v7992_v19 }
 0x520   :  { %13656 = vmatmul.mubr.msk.bf16.gmra.mrb[76].mxu1 %vm6494_vm3, %v7556_v60  ;;  %v8004_v60 = vpack.c.bf16 %v7996_v14, %v7995_v21 }
 0x521   :  { %13661 = vmatprep.mubr.msk.bf16.mxu1 %vm6494_vm3, %v20511_v6  ;;  %v8343_v6 = vpack.c.bf16 %v7995_v21, %v7994_v34 }
 0x528   :  { %13662 = vmatmul.mubr.msk.bf16.vlgmr.msra.gmra.mrb[64].mxu1 %vm6494_vm3, %v20512_v39 }
 0x529   :  { %13678 = vmatpush3.bf16.msra.mxu1 %v14677_v56  ;;  %13665 = vmatprep.mubr.msk.bf16.mxu1 %vm6494_vm3, %v20513_v16  ;;  %v8337_v56 = vpack.c.bf16 %v19277_v58, %v19265_v41  ;;  %v20518_v16 = vmov 0.0   ;;  %v19417_v41 = vld [vmem:[%s20078_s4] ss:$0 sm:$0xff] }
 0x52a   :  { %13695 = vmatprep.subr.bf16.mxu1 %v14678_v27  ;;  %8610 = vst.msk [vmem:[#allocation3 + $0x30] sm:$0xff] %vm8602_vm9, %v20518_v16  ;;  %8603 = vst.msk [vmem:[#allocation3] sm:$0xff] %vm8602_vm9, %v20518_v16 }
 0x52b   :  { %8611 = vst.msk [vmem:[#allocation3 + $0x38] sm:$0x3] %vm8604_vm10, %v20518_v16  ;;  %8605 = vst.msk [vmem:[#allocation3 + $0x8] sm:$0x3] %vm8604_vm10, %v20518_v16 }
 0x52c   :  { %8606 = vst.msk [vmem:[#allocation3 + $0x10] sm:$0xff] %vm8602_vm9, %v20518_v16  ;;  %8608 = vst.msk [vmem:[#allocation3 + $0x20] sm:$0xff] %vm8602_vm9, %v20518_v16 }
 0x52d   :  { %8607 = vst.msk [vmem:[#allocation3 + $0x18] sm:$0x3] %vm8604_vm10, %v20518_v16  ;;  %8609 = vst.msk [vmem:[#allocation3 + $0x28] sm:$0x3] %vm8604_vm10, %v20518_v16 }
 0x52e   :  { %8612 = vst.msk [vmem:[#allocation3 + $0x40] sm:$0xff] %vm8602_vm9, %v20518_v16  ;;  %8614 = vst.msk [vmem:[#allocation3 + $0x50] sm:$0xff] %vm8602_vm9, %v20518_v16 }
 0x52f   :  { %8613 = vst.msk [vmem:[#allocation3 + $0x48] sm:$0x3] %vm8604_vm10, %v20518_v16  ;;  %8615 = vst.msk [vmem:[#allocation3 + $0x58] sm:$0x3] %vm8604_vm10, %v20518_v16 }
 0x530   :  { %13666 = vmatmul.mubr.msk.bf16.gmra.mrb[68].mxu1 %vm6494_vm3, %v20514_v15  ;;  %8616 = vst.msk [vmem:[#allocation3 + $0x60] sm:$0xff] %vm8602_vm9, %v20518_v16  ;;  %8618 = vst.msk [vmem:[#allocation3 + $0x70] sm:$0xff] %vm8602_vm9, %v20518_v16  ;;  %v14680_v15 = vld [vmem:[%s20079_s5 + $0x30] sm:$0xff]  }
 0x531   :  { %13669 = vmatprep.mubr.msk.bf16.mxu1 %vm6494_vm3, %v20515_v2  ;;  %8617 = vst.msk [vmem:[#allocation3 + $0x68] sm:$0x3] %vm8604_vm10, %v20518_v16  ;;  %8619 = vst.msk [vmem:[#allocation3 + $0x78] sm:$0x3] %vm8604_vm10, %v20518_v16  ;;  %v14681_v2 = vld [vmem:[%s20079_s5 + $0x38] sm:$0xff]  }
 0x532   :  { %8620 = vst.msk [vmem:[#allocation3 + $0x80] sm:$0xff] %vm8602_vm9, %v20518_v16  ;;  %8622 = vst.msk [vmem:[#allocation3 + $0x90] sm:$0xff] %vm8602_vm9, %v20518_v16 }
 0x533   :  { %8621 = vst.msk [vmem:[#allocation3 + $0x88] sm:$0x3] %vm8604_vm10, %v20518_v16  ;;  %8623 = vst.msk [vmem:[#allocation3 + $0x98] sm:$0x3] %vm8604_vm10, %v20518_v16 }
 0x534   :  { %8624 = vst.msk [vmem:[#allocation3 + $0xa0] sm:$0xff] %vm8602_vm9, %v20518_v16  ;;  %8626 = vst.msk [vmem:[#allocation3 + $0xb0] sm:$0xff] %vm8602_vm9, %v20518_v16 }
 0x535   :  { %8625 = vst.msk [vmem:[#allocation3 + $0xa8] sm:$0x3] %vm8604_vm10, %v20518_v16  ;;  %8627 = vst.msk [vmem:[#allocation3 + $0xb8] sm:$0x3] %vm8604_vm10, %v20518_v16 }
 0x536   :  { %8628 = vst.msk [vmem:[#allocation3 + $0xc0] sm:$0xff] %vm8602_vm9, %v20518_v16  ;;  %8630 = vst.msk [vmem:[#allocation3 + $0xd0] sm:$0xff] %vm8602_vm9, %v20518_v16 }
 0x537   :  { %8629 = vst.msk [vmem:[#allocation3 + $0xc8] sm:$0x3] %vm8604_vm10, %v20518_v16  ;;  %8631 = vst.msk [vmem:[#allocation3 + $0xd8] sm:$0x3] %vm8604_vm10, %v20518_v16 }
 0x538   :  { %13670 = vmatmul.mubr.msk.bf16.gmra.mrb[72].mxu1 %vm6494_vm3, %v20516_v13  ;;  %8632 = vst.msk [vmem:[#allocation3 + $0xe0] sm:$0xff] %vm8602_vm9, %v20518_v16  ;;  %8634 = vst.msk [vmem:[#allocation3 + $0xf0] sm:$0xff] %vm8602_vm9, %v20518_v16  ;;  %v19409_v13 = vld [vmem:[%s20079_s5] sm:$0xff]  }
 0x539   :  { %13673 = vmatprep.mubr.msk.bf16.mxu1 %vm6494_vm3, %v20517_v20  ;;  %8633 = vst.msk [vmem:[#allocation3 + $0xe8] sm:$0x3] %vm8604_vm10, %v20518_v16  ;;  %8635 = vst.msk [vmem:[#allocation3 + $0xf8] sm:$0x3] %vm8604_vm10, %v20518_v16 }
 0x53a   :  { %8636 = vst.msk [vmem:[#allocation3 + $0x100] sm:$0xff] %vm8602_vm9, %v20518_v16  ;;  %8638 = vst.msk [vmem:[#allocation3 + $0x110] sm:$0xff] %vm8602_vm9, %v20518_v16  ;;  %v8661_v20 = vld [vmem:[#allocation3] ss:$2 sm:$0xf] }
 0x53b   :  { %8637 = vst.msk [vmem:[#allocation3 + $0x108] sm:$0x3] %vm8604_vm10, %v20518_v16  ;;  %8639 = vst.msk [vmem:[#allocation3 + $0x118] sm:$0x3] %vm8604_vm10, %v20518_v16 }
 0x53c   :  { %8640 = vst.msk [vmem:[#allocation3 + $0x120] sm:$0xff] %vm8602_vm9, %v20518_v16  ;;  %8642 = vst.msk [vmem:[#allocation3 + $0x130] sm:$0xff] %vm8602_vm9, %v20518_v16  ;;  %v8681_v61 = vld [vmem:[#allocation3 + $0xa0] ss:$2 sm:$0xf] }
 0x53d   :  { %8641 = vst.msk [vmem:[#allocation3 + $0x128] sm:$0x3] %vm8604_vm10, %v20518_v16  ;;  %8643 = vst.msk [vmem:[#allocation3 + $0x138] sm:$0x3] %vm8604_vm10, %v20518_v16 }
 0x540   :  { %13674 = vmatmul.mubr.msk.bf16.gmra.mrb[76].mxu1 %vm6494_vm3, %v7726_v48  ;;  %v8152_v48 = vld [vmem:[#allocation6 + $0x18] sm:$0xff] }
 0x541   :  { %13679 = vmatprep.mubr.msk.bf16.mxu1 %vm6494_vm3, %v7997_v8  ;;  %v8167_v31 = vpack.c.bf16 %v8152_v48, %v8151_v18 }
 0x548   :  { %13680 = vmatmul.mubr.msk.bf16.vlgmr.msra.gmra.mrb[64].mxu1 %vm6494_vm3, %v7998_v63 }
 0x549   :  { %13696 = vmatpush3.bf16.msra.mxu1 %v14678_v27  ;;  %13683 = vmatprep.mubr.msk.bf16.mxu1 %vm6494_vm3, %v7999_v3  ;;  %v8336_v27 = vld [vmem:[#allocation6 + $0x110] sm:$0xff] }
 0x54a   :  { %13713 = vmatprep.subr.bf16.mxu1 %v14679_v53  ;;  %v8344_v39 = vpack.c.bf16 %v8336_v27, %v7996_v14 }
 0x550   :  { %13684 = vmatmul.mubr.msk.bf16.gmra.mrb[68].mxu1 %vm6494_vm3, %v8000_v12  ;;  %v19431_v12 = vld [vmem:[%s20078_s4 + $0x2] ss:$0 sm:$0xff] }
 0x551   :  { %13687 = vmatprep.mubr.msk.bf16.mxu1 %vm6494_vm3, %v8001_v44 }
 0x558   :  { %13688 = vmatmul.mubr.msk.bf16.gmra.mrb[72].mxu1 %vm6494_vm3, %v8002_v4 }
 0x559   :  { %13691 = vmatprep.mubr.msk.bf16.mxu1 %vm6494_vm3, %v8003_v42 }
 0x560   :  { %13692 = vmatmul.mubr.msk.bf16.gmra.mrb[76].mxu1 %vm6494_vm3, %v8004_v60 }
 0x561   :  { %13697 = vmatprep.mubr.msk.bf16.mxu1 %vm6494_vm3, %v8167_v31 }
 0x568   :  { %13698 = vmatmul.mubr.msk.bf16.vlgmr.msra.gmra.mrb[64].mxu1 %vm6494_vm3, %v8168_v11 }
 0x569   :  { %13714 = vmatpush3.bf16.msra.mxu1 %v14679_v53  ;;  %13701 = vmatprep.mubr.msk.bf16.mxu1 %vm6494_vm3, %v8169_v25  ;;  %v19424_v53 = vld [vmem:[%s20078_s4 + $0x1] ss:$0 sm:$0xff] }
 0x56a   :  { %13731 = vmatprep.subr.bf16.mxu1 %v14680_v15 }
 0x570   :  { %13702 = vmatmul.mubr.msk.bf16.gmra.mrb[68].mxu1 %vm6494_vm3, %v8170_v51 }
 0x571   :  { %13705 = vmatprep.mubr.msk.bf16.mxu1 %vm6494_vm3, %v8171_v26 }
 0x578   :  { %13706 = vmatmul.mubr.msk.bf16.gmra.mrb[72].mxu1 %vm6494_vm3, %v8172_v33 }
 0x579   :  { %13709 = vmatprep.mubr.msk.bf16.mxu1 %vm6494_vm3, %v8173_v10 }
 0x580   :  { %13710 = vmatmul.mubr.msk.bf16.gmra.mrb[76].mxu1 %vm6494_vm3, %v8174_v29 }
 0x581   :  { %13715 = vmatprep.mubr.msk.bf16.mxu1 %vm6494_vm3, %v8337_v56 }
 0x588   :  { %13716 = vmatmul.mubr.msk.bf16.vlgmr.msra.gmra.mrb[64].mxu1 %vm6494_vm3, %v8338_v28 }
 0x589   :  { %13719 = vmatprep.mubr.msk.bf16.mxu1 %vm6494_vm3, %v8339_v55  ;;  %13732 = vmatpush3.bf16.msra.mxu1 %v14680_v15 }
 0x58a   :  { %13733 = vmatprep.subr.bf16.mxu1 %v14681_v2 }
 0x58d   :  { %13734 = vmatpush3.bf16.msra.mxu1 %v14681_v2 }
 0x58e   :  { %13739 = vmatprep.subr.bf16.mxu1 %v19409_v13 }
 0x590   :  { %13720 = vmatmul.mubr.msk.bf16.gmra.mrb[68].mxu1 %vm6494_vm3, %v8340_v37 }
 0x591   :  { %13723 = vmatprep.mubr.msk.bf16.mxu1 %vm6494_vm3, %v8341_v35 }
 0x598   :  { %13724 = vmatmul.mubr.msk.bf16.gmra.mrb[72].mxu1 %vm6494_vm3, %v8342_v49 }
 0x599   :  { %13727 = vmatprep.mubr.msk.bf16.mxu1 %vm6494_vm3, %v8343_v6 }
 0x5a0   :  { %13728 = vmatmul.mubr.msk.bf16.gmra.mrb[76].mxu1 %vm6494_vm3, %v8344_v39  ;;  %vm8700_vm3 = vcmask 257024  }
 0x5a1   :  { %8701 = vst.msk [vmem:[#allocation7] sm:$0xf] %vm8700_vm3, %v8661_v20  ;;  %8711 = vst.msk [vmem:[#allocation7 + $0x28] sm:$0xf] %vm8700_vm3, %v8681_v61 }
 0x65b   :  { %v13717_v8 = vpop.f32.mrb[64].mxu1 }
 0x65c   :  { %v8498_v17 = vadd.f32 %v13717_v8, %v19417_v41  ;;  %v8412_v22 = vpop.f32.mrb[65].mxu1 }
 0x65d   :  { %v8496_v58 = vadd.f32 %v19417_v41, %v8412_v22  ;;  %v13718_v63 = vpop.f32.mrb[66].mxu1 }
 0x65e   :  { %vm8514_vm11 = vcmp.ge.f32.partialorder %v8498_v17, 0.0  ;;  %v8530_v23 = vmul.f32 0.2, %v8498_v17  ;;  %v8499_v3 = vadd.f32 %v13718_v63, %v19417_v41  ;;  %v8415_v46 = vpop.f32.mrb[67].mxu1 }
 0x65f   :  { %vm8512_vm12 = vcmp.ge.f32.partialorder %v8496_v58, 0.0  ;;  %v8528_v45 = vmul.f32 0.2, %v8496_v58  ;;  %v8497_v57 = vadd.f32 %v19417_v41, %v8415_v46 }
 0x660   :  { %v8546_v30 = vsel %vm8514_vm11, %v8498_v17, %v8530_v23  ;;  %vm8515_vm13 = vcmp.ge.f32.partialorder %v8499_v3, 0.0  ;;  %v8531_v44 = vmul.f32 0.2, %v8499_v3 }
 0x661   :  { %v8567_v19 = vmul.f32 %v19424_v53, %v8546_v30  ;;  %v8544_v34 = vsel %vm8512_vm12, %v8496_v58, %v8528_v45  ;;  %vm8513_vm14 = vcmp.ge.f32.partialorder %v8497_v57, 0.0  ;;  %v8529_v62 = vmul.f32 0.2, %v8497_v57 }
 0x662   :  { %v8565_v4 = vmul.f32 %v19424_v53, %v8544_v34  ;;  %v8547_v5 = vsel %vm8515_vm13, %v8499_v3, %v8531_v44  ;;  %vm14896_vm13 = vmmov 0  }
 0x663   :  { %v8588_v42 = vadd.f32 %v19431_v12, %v8567_v19  ;;  %v8568_v14 = vmul.f32 %v19424_v53, %v8547_v5  ;;  %v8545_v48 = vsel %vm8513_vm14, %v8497_v57, %v8529_v62  ;;  %v13721_v21 = vpop.f32.mrb[68].mxu1 }
 0x664   :  { %v8586_v60 = vadd.f32 %v19431_v12, %v8565_v4  ;;  %v8566_v18 = vmul.f32 %v19424_v53, %v8545_v48  ;;  %v8502_v31 = vadd.f32 %v13721_v21, %v19417_v41  ;;  %v8428_v50 = vpop.f32.mrb[69].mxu1 }
 0x665   :  { %8647 = vst.msk [vmem:[#allocation3 + $0x31] sm:$0xff] %vm8602_vm9, %v8588_v42  ;;  %v8589_v59 = vadd.f32 %v19431_v12, %v8568_v14  ;;  %v8500_v47 = vadd.f32 %v19417_v41, %v8428_v50  ;;  %v13722_v11 = vpop.f32.mrb[70].mxu1 }
 0x666   :  { %8645 = vst.msk [vmem:[#allocation3 + $0x11] sm:$0xff] %vm8602_vm9, %v8586_v60  ;;  %v8587_v24 = vadd.f32 %v19431_v12, %v8566_v18  ;;  %vm8518_vm15 = vcmp.ge.f32.partialorder %v8502_v31, 0.0  ;;  %v8534_v25 = vmul.f32 0.2, %v8502_v31  ;;  %v8503_v36 = vadd.f32 %v13722_v11, %v19417_v41  ;;  %v8431_v32 = vpop.f32.mrb[71].mxu1 }
 0x667   :  { %8648 = vst.msk [vmem:[#allocation3 + $0x41] sm:$0xff] %vm8602_vm9, %v8589_v59  ;;  %vm8516_vm0 = vcmp.ge.f32.partialorder %v8500_v47, 0.0  ;;  %v8532_v0 = vmul.f32 0.2, %v8500_v47  ;;  %v8501_v51 = vadd.f32 %v19417_v41, %v8431_v32 }
 0x668   :  { %8646 = vst.msk [vmem:[#allocation3 + $0x21] sm:$0xff] %vm8602_vm9, %v8587_v24  ;;  %v8550_v43 = vsel %vm8518_vm15, %v8502_v31, %v8534_v25  ;;  %vm8519_vm1 = vcmp.ge.f32.partialorder %v8503_v36, 0.0  ;;  %v8535_v26 = vmul.f32 0.2, %v8503_v36 }
 0x669   :  { %v8571_v38 = vmul.f32 %v19424_v53, %v8550_v43  ;;  %v8548_v9 = vsel %vm8516_vm0, %v8500_v47, %v8532_v0  ;;  %vm8517_vm2 = vcmp.ge.f32.partialorder %v8501_v51, 0.0  ;;  %v8533_v1 = vmul.f32 0.2, %v8501_v51  ;;  %v9021_v43 = vld [vmem:[#allocation3 + $0x1] ss:$2 sm:$0xf] }
 0x66a   :  { %v8569_v33 = vmul.f32 %v19424_v53, %v8548_v9  ;;  %v8551_v7 = vsel %vm8519_vm1, %v8503_v36, %v8535_v26 }
 0x66b   :  { %v8592_v10 = vadd.f32 %v19431_v12, %v8571_v38  ;;  %v8572_v40 = vmul.f32 %v19424_v53, %v8551_v7  ;;  %v8549_v52 = vsel %vm8517_vm2, %v8501_v51, %v8533_v1  ;;  %v13725_v29 = vpop.f32.mrb[72].mxu1  ;;  %vm9817_vm2 = vcmask 519168  }
 0x66c   :  { %v8590_v56 = vadd.f32 %v19431_v12, %v8569_v33  ;;  %v8570_v28 = vmul.f32 %v19424_v53, %v8549_v52  ;;  %v8506_v55 = vadd.f32 %v13725_v29, %v19417_v41  ;;  %v8444_v54 = vpop.f32.mrb[73].mxu1  ;;  %v8667_v37 = vld [vmem:[#allocation3 + $0x30] ss:$2 sm:$0xf] }
 0x66d   :  { %8651 = vst.msk [vmem:[#allocation3 + $0x71] sm:$0xff] %vm8602_vm9, %v8592_v10  ;;  %v8593_v35 = vadd.f32 %v19431_v12, %v8572_v40  ;;  %v8504_v49 = vadd.f32 %v19417_v41, %v8444_v54  ;;  %v13726_v6 = vpop.f32.mrb[74].mxu1  ;;  %v8663_v27 = vld [vmem:[#allocation3 + $0x10] ss:$2 sm:$0xf] }
 0x66e   :  { %8704 = vst.msk [vmem:[#allocation7 + $0xc] sm:$0xf] %vm8700_vm3, %v8667_v37  ;;  %v8591_v39 = vadd.f32 %v19431_v12, %v8570_v28  ;;  %vm8522_vm4 = vcmp.ge.f32.partialorder %v8506_v55, 0.0  ;;  %v8538_v15 = vmul.f32 0.2, %v8506_v55  ;;  %v8507_v2 = vadd.f32 %v13726_v6, %v19417_v41  ;;  %v8447_v20 = vpop.f32.mrb[75].mxu1 }
 0x66f   :  { %8649 = vst.msk [vmem:[#allocation3 + $0x51] sm:$0xff] %vm8602_vm9, %v8590_v56  ;;  %8652 = vst.msk [vmem:[#allocation3 + $0x81] sm:$0xff] %vm8602_vm9, %v8593_v35  ;;  %vm8520_vm5 = vcmp.ge.f32.partialorder %v8504_v49, 0.0  ;;  %v8536_v61 = vmul.f32 0.2, %v8504_v49  ;;  %v8505_v8 = vadd.f32 %v19417_v41, %v8447_v20 }
 0x670   :  { %8702 = vst.msk [vmem:[#allocation7 + $0x4] sm:$0xf] %vm8700_vm3, %v8663_v27  ;;  %v8554_v17 = vsel %vm8522_vm4, %v8506_v55, %v8538_v15  ;;  %vm8523_vm6 = vcmp.ge.f32.partialorder %v8507_v2, 0.0  ;;  %v8539_v22 = vmul.f32 0.2, %v8507_v2  ;;  %vm9958_vm4 = vcmask 523264  }
 0x671   :  { %8650 = vst.msk [vmem:[#allocation3 + $0x61] sm:$0xff] %vm8602_vm9, %v8591_v39  ;;  %v8575_v58 = vmul.f32 %v19424_v53, %v8554_v17  ;;  %v8552_v63 = vsel %vm8520_vm5, %v8504_v49, %v8536_v61  ;;  %vm8521_vm7 = vcmp.ge.f32.partialorder %v8505_v8, 0.0  ;;  %v8537_v23 = vmul.f32 0.2, %v8505_v8 }
 0x672   :  { %v8665_v3 = vld [vmem:[#allocation3 + $0x20] ss:$2 sm:$0xf]  ;;  %v8573_v46 = vmul.f32 %v19424_v53, %v8552_v63  ;;  %v8555_v45 = vsel %vm8523_vm6, %v8507_v2, %v8539_v22  ;;  %v9023_v48 = vld [vmem:[#allocation3 + $0x11] ss:$2 sm:$0xf] }
 0x673   :  { %v8669_v57 = vld [vmem:[#allocation3 + $0x40] ss:$2 sm:$0xf]  ;;  %8703 = vst.msk [vmem:[#allocation7 + $0x8] sm:$0xf] %vm8700_vm3, %v8665_v3  ;;  %v8596_v30 = vadd.f32 %v19431_v12, %v8575_v58  ;;  %v8576_v44 = vmul.f32 %v19424_v53, %v8555_v45  ;;  %v8553_v19 = vsel %vm8521_vm7, %v8505_v8, %v8537_v23  ;;  %v13729_v34 = vpop.f32.mrb[76].mxu1 }
 0x674   :  { %8705 = vst.msk [vmem:[#allocation7 + $0x10] sm:$0xf] %vm8700_vm3, %v8669_v57  ;;  %v8594_v62 = vadd.f32 %v19431_v12, %v8573_v46  ;;  %v8574_v4 = vmul.f32 %v19424_v53, %v8553_v19  ;;  %v8510_v5 = vadd.f32 %v13729_v34, %v19417_v41  ;;  %v8460_v42 = vpop.f32.mrb[77].mxu1  ;;  %v8675_v14 = vld [vmem:[#allocation3 + $0x70] ss:$2 sm:$0xf] }
 0x675   :  { %v9027_v21 = vld [vmem:[#allocation3 + $0x31] ss:$2 sm:$0xf]  ;;  %8655 = vst.msk [vmem:[#allocation3 + $0xd1] sm:$0xff] %vm8602_vm9, %v8596_v30  ;;  %v8597_v60 = vadd.f32 %v19431_v12, %v8576_v44  ;;  %v8508_v18 = vadd.f32 %v19417_v41, %v8460_v42  ;;  %v13730_v31 = vpop.f32.mrb[78].mxu1  ;;  %vm10934_vm6 = vcmask 1041409  }
 0x676   :  { %v8671_v50 = vld [vmem:[#allocation3 + $0x50] ss:$2 sm:$0xf]  ;;  %8708 = vst.msk [vmem:[#allocation7 + $0x1c] sm:$0xf] %vm8700_vm3, %v8675_v14  ;;  %v8595_v59 = vadd.f32 %v19431_v12, %v8574_v4  ;;  %vm8526_vm8 = vcmp.ge.f32.partialorder %v8510_v5, 0.0  ;;  %v8511_v11 = vadd.f32 %v13730_v31, %v19417_v41 }
 0x677   :  { %8653 = vst.msk [vmem:[#allocation3 + $0xb1] sm:$0xff] %vm8602_vm9, %v8594_v62  ;;  %v8542_v47 = vmul.f32 0.2, %v8510_v5  ;;  %v8463_v24 = vpop.f32.mrb[79].mxu1  ;;  %v14682_v25 = vld [vmem:[#allocation7 + $0x4] ss:$8 sps:$4 sm:$0xff]  }
 0x678   :  { %8706 = vst.msk [vmem:[#allocation7 + $0x14] sm:$0xf] %vm8700_vm3, %v8671_v50  ;;  %vm8524_vm10 = vcmp.ge.f32.partialorder %v8508_v18, 0.0  ;;  %v8540_v36 = vmul.f32 0.2, %v8508_v18  ;;  %v8509_v32 = vadd.f32 %v19417_v41, %v8463_v24  ;;  %vm8527_vm11 = vcmp.ge.f32.partialorder %v8511_v11, 0.0 }
 0x679   :  { %8656 = vst.msk [vmem:[#allocation3 + $0xe1] sm:$0xff] %vm8602_vm9, %v8597_v60  ;;  %8654 = vst.msk [vmem:[#allocation3 + $0xc1] sm:$0xff] %vm8602_vm9, %v8595_v59  ;;  %v8558_v0 = vsel %vm8526_vm8, %v8510_v5, %v8542_v47  ;;  %v8543_v51 = vmul.f32 0.2, %v8511_v11  ;;  %v14689_v14 = vld [vmem:[%s20079_s5 + $0x8] sm:$0xff]   ;;  %vm11348_vm7 = vcmask 1024  }
 0x67a   :  { %9061 = vst.msk [vmem:[#allocation7 + $0x4] sm:$0xf] %vm8700_vm3, %v9023_v48  ;;  %9063 = vst.msk [vmem:[#allocation7 + $0xc] sm:$0xf] %vm8700_vm3, %v9027_v21  ;;  %v8579_v26 = vmul.f32 %v19424_v53, %v8558_v0  ;;  %v8556_v38 = vsel %vm8524_vm10, %v8508_v18, %v8540_v36  ;;  %vm8525_vm12 = vcmp.ge.f32.partialorder %v8509_v32, 0.0  ;;  %vm11350_vm8 = vcmask 82952  }
 0x67b   :  { %v8541_v9 = vmul.f32 0.2, %v8509_v32  ;;  %v8673_v1 = vld [vmem:[#allocation3 + $0x60] ss:$2 sm:$0xf]  ;;  %v8577_v33 = vmul.f32 %v19424_v53, %v8556_v38  ;;  %v8559_v7 = vsel %vm8527_vm11, %v8511_v11, %v8543_v51  ;;  %vm11361_vm10 = vcmask 74752  }
 0x67c   :  { %8707 = vst.msk [vmem:[#allocation7 + $0x18] sm:$0xf] %vm8700_vm3, %v8673_v1  ;;  %v19492_v41 = vld [vmem:[#allocation7] ss:$8 sps:$4 sm:$0xff]   ;;  %v8600_v10 = vadd.f32 %v19431_v12, %v8579_v26  ;;  %v8580_v40 = vmul.f32 %v19424_v53, %v8559_v7  ;;  %vm11376_vm11 = vcmask 9216  }
 0x67d   :  { %v8557_v52 = vsel %vm8525_vm12, %v8509_v32, %v8541_v9  ;;  %v9031_v29 = vld [vmem:[#allocation3 + $0x51] ss:$2 sm:$0xf]  ;;  %9060 = vst.msk [vmem:[#allocation7] sm:$0xf] %vm8700_vm3, %v9021_v43  ;;  %v8598_v55 = vadd.f32 %v19431_v12, %v8577_v33  ;;  %v14690_v11 = vld [vmem:[%s20079_s5 + $0x60] sm:$0xff]  }
 0x67e   :  { %v9035_v56 = vld [vmem:[#allocation3 + $0x71] ss:$2 sm:$0xf]  ;;  %v8677_v28 = vld [vmem:[#allocation3 + $0x80] ss:$2 sm:$0xf]  ;;  %v8578_v54 = vmul.f32 %v19424_v53, %v8557_v52  ;;  %v8601_v35 = vadd.f32 %v19431_v12, %v8580_v40 }
 0x67f   :  { %v8687_v37 = vld [vmem:[#allocation3 + $0xd0] ss:$2 sm:$0xf]  ;;  %8709 = vst.msk [vmem:[#allocation7 + $0x20] sm:$0xf] %vm8700_vm3, %v8677_v28 }
 0x680   :  { %8659 = vst.msk [vmem:[#allocation3 + $0x111] sm:$0xff] %vm8602_vm9, %v8600_v10  ;;  %v14683_v49 = vld [vmem:[#allocation7 + $0x14] ss:$8 sps:$4 sm:$0xff]   ;;  %v8689_v6 = vld [vmem:[#allocation3 + $0xe0] ss:$2 sm:$0xf]  ;;  %v8599_v27 = vadd.f32 %v19431_v12, %v8578_v54 }
 0x681   :  { %8714 = vst.msk [vmem:[#allocation7 + $0x34] sm:$0xf] %vm8700_vm3, %v8687_v37  ;;  %9065 = vst.msk [vmem:[#allocation7 + $0x14] sm:$0xf] %vm8700_vm3, %v9031_v29  ;;  %v8776_v15 = vpack.c.bf16 %v14683_v49, %v14682_v25  ;;  %v19512_v20 = vld [vmem:[#allocation7 + $0x8] ss:$8 sps:$4 sm:$0xff]  }
 0x682   :  { %8657 = vst.msk [vmem:[#allocation3 + $0xf1] sm:$0xff] %vm8602_vm9, %v8598_v55  ;;  %v8683_v53 = vld [vmem:[#allocation3 + $0xb0] ss:$2 sm:$0xf]  ;;  %8660 = vst.msk [vmem:[#allocation3 + $0x121] sm:$0xff] %vm8602_vm9, %v8601_v35  ;;  %v14695_v10 = vld [vmem:[%s20079_s5 + $0x68] sm:$0xff]  }
 0x683   :  { %9067 = vst.msk [vmem:[#allocation7 + $0x1c] sm:$0xf] %vm8700_vm3, %v9035_v56  ;;  %v8685_v39 = vld [vmem:[#allocation3 + $0xc0] ss:$2 sm:$0xf]  ;;  %13735 = vmatprep.mubr.msk.bf16.mxu1 %vm8602_vm9, %v8776_v15  ;;  %v14696_v35 = vld [vmem:[%s20079_s5 + $0x10] sm:$0xff]  }
 0x684   :  { %8715 = vst.msk [vmem:[#allocation7 + $0x38] sm:$0xf] %vm8700_vm3, %v8689_v6  ;;  %8712 = vst.msk [vmem:[#allocation7 + $0x2c] sm:$0xf] %vm8700_vm3, %v8683_v53  ;;  %v14688_v61 = vld [vmem:[#allocation7 + $0x10] ss:$8 sps:$4 sm:$0xff]  }
 0x685   :  { %v9025_v2 = vld [vmem:[#allocation3 + $0x21] ss:$2 sm:$0xf]  ;;  %8658 = vst.msk [vmem:[#allocation3 + $0x101] sm:$0xff] %vm8602_vm9, %v8599_v27  ;;  %v8745_v47 = vpack.c.bf16 %v14688_v61, %v19492_v41 }
 0x686   :  { %8713 = vst.msk [vmem:[#allocation7 + $0x30] sm:$0xf] %vm8700_vm3, %v8685_v39  ;;  %v9029_v12 = vld [vmem:[#allocation3 + $0x41] ss:$2 sm:$0xf] }
 0x687   :  { %9062 = vst.msk [vmem:[#allocation7 + $0x8] sm:$0xf] %vm8700_vm3, %v9025_v2  ;;  %v9033_v8 = vld [vmem:[#allocation3 + $0x61] ss:$2 sm:$0xf] }
 0x688   :  { %v9037_v17 = vld [vmem:[#allocation3 + $0x81] ss:$2 sm:$0xf]  ;;  %9064 = vst.msk [vmem:[#allocation7 + $0x10] sm:$0xf] %vm8700_vm3, %v9029_v12  ;;  %v14701_v12 = vld [vmem:[%s20079_s5 + $0x18] sm:$0xff]  }
 0x689   :  { %v19517_v22 = vld [vmem:[#allocation7 + $0x18] ss:$8 sps:$4 sm:$0xff]   ;;  %v8695_v58 = vld [vmem:[#allocation3 + $0x110] ss:$2 sm:$0xf] }
 0x68a   :  { %v9043_v63 = vld [vmem:[#allocation3 + $0xb1] ss:$2 sm:$0xf]  ;;  %v9041_v23 = vld [vmem:[#allocation3 + $0xa1] ss:$2 sm:$0xf]  ;;  %v8942_v52 = vpack.c.bf16 %v19517_v22, %v19512_v20 }
 0x68b   :  { %9066 = vst.msk [vmem:[#allocation7 + $0x18] sm:$0xf] %vm8700_vm3, %v9033_v8  ;;  %9068 = vst.msk [vmem:[#allocation7 + $0x20] sm:$0xf] %vm8700_vm3, %v9037_v17  ;;  %v14685_v45 = vld [vmem:[#allocation7 + $0x2c] ss:$8 sps:$4 sm:$0xff]  }
 0x68c   :  { %v8691_v3 = vld [vmem:[#allocation3 + $0xf0] ss:$2 sm:$0xf]  ;;  %8718 = vst.msk [vmem:[#allocation7 + $0x44] sm:$0xf] %vm8700_vm3, %v8695_v58  ;;  %v14702_v8 = vld [vmem:[%s20079_s5 + $0x40] sm:$0xff]  }
 0x68d   :  { %v9047_v46 = vld [vmem:[#allocation3 + $0xd1] ss:$2 sm:$0xf]  ;;  %8716 = vst.msk [vmem:[#allocation7 + $0x3c] sm:$0xf] %vm8700_vm3, %v8691_v3  ;;  %v14707_v22 = vld [vmem:[%s20079_s5 + $0x48] sm:$0xff]  }
 0x68e   :  { %v8693_v57 = vld [vmem:[#allocation3 + $0x100] ss:$2 sm:$0xf]  ;;  %9071 = vst.msk [vmem:[#allocation7 + $0x2c] sm:$0xf] %vm8700_vm3, %v9043_v63  ;;  %v14708_v63 = vld [vmem:[%s20079_s5 + $0x70] sm:$0xff]  }
 0x68f   :  { %9073 = vst.msk [vmem:[#allocation7 + $0x34] sm:$0xf] %vm8700_vm3, %v9047_v46  ;;  %8717 = vst.msk [vmem:[#allocation7 + $0x40] sm:$0xf] %vm8700_vm3, %v8693_v57  ;;  %v14691_v30 = vld [vmem:[#allocation7 + $0x28] ss:$8 sps:$4 sm:$0xff]  }
 0x690   :  { %9070 = vst.msk [vmem:[#allocation7 + $0x28] sm:$0xf] %vm8700_vm3, %v9041_v23  ;;  %v8697_v44 = vld [vmem:[#allocation3 + $0x120] ss:$2 sm:$0xf]  ;;  %v14713_v3 = vld [vmem:[%s20079_s5 + $0x78] sm:$0xff]  }
 0x691   :  { %8719 = vst.msk [vmem:[#allocation7 + $0x48] sm:$0xf] %vm8700_vm3, %v8697_v44  ;;  %v19528_v19 = vld [vmem:[#allocation7 + $0x30] ss:$8 sps:$4 sm:$0xff]   ;;  %v19536_v21 = vld [vmem:[#allocation7] ss:$8 sps:$4 sm:$0xff]  }
 0x692   :  { %v9045_v34 = vld [vmem:[#allocation3 + $0xc1] ss:$2 sm:$0xf]  ;;  %v9051_v62 = vld [vmem:[#allocation3 + $0xf1] ss:$2 sm:$0xf] }
 0x693   :  { %9072 = vst.msk [vmem:[#allocation7 + $0x30] sm:$0xf] %vm8700_vm3, %v9045_v34  ;;  %v9387_v4 = vld [vmem:[#allocation3 + $0x2] ss:$2 sm:$0xf] }
 0x694   :  { %v9055_v5 = vld [vmem:[#allocation3 + $0x111] ss:$2 sm:$0xf]  ;;  %v14686_v42 = vld [vmem:[#allocation7 + $0x3c] ss:$8 sps:$4 sm:$0xff]  }
 0x695   :  { %v9049_v48 = vld [vmem:[#allocation3 + $0xe1] ss:$2 sm:$0xf]  ;;  %9075 = vst.msk [vmem:[#allocation7 + $0x3c] sm:$0xf] %vm8700_vm3, %v9051_v62  ;;  %v8777_v18 = vpack.c.bf16 %v14686_v42, %v14685_v45  ;;  %v14720_v62 = vld [vmem:[%s20079_s5 + $0x50] sm:$0xff]  }
 0x696   :  { %9077 = vst.msk [vmem:[#allocation7 + $0x44] sm:$0xf] %vm8700_vm3, %v9055_v5  ;;  %v9407_v60 = vld [vmem:[#allocation3 + $0xa2] ss:$2 sm:$0xf] }
 0x697   :  { %v14692_v31 = vld [vmem:[#allocation7 + $0x38] ss:$8 sps:$4 sm:$0xff]   ;;  %9426 = vst.msk [vmem:[#allocation7] sm:$0xf] %vm8700_vm3, %v9387_v4  ;;  %13736 = vmatmul.mubr.msk.bf16.vlgmr.msra.gmra.mrb[80].mxu1 %vm8602_vm9, %v8777_v18  ;;  %v19554_v36 = vld [vmem:[#allocation7 + $0x4] ss:$8 sps:$4 sm:$0xff]  }
 0x698   :  { %v9053_v50 = vld [vmem:[#allocation3 + $0x101] ss:$2 sm:$0xf]  ;;  %9074 = vst.msk [vmem:[#allocation7 + $0x38] sm:$0xf] %vm8700_vm3, %v9049_v48  ;;  %13740 = vmatpush3.bf16.msra.mxu1 %v19409_v13  ;;  %13743 = vmatprep.mubr.msk.bf16.mxu1 %vm8602_vm9, %v8745_v47  ;;  %v8746_v41 = vpack.c.bf16 %v14692_v31, %v14691_v30 }
 0x699   :  { %v9057_v59 = vld [vmem:[#allocation3 + $0x121] ss:$2 sm:$0xf]  ;;  %13741 = vmatprep.subr.bf16.mxu1 %v14689_v14  ;;  %v19556_v32 = vld [vmem:[#allocation7 + $0x14] ss:$8 sps:$4 sm:$0xff]  }
 0x69a   :  { %v19545_v24 = vld [vmem:[#allocation7 + $0x40] ss:$8 sps:$4 sm:$0xff]   ;;  %v9389_v0 = vld [vmem:[#allocation3 + $0x12] ss:$2 sm:$0xf]  ;;  %v9206_v58 = vpack.c.bf16 %v19556_v32, %v19554_v36 }
 0x69b   :  { %9076 = vst.msk [vmem:[#allocation7 + $0x40] sm:$0xf] %vm8700_vm3, %v9053_v50  ;;  %9078 = vst.msk [vmem:[#allocation7 + $0x48] sm:$0xf] %vm8700_vm3, %v9057_v59  ;;  %v19551_v25 = vld [vmem:[#allocation7 + $0x28] ss:$8 sps:$4 sm:$0xff]   ;;  %v8943_v20 = vpack.c.bf16 %v19545_v24, %v19528_v19 }
 0x69c   :  { %9436 = vst.msk [vmem:[#allocation7 + $0x28] sm:$0xf] %vm8700_vm3, %v9407_v60  ;;  %v9393_v51 = vld [vmem:[#allocation3 + $0x32] ss:$2 sm:$0xf]  ;;  %13742 = vmatpush3.bf16.msra.mxu1 %v14689_v14  ;;  %v14714_v45 = vld [vmem:[%s20079_s5 + $0x20] sm:$0xff]  }
 0x69d   :  { %v9397_v43 = vld [vmem:[#allocation3 + $0x52] ss:$2 sm:$0xf]  ;;  %9427 = vst.msk [vmem:[#allocation7 + $0x4] sm:$0xf] %vm8700_vm3, %v9389_v0  ;;  %13747 = vmatprep.subr.bf16.mxu1 %v14690_v11  ;;  %v14719_v19 = vld [vmem:[%s20079_s5 + $0x28] sm:$0xff]  }
 0x69e   :  { %v9401_v26 = vld [vmem:[#allocation3 + $0x72] ss:$2 sm:$0xf]  ;;  %9429 = vst.msk [vmem:[#allocation7 + $0xc] sm:$0xf] %vm8700_vm3, %v9393_v51  ;;  %v14726_v18 = vld [vmem:[%s20079_s5 + $0x80] sm:$0xff]  }
 0x69f   :  { %9431 = vst.msk [vmem:[#allocation7 + $0x14] sm:$0xf] %vm8700_vm3, %v9397_v43  ;;  %9433 = vst.msk [vmem:[#allocation7 + $0x1c] sm:$0xf] %vm8700_vm3, %v9401_v26  ;;  %v19562_v13 = vld [vmem:[#allocation7 + $0x2c] ss:$8 sps:$4 sm:$0xff]  }
 0x6a0   :  { %v19564_v38 = vld [vmem:[#allocation7 + $0x3c] ss:$8 sps:$4 sm:$0xff]   ;;  %v9409_v9 = vld [vmem:[#allocation3 + $0xb2] ss:$2 sm:$0xf]  ;;  %v14731_v24 = vld [vmem:[%s20079_s5 + $0x88] sm:$0xff]  }
 0x6a1   :  { %9437 = vst.msk [vmem:[#allocation7 + $0x2c] sm:$0xf] %vm8700_vm3, %v9409_v9  ;;  %v14700_v1 = vld [vmem:[#allocation7 + $0x10] ss:$8 sps:$4 sm:$0xff]   ;;  %v9207_v23 = vpack.c.bf16 %v19564_v38, %v19562_v13  ;;  %v14734_v51 = vld [vmem:[%s20081_s7 + $0x60] sm:$0xff]   ;;  %v14735_v43 = vld [vmem:[%s20081_s7 + $0x68] sm:$0xff]  }
 0x6a2   :  { %v9413_v33 = vld [vmem:[#allocation3 + $0xd2] ss:$2 sm:$0xf]  ;;  %v9391_v28 = vld [vmem:[#allocation3 + $0x22] ss:$2 sm:$0xf]  ;;  %v9104_v61 = vpack.c.bf16 %v14700_v1, %v19536_v21 }
 0x6a3   :  { %v9417_v7 = vld [vmem:[#allocation3 + $0xf2] ss:$2 sm:$0xf]  ;;  %9439 = vst.msk [vmem:[#allocation7 + $0x34] sm:$0xf] %vm8700_vm3, %v9413_v33  ;;  %13744 = vmatmul.mubr.msk.bf16.vlgmr.msra.gmra.mrb[80].mxu1 %vm8602_vm9, %v8746_v41 }
 0x6a4   :  { %v9421_v40 = vld [vmem:[#allocation3 + $0x112] ss:$2 sm:$0xf]  ;;  %9441 = vst.msk [vmem:[#allocation7 + $0x3c] sm:$0xf] %vm8700_vm3, %v9417_v7  ;;  %13748 = vmatpush3.bf16.msra.mxu1 %v14690_v11  ;;  %13751 = vmatprep.mubr.msk.bf16.mxu1 %vm8602_vm9, %v8942_v52 }
 0x6a5   :  { %9443 = vst.msk [vmem:[#allocation7 + $0x44] sm:$0xf] %vm8700_vm3, %v9421_v40  ;;  %v14711_v29 = vld [vmem:[#allocation7 + $0x8] ss:$8 sps:$4 sm:$0xff]   ;;  %v14712_v56 = vld [vmem:[#allocation7 + $0x18] ss:$8 sps:$4 sm:$0xff]   ;;  %13749 = vmatprep.subr.bf16.mxu1 %v14695_v10 }
 0x6a6   :  { %v14704_v55 = vld [vmem:[#allocation7 + $0x38] ss:$8 sps:$4 sm:$0xff]   ;;  %9428 = vst.msk [vmem:[#allocation7 + $0x8] sm:$0xf] %vm8700_vm3, %v9391_v28  ;;  %v9308_v46 = vpack.c.bf16 %v14712_v56, %v14711_v29  ;;  %v14724_v42 = vld [vmem:[#allocation7 + $0x14] ss:$8 sps:$4 sm:$0xff]  }
 0x6a7   :  { %v9395_v54 = vld [vmem:[#allocation3 + $0x42] ss:$2 sm:$0xf]  ;;  %v14715_v6 = vld [vmem:[#allocation7 + $0x30] ss:$8 sps:$4 sm:$0xff]   ;;  %v9105_v17 = vpack.c.bf16 %v14704_v55, %v19551_v25 }
 0x6a8   :  { %v9399_v37 = vld [vmem:[#allocation3 + $0x62] ss:$2 sm:$0xf]  ;;  %9430 = vst.msk [vmem:[#allocation7 + $0x10] sm:$0xf] %vm8700_vm3, %v9395_v54  ;;  %13750 = vmatpush3.bf16.msra.mxu1 %v14695_v10  ;;  %v14725_v21 = vld [vmem:[%s20079_s5 + $0x58] sm:$0xff]  }
 0x6a9   :  { %v9403_v49 = vld [vmem:[#allocation3 + $0x82] ss:$2 sm:$0xf]  ;;  %9432 = vst.msk [vmem:[#allocation7 + $0x18] sm:$0xf] %vm8700_vm3, %v9399_v37  ;;  %13755 = vmatprep.subr.bf16.mxu1 %v14696_v35  ;;  %v14736_v26 = vld [vmem:[%s20081_s7 + $0x70] sm:$0xff]  }
 0x6aa   :  { %9434 = vst.msk [vmem:[#allocation7 + $0x20] sm:$0xf] %vm8700_vm3, %v9403_v49  ;;  %v14716_v27 = vld [vmem:[#allocation7 + $0x40] ss:$8 sps:$4 sm:$0xff]   ;;  %v14723_v14 = vld [vmem:[#allocation7 + $0x4] ss:$8 sps:$4 sm:$0xff]  }
 0x6ab   :  { %v9411_v53 = vld [vmem:[#allocation3 + $0xc2] ss:$2 sm:$0xf]  ;;  %v9309_v44 = vpack.c.bf16 %v14716_v27, %v14715_v6  ;;  %v9572_v60 = vpack.c.bf16 %v14724_v42, %v14723_v14  ;;  %v14727_v47 = vld [vmem:[#allocation7 + $0x2c] ss:$8 sps:$4 sm:$0xff]   ;;  %v14737_v13 = vld [vmem:[%s20081_s7 + $0x78] sm:$0xff]  }
 0x6ac   :  { %v9415_v39 = vld [vmem:[#allocation3 + $0xe2] ss:$2 sm:$0xf]  ;;  %9438 = vst.msk [vmem:[#allocation7 + $0x30] sm:$0xf] %vm8700_vm3, %v9411_v53 }
 0x6ad   :  { %v9419_v15 = vld [vmem:[#allocation3 + $0x102] ss:$2 sm:$0xf]  ;;  %9440 = vst.msk [vmem:[#allocation7 + $0x38] sm:$0xf] %vm8700_vm3, %v9415_v39 }
 0x6ae   :  { %v9423_v2 = vld [vmem:[#allocation3 + $0x122] ss:$2 sm:$0xf]  ;;  %9442 = vst.msk [vmem:[#allocation7 + $0x40] sm:$0xf] %vm8700_vm3, %v9419_v15 }
 0x6af   :  { %9444 = vst.msk [vmem:[#allocation7 + $0x48] sm:$0xf] %vm8700_vm3, %v9423_v2  ;;  %13752 = vmatmul.mubr.msk.bf16.vlgmr.msra.gmra.mrb[80].mxu1 %vm8602_vm9, %v8943_v20  ;;  %v14717_v57 = vld [vmem:[#allocation7] ss:$8 sps:$4 sm:$0xff]   ;;  %v14728_v31 = vld [vmem:[#allocation7 + $0x3c] ss:$8 sps:$4 sm:$0xff]  }
 0x6b0   :  { %13756 = vmatpush3.bf16.msra.mxu1 %v14696_v35  ;;  %13759 = vmatprep.mubr.msk.bf16.mxu1 %vm8602_vm9, %v9104_v61  ;;  %v14718_v30 = vld [vmem:[#allocation7 + $0x10] ss:$8 sps:$4 sm:$0xff]   ;;  %v9573_v11 = vpack.c.bf16 %v14728_v31, %v14727_v47  ;;  %vm9791_vm3 = vcmask 521216   ;;  %v12284_v1 = vld [vmem:[%s20080_s6] ss:$0 sm:$0xff] }
 0x6b1   :  { %13757 = vmatprep.subr.bf16.mxu1 %v14701_v12  ;;  %v9470_v34 = vpack.c.bf16 %v14718_v30, %v14717_v57  ;;  %v14729_v50 = vld [vmem:[#allocation7 + $0x8] ss:$8 sps:$4 sm:$0xff]   ;;  %v14730_v59 = vld [vmem:[#allocation7 + $0x18] ss:$8 sps:$4 sm:$0xff]   ;;  %9797 = vst.msk [vmem:[#allocation4 + $0x28] sm:$0x3f] %vm9791_vm3, %v20518_v16 }
 0x6b2   :  { %v9674_v25 = vpack.c.bf16 %v14730_v59, %v14729_v50  ;;  %9799 = vst.msk [vmem:[#allocation4 + $0x38] sm:$0x3f] %vm9791_vm3, %v20518_v16  ;;  %9800 = vst.msk [vmem:[#allocation4 + $0x40] sm:$0x3f] %vm9791_vm3, %v20518_v16  ;;  %v12285_v29 = vld [vmem:[%s20080_s6 + $0x1] ss:$0 sm:$0xff] }
 0x6b3   :  { %v14721_v4 = vld [vmem:[#allocation7 + $0x28] ss:$8 sps:$4 sm:$0xff]   ;;  %9803 = vst.msk [vmem:[#allocation4 + $0x58] sm:$0x3f] %vm9791_vm3, %v20518_v16  ;;  %9792 = vst.msk [vmem:[#allocation4] sm:$0x3f] %vm9791_vm3, %v20518_v16 }
 0x6b4   :  { %13758 = vmatpush3.bf16.msra.mxu1 %v14701_v12  ;;  %v14732_v36 = vld [vmem:[#allocation7 + $0x30] ss:$8 sps:$4 sm:$0xff]   ;;  %9793 = vst.msk [vmem:[#allocation4 + $0x8] sm:$0x3f] %vm9791_vm3, %v20518_v16  ;;  %9794 = vst.msk [vmem:[#allocation4 + $0x10] sm:$0x3f] %vm9791_vm3, %v20518_v16 }
 0x6b5   :  { %13763 = vmatprep.subr.bf16.mxu1 %v14702_v8  ;;  %v14722_v5 = vld [vmem:[#allocation7 + $0x38] ss:$8 sps:$4 sm:$0xff]   ;;  %9795 = vst.msk [vmem:[#allocation4 + $0x18] sm:$0x3f] %vm9791_vm3, %v20518_v16  ;;  %9796 = vst.msk [vmem:[#allocation4 + $0x20] sm:$0x3f] %vm9791_vm3, %v20518_v16 }
 0x6b6   :  { %v9471_v48 = vpack.c.bf16 %v14722_v5, %v14721_v4  ;;  %v14733_v32 = vld [vmem:[#allocation7 + $0x40] ss:$8 sps:$4 sm:$0xff]   ;;  %9798 = vst.msk [vmem:[#allocation4 + $0x30] sm:$0x3f] %vm9791_vm3, %v20518_v16  ;;  %9801 = vst.msk [vmem:[#allocation4 + $0x48] sm:$0x3f] %vm9791_vm3, %v20518_v16 }
 0x6b7   :  { %v9675_v0 = vpack.c.bf16 %v14733_v32, %v14732_v36  ;;  %9802 = vst.msk [vmem:[#allocation4 + $0x50] sm:$0x3f] %vm9791_vm3, %v20518_v16  ;;  %v12286_v35 = vld [vmem:[%s20080_s6 + $0x2] ss:$0 sm:$0xff] }
 0x6ba   :  { %v9826_v38 = vld [vmem:[#allocation4] ss:$2 sm:$0x3]  ;;  %v10175_v5 = vld [vmem:[#allocation4 + $0x1] ss:$2 sm:$0x3] }
 0x6bb   :  { %13760 = vmatmul.mubr.msk.bf16.vlgmr.msra.gmra.mrb[80].mxu1 %vm8602_vm9, %v9105_v17 }
 0x6bc   :  { %13764 = vmatpush3.bf16.msra.mxu1 %v14702_v8  ;;  %13767 = vmatprep.mubr.msk.bf16.mxu1 %vm8602_vm9, %v9206_v58 }
 0x6bd   :  { %13765 = vmatprep.subr.bf16.mxu1 %v14707_v22  ;;  %v9838_v9 = vld [vmem:[#allocation4 + $0x30] ss:$2 sm:$0x3]  ;;  %v10187_v42 = vld [vmem:[#allocation4 + $0x31] ss:$2 sm:$0x3] }
 0x6c0   :  { %13766 = vmatpush3.bf16.msra.mxu1 %v14707_v22 }
 0x6c1   :  { %13771 = vmatprep.subr.bf16.mxu1 %v14708_v63 }
 0x6c7   :  { %13768 = vmatmul.mubr.msk.bf16.vlgmr.msra.gmra.mrb[80].mxu1 %vm8602_vm9, %v9207_v23 }
 0x6c8   :  { %13772 = vmatpush3.bf16.msra.mxu1 %v14708_v63  ;;  %13775 = vmatprep.mubr.msk.bf16.mxu1 %vm8602_vm9, %v9308_v46 }
 0x6c9   :  { %13773 = vmatprep.subr.bf16.mxu1 %v14713_v3 }
 0x6cc   :  { %13774 = vmatpush3.bf16.msra.mxu1 %v14713_v3 }
 0x6cd   :  { %13779 = vmatprep.subr.bf16.mxu1 %v14714_v45 }
 0x6d3   :  { %13776 = vmatmul.mubr.msk.bf16.vlgmr.msra.gmra.mrb[80].mxu1 %vm8602_vm9, %v9309_v44 }
 0x6d4   :  { %13780 = vmatpush3.bf16.msra.mxu1 %v14714_v45  ;;  %13783 = vmatprep.mubr.msk.bf16.mxu1 %vm8602_vm9, %v9470_v34 }
 0x6d5   :  { %13781 = vmatprep.subr.bf16.mxu1 %v14719_v19 }
 0x6d8   :  { %13782 = vmatpush3.bf16.msra.mxu1 %v14719_v19 }
 0x6d9   :  { %13787 = vmatprep.subr.bf16.mxu1 %v14720_v62 }
 0x6df   :  { %13784 = vmatmul.mubr.msk.bf16.vlgmr.msra.gmra.mrb[80].mxu1 %vm8602_vm9, %v9471_v48 }
 0x6e0   :  { %13788 = vmatpush3.bf16.msra.mxu1 %v14720_v62  ;;  %13791 = vmatprep.mubr.msk.bf16.mxu1 %vm8602_vm9, %v9572_v60 }
 0x6e1   :  { %13789 = vmatprep.subr.bf16.mxu1 %v14725_v21 }
 0x6e4   :  { %13790 = vmatpush3.bf16.msra.mxu1 %v14725_v21 }
 0x6e5   :  { %13795 = vmatprep.subr.bf16.mxu1 %v14726_v18 }
 0x6eb   :  { %13792 = vmatmul.mubr.msk.bf16.vlgmr.msra.gmra.mrb[80].mxu1 %vm8602_vm9, %v9573_v11 }
 0x6ec   :  { %13796 = vmatpush3.bf16.msra.mxu1 %v14726_v18  ;;  %13799 = vmatprep.mubr.msk.bf16.mxu1 %vm8602_vm9, %v9674_v25 }
 0x6ed   :  { %13797 = vmatprep.subr.bf16.mxu1 %v14731_v24 }
 0x6f0   :  { %13798 = vmatpush3.bf16.msra.mxu1 %v14731_v24 }
 0x6f1   :  { %13803 = vmatprep.subr.bf16.mxu1 %v20518_v16 }
 0x6f7   :  { %13800 = vmatmul.mubr.msk.bf16.vlgmr.msra.gmra.mrb[80].mxu1 %vm8602_vm9, %v9675_v0  ;;  %vm9849_vm9 = vcmask 517120   ;;  %v14740_v0 = vld [vmem:[%s20081_s7] sm:$0xff]  }
 0x6f8   :  { %13811 = vmatprep.mubr.msk.bf16.mxu1 %vm14896_vm13, %v20518_v16  ;;  %13804 = vmatpush3.bf16.msra.mxu1 %v14734_v51  ;;  %9850 = vst.msk [vmem:[#allocation8] sm:$0x3] %vm9849_vm9, %v9826_v38  ;;  %9856 = vst.msk [vmem:[#allocation8 + $0xc] sm:$0x3] %vm9849_vm9, %v9838_v9 }
 0x6f9   :  { %13805 = vmatprep.subr.bf16.mxu1 %v20518_v16  ;;  %v10523_v9 = vld [vmem:[#allocation4 + $0x2] ss:$2 sm:$0x3] }
 0x6fc   :  { %13806 = vmatpush3.bf16.msra.mxu1 %v14735_v43 }
 0x6fd   :  { %13807 = vmatprep.subr.bf16.mxu1 %v20518_v16 }
 0x700   :  { %13808 = vmatpush3.bf16.msra.mxu1 %v14736_v26 }
 0x701   :  { %13809 = vmatprep.subr.bf16.mxu1 %v20518_v16 }
 0x704   :  { %13810 = vmatpush3.bf16.msra.mxu1 %v14737_v13 }
 0x705   :  { %13815 = vmatprep.subr.bf16.mxu1 %v20518_v16 }
 0x7ca   :  { %v13801_v33 = vpop.f32.mrb[80].mxu1 }
 0x7cb   :  { %v9759_v7 = vadd.f32 %v13801_v33, %v12284_v1  ;;  %v9733_v41 = vpop.f32.mrb[81].mxu1 }
 0x7cc   :  { %v9757_v10 = vadd.f32 %v12284_v1, %v9733_v41  ;;  %v13802_v40 = vpop.f32.mrb[82].mxu1  ;;  %v10535_v41 = vld [vmem:[#allocation4 + $0x32] ss:$2 sm:$0x3] }
 0x7cd   :  { %vm9763_vm14 = vcmp.ge.f32.partialorder %v9759_v7, 0.0  ;;  %v9767_v52 = vmul.f32 0.2, %v9759_v7  ;;  %v9760_v56 = vadd.f32 %v13802_v40, %v12284_v1  ;;  %v9736_v28 = vpop.f32.mrb[83].mxu1 }
 0x7ce   :  { %vm9761_vm15 = vcmp.ge.f32.partialorder %v9757_v10, 0.0  ;;  %v9765_v55 = vmul.f32 0.2, %v9757_v10  ;;  %v9758_v54 = vadd.f32 %v12284_v1, %v9736_v28 }
 0x7cf   :  { %v9771_v37 = vsel %vm9763_vm14, %v9759_v7, %v9767_v52  ;;  %vm9764_vm0 = vcmp.ge.f32.partialorder %v9760_v56, 0.0  ;;  %v9768_v49 = vmul.f32 0.2, %v9760_v56  ;;  %v14741_v7 = vld [vmem:[%s20081_s7 + $0x8] sm:$0xff]  }
 0x7d0   :  { %v9780_v6 = vmul.f32 %v12285_v29, %v9771_v37  ;;  %v9769_v27 = vsel %vm9761_vm15, %v9757_v10, %v9765_v55  ;;  %vm9762_vm1 = vcmp.ge.f32.partialorder %v9758_v54, 0.0  ;;  %v9766_v53 = vmul.f32 0.2, %v9758_v54  ;;  %v14742_v10 = vld [vmem:[%s20081_s7 + $0x10] sm:$0xff]  }
 0x7d1   :  { %v9778_v39 = vmul.f32 %v12285_v29, %v9769_v27  ;;  %v9772_v15 = vsel %vm9764_vm0, %v9760_v56, %v9768_v49  ;;  %v14746_v27 = vld [vmem:[%s20081_s7 + $0xc0] sm:$0xff]  }
 0x7d2   :  { %v9789_v2 = vadd.f32 %v12286_v35, %v9780_v6  ;;  %v9781_v20 = vmul.f32 %v12285_v29, %v9772_v15  ;;  %v9770_v12 = vsel %vm9762_vm1, %v9758_v54, %v9766_v53  ;;  %v14748_v15 = vld [vmem:[%s20081_s7 + $0xd0] sm:$0xff]  }
 0x7d3   :  { %v9787_v61 = vadd.f32 %v12286_v35, %v9778_v39  ;;  %v9779_v8 = vmul.f32 %v12285_v29, %v9770_v12  ;;  %v14747_v39 = vld [vmem:[%s20081_s7 + $0xc8] sm:$0xff]   ;;  %v14752_v12 = vld [vmem:[%s20081_s7 + $0x20] sm:$0xff]  }
 0x7d4   :  { %v9810_v17 = vcombine.high %v9789_v2, %v9789_v2  ;;  %9822 = vst.msk [vmem:[#allocation4 + $0x39] sm:$0xf] %vm9817_vm2, %v9789_v2  ;;  %v9790_v22 = vadd.f32 %v12286_v35, %v9781_v20  ;;  %v14749_v2 = vld [vmem:[%s20081_s7 + $0xd8] sm:$0xff]  }
 0x7d5   :  { %v9808_v58 = vcombine.high %v9787_v61, %v9787_v61  ;;  %9818 = vst.msk [vmem:[#allocation4 + $0x9] sm:$0xf] %vm9817_vm2, %v9787_v61  ;;  %v9788_v63 = vadd.f32 %v12286_v35, %v9779_v8  ;;  %v14743_v35 = vld [vmem:[%s20081_s7 + $0x18] sm:$0xff]   ;;  %v14753_v8 = vld [vmem:[%s20081_s7 + $0x28] sm:$0xff]  }
 0x7d6   :  { %9823 = vst.msk [vmem:[#allocation4 + $0x41] sm:$0xf] %vm9817_vm2, %v9810_v17  ;;  %v9811_v23 = vcombine.high %v9790_v22, %v9790_v22  ;;  %9824 = vst.msk [vmem:[#allocation4 + $0x49] sm:$0xf] %vm9817_vm2, %v9790_v22  ;;  %v14754_v17 = vld [vmem:[%s20081_s7 + $0x30] sm:$0xff]   ;;  %v14755_v22 = vld [vmem:[%s20081_s7 + $0x38] sm:$0xff]  }
 0x7d7   :  { %9819 = vst.msk [vmem:[#allocation4 + $0x11] sm:$0xf] %vm9817_vm2, %v9808_v58  ;;  %v9809_v3 = vcombine.high %v9788_v63, %v9788_v63  ;;  %9820 = vst.msk [vmem:[#allocation4 + $0x19] sm:$0xf] %vm9817_vm2, %v9788_v63  ;;  %v14758_v63 = vld [vmem:[%s20081_s7 + $0x80] sm:$0xff]  }
 0x7d8   :  { %9825 = vst.msk [vmem:[#allocation4 + $0x51] sm:$0xf] %vm9817_vm2, %v9811_v23 }
 0x7d9   :  { %9821 = vst.msk [vmem:[#allocation4 + $0x21] sm:$0xf] %vm9817_vm2, %v9809_v3  ;;  %v14759_v3 = vld [vmem:[%s20081_s7 + $0x88] sm:$0xff]  }
 0x7db   :  { %v9840_v46 = vld [vmem:[#allocation4 + $0x38] ss:$2 sm:$0x3]  ;;  %v10189_v4 = vld [vmem:[#allocation4 + $0x39] ss:$2 sm:$0x3] }
 0x7dc   :  { %v9828_v45 = vld [vmem:[#allocation4 + $0x8] ss:$2 sm:$0x3]  ;;  %9857 = vst.msk [vmem:[#allocation8 + $0xe] sm:$0x3] %vm9849_vm9, %v9840_v46  ;;  %v14760_v46 = vld [vmem:[%s20081_s7 + $0x90] sm:$0xff]  }
 0x7dd   :  { %v9842_v57 = vld [vmem:[#allocation4 + $0x40] ss:$2 sm:$0x3]  ;;  %v9844_v30 = vld [vmem:[#allocation4 + $0x48] ss:$2 sm:$0x3] }
 0x7de   :  { %9851 = vst.msk [vmem:[#allocation8 + $0x2] sm:$0x3] %vm9849_vm9, %v9828_v45  ;;  %9858 = vst.msk [vmem:[#allocation8 + $0x10] sm:$0x3] %vm9849_vm9, %v9842_v57  ;;  %v14761_v45 = vld [vmem:[%s20081_s7 + $0x98] sm:$0xff]  }
 0x7df   :  { %v9830_v44 = vld [vmem:[#allocation4 + $0x10] ss:$2 sm:$0x3]  ;;  %v9832_v19 = vld [vmem:[#allocation4 + $0x18] ss:$2 sm:$0x3] }
 0x7e0   :  { %9859 = vst.msk [vmem:[#allocation8 + $0x12] sm:$0x3] %vm9849_vm9, %v9844_v30  ;;  %9852 = vst.msk [vmem:[#allocation8 + $0x4] sm:$0x3] %vm9849_vm9, %v9830_v44  ;;  %v14764_v30 = vld [vmem:[%s20081_s7 + $0xe0] sm:$0xff]  }
 0x7e1   :  { %9853 = vst.msk [vmem:[#allocation8 + $0x6] sm:$0x3] %vm9849_vm9, %v9832_v19  ;;  %v9834_v34 = vld [vmem:[#allocation4 + $0x20] ss:$2 sm:$0x3]  ;;  %v14765_v19 = vld [vmem:[%s20081_s7 + $0xe8] sm:$0xff]  }
 0x7e2   :  { %v9846_v62 = vld [vmem:[#allocation4 + $0x50] ss:$2 sm:$0x3]  ;;  %9854 = vst.msk [vmem:[#allocation8 + $0x8] sm:$0x3] %vm9849_vm9, %v9834_v34 }
 0x7e3   :  { %9860 = vst.msk [vmem:[#allocation8 + $0x14] sm:$0x3] %vm9849_vm9, %v9846_v62  ;;  %v10177_v14 = vld [vmem:[#allocation4 + $0x9] ss:$2 sm:$0x3]  ;;  %v14766_v34 = vld [vmem:[%s20081_s7 + $0xf0] sm:$0xff]  }
 0x7e4   :  { %v10181_v48 = vld [vmem:[#allocation4 + $0x19] ss:$2 sm:$0x3]  ;;  %v10193_v21 = vld [vmem:[#allocation4 + $0x49] ss:$2 sm:$0x3] }
 0x7e5   :  { %v14831_v50 = vld.sshfl [vmem:[#allocation8 + $0xc] sm:$0xf pattern:$0x76325410] }
 0x7e6   :  { %v10179_v59 = vld [vmem:[#allocation4 + $0x11] ss:$2 sm:$0x3]  ;;  %v10183_v47 = vld [vmem:[#allocation4 + $0x21] ss:$2 sm:$0x3] }
 0x7e7   :  { %v14828_v60 = vld.sshfl [vmem:[#allocation8 + $0xe] sm:$0xf pattern:$0x76325410]  ;;  %10204 = vst.msk [vmem:[#allocation8 + $0xc] sm:$0x3] %vm9849_vm9, %v10187_v42 }
 0x7e8   :  { %v14829_v18 = vld.sshfl [vmem:[#allocation8 + $0x2] sm:$0xf pattern:$0x76325410]  ;;  %10205 = vst.msk [vmem:[#allocation8 + $0xe] sm:$0x3] %vm9849_vm9, %v10189_v4 }
 0x7e9   :  { %10207 = vst.msk [vmem:[#allocation8 + $0x12] sm:$0x3] %vm9849_vm9, %v10193_v21  ;;  %10199 = vst.msk [vmem:[#allocation8 + $0x2] sm:$0x3] %vm9849_vm9, %v10177_v14  ;;  %v9922_v32 = vcombine.low %v14829_v18, %v14828_v60  ;;  %v14767_v62 = vld [vmem:[%s20081_s7 + $0xf8] sm:$0xff]   ;;  %v14770_v4 = vld [vmem:[%s20081_s7 + $0x40] sm:$0xff]  }
 0x7ea   :  { %10201 = vst.msk [vmem:[#allocation8 + $0x6] sm:$0x3] %vm9849_vm9, %v10181_v48  ;;  %v14830_v31 = vld.sshfl [vmem:[#allocation8] sm:$0xf pattern:$0x76325410] }
 0x7eb   :  { %v10191_v11 = vld [vmem:[#allocation4 + $0x41] ss:$2 sm:$0x3]  ;;  %v10195_v24 = vld [vmem:[#allocation4 + $0x51] ss:$2 sm:$0x3]  ;;  %v9924_v51 = vpack.c.bf16 %v9922_v32, %v9922_v32  ;;  %v9886_v49 = vcombine.low %v14830_v31, %v14831_v50 }
 0x7ec   :  { %10198 = vst.msk [vmem:[#allocation8] sm:$0x3] %vm9849_vm9, %v10175_v5  ;;  %v19706_v25 = vld.sshfl [vmem:[#allocation8 + $0x4] sm:$0xf pattern:$0x76325410] }
 0x7ed   :  { %v19708_v36 = vld.sshfl [vmem:[#allocation8 + $0x10] sm:$0xf pattern:$0x76325410]  ;;  %10200 = vst.msk [vmem:[#allocation8 + $0x4] sm:$0x3] %vm9849_vm9, %v10179_v59  ;;  %13812 = vmatmul.mubr.msk.bf16.vlgmr.msra.gmra.mrb[84].mxu1 %vm9958_vm4, %v9924_v51  ;;  %v9888_v53 = vpack.c.bf16 %v9886_v49, %v9886_v49 }
 0x7ee   :  { %10202 = vst.msk [vmem:[#allocation8 + $0x8] sm:$0x3] %vm9849_vm9, %v10183_v47  ;;  %10206 = vst.msk [vmem:[#allocation8 + $0x10] sm:$0x3] %vm9849_vm9, %v10191_v11  ;;  %13816 = vmatpush3.bf16.msra.mxu1 %v14740_v0  ;;  %13823 = vmatprep.mubr.msk.bf16.mxu1 %vm14896_vm13, %v20518_v16  ;;  %v10094_v20 = vcombine.low %v19706_v25, %v19708_v36  ;;  %v14771_v42 = vld [vmem:[%s20081_s7 + $0x48] sm:$0xff]   ;;  %v14772_v21 = vld [vmem:[%s20081_s7 + $0x50] sm:$0xff]  }
 0x7ef   :  { %10208 = vst.msk [vmem:[#allocation8 + $0x14] sm:$0x3] %vm9849_vm9, %v10195_v24  ;;  %v10525_v43 = vld [vmem:[#allocation4 + $0xa] ss:$2 sm:$0x3]  ;;  %13817 = vmatprep.subr.bf16.mxu1 %v20518_v16  ;;  %v14773_v60 = vld [vmem:[%s20081_s7 + $0x58] sm:$0xff]  }
 0x7f0   :  { %v10529_v26 = vld [vmem:[#allocation4 + $0x1a] ss:$2 sm:$0x3]  ;;  %v10541_v38 = vld [vmem:[#allocation4 + $0x4a] ss:$2 sm:$0x3]  ;;  %v10096_v61 = vpack.c.bf16 %v10094_v20, %v10094_v20 }
 0x7f1   :  { %v10537_v13 = vld [vmem:[#allocation4 + $0x3a] ss:$2 sm:$0x3]  ;;  %v10527_v52 = vld [vmem:[#allocation4 + $0x12] ss:$2 sm:$0x3] }
 0x7f2   :  { %v19717_v1 = vld.sshfl [vmem:[#allocation8 + $0xe] sm:$0xf pattern:$0x76325410]  ;;  %13818 = vmatpush3.bf16.msra.mxu1 %v14741_v7  ;;  %v14777_v59 = vld [vmem:[%s20081_s7 + $0xa8] sm:$0xff]   ;;  %v14778_v24 = vld [vmem:[%s20081_s7 + $0xb0] sm:$0xff]  }
 0x7f3   :  { %v19720_v33 = vld.sshfl [vmem:[#allocation8 + $0x2] sm:$0xf pattern:$0x76325410]  ;;  %10553 = vst.msk [vmem:[#allocation8 + $0xe] sm:$0x3] %vm9849_vm9, %v10537_v13  ;;  %13819 = vmatprep.subr.bf16.mxu1 %v20518_v16 }
 0x7f4   :  { %10555 = vst.msk [vmem:[#allocation8 + $0x12] sm:$0x3] %vm9849_vm9, %v10541_v38  ;;  %10547 = vst.msk [vmem:[#allocation8 + $0x2] sm:$0x3] %vm9849_vm9, %v10525_v43  ;;  %v10338_v57 = vcombine.low %v19720_v33, %v19717_v1  ;;  %v14776_v31 = vld [vmem:[%s20081_s7 + $0xa0] sm:$0xff]   ;;  %v14779_v25 = vld [vmem:[%s20081_s7 + $0xb8] sm:$0xff]  }
 0x7f5   :  { %10549 = vst.msk [vmem:[#allocation8 + $0x6] sm:$0x3] %vm9849_vm9, %v10529_v26  ;;  %v14836_v40 = vld.sshfl [vmem:[#allocation8] sm:$0xf pattern:$0x76325410] }
 0x7f6   :  { %v10531_v29 = vld [vmem:[#allocation4 + $0x22] ss:$2 sm:$0x3]  ;;  %10546 = vst.msk [vmem:[#allocation8] sm:$0x3] %vm9849_vm9, %v10523_v9  ;;  %13820 = vmatpush3.bf16.msra.mxu1 %v14742_v10  ;;  %v10340_v44 = vpack.c.bf16 %v10338_v57, %v10338_v57  ;;  %v14783_v51 = vld [vmem:[%s20081_s7 + $0x108] sm:$0xff]  }
 0x7f7   :  { %v14837_v56 = vld.sshfl [vmem:[#allocation8 + $0xc] sm:$0xf pattern:$0x76325410]  ;;  %13821 = vmatprep.subr.bf16.mxu1 %v20518_v16  ;;  %v14784_v13 = vld [vmem:[%s20081_s7 + $0x110] sm:$0xff]   ;;  %v14789_v7 = vld [vmem:[%s20083_s9 + $0x48] sm:$0xff]  }
 0x7f8   :  { %v10539_v28 = vld [vmem:[#allocation4 + $0x42] ss:$2 sm:$0x3]  ;;  %10552 = vst.msk [vmem:[#allocation8 + $0xc] sm:$0x3] %vm9849_vm9, %v10535_v41  ;;  %v10234_v58 = vcombine.low %v14836_v40, %v14837_v56  ;;  %v14785_v38 = vld [vmem:[%s20081_s7 + $0x118] sm:$0xff]  }
 0x7f9   :  { %v14832_v55 = vld.sshfl [vmem:[#allocation8 + $0x4] sm:$0xf pattern:$0x76325410]  ;;  %v14782_v32 = vld [vmem:[%s20081_s7 + $0x100] sm:$0xff]  }
 0x7fa   :  { %v14833_v54 = vld.sshfl [vmem:[#allocation8 + $0x10] sm:$0xf pattern:$0x76325410]  ;;  %10548 = vst.msk [vmem:[#allocation8 + $0x4] sm:$0x3] %vm9849_vm9, %v10527_v52  ;;  %13822 = vmatpush3.bf16.msra.mxu1 %v14743_v35  ;;  %v10236_v23 = vpack.c.bf16 %v10234_v58, %v10234_v58 }
 0x7fb   :  { %v10543_v37 = vld [vmem:[#allocation4 + $0x52] ss:$2 sm:$0x3]  ;;  %10550 = vst.msk [vmem:[#allocation8 + $0x8] sm:$0x3] %vm9849_vm9, %v10531_v29  ;;  %v19746_v6 = vcombine.low %v14832_v55, %v14833_v54  ;;  %13827 = vmatprep.subr.bf16.mxu1 %v20518_v16  ;;  %v14788_v33 = vld [vmem:[%s20083_s9 + $0x40] sm:$0xff]  }
 0x7fc   :  { %10554 = vst.msk [vmem:[#allocation8 + $0x10] sm:$0x3] %vm9849_vm9, %v10539_v28  ;;  %10556 = vst.msk [vmem:[#allocation8 + $0x14] sm:$0x3] %vm9849_vm9, %v10543_v37  ;;  %v14790_v41 = vld [vmem:[%s20083_s9 + $0x50] sm:$0xff]   ;;  %v14791_v28 = vld [vmem:[%s20083_s9 + $0x58] sm:$0xff]  }
 0x7fd   :  { %13824 = vmatmul.mubr.msk.bf16.vlgmr.msra.gmra.mrb[88].mxu1 %vm9958_vm4, %v9888_v53  ;;  %v10444_v5 = vpack.c.bf16 %v19746_v6, %v19746_v6  ;;  %v14842_v47 = vld.sshfl [vmem:[#allocation8 + $0x2] sm:$0xf pattern:$0x76325410]  ;;  %v14792_v35 = vld [vmem:[%s20083_s9 + $0x60] sm:$0xff]   ;;  %v14793_v6 = vld [vmem:[%s20083_s9 + $0x68] sm:$0xff]  }
 0x7fe   :  { %13828 = vmatpush3.bf16.msra.mxu1 %v14746_v27  ;;  %13835 = vmatprep.mubr.msk.bf16.mxu1 %vm14896_vm13, %v20518_v16  ;;  %v14843_v11 = vld.sshfl [vmem:[#allocation8 + $0xe] sm:$0xf pattern:$0x76325410]  ;;  %v14794_v27 = vld [vmem:[%s20083_s9 + $0x70] sm:$0xff]  }
 0x7ff   :  { %13829 = vmatprep.subr.bf16.mxu1 %v20518_v16  ;;  %v10686_v36 = vcombine.low %v14842_v47, %v14843_v11  ;;  %v14795_v53 = vld [vmem:[%s20083_s9 + $0x78] sm:$0xff]  }
 0x801   :  { %v14840_v14 = vld.sshfl [vmem:[#allocation8] sm:$0xf pattern:$0x76325410]  ;;  %v10688_v0 = vpack.c.bf16 %v10686_v36, %v10686_v36 }
 0x802   :  { %13830 = vmatpush3.bf16.msra.mxu1 %v14747_v39  ;;  %v14844_v43 = vld.sshfl [vmem:[#allocation8 + $0x4] sm:$0xf pattern:$0x76325410] }
 0x803   :  { %13831 = vmatprep.subr.bf16.mxu1 %v20518_v16  ;;  %v14841_v48 = vld.sshfl [vmem:[#allocation8 + $0xc] sm:$0xf pattern:$0x76325410] }
 0x804   :  { %v10582_v18 = vcombine.low %v14840_v14, %v14841_v48  ;;  %v14845_v26 = vld.sshfl [vmem:[#allocation8 + $0x10] sm:$0xf pattern:$0x76325410] }
 0x805   :  { %v10790_v9 = vcombine.low %v14844_v43, %v14845_v26  ;;  %v12398_v43 = vld [vmem:[%s20082_s8 + $0x2] ss:$0 sm:$0xff] }
 0x806   :  { %13832 = vmatpush3.bf16.msra.mxu1 %v14748_v15  ;;  %v10584_v50 = vpack.c.bf16 %v10582_v18, %v10582_v18 }
 0x807   :  { %13833 = vmatprep.subr.bf16.mxu1 %v20518_v16  ;;  %v10792_v1 = vpack.c.bf16 %v10790_v9, %v10790_v9 }
 0x80a   :  { %13834 = vmatpush3.bf16.msra.mxu1 %v14749_v2 }
 0x80b   :  { %13839 = vmatprep.subr.bf16.mxu1 %v20518_v16 }
 0x80d   :  { %13836 = vmatmul.mubr.msk.bf16.vlgmr.msra.gmra.mrb[92].mxu1 %vm9958_vm4, %v10096_v61 }
 0x80e   :  { %13840 = vmatpush3.bf16.msra.mxu1 %v14752_v12  ;;  %13847 = vmatprep.mubr.msk.bf16.mxu1 %vm14896_vm13, %v20518_v16 }
 0x80f   :  { %13841 = vmatprep.subr.bf16.mxu1 %v20518_v16 }
 0x812   :  { %13842 = vmatpush3.bf16.msra.mxu1 %v14753_v8 }
 0x813   :  { %13843 = vmatprep.subr.bf16.mxu1 %v20518_v16 }
 0x816   :  { %13844 = vmatpush3.bf16.msra.mxu1 %v14754_v17 }
 0x817   :  { %13845 = vmatprep.subr.bf16.mxu1 %v20518_v16 }
 0x81a   :  { %13846 = vmatpush3.bf16.msra.mxu1 %v14755_v22 }
 0x81b   :  { %13851 = vmatprep.subr.bf16.mxu1 %v20518_v16 }
 0x81d   :  { %13848 = vmatmul.mubr.msk.bf16.vlgmr.msra.gmra.mrb[96].mxu1 %vm9958_vm4, %v10236_v23 }
 0x81e   :  { %13852 = vmatpush3.bf16.msra.mxu1 %v14758_v63  ;;  %13859 = vmatprep.mubr.msk.bf16.mxu1 %vm14896_vm13, %v20518_v16 }
 0x81f   :  { %13853 = vmatprep.subr.bf16.mxu1 %v20518_v16 }
 0x822   :  { %13854 = vmatpush3.bf16.msra.mxu1 %v14759_v3 }
 0x823   :  { %13855 = vmatprep.subr.bf16.mxu1 %v20518_v16 }
 0x826   :  { %13856 = vmatpush3.bf16.msra.mxu1 %v14760_v46 }
 0x827   :  { %13857 = vmatprep.subr.bf16.mxu1 %v20518_v16 }
 0x82a   :  { %13858 = vmatpush3.bf16.msra.mxu1 %v14761_v45 }
 0x82b   :  { %13863 = vmatprep.subr.bf16.mxu1 %v20518_v16 }
 0x82d   :  { %13860 = vmatmul.mubr.msk.bf16.vlgmr.msra.gmra.mrb[100].mxu1 %vm9958_vm4, %v10340_v44 }
 0x82e   :  { %13864 = vmatpush3.bf16.msra.mxu1 %v14764_v30  ;;  %13871 = vmatprep.mubr.msk.bf16.mxu1 %vm14896_vm13, %v20518_v16 }
 0x82f   :  { %13865 = vmatprep.subr.bf16.mxu1 %v20518_v16 }
 0x832   :  { %13866 = vmatpush3.bf16.msra.mxu1 %v14765_v19 }
 0x833   :  { %13867 = vmatprep.subr.bf16.mxu1 %v20518_v16 }
 0x836   :  { %13868 = vmatpush3.bf16.msra.mxu1 %v14766_v34 }
 0x837   :  { %13869 = vmatprep.subr.bf16.mxu1 %v20518_v16 }
 0x83a   :  { %13870 = vmatpush3.bf16.msra.mxu1 %v14767_v62 }
 0x83b   :  { %13875 = vmatprep.subr.bf16.mxu1 %v20518_v16 }
 0x83d   :  { %13872 = vmatmul.mubr.msk.bf16.vlgmr.msra.gmra.mrb[104].mxu1 %vm9958_vm4, %v10444_v5 }
 0x83e   :  { %13876 = vmatpush3.bf16.msra.mxu1 %v14770_v4  ;;  %13883 = vmatprep.mubr.msk.bf16.mxu1 %vm14896_vm13, %v20518_v16 }
 0x83f   :  { %13877 = vmatprep.subr.bf16.mxu1 %v20518_v16 }
 0x842   :  { %13878 = vmatpush3.bf16.msra.mxu1 %v14771_v42 }
 0x843   :  { %13879 = vmatprep.subr.bf16.mxu1 %v20518_v16 }
 0x846   :  { %13880 = vmatpush3.bf16.msra.mxu1 %v14772_v21 }
 0x847   :  { %13881 = vmatprep.subr.bf16.mxu1 %v20518_v16 }
 0x84a   :  { %13882 = vmatpush3.bf16.msra.mxu1 %v14773_v60 }
 0x84b   :  { %13887 = vmatprep.subr.bf16.mxu1 %v20518_v16 }
 0x84d   :  { %13884 = vmatmul.mubr.msk.bf16.vlgmr.msra.gmra.mrb[108].mxu1 %vm9958_vm4, %v10584_v50 }
 0x84e   :  { %13888 = vmatpush3.bf16.msra.mxu1 %v14776_v31  ;;  %13895 = vmatprep.mubr.msk.bf16.mxu1 %vm14896_vm13, %v20518_v16 }
 0x84f   :  { %13889 = vmatprep.subr.bf16.mxu1 %v20518_v16 }
 0x852   :  { %13890 = vmatpush3.bf16.msra.mxu1 %v14777_v59  ;;  %v12396_v59 = vld [vmem:[%s20082_s8] ss:$0 sm:$0xff] }
 0x853   :  { %13891 = vmatprep.subr.bf16.mxu1 %v20518_v16 }
 0x856   :  { %13892 = vmatpush3.bf16.msra.mxu1 %v14778_v24 }
 0x857   :  { %13893 = vmatprep.subr.bf16.mxu1 %v20518_v16 }
 0x85a   :  { %13894 = vmatpush3.bf16.msra.mxu1 %v14779_v25 }
 0x85b   :  { %13899 = vmatprep.subr.bf16.mxu1 %v20518_v16 }
 0x85d   :  { %13896 = vmatmul.mubr.msk.bf16.vlgmr.msra.gmra.mrb[112].mxu1 %vm9958_vm4, %v10688_v0  ;;  %v12397_v0 = vld [vmem:[%s20082_s8 + $0x1] ss:$0 sm:$0xff]  ;;  %s11396_s8 = sshll.u32 %s14900_s29, 4  ;;  %s11397_s8 = int_to_ptr.vmem [resolvable:$true] %s11396_s8 }
 0x85e   :  { %13900 = vmatpush3.bf16.msra.mxu1 %v14782_v32  ;;  %13907 = vmatprep.mubr.msk.bf16.mxu1 %vm14896_vm13, %v20518_v16 }
 0x85f   :  { %13901 = vmatprep.subr.bf16.mxu1 %v20518_v16 }
 0x862   :  { %13902 = vmatpush3.bf16.msra.mxu1 %v14783_v51 }
 0x863   :  { %13903 = vmatprep.subr.bf16.mxu1 %v20518_v16 }
 0x866   :  { %13904 = vmatpush3.bf16.msra.mxu1 %v14784_v13 }
 0x867   :  { %13905 = vmatprep.subr.bf16.mxu1 %v20518_v16 }
 0x86a   :  { %13906 = vmatpush3.bf16.msra.mxu1 %v14785_v38 }
 0x86b   :  { %13911 = vmatprep.subr.bf16.mxu1 %v20518_v16 }
 0x86d   :  { %13908 = vmatmul.mubr.msk.bf16.vlgmr.msra.gmra.mrb[116].mxu1 %vm9958_vm4, %v10792_v1 }
 0x86e   :  { %13927 = vmatprep.mubr.msk.bf16.mxu1 %vm14896_vm13, %v20518_v16  ;;  %13912 = vmatpush3.bf16.msra.mxu1 %v14788_v33 }
 0x86f   :  { %13913 = vmatprep.subr.bf16.mxu1 %v20518_v16 }
 0x872   :  { %13914 = vmatpush3.bf16.msra.mxu1 %v14789_v7 }
 0x873   :  { %13915 = vmatprep.subr.bf16.mxu1 %v20518_v16 }
 0x876   :  { %13916 = vmatpush3.bf16.msra.mxu1 %v14790_v41 }
 0x877   :  { %13917 = vmatprep.subr.bf16.mxu1 %v20518_v16 }
 0x87a   :  { %13918 = vmatpush3.bf16.msra.mxu1 %v14791_v28 }
 0x87b   :  { %13919 = vmatprep.subr.bf16.mxu1 %v20518_v16 }
 0x87e   :  { %13920 = vmatpush3.bf16.msra.mxu1 %v14792_v35  ;;  %v14797_v35 = vld [vmem:[%s20083_s9 + $0x8] sm:$0xff]  }
 0x87f   :  { %13921 = vmatprep.subr.bf16.mxu1 %v20518_v16 }
 0x882   :  { %13922 = vmatpush3.bf16.msra.mxu1 %v14793_v6  ;;  %v14799_v6 = vld [vmem:[%s20083_s9 + $0x18] sm:$0xff]  }
 0x883   :  { %13923 = vmatprep.subr.bf16.mxu1 %v20518_v16 }
 0x886   :  { %13924 = vmatpush3.bf16.msra.mxu1 %v14794_v27  ;;  %v14800_v27 = vld [vmem:[%s20083_s9 + $0x20] sm:$0xff]  }
 0x887   :  { %13925 = vmatprep.subr.bf16.mxu1 %v20518_v16 }
 0x88a   :  { %13926 = vmatpush3.bf16.msra.mxu1 %v14795_v53  ;;  %v14801_v53 = vld [vmem:[%s20083_s9 + $0x28] sm:$0xff]  }
 0x88b   :  { %13931 = vmatprep.subr.bf16.mxu1 %v20518_v16 }
 0x8c0   :  { %v9996_v10 = vpop.f32.mrb[84].mxu1 }
 0x8c1   :  { %v13813_v40 = vpop.f32.mrb[85].mxu1 }
 0x8c2   :  { %v9999_v52 = vpop.f32.mrb[86].mxu1 }
 0x8c3   :  { %v13814_v29 = vpop.f32.mrb[87].mxu1  ;;  %v14796_v52 = vld [vmem:[%s20083_s9] sm:$0xff]  }
 0x8d0   :  { %v10063_v56 = vpop.f32.mrb[88].mxu1 }
 0x8d1   :  { %v10064_v55 = vadd.f32 %v10063_v56, %v9996_v10  ;;  %v13825_v54 = vpop.f32.mrb[89].mxu1 }
 0x8d2   :  { %v10066_v37 = vpop.f32.mrb[90].mxu1 }
 0x8d3   :  { %v13826_v49 = vpop.f32.mrb[91].mxu1 }
 0x8d4   :  { %v14798_v49 = vld [vmem:[%s20083_s9 + $0x10] sm:$0xff]  }
 0x8e0   :  { %v10167_v39 = vpop.f32.mrb[92].mxu1 }
 0x8e1   :  { %v10173_v15 = vadd.f32 %v10167_v39, %v10064_v55  ;;  %v13837_v2 = vpop.f32.mrb[93].mxu1  ;;  %v14802_v39 = vld [vmem:[%s20083_s9 + $0x30] sm:$0xff]  }
 0x8e2   :  { %v10170_v20 = vpop.f32.mrb[94].mxu1  ;;  %v14803_v2 = vld [vmem:[%s20083_s9 + $0x38] sm:$0xff]  }
 0x8e3   :  { %v13838_v12 = vpop.f32.mrb[95].mxu1 }
 0x8e4   :  { %v14804_v12 = vld [vmem:[%s20083_s9 + $0x80] sm:$0xff]  }
 0x8f0   :  { %v10307_v61 = vpop.f32.mrb[96].mxu1 }
 0x8f1   :  { %v10313_v8 = vadd.f32 %v10307_v61, %v10173_v15  ;;  %v13849_v17 = vpop.f32.mrb[97].mxu1 }
 0x8f2   :  { %v10310_v22 = vpop.f32.mrb[98].mxu1  ;;  %v14806_v17 = vld [vmem:[%s20083_s9 + $0x90] sm:$0xff]  }
 0x8f3   :  { %v13850_v58 = vpop.f32.mrb[99].mxu1  ;;  %v14807_v22 = vld [vmem:[%s20083_s9 + $0x98] sm:$0xff]  }
 0x8f4   :  { %v14808_v58 = vld [vmem:[%s20083_s9 + $0xa0] sm:$0xff]  }
 0x900   :  { %v10411_v63 = vpop.f32.mrb[100].mxu1 }
 0x901   :  { %v10417_v23 = vadd.f32 %v10411_v63, %v10313_v8  ;;  %v13861_v3 = vpop.f32.mrb[101].mxu1  ;;  %v14805_v8 = vld [vmem:[%s20083_s9 + $0x88] sm:$0xff]  }
 0x902   :  { %v10414_v46 = vpop.f32.mrb[102].mxu1  ;;  %v14809_v63 = vld [vmem:[%s20083_s9 + $0xa8] sm:$0xff]   ;;  %v14811_v3 = vld [vmem:[%s20083_s9 + $0xb8] sm:$0xff]  }
 0x903   :  { %v13862_v45 = vpop.f32.mrb[103].mxu1  ;;  %v14812_v46 = vld [vmem:[%s20083_s9 + $0xc0] sm:$0xff]  }
 0x910   :  { %v10515_v57 = vpop.f32.mrb[104].mxu1 }
 0x911   :  { %v10521_v30 = vadd.f32 %v10515_v57, %v10417_v23  ;;  %v13873_v44 = vpop.f32.mrb[105].mxu1  ;;  %v14810_v23 = vld [vmem:[%s20083_s9 + $0xb0] sm:$0xff]   ;;  %v14813_v57 = vld [vmem:[%s20083_s9 + $0xc8] sm:$0xff]  }
 0x912   :  { %v10518_v19 = vpop.f32.mrb[106].mxu1  ;;  %v14815_v44 = vld [vmem:[%s20083_s9 + $0xd8] sm:$0xff]  }
 0x913   :  { %v13874_v34 = vpop.f32.mrb[107].mxu1  ;;  %v14816_v19 = vld [vmem:[%s20083_s9 + $0xe0] sm:$0xff]  }
 0x914   :  { %v14817_v34 = vld [vmem:[%s20083_s9 + $0xe8] sm:$0xff]  }
 0x920   :  { %v10655_v62 = vpop.f32.mrb[108].mxu1 }
 0x921   :  { %v10661_v4 = vadd.f32 %v10655_v62, %v10521_v30  ;;  %v13885_v5 = vpop.f32.mrb[109].mxu1  ;;  %v14814_v30 = vld [vmem:[%s20083_s9 + $0xd0] sm:$0xff]  }
 0x922   :  { %v10658_v42 = vpop.f32.mrb[110].mxu1  ;;  %v14818_v62 = vld [vmem:[%s20083_s9 + $0xf0] sm:$0xff]  }
 0x923   :  { %v13886_v14 = vpop.f32.mrb[111].mxu1 }
 0x930   :  { %v10759_v48 = vpop.f32.mrb[112].mxu1 }
 0x931   :  { %v10765_v21 = vadd.f32 %v10759_v48, %v10661_v4  ;;  %v13897_v60 = vpop.f32.mrb[113].mxu1  ;;  %v14819_v4 = vld [vmem:[%s20083_s9 + $0xf8] sm:$0xff]  }
 0x932   :  { %v10762_v18 = vpop.f32.mrb[114].mxu1 }
 0x933   :  { %v13898_v31 = vpop.f32.mrb[115].mxu1 }
 0x940   :  { %v10863_v50 = vpop.f32.mrb[116].mxu1 }
 0x941   :  { %v10869_v47 = vadd.f32 %v10863_v50, %v10765_v21  ;;  %v13909_v11 = vpop.f32.mrb[117].mxu1 }
 0x942   :  { %v10866_v24 = vpop.f32.mrb[118].mxu1 }
 0x943   :  { %v10875_v25 = vadd.f32 %v12396_v59, %v10869_v47  ;;  %v13910_v36 = vpop.f32.mrb[119].mxu1 }
 0x945   :  { %vm10876_vm5 = vcmp.ge.f32.partialorder %v10875_v25, 0.0  ;;  %v10877_v32 = vmul.f32 0.2, %v10875_v25 }
 0x947   :  { %v10878_v51 = vsel %vm10876_vm5, %v10875_v25, %v10877_v32  ;;  %v12479_v32 = vld [vmem:[%s20084_s10] ss:$0 sm:$0xff]  ;;  %s14898_s10 = smov 117  }
 0x948   :  { %v10884_v26 = vmul.f32 %v12397_v0, %v10878_v51 }
 0x94a   :  { %v10890_v13 = vadd.f32 %v12398_v43, %v10884_v26 }
 0x94c   :  { %v10892_v38 = vcombine.high %v10890_v13, %v10890_v13  ;;  %v10894_v9 = vpack.c.bf16 %v10890_v13, %v10890_v13 }
 0x94e   :  { %v10895_v1 = vpack.c.bf16 %v10892_v38, %v10892_v38  ;;  %v10931_v33 = vunpack.c.l.b16 %v10894_v9 }
 0x950   :  { %v10932_v7 = vunpack.c.l.b16 %v10895_v1  ;;  %v10933_v41 = vrot.slane %v10931_v33, 1  ;;  %v11135_v10 = vrot.slane %v10931_v33, 2  ;;  %v11246_v56 = vrot.slane %v10931_v33, 3 }
 0x952   :  { %v10935_v40 = vsel %vm10934_vm6, %v10932_v7, %v10933_v41  ;;  %v11136_v29 = vrot.slane %v10932_v7, 1  ;;  %v11247_v28 = vrot.slane %v10932_v7, 2  ;;  %v11026_v15 = vrot.slane %v10932_v7, 7 }
 0x953   :  { %v10936_v55 = vpack.c.b16 %v10935_v40, %v10935_v40 }
 0x954   :  { %v11137_v54 = vsel %vm10934_vm6, %v11136_v29, %v11135_v10  ;;  %v19938_v37 = vsel %vm10934_vm6, %v11247_v28, %v11246_v56  ;;  %v11027_v20 = vsel %vm10934_vm6, %v11026_v15, %v10931_v33 }
 0x955   :  { %13928 = vmatmul.mubr.bf16.vlgmr.msra.gmra.mrb[120].mxu1 %v10936_v55  ;;  %v11028_v61 = vpack.c.b16 %v11027_v20, %v11027_v20  ;;  %v11138_v45 = vpack.c.b16 %v11137_v54, %v11137_v54  ;;  %v11249_v5 = vpack.c.b16 %v19938_v37, %v19938_v37 }
 0x956   :  { %13932 = vmatpush3.bf16.msra.mxu1 %v14796_v52  ;;  %13947 = vmatprep.mubr.msk.bf16.mxu1 %vm14896_vm13, %v20518_v16 }
 0x957   :  { %13933 = vmatprep.subr.bf16.mxu1 %v20518_v16 }
 0x95a   :  { %13934 = vmatpush3.bf16.msra.mxu1 %v14797_v35 }
 0x95b   :  { %13935 = vmatprep.subr.bf16.mxu1 %v20518_v16 }
 0x95e   :  { %13936 = vmatpush3.bf16.msra.mxu1 %v14798_v49 }
 0x95f   :  { %13937 = vmatprep.subr.bf16.mxu1 %v20518_v16 }
 0x962   :  { %13938 = vmatpush3.bf16.msra.mxu1 %v14799_v6 }
 0x963   :  { %13939 = vmatprep.subr.bf16.mxu1 %v20518_v16 }
 0x966   :  { %13940 = vmatpush3.bf16.msra.mxu1 %v14800_v27 }
 0x967   :  { %13941 = vmatprep.subr.bf16.mxu1 %v20518_v16 }
 0x96a   :  { %13942 = vmatpush3.bf16.msra.mxu1 %v14801_v53 }
 0x96b   :  { %13943 = vmatprep.subr.bf16.mxu1 %v20518_v16 }
 0x96e   :  { %13944 = vmatpush3.bf16.msra.mxu1 %v14802_v39 }
 0x96f   :  { %13945 = vmatprep.subr.bf16.mxu1 %v20518_v16 }
 0x972   :  { %13946 = vmatpush3.bf16.msra.mxu1 %v14803_v2 }
 0x973   :  { %13951 = vmatprep.subr.bf16.mxu1 %v20518_v16 }
 0x975   :  { %13948 = vmatmul.mubr.bf16.vlgmr.msra.gmra.mrb[124].mxu1 %v11028_v61 }
 0x976   :  { %13952 = vmatpush3.bf16.msra.mxu1 %v14804_v12  ;;  %13967 = vmatprep.mubr.msk.bf16.mxu1 %vm14896_vm13, %v20518_v16 }
 0x977   :  { %13953 = vmatprep.subr.bf16.mxu1 %v20518_v16 }
 0x97a   :  { %13954 = vmatpush3.bf16.msra.mxu1 %v14805_v8 }
 0x97b   :  { %13955 = vmatprep.subr.bf16.mxu1 %v20518_v16 }
 0x97e   :  { %13956 = vmatpush3.bf16.msra.mxu1 %v14806_v17 }
 0x97f   :  { %13957 = vmatprep.subr.bf16.mxu1 %v20518_v16 }
 0x982   :  { %13958 = vmatpush3.bf16.msra.mxu1 %v14807_v22 }
 0x983   :  { %13959 = vmatprep.subr.bf16.mxu1 %v20518_v16 }
 0x986   :  { %13960 = vmatpush3.bf16.msra.mxu1 %v14808_v58 }
 0x987   :  { %13961 = vmatprep.subr.bf16.mxu1 %v20518_v16 }
 0x98a   :  { %13962 = vmatpush3.bf16.msra.mxu1 %v14809_v63 }
 0x98b   :  { %13963 = vmatprep.subr.bf16.mxu1 %v20518_v16 }
 0x98e   :  { %13964 = vmatpush3.bf16.msra.mxu1 %v14810_v23 }
 0x98f   :  { %13965 = vmatprep.subr.bf16.mxu1 %v20518_v16 }
 0x992   :  { %13966 = vmatpush3.bf16.msra.mxu1 %v14811_v3 }
 0x993   :  { %13971 = vmatprep.subr.bf16.mxu1 %v20518_v16 }
 0x995   :  { %13968 = vmatmul.mubr.bf16.vlgmr.msra.gmra.mrb[128].mxu1 %v11138_v45 }
 0x996   :  { %13972 = vmatpush3.bf16.msra.mxu1 %v14812_v46  ;;  %13987 = vmatprep.mubr.msk.bf16.mxu1 %vm14896_vm13, %v20518_v16 }
 0x997   :  { %13973 = vmatprep.subr.bf16.mxu1 %v20518_v16 }
 0x99a   :  { %13974 = vmatpush3.bf16.msra.mxu1 %v14813_v57 }
 0x99b   :  { %13975 = vmatprep.subr.bf16.mxu1 %v20518_v16 }
 0x99e   :  { %13976 = vmatpush3.bf16.msra.mxu1 %v14814_v30 }
 0x99f   :  { %13977 = vmatprep.subr.bf16.mxu1 %v20518_v16 }
 0x9a2   :  { %13978 = vmatpush3.bf16.msra.mxu1 %v14815_v44 }
 0x9a3   :  { %13979 = vmatprep.subr.bf16.mxu1 %v20518_v16 }
 0x9a6   :  { %13980 = vmatpush3.bf16.msra.mxu1 %v14816_v19 }
 0x9a7   :  { %13981 = vmatprep.subr.bf16.mxu1 %v20518_v16 }
 0x9aa   :  { %13982 = vmatpush3.bf16.msra.mxu1 %v14817_v34 }
 0x9ab   :  { %13983 = vmatprep.subr.bf16.mxu1 %v20518_v16 }
 0x9ae   :  { %13984 = vmatpush3.bf16.msra.mxu1 %v14818_v62 }
 0x9af   :  { %13985 = vmatprep.subr.bf16.mxu1 %v20518_v16 }
 0x9b2   :  { %13986 = vmatpush3.bf16.msra.mxu1 %v14819_v4 }
 0x9b5   :  { %13988 = vmatmul.mubr.bf16.vlgmr.msra.gmra.mrb[132].mxu1 %v11249_v5 }
 0xa28   :  { %v11020_v42 = vpop.f32.mrb[120].mxu1 }
 0xa29   :  { %v13929_v14 = vpop.f32.mrb[121].mxu1 }
 0xa2a   :  { %v11023_v48 = vpop.f32.mrb[122].mxu1 }
 0xa2b   :  { %v13930_v21 = vpop.f32.mrb[123].mxu1 }
 0xa48   :  { %v11112_v60 = vpop.f32.mrb[124].mxu1 }
 0xa49   :  { %v11113_v18 = vadd.f32 %v11112_v60, %v11020_v42  ;;  %v13949_v31 = vpop.f32.mrb[125].mxu1 }
 0xa4a   :  { %v11115_v50 = vpop.f32.mrb[126].mxu1 }
 0xa4b   :  { %v13950_v59 = vpop.f32.mrb[127].mxu1 }
 0xa68   :  { %v11222_v47 = vpop.f32.mrb[128].mxu1 }
 0xa69   :  { %v11228_v11 = vadd.f32 %v11222_v47, %v11113_v18  ;;  %v13969_v24 = vpop.f32.mrb[129].mxu1 }
 0xa6a   :  { %v11225_v25 = vpop.f32.mrb[130].mxu1 }
 0xa6b   :  { %v13970_v36 = vpop.f32.mrb[131].mxu1 }
 0xa88   :  { %v11333_v16 = vpop.f32.mrb[132].mxu1 }
 0xa89   :  { %v11339_v0 = vadd.f32 %v11333_v16, %v11228_v11  ;;  %v13989_v51 = vpop.f32.mrb[133].mxu1 }
 0xa8a   :  { %v11336_v43 = vpop.f32.mrb[134].mxu1 }
 0xa8b   :  { %v11347_v26 = vadd.f32 %v12479_v32, %v11339_v0  ;;  %v13990_v13 = vpop.f32.mrb[135].mxu1 }
 0xa8d   :  { %11349 = vst.msk [vmem:[%s20085_s11] sm:$0x3] %vm11348_vm7, %v11347_v26  ;;  %v11351_v38 = vsel %vm11350_vm8, %v11347_v26, -inf  ;;  %s14899_s11 = smov [#allocation9]  }
 0xa8e   :  { %11352 = vmax.xlane.f32.xlu0 %v11351_v38  ;;  %s11386_s3 = sshll.u32 %s14899_s11, 4  ;;  %s11387_s3 = int_to_ptr.vmem [resolvable:$true] %s11386_s3 }
 0xa8f   :  { %s14846_s0 = scalar_lea.vmem %s11387_s3, 32  ;;  %p14851_p1 = scmp.lt.s32.totalorder %s11387_s3, %s11387_s3 }
 0xa90   :  { %p14847_p0 = scmp.ne.s32.totalorder %s11387_s3, %s14846_s0  ;;  %p14852_p2 = scmp.lt.s32.totalorder %s14846_s0, %s14846_s0 }
 0xa92   :  { %p14853_p3 = por %p14852_p2, %p14851_p1 }
 0xa94   :  { %p14854_p4 = pnand %p14853_p3, %p14847_p0 }
 0xb1b   :  { %v11353_v9 = vpop.xlane.xlu0 %11352 }
 0xb1c   :  { %v11354_v1 = vsub.f32 %v11347_v26, %v11353_v9 }
 0xb1e   :  { %v11355_v33 = vmul.f32 1.442695, %v11354_v1 }
 0xb20   :  { %14820 = vpow2.f32 %v11355_v33 }
 0xb2a   :  { %v14821_v7 = vpop.eup %14820 }
 0xb2b   :  { %11358 = vrot.lane.b32.xlu0 %v14821_v7, %s14897_s28 }
 0xb9d   :  { %v11359_v41 = vpop.permute.xlu0 %11358 }
 0xb9e   :  { %v11362_v10 = vsel %vm11361_vm10, %v11359_v41, 0.0 }
 0xb9f   :  { %11363 = vadd.xlane.f32.xlu1 %v11362_v10 }
 0xc2c   :  { %v11364_v40 = vpop.xlane.xlu1 %11363 }
 0xc2d   :  { %14822 = vrcp.f32 %v11364_v40 }
 0xc37   :  { %v14823_v52 = vpop.eup %14822 }
 0xc38   :  { %v11366_v29 = vmul.f32 %v14823_v52, %v14821_v7 }
 0xc3a   :  { %11368 = vrot.lane.b32.xlu1 %v11366_v29, %s14897_s28 }
 0xc3e   :  { %11373 = vrot.lane.b32.xlu1 %v11347_v26, %s14898_s10 }
 0xcac   :  { %v11369_v56 = vpop.permute.xlu1 %11368 }
 0xcad   :  { %11371 = vst.msk [vmem:[#allocation9] sm:$0x3] %vm11361_vm10, %v11369_v56 }
 0xcae   :  { %14857 = shalt.err (!%p14854_p4)
}
 0xcaf   :  { %s14858_s15 = scalar_lea.hbm %s20086_s12, 32 }
 0xcb0   :  { %p14859_p5 = scmp.ne.s32.totalorder %s20086_s12, %s14858_s15  ;;  %p14862_p6 = scmp.lt.u32.totalorder %s14858_s15, %s20086_s12 }
 0xcb2   :  { %p14864_p7 = pnand %p14862_p6, %p14859_p5 }
 0xcb4   :  { %14867 = shalt.err (!%p14864_p7)
}
 0xcb5   :  { %11389 = dma.vmem_to_hbm [thread:$0]  %s11387_s3, 32, %s20086_s12, [#allocation10]   ;;  %v11374_v28 = vpop.permute.xlu1 %11373 }
 0xcb6   :  { %11377 = vst.msk [vmem:[#allocation11] sm:$0x3] %vm11376_vm11, %v11374_v28  ;;  %s14868_s6 = scalar_lea.vmem %s11397_s8, 32  ;;  %p14873_p9 = scmp.lt.s32.totalorder %s11397_s8, %s11397_s8 }
 0xcb7   :  { %p14869_p8 = scmp.ne.s32.totalorder %s11397_s8, %s14868_s6  ;;  %p14874_p10 = scmp.lt.s32.totalorder %s14868_s6, %s14868_s6 }
 0xcb9   :  { %p14875_p11 = por %p14874_p10, %p14873_p9 }
 0xcbb   :  { %p14876_p12 = pnand %p14875_p11, %p14869_p8 }
 0xcbd   :  { %14879 = shalt.err (!%p14876_p12)
}
 0xcbe   :  { %s14880_s20 = scalar_lea.hbm %s20087_s13, 32 }
 0xcbf   :  { %p14881_p13 = scmp.ne.s32.totalorder %s20087_s13, %s14880_s20  ;;  %p14884_p0 = scmp.lt.u32.totalorder %s14880_s20, %s20087_s13 }
 0xcc1   :  { %p14886_p1 = pnand %p14884_p0, %p14881_p13 }
 0xcc3   :  { %14889 = shalt.err (!%p14886_p1)
}
 0xcc4   :  { %11399 = dma.vmem_to_hbm [thread:$0]  %s11397_s8, 32, %s20087_s13, [#allocation12]  }
 0xcc5   :  { %14890 = dma.done.wait [#allocation10], 32  }
 0xcc6   :  { %14891 = vsyncadd [#allocation10], 4294967264 }
 0xcc7   :  { %14892 = dma.done.wait [#allocation12], 32  }
 0xcc8   :  { %14893 = vsyncadd [#allocation12], 4294967264 }
 0xcc9   :  { %11408 = vsyncpa [#allocation10], 1 }
 0xcca   :  { %11409 = vsyncpa [#allocation12], 1 }

</bundles_post_ra>
